<compile_context>
chip_gen: v7x
topology: tpu7x:2x2x1
jax: 0.10.0
libtpu: 0.0.40
codegen_flags: <defaults>
</compile_context>

<pallas_src>
import functools

import jax
import jax.numpy as jnp
from jax.experimental import pallas as pl
from jax.experimental.pallas import tpu as pltpu


def _round_up(x, m):
    return (x + m - 1) // m * m


def _vmem_limit_bytes():
    # generation-aware scoped-VMEM limit (v5e/v6e: 128 MiB physical, v7x: 64 MiB)
    try:
        cap = int(pltpu.get_tpu_info().vmem_capacity_bytes)
    except Exception:
        cap = 64 * 1024 * 1024
    return int(min(cap * 3 // 4, 100 * 1024 * 1024))


_VMEM_LIMIT = _vmem_limit_bytes()


# ----------------------------------------------------------------------------
# Fused conv (tap accumulation) + InstanceNorm (+ReLU / +residual) kernels
# ----------------------------------------------------------------------------
def _conv_in_body(x_ref, w_ref, *, offsets, wp, ho, wo, eps):
    # x_ref: (1, Mx, K) bf16  flattened (padded) input, row pitch wp
    # w_ref: (T, K, Cout) bf16  per-tap weights
    # valid output rows sit at p = h*wp + w (w < wo); other rows are cheap overcompute.
    m_over = (ho - 1) * wp + wo
    acc = None
    for t, off in enumerate(offsets):
        part = jnp.dot(x_ref[0, off:off + m_over, :], w_ref[t],
                       preferred_element_type=jnp.float32)
        acc = part if acc is None else acc + part
    cout = acc.shape[-1]
    # InstanceNorm2d(affine=False, eps) statistics over the ho*wo valid rows only.
    s = jnp.zeros((1, cout), jnp.float32)
    ss = jnp.zeros((1, cout), jnp.float32)
    for h in range(ho):
        blk = acc[h * wp:h * wp + wo, :]
        s = s + jnp.sum(blk, axis=0, keepdims=True)
        ss = ss + jnp.sum(blk * blk, axis=0, keepdims=True)
    inv_cnt = 1.0 / float(ho * wo)
    mean = s * inv_cnt
    var = jnp.maximum(ss * inv_cnt - mean * mean, 0.0)
    return (acc - mean) * jax.lax.rsqrt(var + eps)


def _conv_in_kernel(x_ref, w_ref, o_ref, *, offsets, wp, ho, wo, relu, eps=1e-5):
    y = _conv_in_body(x_ref, w_ref, offsets=offsets, wp=wp, ho=ho, wo=wo, eps=eps)
    if relu:
        y = jnp.maximum(y, 0.0)
    o_ref[0] = y


def _conv_in_res_kernel(x_ref, w_ref, r_ref, o_ref, *, offsets, wp, ho, wo, eps=1e-5):
    # conv + IN + residual add (MUNIT ResBlock tail, no activation)
    y = _conv_in_body(x_ref, w_ref, offsets=offsets, wp=wp, ho=ho, wo=wo, eps=eps)
    o_ref[0] = y + r_ref[0]


def _fused_conv_in(x_flat, w_taps, *, offsets, wp, ho, wo, relu, residual=None):
    # x_flat: (N, Mx, K) bf16 ; w_taps: (T, K, Cout) bf16 ; residual: (N, Mo, Cout) f32|None
    n, mx, k = x_flat.shape
    t, _, cout = w_taps.shape
    m_over = (ho - 1) * wp + wo
    out_shape = jax.ShapeDtypeStruct((n, m_over, cout), jnp.float32)
    cparams = pltpu.CompilerParams(dimension_semantics=("parallel",),
                                   vmem_limit_bytes=_VMEM_LIMIT)
    x_spec = pl.BlockSpec((1, mx, k), lambda i: (i, 0, 0))
    w_spec = pl.BlockSpec((t, k, cout), lambda i: (0, 0, 0))   # grid-invariant, VMEM resident
    o_spec = pl.BlockSpec((1, m_over, cout), lambda i: (i, 0, 0))

    if residual is None:
        kern = functools.partial(_conv_in_kernel, offsets=offsets, wp=wp,
                                 ho=ho, wo=wo, relu=relu)
        return pl.pallas_call(
            kern, out_shape=out_shape, grid=(n,),
            in_specs=[x_spec, w_spec], out_specs=o_spec,
            compiler_params=cparams)(x_flat, w_taps)

    kern = functools.partial(_conv_in_res_kernel, offsets=offsets, wp=wp, ho=ho, wo=wo)
    r_spec = pl.BlockSpec((1, m_over, cout), lambda i: (i, 0, 0))
    return pl.pallas_call(
        kern, out_shape=out_shape, grid=(n,),
        in_specs=[x_spec, w_spec, r_spec], out_specs=o_spec,
        compiler_params=cparams)(x_flat, w_taps, residual)


# ----------------------------------------------------------------------------
# Layer wrappers (plain-JAX layout plumbing only: pad / cast / reshape / slice)
# ----------------------------------------------------------------------------
def head_conv7x7_in_relu(x, w, cout_pad=128):
    """7x7, stride 1, pad 3, Cin=3 head: small bf16 im2col + fused matmul+IN+ReLU."""
    n, h, wd, cin = x.shape
    kh, kw, _, cout = w.shape
    pad = 3
    ho, wo = h, wd                                  # stride 1, pad 3 keeps spatial size
    xp = jnp.pad(x, ((0, 0), (pad, pad), (pad, pad), (0, 0))).astype(jnp.bfloat16)
    cols = []
    for i in range(kh):
        for j in range(kw):
            cols.append(xp[:, i:i + ho, j:j + wo, :])
    patches = jnp.stack(cols, axis=3).reshape(n, ho * wo, kh * kw * cin)
    k = kh * kw * cin
    k_pad = _round_up(k, 128)
    patches = jnp.pad(patches, ((0, 0), (0, 0), (0, k_pad - k)))
    wf = jnp.pad(w.reshape(k, cout), ((0, k_pad - k), (0, cout_pad - cout)))
    wf = wf.astype(jnp.bfloat16).reshape(1, k_pad, cout_pad)
    m = ho * wo
    y = _fused_conv_in(patches, wf, offsets=(0,), wp=m, ho=1, wo=m, relu=True)
    return y.reshape(n, ho, wo, cout_pad)


def strided_conv4x4_in_relu(x, w, cin_real, cout_pad):
    """4x4, stride 2, pad 1 conv (zero pad) + IN + ReLU via space-to-depth -> 2x2 stride-1
    conv with in-kernel tap accumulation.  x carries 128-padded channels."""
    n, h, wd, cin_pad = x.shape
    kh, kw, _, cout = w.shape
    pad, stride = 1, 2
    hp, wsp = h + 2 * pad, wd + 2 * pad
    assert hp % 2 == 0 and wsp % 2 == 0
    ho = (hp - kh) // stride + 1
    wo = (wsp - kw) // stride + 1
    hs, ws = hp // 2, wsp // 2
    xp = jnp.pad(x, ((0, 0), (pad, pad), (pad, pad), (0, 0))).astype(jnp.bfloat16)
    # space-to-depth: channel index = (pi*2 + pj)*cin_pad + c
    xs = xp.reshape(n, hs, 2, ws, 2, cin_pad).transpose(0, 1, 3, 2, 4, 5)
    xs = xs.reshape(n, hs * ws, 4 * cin_pad)
    # weights: zero-pad Cin/Cout, then rearrange 4x4/stride-2 -> (2x2 taps, 4*Cin)
    wf = jnp.pad(w, ((0, 0), (0, 0), (0, cin_pad - cin_real), (0, cout_pad - cout)))
    wf = wf.reshape(2, 2, 2, 2, cin_pad, cout_pad)            # (i2, pi, j2, pj, c, o)
    wf = wf.transpose(0, 2, 1, 3, 4, 5).reshape(4, 4 * cin_pad, cout_pad)
    wf = wf.astype(jnp.bfloat16)
    offsets = tuple(i2 * ws + j2 for i2 in range(2) for j2 in range(2))
    y = _fused_conv_in(xs, wf, offsets=offsets, wp=ws, ho=ho, wo=wo, relu=True)
    m_over = (ho - 1) * ws + wo
    y = jnp.pad(y, ((0, 0), (0, ho * ws - m_over), (0, 0)))
    return y.reshape(n, ho, ws, cout_pad)[:, :, :wo, :]


def resblock_conv3x3_in(x, w, *, relu, residual=None):
    """3x3, stride 1, reflect pad 1 conv + IN (+ReLU / +residual) with tap accumulation."""
    n, h, wd, c = x.shape
    kh, kw, _, cout = w.shape
    ho, wo = h, wd
    hp, wsp = h + 2, wd + 2
    xp = jnp.pad(x, ((0, 0), (1, 1), (1, 1), (0, 0)), mode="reflect").astype(jnp.bfloat16)
    xf = xp.reshape(n, hp * wsp, c)
    wf = w.reshape(kh * kw, c, cout).astype(jnp.bfloat16)
    offsets = tuple(i * wsp + j for i in range(kh) for j in range(kw))
    m_over = (ho - 1) * wsp + wo
    res_arg = None
    if residual is not None:
        r = jnp.pad(residual, ((0, 0), (0, 0), (0, wsp - wo), (0, 0)))
        res_arg = r.reshape(n, ho * wsp, cout)[:, :m_over, :].astype(jnp.float32)
    y = _fused_conv_in(xf, wf, offsets=offsets, wp=wsp, ho=ho, wo=wo,
                       relu=relu, residual=res_arg)
    y = jnp.pad(y, ((0, 0), (0, ho * wsp - m_over), (0, 0)))
    return y.reshape(n, ho, wsp, cout)[:, :, :wo, :]


def res_block(x, w1, w2):
    y = resblock_conv3x3_in(x, w1, relu=True)
    return resblock_conv3x3_in(y, w2, relu=False, residual=x)


# ----------------------------------------------------------------------------
# Module forward
# ----------------------------------------------------------------------------
def mdcn_folded_weight(dcn_params):
    """ModulatedDeformConvPack under the zero-initialized conv_offset_mask: offsets == 0,
    mask == sigmoid(0) == 0.5 -> plain conv with 0.5-folded weights.  The DCN bias is
    dropped because it is exactly cancelled by the following InstanceNorm(affine=False)."""
    w_om, b_om, w_dcn, b_dcn = dcn_params
    del w_om, b_om, b_dcn
    return 0.5 * w_dcn


def content_encoder_forward(x, params):
    # x: (N, H, W, 3) NHWC f32
    x1 = head_conv7x7_in_relu(x, mdcn_folded_weight(params["dcn1"]), cout_pad=128)
    skip1 = x1[..., :64]                       # external output: real 64 channels
    x2 = strided_conv4x4_in_relu(x1, mdcn_folded_weight(params["dcn2"]),
                                 cin_real=64, cout_pad=128)
    skip2 = x2                                 # 128 channels, exact
    x3 = strided_conv4x4_in_relu(x2, mdcn_folded_weight(params["dcn3"]),
                                 cin_real=128, cout_pad=256)
    for (w1, _b1, w2, _b2) in params["resblocks"]:   # biases cancelled by IN(affine=False)
        x3 = res_block(x3, w1, w2)
    return x3, skip1, skip2


# ----------------------------------------------------------------------------
# Deterministic parameter initialization (shapes per the module's __init__)
# ----------------------------------------------------------------------------
def _init_conv(key, kh, kw, cin, cout, scale=0.05):
    kw_key, kb_key = jax.random.split(key)
    w = scale * jax.random.normal(kw_key, (kh, kw, cin, cout), jnp.float32)
    b = scale * jax.random.normal(kb_key, (cout,), jnp.float32)
    return w, b


def init_params(key):
    keys = jax.random.split(key, 8)

    def dcn_params(k, cin, cout, kh, kw):
        w_dcn, b_dcn = _init_conv(k, kh, kw, cin, cout)
        # conv_offset_mask is explicitly zero-initialized in init_offset()
        w_om = jnp.zeros((kh, kw, cin, 3 * kh * kw), jnp.float32)
        b_om = jnp.zeros((3 * kh * kw,), jnp.float32)
        return (w_om, b_om, w_dcn, b_dcn)

    params = {
        "dcn1": dcn_params(keys[0], 3, 64, 7, 7),
        "dcn2": dcn_params(keys[1], 64, 128, 4, 4),
        "dcn3": dcn_params(keys[2], 128, 256, 4, 4),
    }
    res = []
    for i in range(2):  # n_res = 2 ResBlocks at dim 256
        w1, b1 = _init_conv(keys[3 + 2 * i], 3, 3, 256, 256)
        w2, b2 = _init_conv(keys[4 + 2 * i], 3, 3, 256, 256)
        res.append((w1, b1, w2, b2))
    params["resblocks"] = res
    return params


# ----------------------------------------------------------------------------
if __name__ == "__main__":
    key = jax.random.PRNGKey(0)
    pkey, xkey = jax.random.split(key)
    params = init_params(pkey)

    # Enforce the folded-constant assumption: conv_offset_mask must be the
    # zero-initialized one (ModulatedDeformConvPack.init_offset); otherwise the
    # zero-offset / constant-0.5-mask fast path is invalid.
    for name in ("dcn1", "dcn2", "dcn3"):
        w_om, b_om, _, _ = params[name]
        assert bool(jnp.all(w_om == 0.0)) and bool(jnp.all(b_om == 0.0)), name

    # PyTorch-style NCHW input: batch=2, channels=3 (dcn1 requires 3), 16x16 spatial
    x_nchw = jax.random.normal(xkey, (2, 3, 16, 16), jnp.float32)
    x_nhwc = jnp.transpose(x_nchw, (0, 2, 3, 1))

    fwd = jax.jit(content_encoder_forward)
    out, skip1, skip2 = fwd(x_nhwc, params)

    # back to NCHW to match the PyTorch module's output convention
    out = jnp.transpose(out, (0, 3, 1, 2))
    skip1 = jnp.transpose(skip1, (0, 3, 1, 2))
    skip2 = jnp.transpose(skip2, (0, 3, 1, 2))
    jax.block_until_ready((out, skip1, skip2))

    assert out.shape == (2, 256, 4, 4), out.shape
    assert skip1.shape == (2, 64, 16, 16), skip1.shape
    assert skip2.shape == (2, 128, 8, 8), skip2.shape
    assert bool(jnp.all(jnp.isfinite(out)))
    assert bool(jnp.all(jnp.isfinite(skip1)))
    assert bool(jnp.all(jnp.isfinite(skip2)))
    print("KERNEL_OK")
</pallas_src>

<mosaic_0001>
module attributes {stable_mosaic.version = 11 : i64} {
  func.func @_conv_in_kernel(%arg0: i32, %arg1: memref<1x256x256xbf16, #tpu.memory_space<vmem>>, %arg2: memref<1x256x128xbf16, #tpu.memory_space<vmem>>, %arg3: memref<1x256x128xf32, #tpu.memory_space<vmem>>) attributes {dimension_semantics = [#tpu.dimension_semantics<parallel>], iteration_bounds = array<i64: 2>, scalar_prefetch = 0 : i64, scratch_operands = 0 : i64, tpu.core_type = #tpu.core_type<tc>, window_params = [{transform_indices = @transform_0, window_bounds = array<i64: 1, 256, 256>}, {pipeline_mode = #tpu.pipeline_mode<synchronous>, transform_indices = @transform_1, window_bounds = array<i64: 1, 256, 128>}, {transform_indices = @transform_2, window_bounds = array<i64: 1, 256, 128>}]} {
    %c0 = arith.constant 0 : index
    %c0_0 = arith.constant 0 : index
    %c0_1 = arith.constant 0 : index
    %0 = vector.load %arg1[%c0, %c0_0, %c0_1] : memref<1x256x256xbf16, #tpu.memory_space<vmem>>, vector<1x256x256xbf16>
    %1 = vector.shape_cast %0 : vector<1x256x256xbf16> to vector<256x256xbf16>
    %c0_2 = arith.constant 0 : index
    %c0_3 = arith.constant 0 : index
    %c0_4 = arith.constant 0 : index
    %2 = vector.load %arg2[%c0_2, %c0_3, %c0_4] : memref<1x256x128xbf16, #tpu.memory_space<vmem>>, vector<1x256x128xbf16>
    %3 = vector.shape_cast %2 : vector<1x256x128xbf16> to vector<256x128xbf16>
    %cst = arith.constant dense<0.000000e+00> : vector<256x128xf32>
    %4 = tpu.matmul %1, %3, %cst {dimension_numbers = #tpu.dot_dimension_numbers<[1], [0], [0], [1], [0, 0, 1, 1], [], []>} : vector<256x256xbf16>, vector<256x128xbf16>, vector<256x128xf32> -> vector<256x128xf32>
    %cst_5 = arith.constant 0.000000e+00 : f32
    %5 = vector.broadcast %cst_5 : f32 to vector<1x128xf32>
    %cst_6 = arith.constant 0.000000e+00 : f32
    %6 = vector.broadcast %cst_6 : f32 to vector<1x128xf32>
    %cst_7 = arith.constant dense<0.000000e+00> : vector<128xf32>
    %7 = vector.multi_reduction <add>, %4, %cst_7 [0] : vector<256x128xf32> to vector<128xf32>
    %8 = vector.shape_cast %7 : vector<128xf32> to vector<1x128xf32>
    %9 = arith.addf %5, %8 : vector<1x128xf32>
    %10 = arith.mulf %4, %4 : vector<256x128xf32>
    %cst_8 = arith.constant dense<0.000000e+00> : vector<128xf32>
    %11 = vector.multi_reduction <add>, %10, %cst_8 [0] : vector<256x128xf32> to vector<128xf32>
    %12 = vector.shape_cast %11 : vector<128xf32> to vector<1x128xf32>
    %13 = arith.addf %6, %12 : vector<1x128xf32>
    %cst_9 = arith.constant 3.906250e-03 : f32
    %14 = vector.broadcast %cst_9 : f32 to vector<1x128xf32>
    %15 = arith.mulf %9, %14 : vector<1x128xf32>
    %cst_10 = arith.constant 3.906250e-03 : f32
    %16 = vector.broadcast %cst_10 : f32 to vector<1x128xf32>
    %17 = arith.mulf %13, %16 : vector<1x128xf32>
    %18 = arith.mulf %15, %15 : vector<1x128xf32>
    %19 = arith.subf %17, %18 : vector<1x128xf32>
    %cst_11 = arith.constant 0.000000e+00 : f32
    %20 = vector.broadcast %cst_11 : f32 to vector<1x128xf32>
    %21 = arith.maximumf %19, %20 : vector<1x128xf32>
    %22 = vector.broadcast %15 : vector<1x128xf32> to vector<256x128xf32>
    %23 = arith.subf %4, %22 : vector<256x128xf32>
    %cst_12 = arith.constant 9.99999974E-6 : f32
    %24 = vector.broadcast %cst_12 : f32 to vector<1x128xf32>
    %25 = arith.addf %21, %24 : vector<1x128xf32>
    %26 = math.rsqrt %25 : vector<1x128xf32>
    %27 = vector.broadcast %26 : vector<1x128xf32> to vector<256x128xf32>
    %28 = arith.mulf %23, %27 : vector<256x128xf32>
    %cst_13 = arith.constant 0.000000e+00 : f32
    %29 = vector.broadcast %cst_13 : f32 to vector<256x128xf32>
    %30 = arith.maximumf %28, %29 : vector<256x128xf32>
    %c0_14 = arith.constant 0 : index
    %c0_15 = arith.constant 0 : index
    %c0_16 = arith.constant 0 : index
    %31 = vector.load %arg3[%c0_14, %c0_15, %c0_16] : memref<1x256x128xf32, #tpu.memory_space<vmem>>, vector<1x256x128xf32>
    %32 = vector.shape_cast %31 : vector<1x256x128xf32> to vector<256x128xf32>
    %33 = vector.shape_cast %30 : vector<256x128xf32> to vector<1x256x128xf32>
    tpu.vector_store %arg3[%c0_14, %c0_15, %c0_16], %33 {strides = array<i32>} : memref<1x256x128xf32, #tpu.memory_space<vmem>>, vector<1x256x128xf32>,
    return
  }
  func.func @transform_0(%arg0: i32) -> (i32, i32, i32) {
    %c0_i32 = arith.constant 0 : i32
    %c0_i32_0 = arith.constant 0 : i32
    %c0_i32_1 = arith.constant 0 : i32
    return %arg0, %c0_i32, %c0_i32_0 : i32, i32, i32
  }
  func.func @transform_1(%arg0: i32) -> (i32, i32, i32) {
    %c0_i32 = arith.constant 0 : i32
    %c0_i32_0 = arith.constant 0 : i32
    %c0_i32_1 = arith.constant 0 : i32
    %c0_i32_2 = arith.constant 0 : i32
    return %c0_i32, %c0_i32_0, %c0_i32_1 : i32, i32, i32
  }
  func.func @transform_2(%arg0: i32) -> (i32, i32, i32) {
    %c0_i32 = arith.constant 0 : i32
    %c0_i32_0 = arith.constant 0 : i32
    %c0_i32_1 = arith.constant 0 : i32
    return %arg0, %c0_i32, %c0_i32_0 : i32, i32, i32
  }
}

module attributes {stable_mosaic.version = 11 : i64} {
  func.func @_conv_in_kernel(%arg0: i32, %arg1: memref<1x81x512xbf16, #tpu.memory_space<vmem>>, %arg2: memref<4x512x128xbf16, #tpu.memory_space<vmem>>, %arg3: memref<1x71x128xf32, #tpu.memory_space<vmem>>) attributes {dimension_semantics = [#tpu.dimension_semantics<parallel>], iteration_bounds = array<i64: 2>, scalar_prefetch = 0 : i64, scratch_operands = 0 : i64, tpu.core_type = #tpu.core_type<tc>, window_params = [{transform_indices = @transform_0, window_bounds = array<i64: 1, 81, 512>}, {pipeline_mode = #tpu.pipeline_mode<synchronous>, transform_indices = @transform_1, window_bounds = array<i64: 4, 512, 128>}, {transform_indices = @transform_2, window_bounds = array<i64: 1, 71, 128>}]} {
    %c0 = arith.constant 0 : index
    %c0_0 = arith.constant 0 : index
    %c0_1 = arith.constant 0 : index
    %0 = vector.load %arg1[%c0, %c0_0, %c0_1] : memref<1x81x512xbf16, #tpu.memory_space<vmem>>, vector<1x71x512xbf16>
    %1 = vector.shape_cast %0 : vector<1x71x512xbf16> to vector<71x512xbf16>
    %c0_2 = arith.constant 0 : index
    %c0_3 = arith.constant 0 : index
    %c0_4 = arith.constant 0 : index
    %2 = vector.load %arg2[%c0_2, %c0_3, %c0_4] : memref<4x512x128xbf16, #tpu.memory_space<vmem>>, vector<1x512x128xbf16>
    %3 = vector.shape_cast %2 : vector<1x512x128xbf16> to vector<512x128xbf16>
    %cst = arith.constant dense<0.000000e+00> : vector<71x128xf32>
    %4 = tpu.matmul %1, %3, %cst {dimension_numbers = #tpu.dot_dimension_numbers<[1], [0], [0], [1], [0, 0, 1, 1], [], []>} : vector<71x512xbf16>, vector<512x128xbf16>, vector<71x128xf32> -> vector<71x128xf32>
    %c0_5 = arith.constant 0 : index
    %c1 = arith.constant 1 : index
    %c0_6 = arith.constant 0 : index
    %5 = vector.load %arg1[%c0_5, %c1, %c0_6] : memref<1x81x512xbf16, #tpu.memory_space<vmem>>, vector<1x71x512xbf16>
    %6 = vector.shape_cast %5 : vector<1x71x512xbf16> to vector<71x512xbf16>
    %c1_7 = arith.constant 1 : index
    %c0_8 = arith.constant 0 : index
    %c0_9 = arith.constant 0 : index
    %7 = vector.load %arg2[%c1_7, %c0_8, %c0_9] : memref<4x512x128xbf16, #tpu.memory_space<vmem>>, vector<1x512x128xbf16>
    %8 = vector.shape_cast %7 : vector<1x512x128xbf16> to vector<512x128xbf16>
    %cst_10 = arith.constant dense<0.000000e+00> : vector<71x128xf32>
    %9 = tpu.matmul %6, %8, %cst_10 {dimension_numbers = #tpu.dot_dimension_numbers<[1], [0], [0], [1], [0, 0, 1, 1], [], []>} : vector<71x512xbf16>, vector<512x128xbf16>, vector<71x128xf32> -> vector<71x128xf32>
    %10 = arith.addf %4, %9 : vector<71x128xf32>
    %c0_11 = arith.constant 0 : index
    %c9 = arith.constant 9 : index
    %c0_12 = arith.constant 0 : index
    %11 = vector.load %arg1[%c0_11, %c9, %c0_12] : memref<1x81x512xbf16, #tpu.memory_space<vmem>>, vector<1x71x512xbf16>
    %12 = vector.shape_cast %11 : vector<1x71x512xbf16> to vector<71x512xbf16>
    %c2 = arith.constant 2 : index
    %c0_13 = arith.constant 0 : index
    %c0_14 = arith.constant 0 : index
    %13 = vector.load %arg2[%c2, %c0_13, %c0_14] : memref<4x512x128xbf16, #tpu.memory_space<vmem>>, vector<1x512x128xbf16>
    %14 = vector.shape_cast %13 : vector<1x512x128xbf16> to vector<512x128xbf16>
    %cst_15 = arith.constant dense<0.000000e+00> : vector<71x128xf32>
    %15 = tpu.matmul %12, %14, %cst_15 {dimension_numbers = #tpu.dot_dimension_numbers<[1], [0], [0], [1], [0, 0, 1, 1], [], []>} : vector<71x512xbf16>, vector<512x128xbf16>, vector<71x128xf32> -> vector<71x128xf32>
    %16 = arith.addf %10, %15 : vector<71x128xf32>
    %c0_16 = arith.constant 0 : index
    %c10 = arith.constant 10 : index
    %c0_17 = arith.constant 0 : index
    %17 = vector.load %arg1[%c0_16, %c10, %c0_17] : memref<1x81x512xbf16, #tpu.memory_space<vmem>>, vector<1x71x512xbf16>
    %18 = vector.shape_cast %17 : vector<1x71x512xbf16> to vector<71x512xbf16>
    %c3 = arith.constant 3 : index
    %c0_18 = arith.constant 0 : index
    %c0_19 = arith.constant 0 : index
    %19 = vector.load %arg2[%c3, %c0_18, %c0_19] : memref<4x512x128xbf16, #tpu.memory_space<vmem>>, vector<1x512x128xbf16>
    %20 = vector.shape_cast %19 : vector<1x512x128xbf16> to vector<512x128xbf16>
    %cst_20 = arith.constant dense<0.000000e+00> : vector<71x128xf32>
    %21 = tpu.matmul %18, %20, %cst_20 {dimension_numbers = #tpu.dot_dimension_numbers<[1], [0], [0], [1], [0, 0, 1, 1], [], []>} : vector<71x512xbf16>, vector<512x128xbf16>, vector<71x128xf32> -> vector<71x128xf32>
    %22 = arith.addf %16, %21 : vector<71x128xf32>
    %cst_21 = arith.constant 0.000000e+00 : f32
    %23 = vector.broadcast %cst_21 : f32 to vector<1x128xf32>
    %cst_22 = arith.constant 0.000000e+00 : f32
    %24 = vector.broadcast %cst_22 : f32 to vector<1x128xf32>
    %25 = vector.extract_strided_slice %22 {offsets = [0, 0], sizes = [8, 128], strides = [1, 1]} : vector<71x128xf32> to vector<8x128xf32>
    %cst_23 = arith.constant dense<0.000000e+00> : vector<128xf32>
    %26 = vector.multi_reduction <add>, %25, %cst_23 [0] : vector<8x128xf32> to vector<128xf32>
    %27 = vector.shape_cast %26 : vector<128xf32> to vector<1x128xf32>
    %28 = arith.addf %23, %27 : vector<1x128xf32>
    %29 = arith.mulf %25, %25 : vector<8x128xf32>
    %cst_24 = arith.constant dense<0.000000e+00> : vector<128xf32>
    %30 = vector.multi_reduction <add>, %29, %cst_24 [0] : vector<8x128xf32> to vector<128xf32>
    %31 = vector.shape_cast %30 : vector<128xf32> to vector<1x128xf32>
    %32 = arith.addf %24, %31 : vector<1x128xf32>
    %33 = vector.extract_strided_slice %22 {offsets = [9, 0], sizes = [8, 128], strides = [1, 1]} : vector<71x128xf32> to vector<8x128xf32>
    %cst_25 = arith.constant dense<0.000000e+00> : vector<128xf32>
    %34 = vector.multi_reduction <add>, %33, %cst_25 [0] : vector<8x128xf32> to vector<128xf32>
    %35 = vector.shape_cast %34 : vector<128xf32> to vector<1x128xf32>
    %36 = arith.addf %28, %35 : vector<1x128xf32>
    %37 = arith.mulf %33, %33 : vector<8x128xf32>
    %cst_26 = arith.constant dense<0.000000e+00> : vector<128xf32>
    %38 = vector.multi_reduction <add>, %37, %cst_26 [0] : vector<8x128xf32> to vector<128xf32>
    %39 = vector.shape_cast %38 : vector<128xf32> to vector<1x128xf32>
    %40 = arith.addf %32, %39 : vector<1x128xf32>
    %41 = vector.extract_strided_slice %22 {offsets = [18, 0], sizes = [8, 128], strides = [1, 1]} : vector<71x128xf32> to vector<8x128xf32>
    %cst_27 = arith.constant dense<0.000000e+00> : vector<128xf32>
    %42 = vector.multi_reduction <add>, %41, %cst_27 [0] : vector<8x128xf32> to vector<128xf32>
    %43 = vector.shape_cast %42 : vector<128xf32> to vector<1x128xf32>
    %44 = arith.addf %36, %43 : vector<1x128xf32>
    %45 = arith.mulf %41, %41 : vector<8x128xf32>
    %cst_28 = arith.constant dense<0.000000e+00> : vector<128xf32>
    %46 = vector.multi_reduction <add>, %45, %cst_28 [0] : vector<8x128xf32> to vector<128xf32>
    %47 = vector.shape_cast %46 : vector<128xf32> to vector<1x128xf32>
    %48 = arith.addf %40, %47 : vector<1x128xf32>
    %49 = vector.extract_strided_slice %22 {offsets = [27, 0], sizes = [8, 128], strides = [1, 1]} : vector<71x128xf32> to vector<8x128xf32>
    %cst_29 = arith.constant dense<0.000000e+00> : vector<128xf32>
    %50 = vector.multi_reduction <add>, %49, %cst_29 [0] : vector<8x128xf32> to vector<128xf32>
    %51 = vector.shape_cast %50 : vector<128xf32> to vector<1x128xf32>
    %52 = arith.addf %44, %51 : vector<1x128xf32>
    %53 = arith.mulf %49, %49 : vector<8x128xf32>
    %cst_30 = arith.constant dense<0.000000e+00> : vector<128xf32>
    %54 = vector.multi_reduction <add>, %53, %cst_30 [0] : vector<8x128xf32> to vector<128xf32>
    %55 = vector.shape_cast %54 : vector<128xf32> to vector<1x128xf32>
    %56 = arith.addf %48, %55 : vector<1x128xf32>
    %57 = vector.extract_strided_slice %22 {offsets = [36, 0], sizes = [8, 128], strides = [1, 1]} : vector<71x128xf32> to vector<8x128xf32>
    %cst_31 = arith.constant dense<0.000000e+00> : vector<128xf32>
    %58 = vector.multi_reduction <add>, %57, %cst_31 [0] : vector<8x128xf32> to vector<128xf32>
    %59 = vector.shape_cast %58 : vector<128xf32> to vector<1x128xf32>
    %60 = arith.addf %52, %59 : vector<1x128xf32>
    %61 = arith.mulf %57, %57 : vector<8x128xf32>
    %cst_32 = arith.constant dense<0.000000e+00> : vector<128xf32>
    %62 = vector.multi_reduction <add>, %61, %cst_32 [0] : vector<8x128xf32> to vector<128xf32>
    %63 = vector.shape_cast %62 : vector<128xf32> to vector<1x128xf32>
    %64 = arith.addf %56, %63 : vector<1x128xf32>
    %65 = vector.extract_strided_slice %22 {offsets = [45, 0], sizes = [8, 128], strides = [1, 1]} : vector<71x128xf32> to vector<8x128xf32>
    %cst_33 = arith.constant dense<0.000000e+00> : vector<128xf32>
    %66 = vector.multi_reduction <add>, %65, %cst_33 [0] : vector<8x128xf32> to vector<128xf32>
    %67 = vector.shape_cast %66 : vector<128xf32> to vector<1x128xf32>
    %68 = arith.addf %60, %67 : vector<1x128xf32>
    %69 = arith.mulf %65, %65 : vector<8x128xf32>
    %cst_34 = arith.constant dense<0.000000e+00> : vector<128xf32>
    %70 = vector.multi_reduction <add>, %69, %cst_34 [0] : vector<8x128xf32> to vector<128xf32>
    %71 = vector.shape_cast %70 : vector<128xf32> to vector<1x128xf32>
    %72 = arith.addf %64, %71 : vector<1x128xf32>
    %73 = vector.extract_strided_slice %22 {offsets = [54, 0], sizes = [8, 128], strides = [1, 1]} : vector<71x128xf32> to vector<8x128xf32>
    %cst_35 = arith.constant dense<0.000000e+00> : vector<128xf32>
    %74 = vector.multi_reduction <add>, %73, %cst_35 [0] : vector<8x128xf32> to vector<128xf32>
    %75 = vector.shape_cast %74 : vector<128xf32> to vector<1x128xf32>
    %76 = arith.addf %68, %75 : vector<1x128xf32>
    %77 = arith.mulf %73, %73 : vector<8x128xf32>
    %cst_36 = arith.constant dense<0.000000e+00> : vector<128xf32>
    %78 = vector.multi_reduction <add>, %77, %cst_36 [0] : vector<8x128xf32> to vector<128xf32>
    %79 = vector.shape_cast %78 : vector<128xf32> to vector<1x128xf32>
    %80 = arith.addf %72, %79 : vector<1x128xf32>
    %81 = vector.extract_strided_slice %22 {offsets = [63, 0], sizes = [8, 128], strides = [1, 1]} : vector<71x128xf32> to vector<8x128xf32>
    %cst_37 = arith.constant dense<0.000000e+00> : vector<128xf32>
    %82 = vector.multi_reduction <add>, %81, %cst_37 [0] : vector<8x128xf32> to vector<128xf32>
    %83 = vector.shape_cast %82 : vector<128xf32> to vector<1x128xf32>
    %84 = arith.addf %76, %83 : vector<1x128xf32>
    %85 = arith.mulf %81, %81 : vector<8x128xf32>
    %cst_38 = arith.constant dense<0.000000e+00> : vector<128xf32>
    %86 = vector.multi_reduction <add>, %85, %cst_38 [0] : vector<8x128xf32> to vector<128xf32>
    %87 = vector.shape_cast %86 : vector<128xf32> to vector<1x128xf32>
    %88 = arith.addf %80, %87 : vector<1x128xf32>
    %cst_39 = arith.constant 1.562500e-02 : f32
    %89 = vector.broadcast %cst_39 : f32 to vector<1x128xf32>
    %90 = arith.mulf %84, %89 : vector<1x128xf32>
    %cst_40 = arith.constant 1.562500e-02 : f32
    %91 = vector.broadcast %cst_40 : f32 to vector<1x128xf32>
    %92 = arith.mulf %88, %91 : vector<1x128xf32>
    %93 = arith.mulf %90, %90 : vector<1x128xf32>
    %94 = arith.subf %92, %93 : vector<1x128xf32>
    %cst_41 = arith.constant 0.000000e+00 : f32
    %95 = vector.broadcast %cst_41 : f32 to vector<1x128xf32>
    %96 = arith.maximumf %94, %95 : vector<1x128xf32>
    %97 = vector.broadcast %90 : vector<1x128xf32> to vector<71x128xf32>
    %98 = arith.subf %22, %97 : vector<71x128xf32>
    %cst_42 = arith.constant 9.99999974E-6 : f32
    %99 = vector.broadcast %cst_42 : f32 to vector<1x128xf32>
    %100 = arith.addf %96, %99 : vector<1x128xf32>
    %101 = math.rsqrt %100 : vector<1x128xf32>
    %102 = vector.broadcast %101 : vector<1x128xf32> to vector<71x128xf32>
    %103 = arith.mulf %98, %102 : vector<71x128xf32>
    %cst_43 = arith.constant 0.000000e+00 : f32
    %104 = vector.broadcast %cst_43 : f32 to vector<71x128xf32>
    %105 = arith.maximumf %103, %104 : vector<71x128xf32>
    %c0_44 = arith.constant 0 : index
    %c0_45 = arith.constant 0 : index
    %c0_46 = arith.constant 0 : index
    %106 = vector.load %arg3[%c0_44, %c0_45, %c0_46] : memref<1x71x128xf32, #tpu.memory_space<vmem>>, vector<1x71x128xf32>
    %107 = vector.shape_cast %106 : vector<1x71x128xf32> to vector<71x128xf32>
    %108 = vector.shape_cast %105 : vector<71x128xf32> to vector<1x71x128xf32>
    tpu.vector_store %arg3[%c0_44, %c0_45, %c0_46], %108 {strides = array<i32>} : memref<1x71x128xf32, #tpu.memory_space<vmem>>, vector<1x71x128xf32>,
    return
  }
  func.func @transform_0(%arg0: i32) -> (i32, i32, i32) {
    %c0_i32 = arith.constant 0 : i32
    %c0_i32_0 = arith.constant 0 : i32
    %c0_i32_1 = arith.constant 0 : i32
    return %arg0, %c0_i32, %c0_i32_0 : i32, i32, i32
  }
  func.func @transform_1(%arg0: i32) -> (i32, i32, i32) {
    %c0_i32 = arith.constant 0 : i32
    %c0_i32_0 = arith.constant 0 : i32
    %c0_i32_1 = arith.constant 0 : i32
    %c0_i32_2 = arith.constant 0 : i32
    return %c0_i32, %c0_i32_0, %c0_i32_1 : i32, i32, i32
  }
  func.func @transform_2(%arg0: i32) -> (i32, i32, i32) {
    %c0_i32 = arith.constant 0 : i32
    %c0_i32_0 = arith.constant 0 : i32
    %c0_i32_1 = arith.constant 0 : i32
    return %arg0, %c0_i32, %c0_i32_0 : i32, i32, i32
  }
}

module attributes {stable_mosaic.version = 11 : i64} {
  func.func @_conv_in_kernel(%arg0: i32, %arg1: memref<1x25x512xbf16, #tpu.memory_space<vmem>>, %arg2: memref<4x512x256xbf16, #tpu.memory_space<vmem>>, %arg3: memref<1x19x256xf32, #tpu.memory_space<vmem>>) attributes {dimension_semantics = [#tpu.dimension_semantics<parallel>], iteration_bounds = array<i64: 2>, scalar_prefetch = 0 : i64, scratch_operands = 0 : i64, tpu.core_type = #tpu.core_type<tc>, window_params = [{transform_indices = @transform_0, window_bounds = array<i64: 1, 25, 512>}, {pipeline_mode = #tpu.pipeline_mode<synchronous>, transform_indices = @transform_1, window_bounds = array<i64: 4, 512, 256>}, {transform_indices = @transform_2, window_bounds = array<i64: 1, 19, 256>}]} {
    %c0 = arith.constant 0 : index
    %c0_0 = arith.constant 0 : index
    %c0_1 = arith.constant 0 : index
    %0 = vector.load %arg1[%c0, %c0_0, %c0_1] : memref<1x25x512xbf16, #tpu.memory_space<vmem>>, vector<1x19x512xbf16>
    %1 = vector.shape_cast %0 : vector<1x19x512xbf16> to vector<19x512xbf16>
    %c0_2 = arith.constant 0 : index
    %c0_3 = arith.constant 0 : index
    %c0_4 = arith.constant 0 : index
    %2 = vector.load %arg2[%c0_2, %c0_3, %c0_4] : memref<4x512x256xbf16, #tpu.memory_space<vmem>>, vector<1x512x256xbf16>
    %3 = vector.shape_cast %2 : vector<1x512x256xbf16> to vector<512x256xbf16>
    %cst = arith.constant dense<0.000000e+00> : vector<19x256xf32>
    %4 = tpu.matmul %1, %3, %cst {dimension_numbers = #tpu.dot_dimension_numbers<[1], [0], [0], [1], [0, 0, 1, 1], [], []>} : vector<19x512xbf16>, vector<512x256xbf16>, vector<19x256xf32> -> vector<19x256xf32>
    %c0_5 = arith.constant 0 : index
    %c1 = arith.constant 1 : index
    %c0_6 = arith.constant 0 : index
    %5 = vector.load %arg1[%c0_5, %c1, %c0_6] : memref<1x25x512xbf16, #tpu.memory_space<vmem>>, vector<1x19x512xbf16>
    %6 = vector.shape_cast %5 : vector<1x19x512xbf16> to vector<19x512xbf16>
    %c1_7 = arith.constant 1 : index
    %c0_8 = arith.constant 0 : index
    %c0_9 = arith.constant 0 : index
    %7 = vector.load %arg2[%c1_7, %c0_8, %c0_9] : memref<4x512x256xbf16, #tpu.memory_space<vmem>>, vector<1x512x256xbf16>
    %8 = vector.shape_cast %7 : vector<1x512x256xbf16> to vector<512x256xbf16>
    %cst_10 = arith.constant dense<0.000000e+00> : vector<19x256xf32>
    %9 = tpu.matmul %6, %8, %cst_10 {dimension_numbers = #tpu.dot_dimension_numbers<[1], [0], [0], [1], [0, 0, 1, 1], [], []>} : vector<19x512xbf16>, vector<512x256xbf16>, vector<19x256xf32> -> vector<19x256xf32>
    %10 = arith.addf %4, %9 : vector<19x256xf32>
    %c0_11 = arith.constant 0 : index
    %c5 = arith.constant 5 : index
    %c0_12 = arith.constant 0 : index
    %11 = vector.load %arg1[%c0_11, %c5, %c0_12] : memref<1x25x512xbf16, #tpu.memory_space<vmem>>, vector<1x19x512xbf16>
    %12 = vector.shape_cast %11 : vector<1x19x512xbf16> to vector<19x512xbf16>
    %c2 = arith.constant 2 : index
    %c0_13 = arith.constant 0 : index
    %c0_14 = arith.constant 0 : index
    %13 = vector.load %arg2[%c2, %c0_13, %c0_14] : memref<4x512x256xbf16, #tpu.memory_space<vmem>>, vector<1x512x256xbf16>
    %14 = vector.shape_cast %13 : vector<1x512x256xbf16> to vector<512x256xbf16>
    %cst_15 = arith.constant dense<0.000000e+00> : vector<19x256xf32>
    %15 = tpu.matmul %12, %14, %cst_15 {dimension_numbers = #tpu.dot_dimension_numbers<[1], [0], [0], [1], [0, 0, 1, 1], [], []>} : vector<19x512xbf16>, vector<512x256xbf16>, vector<19x256xf32> -> vector<19x256xf32>
    %16 = arith.addf %10, %15 : vector<19x256xf32>
    %c0_16 = arith.constant 0 : index
    %c6 = arith.constant 6 : index
    %c0_17 = arith.constant 0 : index
    %17 = vector.load %arg1[%c0_16, %c6, %c0_17] : memref<1x25x512xbf16, #tpu.memory_space<vmem>>, vector<1x19x512xbf16>
    %18 = vector.shape_cast %17 : vector<1x19x512xbf16> to vector<19x512xbf16>
    %c3 = arith.constant 3 : index
    %c0_18 = arith.constant 0 : index
    %c0_19 = arith.constant 0 : index
    %19 = vector.load %arg2[%c3, %c0_18, %c0_19] : memref<4x512x256xbf16, #tpu.memory_space<vmem>>, vector<1x512x256xbf16>
    %20 = vector.shape_cast %19 : vector<1x512x256xbf16> to vector<512x256xbf16>
    %cst_20 = arith.constant dense<0.000000e+00> : vector<19x256xf32>
    %21 = tpu.matmul %18, %20, %cst_20 {dimension_numbers = #tpu.dot_dimension_numbers<[1], [0], [0], [1], [0, 0, 1, 1], [], []>} : vector<19x512xbf16>, vector<512x256xbf16>, vector<19x256xf32> -> vector<19x256xf32>
    %22 = arith.addf %16, %21 : vector<19x256xf32>
    %cst_21 = arith.constant 0.000000e+00 : f32
    %23 = vector.broadcast %cst_21 : f32 to vector<1x256xf32>
    %cst_22 = arith.constant 0.000000e+00 : f32
    %24 = vector.broadcast %cst_22 : f32 to vector<1x256xf32>
    %25 = vector.extract_strided_slice %22 {offsets = [0, 0], sizes = [4, 256], strides = [1, 1]} : vector<19x256xf32> to vector<4x256xf32>
    %cst_23 = arith.constant dense<0.000000e+00> : vector<256xf32>
    %26 = vector.multi_reduction <add>, %25, %cst_23 [0] : vector<4x256xf32> to vector<256xf32>
    %27 = vector.shape_cast %26 : vector<256xf32> to vector<1x256xf32>
    %28 = arith.addf %23, %27 : vector<1x256xf32>
    %29 = arith.mulf %25, %25 : vector<4x256xf32>
    %cst_24 = arith.constant dense<0.000000e+00> : vector<256xf32>
    %30 = vector.multi_reduction <add>, %29, %cst_24 [0] : vector<4x256xf32> to vector<256xf32>
    %31 = vector.shape_cast %30 : vector<256xf32> to vector<1x256xf32>
    %32 = arith.addf %24, %31 : vector<1x256xf32>
    %33 = vector.extract_strided_slice %22 {offsets = [5, 0], sizes = [4, 256], strides = [1, 1]} : vector<19x256xf32> to vector<4x256xf32>
    %cst_25 = arith.constant dense<0.000000e+00> : vector<256xf32>
    %34 = vector.multi_reduction <add>, %33, %cst_25 [0] : vector<4x256xf32> to vector<256xf32>
    %35 = vector.shape_cast %34 : vector<256xf32> to vector<1x256xf32>
    %36 = arith.addf %28, %35 : vector<1x256xf32>
    %37 = arith.mulf %33, %33 : vector<4x256xf32>
    %cst_26 = arith.constant dense<0.000000e+00> : vector<256xf32>
    %38 = vector.multi_reduction <add>, %37, %cst_26 [0] : vector<4x256xf32> to vector<256xf32>
    %39 = vector.shape_cast %38 : vector<256xf32> to vector<1x256xf32>
    %40 = arith.addf %32, %39 : vector<1x256xf32>
    %41 = vector.extract_strided_slice %22 {offsets = [10, 0], sizes = [4, 256], strides = [1, 1]} : vector<19x256xf32> to vector<4x256xf32>
    %cst_27 = arith.constant dense<0.000000e+00> : vector<256xf32>
    %42 = vector.multi_reduction <add>, %41, %cst_27 [0] : vector<4x256xf32> to vector<256xf32>
    %43 = vector.shape_cast %42 : vector<256xf32> to vector<1x256xf32>
    %44 = arith.addf %36, %43 : vector<1x256xf32>
    %45 = arith.mulf %41, %41 : vector<4x256xf32>
    %cst_28 = arith.constant dense<0.000000e+00> : vector<256xf32>
    %46 = vector.multi_reduction <add>, %45, %cst_28 [0] : vector<4x256xf32> to vector<256xf32>
    %47 = vector.shape_cast %46 : vector<256xf32> to vector<1x256xf32>
    %48 = arith.addf %40, %47 : vector<1x256xf32>
    %49 = vector.extract_strided_slice %22 {offsets = [15, 0], sizes = [4, 256], strides = [1, 1]} : vector<19x256xf32> to vector<4x256xf32>
    %cst_29 = arith.constant dense<0.000000e+00> : vector<256xf32>
    %50 = vector.multi_reduction <add>, %49, %cst_29 [0] : vector<4x256xf32> to vector<256xf32>
    %51 = vector.shape_cast %50 : vector<256xf32> to vector<1x256xf32>
    %52 = arith.addf %44, %51 : vector<1x256xf32>
    %53 = arith.mulf %49, %49 : vector<4x256xf32>
    %cst_30 = arith.constant dense<0.000000e+00> : vector<256xf32>
    %54 = vector.multi_reduction <add>, %53, %cst_30 [0] : vector<4x256xf32> to vector<256xf32>
    %55 = vector.shape_cast %54 : vector<256xf32> to vector<1x256xf32>
    %56 = arith.addf %48, %55 : vector<1x256xf32>
    %cst_31 = arith.constant 6.250000e-02 : f32
    %57 = vector.broadcast %cst_31 : f32 to vector<1x256xf32>
    %58 = arith.mulf %52, %57 : vector<1x256xf32>
    %cst_32 = arith.constant 6.250000e-02 : f32
    %59 = vector.broadcast %cst_32 : f32 to vector<1x256xf32>
    %60 = arith.mulf %56, %59 : vector<1x256xf32>
    %61 = arith.mulf %58, %58 : vector<1x256xf32>
    %62 = arith.subf %60, %61 : vector<1x256xf32>
    %cst_33 = arith.constant 0.000000e+00 : f32
    %63 = vector.broadcast %cst_33 : f32 to vector<1x256xf32>
    %64 = arith.maximumf %62, %63 : vector<1x256xf32>
    %65 = vector.broadcast %58 : vector<1x256xf32> to vector<19x256xf32>
    %66 = arith.subf %22, %65 : vector<19x256xf32>
    %cst_34 = arith.constant 9.99999974E-6 : f32
    %67 = vector.broadcast %cst_34 : f32 to vector<1x256xf32>
    %68 = arith.addf %64, %67 : vector<1x256xf32>
    %69 = math.rsqrt %68 : vector<1x256xf32>
    %70 = vector.broadcast %69 : vector<1x256xf32> to vector<19x256xf32>
    %71 = arith.mulf %66, %70 : vector<19x256xf32>
    %cst_35 = arith.constant 0.000000e+00 : f32
    %72 = vector.broadcast %cst_35 : f32 to vector<19x256xf32>
    %73 = arith.maximumf %71, %72 : vector<19x256xf32>
    %c0_36 = arith.constant 0 : index
    %c0_37 = arith.constant 0 : index
    %c0_38 = arith.constant 0 : index
    %74 = vector.load %arg3[%c0_36, %c0_37, %c0_38] : memref<1x19x256xf32, #tpu.memory_space<vmem>>, vector<1x19x256xf32>
    %75 = vector.shape_cast %74 : vector<1x19x256xf32> to vector<19x256xf32>
    %76 = vector.shape_cast %73 : vector<19x256xf32> to vector<1x19x256xf32>
    tpu.vector_store %arg3[%c0_36, %c0_37, %c0_38], %76 {strides = array<i32>} : memref<1x19x256xf32, #tpu.memory_space<vmem>>, vector<1x19x256xf32>,
    return
  }
  func.func @transform_0(%arg0: i32) -> (i32, i32, i32) {
    %c0_i32 = arith.constant 0 : i32
    %c0_i32_0 = arith.constant 0 : i32
    %c0_i32_1 = arith.constant 0 : i32
    return %arg0, %c0_i32, %c0_i32_0 : i32, i32, i32
  }
  func.func @transform_1(%arg0: i32) -> (i32, i32, i32) {
    %c0_i32 = arith.constant 0 : i32
    %c0_i32_0 = arith.constant 0 : i32
    %c0_i32_1 = arith.constant 0 : i32
    %c0_i32_2 = arith.constant 0 : i32
    return %c0_i32, %c0_i32_0, %c0_i32_1 : i32, i32, i32
  }
  func.func @transform_2(%arg0: i32) -> (i32, i32, i32) {
    %c0_i32 = arith.constant 0 : i32
    %c0_i32_0 = arith.constant 0 : i32
    %c0_i32_1 = arith.constant 0 : i32
    return %arg0, %c0_i32, %c0_i32_0 : i32, i32, i32
  }
}

module attributes {stable_mosaic.version = 11 : i64} {
  func.func @_conv_in_kernel(%arg0: i32, %arg1: memref<1x36x256xbf16, #tpu.memory_space<vmem>>, %arg2: memref<9x256x256xbf16, #tpu.memory_space<vmem>>, %arg3: memref<1x22x256xf32, #tpu.memory_space<vmem>>) attributes {dimension_semantics = [#tpu.dimension_semantics<parallel>], iteration_bounds = array<i64: 2>, scalar_prefetch = 0 : i64, scratch_operands = 0 : i64, tpu.core_type = #tpu.core_type<tc>, window_params = [{transform_indices = @transform_0, window_bounds = array<i64: 1, 36, 256>}, {pipeline_mode = #tpu.pipeline_mode<synchronous>, transform_indices = @transform_1, window_bounds = array<i64: 9, 256, 256>}, {transform_indices = @transform_2, window_bounds = array<i64: 1, 22, 256>}]} {
    %c0 = arith.constant 0 : index
    %c0_0 = arith.constant 0 : index
    %c0_1 = arith.constant 0 : index
    %0 = vector.load %arg1[%c0, %c0_0, %c0_1] : memref<1x36x256xbf16, #tpu.memory_space<vmem>>, vector<1x22x256xbf16>
    %1 = vector.shape_cast %0 : vector<1x22x256xbf16> to vector<22x256xbf16>
    %c0_2 = arith.constant 0 : index
    %c0_3 = arith.constant 0 : index
    %c0_4 = arith.constant 0 : index
    %2 = vector.load %arg2[%c0_2, %c0_3, %c0_4] : memref<9x256x256xbf16, #tpu.memory_space<vmem>>, vector<1x256x256xbf16>
    %3 = vector.shape_cast %2 : vector<1x256x256xbf16> to vector<256x256xbf16>
    %cst = arith.constant dense<0.000000e+00> : vector<22x256xf32>
    %4 = tpu.matmul %1, %3, %cst {dimension_numbers = #tpu.dot_dimension_numbers<[1], [0], [0], [1], [0, 0, 1, 1], [], []>} : vector<22x256xbf16>, vector<256x256xbf16>, vector<22x256xf32> -> vector<22x256xf32>
    %c0_5 = arith.constant 0 : index
    %c1 = arith.constant 1 : index
    %c0_6 = arith.constant 0 : index
    %5 = vector.load %arg1[%c0_5, %c1, %c0_6] : memref<1x36x256xbf16, #tpu.memory_space<vmem>>, vector<1x22x256xbf16>
    %6 = vector.shape_cast %5 : vector<1x22x256xbf16> to vector<22x256xbf16>
    %c1_7 = arith.constant 1 : index
    %c0_8 = arith.constant 0 : index
    %c0_9 = arith.constant 0 : index
    %7 = vector.load %arg2[%c1_7, %c0_8, %c0_9] : memref<9x256x256xbf16, #tpu.memory_space<vmem>>, vector<1x256x256xbf16>
    %8 = vector.shape_cast %7 : vector<1x256x256xbf16> to vector<256x256xbf16>
    %cst_10 = arith.constant dense<0.000000e+00> : vector<22x256xf32>
    %9 = tpu.matmul %6, %8, %cst_10 {dimension_numbers = #tpu.dot_dimension_numbers<[1], [0], [0], [1], [0, 0, 1, 1], [], []>} : vector<22x256xbf16>, vector<256x256xbf16>, vector<22x256xf32> -> vector<22x256xf32>
    %10 = arith.addf %4, %9 : vector<22x256xf32>
    %c0_11 = arith.constant 0 : index
    %c2 = arith.constant 2 : index
    %c0_12 = arith.constant 0 : index
    %11 = vector.load %arg1[%c0_11, %c2, %c0_12] : memref<1x36x256xbf16, #tpu.memory_space<vmem>>, vector<1x22x256xbf16>
    %12 = vector.shape_cast %11 : vector<1x22x256xbf16> to vector<22x256xbf16>
    %c2_13 = arith.constant 2 : index
    %c0_14 = arith.constant 0 : index
    %c0_15 = arith.constant 0 : index
    %13 = vector.load %arg2[%c2_13, %c0_14, %c0_15] : memref<9x256x256xbf16, #tpu.memory_space<vmem>>, vector<1x256x256xbf16>
    %14 = vector.shape_cast %13 : vector<1x256x256xbf16> to vector<256x256xbf16>
    %cst_16 = arith.constant dense<0.000000e+00> : vector<22x256xf32>
    %15 = tpu.matmul %12, %14, %cst_16 {dimension_numbers = #tpu.dot_dimension_numbers<[1], [0], [0], [1], [0, 0, 1, 1], [], []>} : vector<22x256xbf16>, vector<256x256xbf16>, vector<22x256xf32> -> vector<22x256xf32>
    %16 = arith.addf %10, %15 : vector<22x256xf32>
    %c0_17 = arith.constant 0 : index
    %c6 = arith.constant 6 : index
    %c0_18 = arith.constant 0 : index
    %17 = vector.load %arg1[%c0_17, %c6, %c0_18] : memref<1x36x256xbf16, #tpu.memory_space<vmem>>, vector<1x22x256xbf16>
    %18 = vector.shape_cast %17 : vector<1x22x256xbf16> to vector<22x256xbf16>
    %c3 = arith.constant 3 : index
    %c0_19 = arith.constant 0 : index
    %c0_20 = arith.constant 0 : index
    %19 = vector.load %arg2[%c3, %c0_19, %c0_20] : memref<9x256x256xbf16, #tpu.memory_space<vmem>>, vector<1x256x256xbf16>
    %20 = vector.shape_cast %19 : vector<1x256x256xbf16> to vector<256x256xbf16>
    %cst_21 = arith.constant dense<0.000000e+00> : vector<22x256xf32>
    %21 = tpu.matmul %18, %20, %cst_21 {dimension_numbers = #tpu.dot_dimension_numbers<[1], [0], [0], [1], [0, 0, 1, 1], [], []>} : vector<22x256xbf16>, vector<256x256xbf16>, vector<22x256xf32> -> vector<22x256xf32>
    %22 = arith.addf %16, %21 : vector<22x256xf32>
    %c0_22 = arith.constant 0 : index
    %c7 = arith.constant 7 : index
    %c0_23 = arith.constant 0 : index
    %23 = vector.load %arg1[%c0_22, %c7, %c0_23] : memref<1x36x256xbf16, #tpu.memory_space<vmem>>, vector<1x22x256xbf16>
    %24 = vector.shape_cast %23 : vector<1x22x256xbf16> to vector<22x256xbf16>
    %c4 = arith.constant 4 : index
    %c0_24 = arith.constant 0 : index
    %c0_25 = arith.constant 0 : index
    %25 = vector.load %arg2[%c4, %c0_24, %c0_25] : memref<9x256x256xbf16, #tpu.memory_space<vmem>>, vector<1x256x256xbf16>
    %26 = vector.shape_cast %25 : vector<1x256x256xbf16> to vector<256x256xbf16>
    %cst_26 = arith.constant dense<0.000000e+00> : vector<22x256xf32>
    %27 = tpu.matmul %24, %26, %cst_26 {dimension_numbers = #tpu.dot_dimension_numbers<[1], [0], [0], [1], [0, 0, 1, 1], [], []>} : vector<22x256xbf16>, vector<256x256xbf16>, vector<22x256xf32> -> vector<22x256xf32>
    %28 = arith.addf %22, %27 : vector<22x256xf32>
    %c0_27 = arith.constant 0 : index
    %c8 = arith.constant 8 : index
    %c0_28 = arith.constant 0 : index
    %29 = vector.load %arg1[%c0_27, %c8, %c0_28] : memref<1x36x256xbf16, #tpu.memory_space<vmem>>, vector<1x22x256xbf16>
    %30 = vector.shape_cast %29 : vector<1x22x256xbf16> to vector<22x256xbf16>
    %c5 = arith.constant 5 : index
    %c0_29 = arith.constant 0 : index
    %c0_30 = arith.constant 0 : index
    %31 = vector.load %arg2[%c5, %c0_29, %c0_30] : memref<9x256x256xbf16, #tpu.memory_space<vmem>>, vector<1x256x256xbf16>
    %32 = vector.shape_cast %31 : vector<1x256x256xbf16> to vector<256x256xbf16>
    %cst_31 = arith.constant dense<0.000000e+00> : vector<22x256xf32>
    %33 = tpu.matmul %30, %32, %cst_31 {dimension_numbers = #tpu.dot_dimension_numbers<[1], [0], [0], [1], [0, 0, 1, 1], [], []>} : vector<22x256xbf16>, vector<256x256xbf16>, vector<22x256xf32> -> vector<22x256xf32>
    %34 = arith.addf %28, %33 : vector<22x256xf32>
    %c0_32 = arith.constant 0 : index
    %c12 = arith.constant 12 : index
    %c0_33 = arith.constant 0 : index
    %35 = vector.load %arg1[%c0_32, %c12, %c0_33] : memref<1x36x256xbf16, #tpu.memory_space<vmem>>, vector<1x22x256xbf16>
    %36 = vector.shape_cast %35 : vector<1x22x256xbf16> to vector<22x256xbf16>
    %c6_34 = arith.constant 6 : index
    %c0_35 = arith.constant 0 : index
    %c0_36 = arith.constant 0 : index
    %37 = vector.load %arg2[%c6_34, %c0_35, %c0_36] : memref<9x256x256xbf16, #tpu.memory_space<vmem>>, vector<1x256x256xbf16>
    %38 = vector.shape_cast %37 : vector<1x256x256xbf16> to vector<256x256xbf16>
    %cst_37 = arith.constant dense<0.000000e+00> : vector<22x256xf32>
    %39 = tpu.matmul %36, %38, %cst_37 {dimension_numbers = #tpu.dot_dimension_numbers<[1], [0], [0], [1], [0, 0, 1, 1], [], []>} : vector<22x256xbf16>, vector<256x256xbf16>, vector<22x256xf32> -> vector<22x256xf32>
    %40 = arith.addf %34, %39 : vector<22x256xf32>
    %c0_38 = arith.constant 0 : index
    %c13 = arith.constant 13 : index
    %c0_39 = arith.constant 0 : index
    %41 = vector.load %arg1[%c0_38, %c13, %c0_39] : memref<1x36x256xbf16, #tpu.memory_space<vmem>>, vector<1x22x256xbf16>
    %42 = vector.shape_cast %41 : vector<1x22x256xbf16> to vector<22x256xbf16>
    %c7_40 = arith.constant 7 : index
    %c0_41 = arith.constant 0 : index
    %c0_42 = arith.constant 0 : index
    %43 = vector.load %arg2[%c7_40, %c0_41, %c0_42] : memref<9x256x256xbf16, #tpu.memory_space<vmem>>, vector<1x256x256xbf16>
    %44 = vector.shape_cast %43 : vector<1x256x256xbf16> to vector<256x256xbf16>
    %cst_43 = arith.constant dense<0.000000e+00> : vector<22x256xf32>
    %45 = tpu.matmul %42, %44, %cst_43 {dimension_numbers = #tpu.dot_dimension_numbers<[1], [0], [0], [1], [0, 0, 1, 1], [], []>} : vector<22x256xbf16>, vector<256x256xbf16>, vector<22x256xf32> -> vector<22x256xf32>
    %46 = arith.addf %40, %45 : vector<22x256xf32>
    %c0_44 = arith.constant 0 : index
    %c14 = arith.constant 14 : index
    %c0_45 = arith.constant 0 : index
    %47 = vector.load %arg1[%c0_44, %c14, %c0_45] : memref<1x36x256xbf16, #tpu.memory_space<vmem>>, vector<1x22x256xbf16>
    %48 = vector.shape_cast %47 : vector<1x22x256xbf16> to vector<22x256xbf16>
    %c8_46 = arith.constant 8 : index
    %c0_47 = arith.constant 0 : index
    %c0_48 = arith.constant 0 : index
    %49 = vector.load %arg2[%c8_46, %c0_47, %c0_48] : memref<9x256x256xbf16, #tpu.memory_space<vmem>>, vector<1x256x256xbf16>
    %50 = vector.shape_cast %49 : vector<1x256x256xbf16> to vector<256x256xbf16>
    %cst_49 = arith.constant dense<0.000000e+00> : vector<22x256xf32>
    %51 = tpu.matmul %48, %50, %cst_49 {dimension_numbers = #tpu.dot_dimension_numbers<[1], [0], [0], [1], [0, 0, 1, 1], [], []>} : vector<22x256xbf16>, vector<256x256xbf16>, vector<22x256xf32> -> vector<22x256xf32>
    %52 = arith.addf %46, %51 : vector<22x256xf32>
    %cst_50 = arith.constant 0.000000e+00 : f32
    %53 = vector.broadcast %cst_50 : f32 to vector<1x256xf32>
    %cst_51 = arith.constant 0.000000e+00 : f32
    %54 = vector.broadcast %cst_51 : f32 to vector<1x256xf32>
    %55 = vector.extract_strided_slice %52 {offsets = [0, 0], sizes = [4, 256], strides = [1, 1]} : vector<22x256xf32> to vector<4x256xf32>
    %cst_52 = arith.constant dense<0.000000e+00> : vector<256xf32>
    %56 = vector.multi_reduction <add>, %55, %cst_52 [0] : vector<4x256xf32> to vector<256xf32>
    %57 = vector.shape_cast %56 : vector<256xf32> to vector<1x256xf32>
    %58 = arith.addf %53, %57 : vector<1x256xf32>
    %59 = arith.mulf %55, %55 : vector<4x256xf32>
    %cst_53 = arith.constant dense<0.000000e+00> : vector<256xf32>
    %60 = vector.multi_reduction <add>, %59, %cst_53 [0] : vector<4x256xf32> to vector<256xf32>
    %61 = vector.shape_cast %60 : vector<256xf32> to vector<1x256xf32>
    %62 = arith.addf %54, %61 : vector<1x256xf32>
    %63 = vector.extract_strided_slice %52 {offsets = [6, 0], sizes = [4, 256], strides = [1, 1]} : vector<22x256xf32> to vector<4x256xf32>
    %cst_54 = arith.constant dense<0.000000e+00> : vector<256xf32>
    %64 = vector.multi_reduction <add>, %63, %cst_54 [0] : vector<4x256xf32> to vector<256xf32>
    %65 = vector.shape_cast %64 : vector<256xf32> to vector<1x256xf32>
    %66 = arith.addf %58, %65 : vector<1x256xf32>
    %67 = arith.mulf %63, %63 : vector<4x256xf32>
    %cst_55 = arith.constant dense<0.000000e+00> : vector<256xf32>
    %68 = vector.multi_reduction <add>, %67, %cst_55 [0] : vector<4x256xf32> to vector<256xf32>
    %69 = vector.shape_cast %68 : vector<256xf32> to vector<1x256xf32>
    %70 = arith.addf %62, %69 : vector<1x256xf32>
    %71 = vector.extract_strided_slice %52 {offsets = [12, 0], sizes = [4, 256], strides = [1, 1]} : vector<22x256xf32> to vector<4x256xf32>
    %cst_56 = arith.constant dense<0.000000e+00> : vector<256xf32>
    %72 = vector.multi_reduction <add>, %71, %cst_56 [0] : vector<4x256xf32> to vector<256xf32>
    %73 = vector.shape_cast %72 : vector<256xf32> to vector<1x256xf32>
    %74 = arith.addf %66, %73 : vector<1x256xf32>
    %75 = arith.mulf %71, %71 : vector<4x256xf32>
    %cst_57 = arith.constant dense<0.000000e+00> : vector<256xf32>
    %76 = vector.multi_reduction <add>, %75, %cst_57 [0] : vector<4x256xf32> to vector<256xf32>
    %77 = vector.shape_cast %76 : vector<256xf32> to vector<1x256xf32>
    %78 = arith.addf %70, %77 : vector<1x256xf32>
    %79 = vector.extract_strided_slice %52 {offsets = [18, 0], sizes = [4, 256], strides = [1, 1]} : vector<22x256xf32> to vector<4x256xf32>
    %cst_58 = arith.constant dense<0.000000e+00> : vector<256xf32>
    %80 = vector.multi_reduction <add>, %79, %cst_58 [0] : vector<4x256xf32> to vector<256xf32>
    %81 = vector.shape_cast %80 : vector<256xf32> to vector<1x256xf32>
    %82 = arith.addf %74, %81 : vector<1x256xf32>
    %83 = arith.mulf %79, %79 : vector<4x256xf32>
    %cst_59 = arith.constant dense<0.000000e+00> : vector<256xf32>
    %84 = vector.multi_reduction <add>, %83, %cst_59 [0] : vector<4x256xf32> to vector<256xf32>
    %85 = vector.shape_cast %84 : vector<256xf32> to vector<1x256xf32>
    %86 = arith.addf %78, %85 : vector<1x256xf32>
    %cst_60 = arith.constant 6.250000e-02 : f32
    %87 = vector.broadcast %cst_60 : f32 to vector<1x256xf32>
    %88 = arith.mulf %82, %87 : vector<1x256xf32>
    %cst_61 = arith.constant 6.250000e-02 : f32
    %89 = vector.broadcast %cst_61 : f32 to vector<1x256xf32>
    %90 = arith.mulf %86, %89 : vector<1x256xf32>
    %91 = arith.mulf %88, %88 : vector<1x256xf32>
    %92 = arith.subf %90, %91 : vector<1x256xf32>
    %cst_62 = arith.constant 0.000000e+00 : f32
    %93 = vector.broadcast %cst_62 : f32 to vector<1x256xf32>
    %94 = arith.maximumf %92, %93 : vector<1x256xf32>
    %95 = vector.broadcast %88 : vector<1x256xf32> to vector<22x256xf32>
    %96 = arith.subf %52, %95 : vector<22x256xf32>
    %cst_63 = arith.constant 9.99999974E-6 : f32
    %97 = vector.broadcast %cst_63 : f32 to vector<1x256xf32>
    %98 = arith.addf %94, %97 : vector<1x256xf32>
    %99 = math.rsqrt %98 : vector<1x256xf32>
    %100 = vector.broadcast %99 : vector<1x256xf32> to vector<22x256xf32>
    %101 = arith.mulf %96, %100 : vector<22x256xf32>
    %cst_64 = arith.constant 0.000000e+00 : f32
    %102 = vector.broadcast %cst_64 : f32 to vector<22x256xf32>
    %103 = arith.maximumf %101, %102 : vector<22x256xf32>
    %c0_65 = arith.constant 0 : index
    %c0_66 = arith.constant 0 : index
    %c0_67 = arith.constant 0 : index
    %104 = vector.load %arg3[%c0_65, %c0_66, %c0_67] : memref<1x22x256xf32, #tpu.memory_space<vmem>>, vector<1x22x256xf32>
    %105 = vector.shape_cast %104 : vector<1x22x256xf32> to vector<22x256xf32>
    %106 = vector.shape_cast %103 : vector<22x256xf32> to vector<1x22x256xf32>
    tpu.vector_store %arg3[%c0_65, %c0_66, %c0_67], %106 {strides = array<i32>} : memref<1x22x256xf32, #tpu.memory_space<vmem>>, vector<1x22x256xf32>,
    return
  }
  func.func @transform_0(%arg0: i32) -> (i32, i32, i32) {
    %c0_i32 = arith.constant 0 : i32
    %c0_i32_0 = arith.constant 0 : i32
    %c0_i32_1 = arith.constant 0 : i32
    return %arg0, %c0_i32, %c0_i32_0 : i32, i32, i32
  }
  func.func @transform_1(%arg0: i32) -> (i32, i32, i32) {
    %c0_i32 = arith.constant 0 : i32
    %c0_i32_0 = arith.constant 0 : i32
    %c0_i32_1 = arith.constant 0 : i32
    %c0_i32_2 = arith.constant 0 : i32
    return %c0_i32, %c0_i32_0, %c0_i32_1 : i32, i32, i32
  }
  func.func @transform_2(%arg0: i32) -> (i32, i32, i32) {
    %c0_i32 = arith.constant 0 : i32
    %c0_i32_0 = arith.constant 0 : i32
    %c0_i32_1 = arith.constant 0 : i32
    return %arg0, %c0_i32, %c0_i32_0 : i32, i32, i32
  }
}

module attributes {stable_mosaic.version = 11 : i64} {
  func.func @_conv_in_res_kernel(%arg0: i32, %arg1: memref<1x36x256xbf16, #tpu.memory_space<vmem>>, %arg2: memref<9x256x256xbf16, #tpu.memory_space<vmem>>, %arg3: memref<1x22x256xf32, #tpu.memory_space<vmem>>, %arg4: memref<1x22x256xf32, #tpu.memory_space<vmem>>) attributes {dimension_semantics = [#tpu.dimension_semantics<parallel>], iteration_bounds = array<i64: 2>, scalar_prefetch = 0 : i64, scratch_operands = 0 : i64, tpu.core_type = #tpu.core_type<tc>, window_params = [{transform_indices = @transform_0, window_bounds = array<i64: 1, 36, 256>}, {pipeline_mode = #tpu.pipeline_mode<synchronous>, transform_indices = @transform_1, window_bounds = array<i64: 9, 256, 256>}, {transform_indices = @transform_2, window_bounds = array<i64: 1, 22, 256>}, {transform_indices = @transform_3, window_bounds = array<i64: 1, 22, 256>}]} {
    %c0 = arith.constant 0 : index
    %c0_0 = arith.constant 0 : index
    %c0_1 = arith.constant 0 : index
    %0 = vector.load %arg1[%c0, %c0_0, %c0_1] : memref<1x36x256xbf16, #tpu.memory_space<vmem>>, vector<1x22x256xbf16>
    %1 = vector.shape_cast %0 : vector<1x22x256xbf16> to vector<22x256xbf16>
    %c0_2 = arith.constant 0 : index
    %c0_3 = arith.constant 0 : index
    %c0_4 = arith.constant 0 : index
    %2 = vector.load %arg2[%c0_2, %c0_3, %c0_4] : memref<9x256x256xbf16, #tpu.memory_space<vmem>>, vector<1x256x256xbf16>
    %3 = vector.shape_cast %2 : vector<1x256x256xbf16> to vector<256x256xbf16>
    %cst = arith.constant dense<0.000000e+00> : vector<22x256xf32>
    %4 = tpu.matmul %1, %3, %cst {dimension_numbers = #tpu.dot_dimension_numbers<[1], [0], [0], [1], [0, 0, 1, 1], [], []>} : vector<22x256xbf16>, vector<256x256xbf16>, vector<22x256xf32> -> vector<22x256xf32>
    %c0_5 = arith.constant 0 : index
    %c1 = arith.constant 1 : index
    %c0_6 = arith.constant 0 : index
    %5 = vector.load %arg1[%c0_5, %c1, %c0_6] : memref<1x36x256xbf16, #tpu.memory_space<vmem>>, vector<1x22x256xbf16>
    %6 = vector.shape_cast %5 : vector<1x22x256xbf16> to vector<22x256xbf16>
    %c1_7 = arith.constant 1 : index
    %c0_8 = arith.constant 0 : index
    %c0_9 = arith.constant 0 : index
    %7 = vector.load %arg2[%c1_7, %c0_8, %c0_9] : memref<9x256x256xbf16, #tpu.memory_space<vmem>>, vector<1x256x256xbf16>
    %8 = vector.shape_cast %7 : vector<1x256x256xbf16> to vector<256x256xbf16>
    %cst_10 = arith.constant dense<0.000000e+00> : vector<22x256xf32>
    %9 = tpu.matmul %6, %8, %cst_10 {dimension_numbers = #tpu.dot_dimension_numbers<[1], [0], [0], [1], [0, 0, 1, 1], [], []>} : vector<22x256xbf16>, vector<256x256xbf16>, vector<22x256xf32> -> vector<22x256xf32>
    %10 = arith.addf %4, %9 : vector<22x256xf32>
    %c0_11 = arith.constant 0 : index
    %c2 = arith.constant 2 : index
    %c0_12 = arith.constant 0 : index
    %11 = vector.load %arg1[%c0_11, %c2, %c0_12] : memref<1x36x256xbf16, #tpu.memory_space<vmem>>, vector<1x22x256xbf16>
    %12 = vector.shape_cast %11 : vector<1x22x256xbf16> to vector<22x256xbf16>
    %c2_13 = arith.constant 2 : index
    %c0_14 = arith.constant 0 : index
    %c0_15 = arith.constant 0 : index
    %13 = vector.load %arg2[%c2_13, %c0_14, %c0_15] : memref<9x256x256xbf16, #tpu.memory_space<vmem>>, vector<1x256x256xbf16>
    %14 = vector.shape_cast %13 : vector<1x256x256xbf16> to vector<256x256xbf16>
    %cst_16 = arith.constant dense<0.000000e+00> : vector<22x256xf32>
    %15 = tpu.matmul %12, %14, %cst_16 {dimension_numbers = #tpu.dot_dimension_numbers<[1], [0], [0], [1], [0, 0, 1, 1], [], []>} : vector<22x256xbf16>, vector<256x256xbf16>, vector<22x256xf32> -> vector<22x256xf32>
    %16 = arith.addf %10, %15 : vector<22x256xf32>
    %c0_17 = arith.constant 0 : index
    %c6 = arith.constant 6 : index
    %c0_18 = arith.constant 0 : index
    %17 = vector.load %arg1[%c0_17, %c6, %c0_18] : memref<1x36x256xbf16, #tpu.memory_space<vmem>>, vector<1x22x256xbf16>
    %18 = vector.shape_cast %17 : vector<1x22x256xbf16> to vector<22x256xbf16>
    %c3 = arith.constant 3 : index
    %c0_19 = arith.constant 0 : index
    %c0_20 = arith.constant 0 : index
    %19 = vector.load %arg2[%c3, %c0_19, %c0_20] : memref<9x256x256xbf16, #tpu.memory_space<vmem>>, vector<1x256x256xbf16>
    %20 = vector.shape_cast %19 : vector<1x256x256xbf16> to vector<256x256xbf16>
    %cst_21 = arith.constant dense<0.000000e+00> : vector<22x256xf32>
    %21 = tpu.matmul %18, %20, %cst_21 {dimension_numbers = #tpu.dot_dimension_numbers<[1], [0], [0], [1], [0, 0, 1, 1], [], []>} : vector<22x256xbf16>, vector<256x256xbf16>, vector<22x256xf32> -> vector<22x256xf32>
    %22 = arith.addf %16, %21 : vector<22x256xf32>
    %c0_22 = arith.constant 0 : index
    %c7 = arith.constant 7 : index
    %c0_23 = arith.constant 0 : index
    %23 = vector.load %arg1[%c0_22, %c7, %c0_23] : memref<1x36x256xbf16, #tpu.memory_space<vmem>>, vector<1x22x256xbf16>
    %24 = vector.shape_cast %23 : vector<1x22x256xbf16> to vector<22x256xbf16>
    %c4 = arith.constant 4 : index
    %c0_24 = arith.constant 0 : index
    %c0_25 = arith.constant 0 : index
    %25 = vector.load %arg2[%c4, %c0_24, %c0_25] : memref<9x256x256xbf16, #tpu.memory_space<vmem>>, vector<1x256x256xbf16>
    %26 = vector.shape_cast %25 : vector<1x256x256xbf16> to vector<256x256xbf16>
    %cst_26 = arith.constant dense<0.000000e+00> : vector<22x256xf32>
    %27 = tpu.matmul %24, %26, %cst_26 {dimension_numbers = #tpu.dot_dimension_numbers<[1], [0], [0], [1], [0, 0, 1, 1], [], []>} : vector<22x256xbf16>, vector<256x256xbf16>, vector<22x256xf32> -> vector<22x256xf32>
    %28 = arith.addf %22, %27 : vector<22x256xf32>
    %c0_27 = arith.constant 0 : index
    %c8 = arith.constant 8 : index
    %c0_28 = arith.constant 0 : index
    %29 = vector.load %arg1[%c0_27, %c8, %c0_28] : memref<1x36x256xbf16, #tpu.memory_space<vmem>>, vector<1x22x256xbf16>
    %30 = vector.shape_cast %29 : vector<1x22x256xbf16> to vector<22x256xbf16>
    %c5 = arith.constant 5 : index
    %c0_29 = arith.constant 0 : index
    %c0_30 = arith.constant 0 : index
    %31 = vector.load %arg2[%c5, %c0_29, %c0_30] : memref<9x256x256xbf16, #tpu.memory_space<vmem>>, vector<1x256x256xbf16>
    %32 = vector.shape_cast %31 : vector<1x256x256xbf16> to vector<256x256xbf16>
    %cst_31 = arith.constant dense<0.000000e+00> : vector<22x256xf32>
    %33 = tpu.matmul %30, %32, %cst_31 {dimension_numbers = #tpu.dot_dimension_numbers<[1], [0], [0], [1], [0, 0, 1, 1], [], []>} : vector<22x256xbf16>, vector<256x256xbf16>, vector<22x256xf32> -> vector<22x256xf32>
    %34 = arith.addf %28, %33 : vector<22x256xf32>
    %c0_32 = arith.constant 0 : index
    %c12 = arith.constant 12 : index
    %c0_33 = arith.constant 0 : index
    %35 = vector.load %arg1[%c0_32, %c12, %c0_33] : memref<1x36x256xbf16, #tpu.memory_space<vmem>>, vector<1x22x256xbf16>
    %36 = vector.shape_cast %35 : vector<1x22x256xbf16> to vector<22x256xbf16>
    %c6_34 = arith.constant 6 : index
    %c0_35 = arith.constant 0 : index
    %c0_36 = arith.constant 0 : index
    %37 = vector.load %arg2[%c6_34, %c0_35, %c0_36] : memref<9x256x256xbf16, #tpu.memory_space<vmem>>, vector<1x256x256xbf16>
    %38 = vector.shape_cast %37 : vector<1x256x256xbf16> to vector<256x256xbf16>
    %cst_37 = arith.constant dense<0.000000e+00> : vector<22x256xf32>
    %39 = tpu.matmul %36, %38, %cst_37 {dimension_numbers = #tpu.dot_dimension_numbers<[1], [0], [0], [1], [0, 0, 1, 1], [], []>} : vector<22x256xbf16>, vector<256x256xbf16>, vector<22x256xf32> -> vector<22x256xf32>
    %40 = arith.addf %34, %39 : vector<22x256xf32>
    %c0_38 = arith.constant 0 : index
    %c13 = arith.constant 13 : index
    %c0_39 = arith.constant 0 : index
    %41 = vector.load %arg1[%c0_38, %c13, %c0_39] : memref<1x36x256xbf16, #tpu.memory_space<vmem>>, vector<1x22x256xbf16>
    %42 = vector.shape_cast %41 : vector<1x22x256xbf16> to vector<22x256xbf16>
    %c7_40 = arith.constant 7 : index
    %c0_41 = arith.constant 0 : index
    %c0_42 = arith.constant 0 : index
    %43 = vector.load %arg2[%c7_40, %c0_41, %c0_42] : memref<9x256x256xbf16, #tpu.memory_space<vmem>>, vector<1x256x256xbf16>
    %44 = vector.shape_cast %43 : vector<1x256x256xbf16> to vector<256x256xbf16>
    %cst_43 = arith.constant dense<0.000000e+00> : vector<22x256xf32>
    %45 = tpu.matmul %42, %44, %cst_43 {dimension_numbers = #tpu.dot_dimension_numbers<[1], [0], [0], [1], [0, 0, 1, 1], [], []>} : vector<22x256xbf16>, vector<256x256xbf16>, vector<22x256xf32> -> vector<22x256xf32>
    %46 = arith.addf %40, %45 : vector<22x256xf32>
    %c0_44 = arith.constant 0 : index
    %c14 = arith.constant 14 : index
    %c0_45 = arith.constant 0 : index
    %47 = vector.load %arg1[%c0_44, %c14, %c0_45] : memref<1x36x256xbf16, #tpu.memory_space<vmem>>, vector<1x22x256xbf16>
    %48 = vector.shape_cast %47 : vector<1x22x256xbf16> to vector<22x256xbf16>
    %c8_46 = arith.constant 8 : index
    %c0_47 = arith.constant 0 : index
    %c0_48 = arith.constant 0 : index
    %49 = vector.load %arg2[%c8_46, %c0_47, %c0_48] : memref<9x256x256xbf16, #tpu.memory_space<vmem>>, vector<1x256x256xbf16>
    %50 = vector.shape_cast %49 : vector<1x256x256xbf16> to vector<256x256xbf16>
    %cst_49 = arith.constant dense<0.000000e+00> : vector<22x256xf32>
    %51 = tpu.matmul %48, %50, %cst_49 {dimension_numbers = #tpu.dot_dimension_numbers<[1], [0], [0], [1], [0, 0, 1, 1], [], []>} : vector<22x256xbf16>, vector<256x256xbf16>, vector<22x256xf32> -> vector<22x256xf32>
    %52 = arith.addf %46, %51 : vector<22x256xf32>
    %cst_50 = arith.constant 0.000000e+00 : f32
    %53 = vector.broadcast %cst_50 : f32 to vector<1x256xf32>
    %cst_51 = arith.constant 0.000000e+00 : f32
    %54 = vector.broadcast %cst_51 : f32 to vector<1x256xf32>
    %55 = vector.extract_strided_slice %52 {offsets = [0, 0], sizes = [4, 256], strides = [1, 1]} : vector<22x256xf32> to vector<4x256xf32>
    %cst_52 = arith.constant dense<0.000000e+00> : vector<256xf32>
    %56 = vector.multi_reduction <add>, %55, %cst_52 [0] : vector<4x256xf32> to vector<256xf32>
    %57 = vector.shape_cast %56 : vector<256xf32> to vector<1x256xf32>
    %58 = arith.addf %53, %57 : vector<1x256xf32>
    %59 = arith.mulf %55, %55 : vector<4x256xf32>
    %cst_53 = arith.constant dense<0.000000e+00> : vector<256xf32>
    %60 = vector.multi_reduction <add>, %59, %cst_53 [0] : vector<4x256xf32> to vector<256xf32>
    %61 = vector.shape_cast %60 : vector<256xf32> to vector<1x256xf32>
    %62 = arith.addf %54, %61 : vector<1x256xf32>
    %63 = vector.extract_strided_slice %52 {offsets = [6, 0], sizes = [4, 256], strides = [1, 1]} : vector<22x256xf32> to vector<4x256xf32>
    %cst_54 = arith.constant dense<0.000000e+00> : vector<256xf32>
    %64 = vector.multi_reduction <add>, %63, %cst_54 [0] : vector<4x256xf32> to vector<256xf32>
    %65 = vector.shape_cast %64 : vector<256xf32> to vector<1x256xf32>
    %66 = arith.addf %58, %65 : vector<1x256xf32>
    %67 = arith.mulf %63, %63 : vector<4x256xf32>
    %cst_55 = arith.constant dense<0.000000e+00> : vector<256xf32>
    %68 = vector.multi_reduction <add>, %67, %cst_55 [0] : vector<4x256xf32> to vector<256xf32>
    %69 = vector.shape_cast %68 : vector<256xf32> to vector<1x256xf32>
    %70 = arith.addf %62, %69 : vector<1x256xf32>
    %71 = vector.extract_strided_slice %52 {offsets = [12, 0], sizes = [4, 256], strides = [1, 1]} : vector<22x256xf32> to vector<4x256xf32>
    %cst_56 = arith.constant dense<0.000000e+00> : vector<256xf32>
    %72 = vector.multi_reduction <add>, %71, %cst_56 [0] : vector<4x256xf32> to vector<256xf32>
    %73 = vector.shape_cast %72 : vector<256xf32> to vector<1x256xf32>
    %74 = arith.addf %66, %73 : vector<1x256xf32>
    %75 = arith.mulf %71, %71 : vector<4x256xf32>
    %cst_57 = arith.constant dense<0.000000e+00> : vector<256xf32>
    %76 = vector.multi_reduction <add>, %75, %cst_57 [0] : vector<4x256xf32> to vector<256xf32>
    %77 = vector.shape_cast %76 : vector<256xf32> to vector<1x256xf32>
    %78 = arith.addf %70, %77 : vector<1x256xf32>
    %79 = vector.extract_strided_slice %52 {offsets = [18, 0], sizes = [4, 256], strides = [1, 1]} : vector<22x256xf32> to vector<4x256xf32>
    %cst_58 = arith.constant dense<0.000000e+00> : vector<256xf32>
    %80 = vector.multi_reduction <add>, %79, %cst_58 [0] : vector<4x256xf32> to vector<256xf32>
    %81 = vector.shape_cast %80 : vector<256xf32> to vector<1x256xf32>
    %82 = arith.addf %74, %81 : vector<1x256xf32>
    %83 = arith.mulf %79, %79 : vector<4x256xf32>
    %cst_59 = arith.constant dense<0.000000e+00> : vector<256xf32>
    %84 = vector.multi_reduction <add>, %83, %cst_59 [0] : vector<4x256xf32> to vector<256xf32>
    %85 = vector.shape_cast %84 : vector<256xf32> to vector<1x256xf32>
    %86 = arith.addf %78, %85 : vector<1x256xf32>
    %cst_60 = arith.constant 6.250000e-02 : f32
    %87 = vector.broadcast %cst_60 : f32 to vector<1x256xf32>
    %88 = arith.mulf %82, %87 : vector<1x256xf32>
    %cst_61 = arith.constant 6.250000e-02 : f32
    %89 = vector.broadcast %cst_61 : f32 to vector<1x256xf32>
    %90 = arith.mulf %86, %89 : vector<1x256xf32>
    %91 = arith.mulf %88, %88 : vector<1x256xf32>
    %92 = arith.subf %90, %91 : vector<1x256xf32>
    %cst_62 = arith.constant 0.000000e+00 : f32
    %93 = vector.broadcast %cst_62 : f32 to vector<1x256xf32>
    %94 = arith.maximumf %92, %93 : vector<1x256xf32>
    %95 = vector.broadcast %88 : vector<1x256xf32> to vector<22x256xf32>
    %96 = arith.subf %52, %95 : vector<22x256xf32>
    %cst_63 = arith.constant 9.99999974E-6 : f32
    %97 = vector.broadcast %cst_63 : f32 to vector<1x256xf32>
    %98 = arith.addf %94, %97 : vector<1x256xf32>
    %99 = math.rsqrt %98 : vector<1x256xf32>
    %100 = vector.broadcast %99 : vector<1x256xf32> to vector<22x256xf32>
    %101 = arith.mulf %96, %100 : vector<22x256xf32>
    %c0_64 = arith.constant 0 : index
    %c0_65 = arith.constant 0 : index
    %c0_66 = arith.constant 0 : index
    %102 = vector.load %arg3[%c0_64, %c0_65, %c0_66] : memref<1x22x256xf32, #tpu.memory_space<vmem>>, vector<1x22x256xf32>
    %103 = vector.shape_cast %102 : vector<1x22x256xf32> to vector<22x256xf32>
    %104 = arith.addf %101, %103 : vector<22x256xf32>
    %c0_67 = arith.constant 0 : index
    %c0_68 = arith.constant 0 : index
    %c0_69 = arith.constant 0 : index
    %105 = vector.load %arg4[%c0_67, %c0_68, %c0_69] : memref<1x22x256xf32, #tpu.memory_space<vmem>>, vector<1x22x256xf32>
    %106 = vector.shape_cast %105 : vector<1x22x256xf32> to vector<22x256xf32>
    %107 = vector.shape_cast %104 : vector<22x256xf32> to vector<1x22x256xf32>
    tpu.vector_store %arg4[%c0_67, %c0_68, %c0_69], %107 {strides = array<i32>} : memref<1x22x256xf32, #tpu.memory_space<vmem>>, vector<1x22x256xf32>,
    return
  }
  func.func @transform_0(%arg0: i32) -> (i32, i32, i32) {
    %c0_i32 = arith.constant 0 : i32
    %c0_i32_0 = arith.constant 0 : i32
    %c0_i32_1 = arith.constant 0 : i32
    return %arg0, %c0_i32, %c0_i32_0 : i32, i32, i32
  }
  func.func @transform_1(%arg0: i32) -> (i32, i32, i32) {
    %c0_i32 = arith.constant 0 : i32
    %c0_i32_0 = arith.constant 0 : i32
    %c0_i32_1 = arith.constant 0 : i32
    %c0_i32_2 = arith.constant 0 : i32
    return %c0_i32, %c0_i32_0, %c0_i32_1 : i32, i32, i32
  }
  func.func @transform_2(%arg0: i32) -> (i32, i32, i32) {
    %c0_i32 = arith.constant 0 : i32
    %c0_i32_0 = arith.constant 0 : i32
    %c0_i32_1 = arith.constant 0 : i32
    return %arg0, %c0_i32, %c0_i32_0 : i32, i32, i32
  }
  func.func @transform_3(%arg0: i32) -> (i32, i32, i32) {
    %c0_i32 = arith.constant 0 : i32
    %c0_i32_0 = arith.constant 0 : i32
    %c0_i32_1 = arith.constant 0 : i32
    return %arg0, %c0_i32, %c0_i32_0 : i32, i32, i32
  }
}

</mosaic_0001>

<bundles_post_ra>
// kernel: content_encoder_forward.7
= control target key start
LH: loop header
LB: loop body
LE: loop exit
PB: predicated region body
PF: predicated region fallthrough
CT: control target
= control target key end

     0   :  { %s1210_s9 = smov 0   ;;  %s1614_s0 = inlined_call_operand.vmem [shape: bf16[2,256,256], index: 0, kind: input, shape index: {}]   ;;  %s1615_s1 = inlined_call_operand.vmem [shape: bf16[1,256,128], index: 1, kind: input, shape index: {}]   ;;  %s1616_s2 = inlined_call_operand.vmem [shape: f32[2,256,128], index: 2, kind: output, shape index: {}]  }
   0x1 LB: > { %s924_s10 = sadd.s32 4294967295, %s1193_s9   ;;  %p928_p0 = scmp.ge.s32.totalorder %s1193_s9, 1  ;;  %s1193_s9 = sphi %s1210_s9, %s12_s9  }
   0x2   : > { %p112_p1 = scmp.lt.s32.totalorder %s1193_s9, 3 }
   0x4   : > { %p113_p2 = pnand %p928_p0, %p112_p1 }
   0x5   : > { %v1121_v0 = vld [vmem:[%s1615_s1 + $0x40] sm:$0xff] (!%p113_p2)   ;;  %v1123_v2 = vld [vmem:[%s1615_s1 + $0x48] sm:$0xff] (!%p113_p2)   ;;  %p134_p3 = scmp.lt.s32.totalorder (!%p113_p2), %s924_s10, 1  ;;  %v1125_v4 = vld [vmem:[%s1615_s1 + $0x50] sm:$0xff] (!%p113_p2)  }
   0x6   : > { %116 = sbr.rel (%p113_p2) target bundleno = 404 (0x194), region = 28  ;;  %v1122_v1 = vld [vmem:[%s1615_s1] sm:$0xff] (!%p113_p2)   ;;  %985 = vmatprep.subr.bf16.mxu0 (!%p113_p2), %v1121_v0  ;;  %1097 = vmatprep.subr.bf16.mxu1 (!%p113_p2), %v1121_v0  ;;  %v1124_v3 = vld [vmem:[%s1615_s1 + $0x8] sm:$0xff] (!%p113_p2)   ;;  %v1126_v5 = vld [vmem:[%s1615_s1 + $0x10] sm:$0xff] (!%p113_p2)  }
   0x7   : > { %986 = vmatpush3.bf16.msra.mxu0 (!%p113_p2), %v1122_v1  ;;  %1105 = vmatpush3.bf16.msra.mxu1 (!%p113_p2), %v1122_v1  ;;  %v1127_v6 = vld [vmem:[%s1615_s1 + $0x58] sm:$0xff] (!%p113_p2)   ;;  %v1129_v8 = vld [vmem:[%s1615_s1 + $0x60] sm:$0xff] (!%p113_p2)   ;;  %v1131_v10 = vld [vmem:[%s1615_s1 + $0x68] sm:$0xff] (!%p113_p2)  }
   0x8   : > { %987 = vmatprep.subr.bf16.mxu0 (!%p113_p2), %v1123_v2  ;;  %1098 = vmatprep.subr.bf16.mxu1 (!%p113_p2), %v1123_v2  ;;  %v1128_v7 = vld [vmem:[%s1615_s1 + $0x18] sm:$0xff] (!%p113_p2)   ;;  %v1130_v9 = vld [vmem:[%s1615_s1 + $0x20] sm:$0xff] (!%p113_p2)   ;;  %v1132_v12 = vld [vmem:[%s1615_s1 + $0x28] sm:$0xff] (!%p113_p2)  }
   0x9   : > { %v1133_v13 = vld [vmem:[%s1615_s1 + $0x70] sm:$0xff] (!%p113_p2)   ;;  %v1135_v16 = vld [vmem:[%s1615_s1 + $0x78] sm:$0xff] (!%p113_p2)  }
   0xa   : > { %v1134_v15 = vld [vmem:[%s1615_s1 + $0x30] sm:$0xff] (!%p113_p2)   ;;  %v1136_v17 = vld [vmem:[%s1615_s1 + $0x38] sm:$0xff] (!%p113_p2)  }
   0xb   : > { %988 = vmatpush3.bf16.msra.mxu0 (!%p113_p2), %v1124_v3  ;;  %1106 = vmatpush3.bf16.msra.mxu1 (!%p113_p2), %v1124_v3 }
   0xc   : > { %989 = vmatprep.subr.bf16.mxu0 (!%p113_p2), %v1125_v4  ;;  %1099 = vmatprep.subr.bf16.mxu1 (!%p113_p2), %v1125_v4 }
   0xd   : > { %s1618_s10 = smov (!%p134_p3, %s924_s10), 1 }
   0xe   : > { %s983_s27 = sshll.u32 %s1618_s10, 8 }
   0xf   : > { %990 = vmatpush3.bf16.msra.mxu0 %v1126_v5  ;;  %1107 = vmatpush3.bf16.msra.mxu1 %v1126_v5  ;;  %s1253_s4 = scalar_lea.vmem %s1614_s0, %s983_s27  ;;  %s1557_s23 = scalar_lea.vmem %s1616_s2, %s983_s27 }
  0x10   : > { %991 = vmatprep.subr.bf16.mxu0 %v1127_v6  ;;  %1100 = vmatprep.subr.bf16.mxu1 %v1127_v6  ;;  %v1139_v11 = vld [vmem:[%s1253_s4 + $0x4] ss:$8 sps:$4 sm:$0xff]   ;;  %v1137_v18 = vld [vmem:[%s1253_s4] ss:$8 sps:$4 sm:$0xff]   ;;  %v1140_v19 = vld [vmem:[%s1253_s4 + $0x14] ss:$8 sps:$4 sm:$0xff]  }
  0x11   : > { %497 = vmatprep.mubr.bf16.mxu0 %v1139_v11  ;;  %v1151_v14 = vld [vmem:[%s1253_s4 + $0x84] ss:$8 sps:$4 sm:$0xff]   ;;  %v1149_v20 = vld [vmem:[%s1253_s4 + $0x80] ss:$8 sps:$4 sm:$0xff]   ;;  %v1155_v21 = vld [vmem:[%s1253_s4 + $0x94] ss:$8 sps:$4 sm:$0xff]  }
  0x12   : > { %561 = vmatprep.mubr.bf16.mxu1 %v1151_v14  ;;  %v1142_v22 = vld [vmem:[%s1253_s4 + $0x10] ss:$8 sps:$4 sm:$0xff]   ;;  %v1143_v23 = vld [vmem:[%s1253_s4 + $0x24] ss:$8 sps:$4 sm:$0xff]   ;;  %v1145_v26 = vld [vmem:[%s1253_s4 + $0x20] ss:$8 sps:$4 sm:$0xff]  }
  0x13   : > { %992 = vmatpush3.bf16.msra.mxu0 %v1128_v7  ;;  %1108 = vmatpush3.bf16.msra.mxu1 %v1128_v7  ;;  %v1157_v24 = vld [vmem:[%s1253_s4 + $0x90] ss:$8 sps:$4 sm:$0xff]   ;;  %v1161_v25 = vld [vmem:[%s1253_s4 + $0xa4] ss:$8 sps:$4 sm:$0xff]   ;;  %v1146_v27 = vld [vmem:[%s1253_s4 + $0x34] ss:$8 sps:$4 sm:$0xff]  }
  0x14   : > { %993 = vmatprep.subr.bf16.mxu0 %v1129_v8  ;;  %1101 = vmatprep.subr.bf16.mxu1 %v1129_v8  ;;  %v1163_v28 = vld [vmem:[%s1253_s4 + $0xa0] ss:$8 sps:$4 sm:$0xff]   ;;  %v1167_v29 = vld [vmem:[%s1253_s4 + $0xb4] ss:$8 sps:$4 sm:$0xff]   ;;  %v1148_v30 = vld [vmem:[%s1253_s4 + $0x30] ss:$8 sps:$4 sm:$0xff]  }
  0x15   : > { %v1152_v31 = vld [vmem:[%s1253_s4 + $0x44] ss:$8 sps:$4 sm:$0xff]   ;;  %v1169_v32 = vld [vmem:[%s1253_s4 + $0xb0] ss:$8 sps:$4 sm:$0xff]   ;;  %v1154_v34 = vld [vmem:[%s1253_s4 + $0x40] ss:$8 sps:$4 sm:$0xff]  }
  0x16   : > { %v1173_v33 = vld [vmem:[%s1253_s4 + $0xc4] ss:$8 sps:$4 sm:$0xff]   ;;  %v1158_v35 = vld [vmem:[%s1253_s4 + $0x54] ss:$8 sps:$4 sm:$0xff]   ;;  %v1175_v36 = vld [vmem:[%s1253_s4 + $0xc0] ss:$8 sps:$4 sm:$0xff]  }
  0x17   : > { %994 = vmatpush3.bf16.msra.mxu0 %v1130_v9  ;;  %1109 = vmatpush3.bf16.msra.mxu1 %v1130_v9  ;;  %v1176_v37 = vld [vmem:[%s1253_s4 + $0xd4] ss:$8 sps:$4 sm:$0xff]   ;;  %v1160_v38 = vld [vmem:[%s1253_s4 + $0x50] ss:$8 sps:$4 sm:$0xff]   ;;  %v1164_v39 = vld [vmem:[%s1253_s4 + $0x64] ss:$8 sps:$4 sm:$0xff]  }
  0x18   : > { %995 = vmatprep.subr.bf16.mxu0 %v1131_v10  ;;  %1102 = vmatprep.subr.bf16.mxu1 %v1131_v10  ;;  %v1178_v40 = vld [vmem:[%s1253_s4 + $0xd0] ss:$8 sps:$4 sm:$0xff]   ;;  %v1179_v41 = vld [vmem:[%s1253_s4 + $0xe4] ss:$8 sps:$4 sm:$0xff]   ;;  %v1166_v42 = vld [vmem:[%s1253_s4 + $0x60] ss:$8 sps:$4 sm:$0xff]  }
  0x19   : > { %v1170_v43 = vld [vmem:[%s1253_s4 + $0x74] ss:$8 sps:$4 sm:$0xff]   ;;  %v1181_v44 = vld [vmem:[%s1253_s4 + $0xe0] ss:$8 sps:$4 sm:$0xff]   ;;  %v1172_v46 = vld [vmem:[%s1253_s4 + $0x70] ss:$8 sps:$4 sm:$0xff]  }
  0x1a   : > { %v1182_v45 = vld [vmem:[%s1253_s4 + $0xf4] ss:$8 sps:$4 sm:$0xff]   ;;  %v1184_v47 = vld [vmem:[%s1253_s4 + $0xf0] ss:$8 sps:$4 sm:$0xff]  }
  0x1b   : > { %996 = vmatpush3.bf16.msra.mxu0 %v1132_v12  ;;  %1110 = vmatpush3.bf16.msra.mxu1 %v1132_v12 }
  0x1c   : > { %997 = vmatprep.subr.bf16.mxu0 %v1133_v13  ;;  %1103 = vmatprep.subr.bf16.mxu1 %v1133_v13 }
  0x1f   : > { %998 = vmatpush3.bf16.msra.mxu0 %v1134_v15  ;;  %1111 = vmatpush3.bf16.msra.mxu1 %v1134_v15 }
  0x20   : > { %999 = vmatprep.subr.bf16.mxu0 %v1135_v16  ;;  %1104 = vmatprep.subr.bf16.mxu1 %v1135_v16 }
  0x23   : > { %1000 = vmatpush3.bf16.msra.mxu0 %v1136_v17  ;;  %1112 = vmatpush3.bf16.msra.mxu1 %v1136_v17 }
  0x26   : > { %498 = vmatmul.mubr.bf16.vlgmr.msra.gmra.mrb[0].mxu0 %v1137_v18  ;;  %562 = vmatmul.mubr.bf16.vlgmr.msra.gmra.mrb[0].mxu1 %v1149_v20 }
  0x27   : > { %505 = vmatprep.mubr.bf16.mxu0 %v1140_v19  ;;  %569 = vmatprep.mubr.bf16.mxu1 %v1155_v21 }
  0x2e   : > { %506 = vmatmul.mubr.bf16.gmra.mrb[4].mxu0 %v1142_v22  ;;  %570 = vmatmul.mubr.bf16.gmra.mrb[4].mxu1 %v1157_v24 }
  0x2f   : > { %513 = vmatprep.mubr.bf16.mxu0 %v1143_v23  ;;  %577 = vmatprep.mubr.bf16.mxu1 %v1161_v25 }
  0x36   : > { %514 = vmatmul.mubr.bf16.gmra.mrb[8].mxu0 %v1145_v26  ;;  %578 = vmatmul.mubr.bf16.gmra.mrb[8].mxu1 %v1163_v28 }
  0x37   : > { %521 = vmatprep.mubr.bf16.mxu0 %v1146_v27  ;;  %585 = vmatprep.mubr.bf16.mxu1 %v1167_v29 }
  0x3e   : > { %522 = vmatmul.mubr.bf16.gmra.mrb[12].mxu0 %v1148_v30  ;;  %586 = vmatmul.mubr.bf16.gmra.mrb[12].mxu1 %v1169_v32 }
  0x3f   : > { %529 = vmatprep.mubr.bf16.mxu0 %v1152_v31  ;;  %593 = vmatprep.mubr.bf16.mxu1 %v1173_v33 }
  0x46   : > { %530 = vmatmul.mubr.bf16.gmra.mrb[16].mxu0 %v1154_v34  ;;  %594 = vmatmul.mubr.bf16.gmra.mrb[16].mxu1 %v1175_v36 }
  0x47   : > { %537 = vmatprep.mubr.bf16.mxu0 %v1158_v35  ;;  %601 = vmatprep.mubr.bf16.mxu1 %v1176_v37 }
  0x4e   : > { %538 = vmatmul.mubr.bf16.gmra.mrb[20].mxu0 %v1160_v38  ;;  %602 = vmatmul.mubr.bf16.gmra.mrb[20].mxu1 %v1178_v40 }
  0x4f   : > { %545 = vmatprep.mubr.bf16.mxu0 %v1164_v39  ;;  %609 = vmatprep.mubr.bf16.mxu1 %v1179_v41 }
  0x56   : > { %546 = vmatmul.mubr.bf16.gmra.mrb[24].mxu0 %v1166_v42  ;;  %610 = vmatmul.mubr.bf16.gmra.mrb[24].mxu1 %v1181_v44 }
  0x57   : > { %553 = vmatprep.mubr.bf16.mxu0 %v1170_v43  ;;  %617 = vmatprep.mubr.bf16.mxu1 %v1182_v45 }
  0x5e   : > { %554 = vmatmul.mubr.bf16.gmra.mrb[28].mxu0 %v1172_v46  ;;  %618 = vmatmul.mubr.bf16.gmra.mrb[28].mxu1 %v1184_v47 }
  0xf9   : > { %v1001_v48 = vpop.f32.mrb[0].mxu0  ;;  %v1049_v50 = vpop.f32.mrb[0].mxu1 }
  0xfa   : > { %v1002_v49 = vpop.f32.mrb[1].mxu0  ;;  %v1050_v53 = vpop.f32.mrb[1].mxu1 }
  0xfb   : > { %v1308_v51 = vadd.f32 %v1002_v49, %v1001_v48  ;;  %v1004_v52 = vpop.f32.mrb[2].mxu0  ;;  %v1310_v55 = vadd.f32 %v1050_v53, %v1049_v50  ;;  %v1052_v56 = vpop.f32.mrb[2].mxu1 }
  0xfc   : > { %v1005_v54 = vpop.f32.mrb[3].mxu0  ;;  %v1053_v58 = vpop.f32.mrb[3].mxu1 }
  0xfd   : > { %v1312_v57 = vadd.f32 %v1005_v54, %v1004_v52  ;;  %v1314_v59 = vadd.f32 %v1053_v58, %v1052_v56  ;;  %v664_v18 = vmul.f32 %v1308_v51, %v1308_v51 }
  0xff   : > { %v665_v11 = vmul.f32 %v1312_v57, %v1312_v57  ;;  %v626_v19 = vadd.f32 %v1312_v57, %v1308_v51 }
 0x101   : > { %v1007_v60 = vpop.f32.mrb[4].mxu0  ;;  %v1055_v62 = vpop.f32.mrb[4].mxu1  ;;  %v696_v24 = vadd.f32 %v665_v11, %v664_v18 }
 0x102   : > { %v1008_v61 = vpop.f32.mrb[5].mxu0  ;;  %v1056_v1 = vpop.f32.mrb[5].mxu1 }
 0x103   : > { %v1316_v63 = vadd.f32 %v1008_v61, %v1007_v60  ;;  %v1010_v0 = vpop.f32.mrb[6].mxu0  ;;  %v1318_v3 = vadd.f32 %v1056_v1, %v1055_v62  ;;  %v1058_v4 = vpop.f32.mrb[6].mxu1 }
 0x104   : > { %v1011_v2 = vpop.f32.mrb[7].mxu0  ;;  %v1059_v6 = vpop.f32.mrb[7].mxu1 }
 0x105   : > { %v1320_v5 = vadd.f32 %v1011_v2, %v1010_v0  ;;  %v1322_v7 = vadd.f32 %v1059_v6, %v1058_v4  ;;  %v666_v20 = vmul.f32 %v1316_v63, %v1316_v63  ;;  %v627_v25 = vadd.f32 %v1316_v63, %v626_v19 }
 0x107   : > { %v697_v26 = vadd.f32 %v696_v24, %v666_v20  ;;  %v667_v27 = vmul.f32 %v1320_v5, %v1320_v5  ;;  %v628_v31 = vadd.f32 %v1320_v5, %v627_v25 }
 0x109   : > { %v1013_v8 = vpop.f32.mrb[8].mxu0  ;;  %v1061_v10 = vpop.f32.mrb[8].mxu1  ;;  %v698_v39 = vadd.f32 %v697_v26, %v667_v27 }
 0x10a   : > { %v1014_v9 = vpop.f32.mrb[9].mxu0  ;;  %v1062_v14 = vpop.f32.mrb[9].mxu1 }
 0x10b   : > { %v1326_v12 = vadd.f32 %v1014_v9, %v1013_v8  ;;  %v1016_v13 = vpop.f32.mrb[10].mxu0  ;;  %v1328_v16 = vadd.f32 %v1062_v14, %v1061_v10  ;;  %v1064_v17 = vpop.f32.mrb[10].mxu1 }
 0x10c   : > { %v1017_v15 = vpop.f32.mrb[11].mxu0  ;;  %v1065_v22 = vpop.f32.mrb[11].mxu1 }
 0x10d   : > { %v1336_v21 = vadd.f32 %v1017_v15, %v1016_v13  ;;  %v1338_v23 = vadd.f32 %v1065_v22, %v1064_v17  ;;  %v668_v32 = vmul.f32 %v1326_v12, %v1326_v12  ;;  %v629_v40 = vadd.f32 %v1326_v12, %v628_v31 }
 0x10f   : > { %v699_v44 = vadd.f32 %v698_v39, %v668_v32  ;;  %v669_v45 = vmul.f32 %v1336_v21, %v1336_v21  ;;  %v630_v46 = vadd.f32 %v1336_v21, %v629_v40 }
 0x111   : > { %v1019_v28 = vpop.f32.mrb[12].mxu0  ;;  %v1067_v30 = vpop.f32.mrb[12].mxu1  ;;  %v700_v52 = vadd.f32 %v699_v44, %v669_v45 }
 0x112   : > { %v1020_v29 = vpop.f32.mrb[13].mxu0  ;;  %v1068_v35 = vpop.f32.mrb[13].mxu1 }
 0x113   : > { %v1346_v33 = vadd.f32 %v1020_v29, %v1019_v28  ;;  %v1022_v34 = vpop.f32.mrb[14].mxu0  ;;  %v1348_v37 = vadd.f32 %v1068_v35, %v1067_v30  ;;  %v1070_v38 = vpop.f32.mrb[14].mxu1 }
 0x114   : > { %v1023_v36 = vpop.f32.mrb[15].mxu0  ;;  %v1071_v42 = vpop.f32.mrb[15].mxu1 }
 0x115   : > { %v1351_v41 = vadd.f32 %v1023_v36, %v1022_v34  ;;  %v1353_v43 = vadd.f32 %v1071_v42, %v1070_v38  ;;  %v670_v47 = vmul.f32 %v1346_v33, %v1346_v33  ;;  %v631_v53 = vadd.f32 %v1346_v33, %v630_v46 }
 0x117   : > { %v701_v0 = vadd.f32 %v700_v52, %v670_v47  ;;  %v671_v1 = vmul.f32 %v1351_v41, %v1351_v41  ;;  %v632_v8 = vadd.f32 %v1351_v41, %v631_v53 }
 0x119   : > { %v1025_v48 = vpop.f32.mrb[16].mxu0  ;;  %v1073_v50 = vpop.f32.mrb[16].mxu1  ;;  %v702_v10 = vadd.f32 %v701_v0, %v671_v1 }
 0x11a   : > { %v1026_v49 = vpop.f32.mrb[17].mxu0  ;;  %v1074_v58 = vpop.f32.mrb[17].mxu1 }
 0x11b   : > { %v1361_v54 = vadd.f32 %v1026_v49, %v1025_v48  ;;  %v1028_v56 = vpop.f32.mrb[18].mxu0  ;;  %v1363_v61 = vadd.f32 %v1074_v58, %v1073_v50  ;;  %v1076_v62 = vpop.f32.mrb[18].mxu1 }
 0x11c   : > { %v1029_v60 = vpop.f32.mrb[19].mxu0  ;;  %v1077_v4 = vpop.f32.mrb[19].mxu1 }
 0x11d   : > { %v1367_v2 = vadd.f32 %v1029_v60, %v1028_v56  ;;  %v1369_v6 = vadd.f32 %v1077_v4, %v1076_v62  ;;  %v672_v9 = vmul.f32 %v1361_v54, %v1361_v54  ;;  %v633_v11 = vadd.f32 %v1361_v54, %v632_v8 }
 0x11f   : > { %v703_v17 = vadd.f32 %v702_v10, %v672_v9  ;;  %v673_v18 = vmul.f32 %v1367_v2, %v1367_v2  ;;  %v634_v27 = vadd.f32 %v1367_v2, %v633_v11 }
 0x121   : > { %v1031_v13 = vpop.f32.mrb[20].mxu0  ;;  %v1079_v15 = vpop.f32.mrb[20].mxu1  ;;  %v704_v32 = vadd.f32 %v703_v17, %v673_v18 }
 0x122   : > { %v1032_v14 = vpop.f32.mrb[21].mxu0  ;;  %v1080_v22 = vpop.f32.mrb[21].mxu1 }
 0x123   : > { %v1377_v19 = vadd.f32 %v1032_v14, %v1031_v13  ;;  %v1034_v20 = vpop.f32.mrb[22].mxu0  ;;  %v1379_v25 = vadd.f32 %v1080_v22, %v1079_v15  ;;  %v1082_v26 = vpop.f32.mrb[22].mxu1 }
 0x124   : > { %v1035_v24 = vpop.f32.mrb[23].mxu0  ;;  %v1083_v30 = vpop.f32.mrb[23].mxu1 }
 0x125   : > { %v674_v28 = vmul.f32 %v1377_v19, %v1377_v19  ;;  %v1384_v29 = vadd.f32 %v1035_v24, %v1034_v20  ;;  %v1386_v31 = vadd.f32 %v1083_v30, %v1082_v26  ;;  %v635_v34 = vadd.f32 %v1377_v19, %v634_v27 }
 0x127   : > { %v705_v35 = vadd.f32 %v704_v32, %v674_v28  ;;  %v675_v36 = vmul.f32 %v1384_v29, %v1384_v29  ;;  %v636_v42 = vadd.f32 %v1384_v29, %v635_v34  ;;  %v680_v34 = vmul.f32 %v1310_v55, %v1310_v55 }
 0x129   : > { %v1037_v38 = vpop.f32.mrb[24].mxu0  ;;  %v1085_v40 = vpop.f32.mrb[24].mxu1  ;;  %v706_v50 = vadd.f32 %v705_v35, %v675_v36 }
 0x12a   : > { %v1038_v39 = vpop.f32.mrb[25].mxu0  ;;  %v1086_v46 = vpop.f32.mrb[25].mxu1 }
 0x12b   : > { %v1392_v44 = vadd.f32 %v1038_v39, %v1037_v38  ;;  %v1040_v45 = vpop.f32.mrb[26].mxu0  ;;  %v1394_v48 = vadd.f32 %v1086_v46, %v1085_v40  ;;  %v1088_v49 = vpop.f32.mrb[26].mxu1  ;;  %v681_v38 = vmul.f32 %v1314_v59, %v1314_v59 }
 0x12c   : > { %v1041_v47 = vpop.f32.mrb[27].mxu0  ;;  %v1089_v58 = vpop.f32.mrb[27].mxu1 }
 0x12d   : > { %v637_v52 = vadd.f32 %v1392_v44, %v636_v42  ;;  %v676_v53 = vmul.f32 %v1392_v44, %v1392_v44  ;;  %v1399_v56 = vadd.f32 %v1041_v47, %v1040_v45  ;;  %v1401_v60 = vadd.f32 %v1089_v58, %v1088_v49 }
 0x12e   : > { %v682_v42 = vmul.f32 %v1318_v3, %v1318_v3  ;;  %v683_v47 = vmul.f32 %v1322_v7, %v1322_v7 }
 0x12f   : > { %v707_v62 = vadd.f32 %v706_v50, %v676_v53  ;;  %v638_v0 = vadd.f32 %v1399_v56, %v637_v52  ;;  %v677_v1 = vmul.f32 %v1399_v56, %v1399_v56  ;;  %v684_v52 = vmul.f32 %v1328_v16, %v1328_v16 }
 0x131   : > { %v708_v4 = vadd.f32 %v707_v62, %v677_v1  ;;  %v1043_v8 = vpop.f32.mrb[28].mxu0  ;;  %v1091_v10 = vpop.f32.mrb[28].mxu1  ;;  %v685_v62 = vmul.f32 %v1338_v23, %v1338_v23 }
 0x132   : > { %v1044_v9 = vpop.f32.mrb[29].mxu0  ;;  %v1092_v14 = vpop.f32.mrb[29].mxu1 }
 0x133   : > { %v1406_v11 = vadd.f32 %v1044_v9, %v1043_v8  ;;  %v1046_v13 = vpop.f32.mrb[30].mxu0  ;;  %v1408_v17 = vadd.f32 %v1092_v14, %v1091_v10  ;;  %v1094_v18 = vpop.f32.mrb[30].mxu1  ;;  %v687_v10 = vmul.f32 %v1353_v43, %v1353_v43 }
 0x134   : > { %v1047_v15 = vpop.f32.mrb[31].mxu0  ;;  %v1095_v26 = vpop.f32.mrb[31].mxu1 }
 0x135   : > { %v639_v20 = vadd.f32 %v1406_v11, %v638_v0  ;;  %v678_v22 = vmul.f32 %v1406_v11, %v1406_v11  ;;  %v1413_v24 = vadd.f32 %v1047_v15, %v1046_v13  ;;  %v1415_v27 = vadd.f32 %v1095_v26, %v1094_v18 }
 0x136   : > { %v688_v18 = vmul.f32 %v1363_v61, %v1363_v61 }
 0x137   : > { %v709_v28 = vadd.f32 %v708_v4, %v678_v22  ;;  %v640_v30 = vadd.f32 %v1413_v24, %v639_v20  ;;  %v679_v32 = vmul.f32 %v1413_v24, %v1413_v24  ;;  %v686_v4 = vmul.f32 %v1348_v37, %v1348_v37 }
 0x139   : > { %v641_v35 = vadd.f32 %v1310_v55, %v640_v30  ;;  %v710_v36 = vadd.f32 %v709_v28, %v679_v32  ;;  %v689_v28 = vmul.f32 %v1369_v6, %v1369_v6 }
 0x13b   : > { %v642_v39 = vadd.f32 %v1314_v59, %v641_v35  ;;  %v711_v40 = vadd.f32 %v710_v36, %v680_v34  ;;  %v690_v34 = vmul.f32 %v1379_v25, %v1379_v25 }
 0x13d   : > { %v643_v45 = vadd.f32 %v1318_v3, %v642_v39  ;;  %v712_v46 = vadd.f32 %v711_v40, %v681_v38  ;;  %v691_v38 = vmul.f32 %v1386_v31, %v1386_v31 }
 0x13f   : > { %v644_v49 = vadd.f32 %v1322_v7, %v643_v45  ;;  %v713_v50 = vadd.f32 %v712_v46, %v682_v42  ;;  %v692_v42 = vmul.f32 %v1394_v48, %v1394_v48 }
 0x141   : > { %v714_v53 = vadd.f32 %v713_v50, %v683_v47  ;;  %v645_v58 = vadd.f32 %v1328_v16, %v644_v49  ;;  %v693_v47 = vmul.f32 %v1401_v60, %v1401_v60  ;;  %v694_v49 = vmul.f32 %v1408_v17, %v1408_v17 }
 0x143   : > { %v646_v0 = vadd.f32 %v1338_v23, %v645_v58  ;;  %v715_v1 = vadd.f32 %v714_v53, %v684_v52 }
 0x145   : > { %v647_v8 = vadd.f32 %v1348_v37, %v646_v0  ;;  %v716_v9 = vadd.f32 %v715_v1, %v685_v62  ;;  %v695_v62 = vmul.f32 %v1415_v27, %v1415_v27 }
 0x147   : > { %v648_v13 = vadd.f32 %v1353_v43, %v647_v8  ;;  %v717_v14 = vadd.f32 %v716_v9, %v686_v4 }
 0x149   : > { %v649_v15 = vadd.f32 %v1363_v61, %v648_v13  ;;  %v718_v20 = vadd.f32 %v717_v14, %v687_v10 }
 0x14b   : > { %v719_v22 = vadd.f32 %v718_v20, %v688_v18  ;;  %v650_v26 = vadd.f32 %v1369_v6, %v649_v15 }
 0x14d   : > { %v720_v30 = vadd.f32 %v719_v22, %v689_v28  ;;  %v651_v32 = vadd.f32 %v1379_v25, %v650_v26 }
 0x14f   : > { %v721_v35 = vadd.f32 %v720_v30, %v690_v34  ;;  %v652_v36 = vadd.f32 %v1386_v31, %v651_v32 }
 0x151   : > { %v722_v39 = vadd.f32 %v721_v35, %v691_v38  ;;  %v653_v40 = vadd.f32 %v1394_v48, %v652_v36 }
 0x153   : > { %v723_v45 = vadd.f32 %v722_v39, %v692_v42  ;;  %v654_v46 = vadd.f32 %v1401_v60, %v653_v40 }
 0x155   : > { %v724_v50 = vadd.f32 %v723_v45, %v693_v47  ;;  %v655_v52 = vadd.f32 %v1408_v17, %v654_v46 }
 0x157   : > { %v725_v53 = vadd.f32 %v724_v50, %v694_v49  ;;  %v656_v58 = vadd.f32 %v1415_v27, %v655_v52 }
 0x159   : > { %v657_v0 = vrot.slane %v656_v58, 4  ;;  %v726_v1 = vadd.f32 %v725_v53, %v695_v62 }
 0x15b   : > { %v658_v4 = vadd.f32 %v657_v0, %v656_v58  ;;  %v727_v8 = vrot.slane %v726_v1, 4 }
 0x15d   : > { %v659_v9 = vrot.slane %v658_v4, 2  ;;  %v728_v10 = vadd.f32 %v727_v8, %v726_v1 }
 0x15f   : > { %v660_v13 = vadd.f32 %v659_v9, %v658_v4  ;;  %v729_v14 = vrot.slane %v728_v10, 2 }
 0x161   : > { %v661_v15 = vrot.slane %v660_v13, 1  ;;  %v730_v18 = vadd.f32 %v729_v14, %v728_v10 }
 0x163   : > { %v662_v20 = vadd.f32 %v661_v15, %v660_v13  ;;  %v731_v22 = vrot.slane %v730_v18, 1 }
 0x165   : > { %v732_v26 = vadd.f32 %v731_v22, %v730_v18  ;;  %v1468_v28 = vmul.f32 0.00390625, %v662_v20 }
 0x167   : > { %v735_v30 = vmul.f32 0.00390625, %v732_v26  ;;  %v736_v32 = vmul.f32 %v1468_v28, %v1468_v28  ;;  %v751_v35 = vsub.f32 %v1392_v44, %v1468_v28  ;;  %v752_v36 = vsub.f32 %v1399_v56, %v1468_v28 }
 0x168   : > { %v753_v38 = vsub.f32 %v1406_v11, %v1468_v28  ;;  %v754_v39 = vsub.f32 %v1413_v24, %v1468_v28  ;;  %v757_v42 = vsub.f32 %v1318_v3, %v1468_v28  ;;  %v758_v45 = vsub.f32 %v1322_v7, %v1468_v28 }
 0x169   : > { %v737_v34 = vsub.f32 %v735_v30, %v736_v32  ;;  %v759_v46 = vsub.f32 %v1328_v16, %v1468_v28  ;;  %v760_v44 = vsub.f32 %v1338_v23, %v1468_v28  ;;  %v761_v56 = vsub.f32 %v1348_v37, %v1468_v28 }
 0x16a   : > { %v762_v11 = vsub.f32 %v1353_v43, %v1468_v28  ;;  %v763_v24 = vsub.f32 %v1363_v61, %v1468_v28  ;;  %v764_v3 = vsub.f32 %v1369_v6, %v1468_v28  ;;  %v765_v7 = vsub.f32 %v1379_v25, %v1468_v28 }
 0x16b   : > { %v738_v40 = vmax.f32 %v737_v34, 0.0  ;;  %v766_v16 = vsub.f32 %v1386_v31, %v1468_v28  ;;  %v767_v23 = vsub.f32 %v1394_v48, %v1468_v28  ;;  %v768_v37 = vsub.f32 %v1401_v60, %v1468_v28 }
 0x16c   : > { %v769_v43 = vsub.f32 %v1408_v17, %v1468_v28  ;;  %v770_v61 = vsub.f32 %v1415_v27, %v1468_v28  ;;  %v739_v6 = vsub.f32 %v1308_v51, %v1468_v28  ;;  %v740_v25 = vsub.f32 %v1312_v57, %v1468_v28 }
 0x16d   : > { %v771_v47 = vadd.f32 1e-05, %v738_v40  ;;  %v741_v31 = vsub.f32 %v1316_v63, %v1468_v28  ;;  %v742_v48 = vsub.f32 %v1320_v5, %v1468_v28  ;;  %v743_v60 = vsub.f32 %v1326_v12, %v1468_v28 }
 0x16e   : > { %v744_v17 = vsub.f32 %v1336_v21, %v1468_v28  ;;  %v745_v27 = vsub.f32 %v1346_v33, %v1468_v28  ;;  %v746_v51 = vsub.f32 %v1351_v41, %v1468_v28  ;;  %v747_v57 = vsub.f32 %v1361_v54, %v1468_v28 }
 0x16f   : > { %1185 = vrsqrt.f32 %v771_v47  ;;  %v748_v63 = vsub.f32 %v1367_v2, %v1468_v28  ;;  %v749_v5 = vsub.f32 %v1377_v19, %v1468_v28  ;;  %v750_v12 = vsub.f32 %v1384_v29, %v1468_v28 }
 0x170   : > { %v755_v21 = vsub.f32 %v1310_v55, %v1468_v28  ;;  %v756_v33 = vsub.f32 %v1314_v59, %v1468_v28 }
 0x179   : > { %v1186_v49 = vpop.eup %1185 }
 0x17a   : > { %v773_v41 = vmul.f32 %v1186_v49, %v739_v6  ;;  %v774_v50 = vmul.f32 %v1186_v49, %v740_v25  ;;  %v775_v52 = vmul.f32 %v1186_v49, %v741_v31  ;;  %v776_v54 = vmul.f32 %v1186_v49, %v742_v48 }
 0x17b   : > { %v777_v53 = vmul.f32 %v1186_v49, %v743_v60  ;;  %v778_v58 = vmul.f32 %v1186_v49, %v744_v17  ;;  %v779_v2 = vmul.f32 %v1186_v49, %v745_v27  ;;  %v780_v62 = vmul.f32 %v1186_v49, %v746_v51 }
 0x17c   : > { %v781_v0 = vmul.f32 %v1186_v49, %v747_v57  ;;  %v782_v1 = vmul.f32 %v1186_v49, %v748_v63  ;;  %v783_v19 = vmul.f32 %v1186_v49, %v749_v5  ;;  %v784_v4 = vmul.f32 %v1186_v49, %v750_v12 }
 0x17d   : > { %v785_v8 = vmul.f32 %v1186_v49, %v751_v35  ;;  %v786_v29 = vmul.f32 %v1186_v49, %v752_v36  ;;  %v787_v9 = vmul.f32 %v1186_v49, %v753_v38  ;;  %v788_v55 = vmul.f32 %v1186_v49, %v754_v39 }
 0x17e   : > { %v789_v10 = vmul.f32 %v1186_v49, %v755_v21  ;;  %v790_v13 = vmul.f32 %v1186_v49, %v756_v33  ;;  %v791_v59 = vmul.f32 %v1186_v49, %v757_v42  ;;  %v792_v14 = vmul.f32 %v1186_v49, %v758_v45 }
 0x17f   : > { %v1536_v15 = vmul.f32 %v1186_v49, %v759_v46  ;;  %v1538_v18 = vmul.f32 %v1186_v49, %v760_v44  ;;  %v1540_v20 = vmul.f32 %v1186_v49, %v761_v56  ;;  %v1542_v22 = vmul.f32 %v1186_v49, %v762_v11 }
 0x180   : > { %v1544_v26 = vmul.f32 %v1186_v49, %v763_v24  ;;  %v1546_v28 = vmul.f32 %v1186_v49, %v764_v3  ;;  %v1548_v30 = vmul.f32 %v1186_v49, %v765_v7  ;;  %v1550_v32 = vmul.f32 %v1186_v49, %v766_v16 }
 0x181   : > { %v1559_v34 = vmul.f32 %v1186_v49, %v767_v23  ;;  %v1561_v35 = vmul.f32 %v1186_v49, %v768_v37  ;;  %v1563_v36 = vmul.f32 %v1186_v49, %v769_v43  ;;  %v1565_v38 = vmul.f32 %v1186_v49, %v770_v61 }
 0x182   : > { %v805_v39 = vmax.f32 %v773_v41, 0.0  ;;  %v806_v40 = vmax.f32 %v774_v50, 0.0  ;;  %v807_v42 = vmax.f32 %v775_v52, 0.0  ;;  %v808_v45 = vmax.f32 %v776_v54, 0.0 }
 0x183   : > { %v809_v46 = vmax.f32 %v777_v53, 0.0  ;;  %v810_v44 = vmax.f32 %v778_v58, 0.0  ;;  %v811_v56 = vmax.f32 %v779_v2, 0.0  ;;  %v812_v11 = vmax.f32 %v780_v62, 0.0 }
 0x184   : > { %v813_v24 = vmax.f32 %v781_v0, 0.0  ;;  %v814_v3 = vmax.f32 %v782_v1, 0.0  ;;  %v815_v7 = vmax.f32 %v783_v19, 0.0  ;;  %v816_v16 = vmax.f32 %v784_v4, 0.0  ;;  %837 = vst [vmem:[%s1557_s23] sm:$0xff] %v805_v39  ;;  %838 = vst [vmem:[%s1557_s23 + $0x8] sm:$0xff] %v806_v40 }
 0x185   : > { %839 = vst [vmem:[%s1557_s23 + $0x10] sm:$0xff] %v807_v42  ;;  %840 = vst [vmem:[%s1557_s23 + $0x18] sm:$0xff] %v808_v45  ;;  %v817_v23 = vmax.f32 %v785_v8, 0.0  ;;  %v818_v37 = vmax.f32 %v786_v29, 0.0  ;;  %v819_v43 = vmax.f32 %v787_v9, 0.0  ;;  %v820_v61 = vmax.f32 %v788_v55, 0.0 }
 0x186   : > { %841 = vst [vmem:[%s1557_s23 + $0x20] sm:$0xff] %v809_v46  ;;  %842 = vst [vmem:[%s1557_s23 + $0x28] sm:$0xff] %v810_v44  ;;  %v821_v47 = vmax.f32 %v789_v10, 0.0  ;;  %v822_v6 = vmax.f32 %v790_v13, 0.0  ;;  %v823_v25 = vmax.f32 %v791_v59, 0.0  ;;  %v824_v31 = vmax.f32 %v792_v14, 0.0 }
 0x187   : > { %843 = vst [vmem:[%s1557_s23 + $0x30] sm:$0xff] %v811_v56  ;;  %844 = vst [vmem:[%s1557_s23 + $0x38] sm:$0xff] %v812_v11  ;;  %v825_v48 = vmax.f32 %v1536_v15, 0.0  ;;  %v826_v60 = vmax.f32 %v1538_v18, 0.0  ;;  %v827_v17 = vmax.f32 %v1540_v20, 0.0  ;;  %v828_v27 = vmax.f32 %v1542_v22, 0.0 }
 0x188   : > { %845 = vst [vmem:[%s1557_s23 + $0x40] sm:$0xff] %v813_v24  ;;  %846 = vst [vmem:[%s1557_s23 + $0x48] sm:$0xff] %v814_v3  ;;  %v829_v51 = vmax.f32 %v1544_v26, 0.0  ;;  %v830_v57 = vmax.f32 %v1546_v28, 0.0  ;;  %v831_v63 = vmax.f32 %v1548_v30, 0.0  ;;  %v832_v49 = vmax.f32 %v1550_v32, 0.0 }
 0x189   : > { %847 = vst [vmem:[%s1557_s23 + $0x50] sm:$0xff] %v815_v7  ;;  %848 = vst [vmem:[%s1557_s23 + $0x58] sm:$0xff] %v816_v16  ;;  %v833_v5 = vmax.f32 %v1559_v34, 0.0  ;;  %v834_v12 = vmax.f32 %v1561_v35, 0.0  ;;  %v835_v21 = vmax.f32 %v1563_v36, 0.0  ;;  %v836_v33 = vmax.f32 %v1565_v38, 0.0 }
 0x18a   : > { %849 = vst [vmem:[%s1557_s23 + $0x60] sm:$0xff] %v817_v23  ;;  %850 = vst [vmem:[%s1557_s23 + $0x68] sm:$0xff] %v818_v37 }
 0x18b   : > { %851 = vst [vmem:[%s1557_s23 + $0x70] sm:$0xff] %v819_v43  ;;  %852 = vst [vmem:[%s1557_s23 + $0x78] sm:$0xff] %v820_v61 }
 0x18c   : > { %853 = vst [vmem:[%s1557_s23 + $0x80] sm:$0xff] %v821_v47  ;;  %854 = vst [vmem:[%s1557_s23 + $0x88] sm:$0xff] %v822_v6 }
 0x18d   : > { %855 = vst [vmem:[%s1557_s23 + $0x90] sm:$0xff] %v823_v25  ;;  %856 = vst [vmem:[%s1557_s23 + $0x98] sm:$0xff] %v824_v31 }
 0x18e   : > { %857 = vst [vmem:[%s1557_s23 + $0xa0] sm:$0xff] %v825_v48  ;;  %858 = vst [vmem:[%s1557_s23 + $0xa8] sm:$0xff] %v826_v60 }
 0x18f   : > { %859 = vst [vmem:[%s1557_s23 + $0xb0] sm:$0xff] %v827_v17  ;;  %860 = vst [vmem:[%s1557_s23 + $0xb8] sm:$0xff] %v828_v27 }
 0x190   : > { %861 = vst [vmem:[%s1557_s23 + $0xc0] sm:$0xff] %v829_v51  ;;  %862 = vst [vmem:[%s1557_s23 + $0xc8] sm:$0xff] %v830_v57 }
 0x191   : > { %863 = vst [vmem:[%s1557_s23 + $0xd0] sm:$0xff] %v831_v63  ;;  %864 = vst [vmem:[%s1557_s23 + $0xd8] sm:$0xff] %v832_v49 }
 0x192   : > { %865 = vst [vmem:[%s1557_s23 + $0xe0] sm:$0xff] %v833_v5  ;;  %866 = vst [vmem:[%s1557_s23 + $0xe8] sm:$0xff] %v834_v12 }
 0x193   : > { %867 = vst [vmem:[%s1557_s23 + $0xf0] sm:$0xff] %v835_v21  ;;  %868 = vst [vmem:[%s1557_s23 + $0xf8] sm:$0xff] %v836_v33 }
 0x194 PF: > { %s12_s9 = sadd.s32 1, %s1193_s9  }
 0x195   : > { %p9_p4 = scmp.ge.s32.totalorder %s12_s9, 4  }
 0x197   :  { %11 = sbr.rel (!%p9_p4) target bundleno = 1 (0x1), region = 58 }

// kernel: content_encoder_forward.8
= control target key start
LH: loop header
LB: loop body
LE: loop exit
PB: predicated region body
PF: predicated region fallthrough
CT: control target
= control target key end

     0   :  { %s3766_s9 = smov 0   ;;  %s4707_s0 = inlined_call_operand.vmem [shape: bf16[2,81,512], index: 0, kind: input, shape index: {}]   ;;  %s4708_s1 = inlined_call_operand.vmem [shape: bf16[4,512,128], index: 1, kind: input, shape index: {}]   ;;  %s4709_s2 = inlined_call_operand.vmem [shape: f32[2,71,128], index: 2, kind: output, shape index: {}]  }
   0x1 LB: > { %s2778_s10 = sadd.s32 4294967295, %s3749_s9   ;;  %p2782_p0 = scmp.ge.s32.totalorder %s3749_s9, 1  ;;  %s3749_s9 = sphi %s3766_s9, %s12_s9  }
   0x2   : > { %p112_p1 = scmp.lt.s32.totalorder %s3749_s9, 3 }
   0x4   : > { %p113_p2 = pnand %p2782_p0, %p112_p1 }
   0x5   : > { %v3545_v0 = vld [vmem:[%s4708_s1 + $0x140] sm:$0xff] (!%p113_p2)   ;;  %v3549_v4 = vld [vmem:[%s4708_s1 + $0x148] sm:$0xff] (!%p113_p2)   ;;  %v3553_v8 = vld [vmem:[%s4708_s1 + $0x150] sm:$0xff] (!%p113_p2)   ;;  %p134_p3 = scmp.lt.s32.totalorder (!%p113_p2), %s2778_s10, 1  ;;  %vm366_vm0 = vsmask.f32 (!%p113_p2), 7424 }
   0x6   : > { %116 = sbr.rel (%p113_p2) target bundleno = 468 (0x1d4), region = 28  ;;  %v3546_v1 = vld [vmem:[%s4708_s1 + $0x1c0] sm:$0xff] (!%p113_p2)   ;;  %3167 = vmatprep.subr.bf16.mxu0 (!%p113_p2), %v3545_v0  ;;  %v3550_v5 = vld [vmem:[%s4708_s1 + $0x1c8] sm:$0xff] (!%p113_p2)   ;;  %v3554_v9 = vld [vmem:[%s4708_s1 + $0x1d0] sm:$0xff] (!%p113_p2)   ;;  %vm2078_vm1 = vcmask (!%p113_p2), 1046528   ;;  %vm2525_vm2 = vcmask (!%p113_p2), 1045504  }
   0x7   : > { %v3547_v2 = vld [vmem:[%s4708_s1 + $0x100] sm:$0xff] (!%p113_p2)   ;;  %3213 = vmatprep.subr.bf16.mxu1 (!%p113_p2), %v3546_v1  ;;  %v3551_v6 = vld [vmem:[%s4708_s1 + $0x108] sm:$0xff] (!%p113_p2)   ;;  %v3555_v10 = vld [vmem:[%s4708_s1 + $0x110] sm:$0xff] (!%p113_p2)   ;;  %vm2551_vm3 = vcmask (!%p113_p2), 1044480   ;;  %vm2577_vm4 = vcmask (!%p113_p2), 1043456   ;;  %vm2603_vm5 = vcmask (!%p113_p2), 1042432  }
   0x8   : > { %v3548_v3 = vld [vmem:[%s4708_s1 + $0x180] sm:$0xff] (!%p113_p2)   ;;  %3168 = vmatpush3.bf16.msra.mxu0 (!%p113_p2), %v3547_v2  ;;  %v3552_v7 = vld [vmem:[%s4708_s1 + $0x188] sm:$0xff] (!%p113_p2)   ;;  %v3556_v11 = vld [vmem:[%s4708_s1 + $0x190] sm:$0xff] (!%p113_p2)   ;;  %vm2629_vm6 = vcmask (!%p113_p2), 1041408   ;;  %vm2655_vm7 = vcmask (!%p113_p2), 1040384  }
   0x9   : > { %3214 = vmatpush3.bf16.msra.mxu1 (!%p113_p2), %v3548_v3  ;;  %3169 = vmatprep.subr.bf16.mxu0 (!%p113_p2), %v3549_v4  ;;  %v3557_v12 = vld [vmem:[%s4708_s1 + $0x158] sm:$0xff] (!%p113_p2)   ;;  %v3561_v16 = vld [vmem:[%s4708_s1 + $0x160] sm:$0xff] (!%p113_p2)   ;;  %v3565_v20 = vld [vmem:[%s4708_s1 + $0x168] sm:$0xff] (!%p113_p2)  }
   0xa   : > { %3215 = vmatprep.subr.bf16.mxu1 (!%p113_p2), %v3550_v5  ;;  %v3558_v13 = vld [vmem:[%s4708_s1 + $0x1d8] sm:$0xff] (!%p113_p2)   ;;  %v3562_v17 = vld [vmem:[%s4708_s1 + $0x1e0] sm:$0xff] (!%p113_p2)   ;;  %v3566_v21 = vld [vmem:[%s4708_s1 + $0x1e8] sm:$0xff] (!%p113_p2)  }
   0xb   : > { %v3559_v14 = vld [vmem:[%s4708_s1 + $0x118] sm:$0xff] (!%p113_p2)   ;;  %v3563_v18 = vld [vmem:[%s4708_s1 + $0x120] sm:$0xff] (!%p113_p2)   ;;  %v3567_v22 = vld [vmem:[%s4708_s1 + $0x128] sm:$0xff] (!%p113_p2)  }
   0xc   : > { %3170 = vmatpush3.bf16.msra.mxu0 (!%p113_p2), %v3551_v6  ;;  %v3560_v15 = vld [vmem:[%s4708_s1 + $0x198] sm:$0xff] (!%p113_p2)   ;;  %v3564_v19 = vld [vmem:[%s4708_s1 + $0x1a0] sm:$0xff] (!%p113_p2)   ;;  %v3568_v23 = vld [vmem:[%s4708_s1 + $0x1a8] sm:$0xff] (!%p113_p2)  }
   0xd   : > { %3216 = vmatpush3.bf16.msra.mxu1 %v3552_v7  ;;  %3171 = vmatprep.subr.bf16.mxu0 %v3553_v8  ;;  %s4711_s10 = smov (!%p134_p3, %s2778_s10), 1  ;;  %v3569_v24 = vld [vmem:[%s4708_s1 + $0x170] sm:$0xff]   ;;  %v3573_v28 = vld [vmem:[%s4708_s1 + $0x178] sm:$0xff]   ;;  %v3585_v52 = vld [vmem:[%s4708_s1 + $0x40] sm:$0xff]  }
   0xe   : > { %3217 = vmatprep.subr.bf16.mxu1 %v3554_v9  ;;  %v3570_v25 = vld [vmem:[%s4708_s1 + $0x1f0] sm:$0xff]   ;;  %s3535_s11 = smul.u32 176, %s4711_s10  ;;  %v3574_v29 = vld [vmem:[%s4708_s1 + $0x1f8] sm:$0xff]   ;;  %v3586_v61 = vld [vmem:[%s4708_s1 + $0xc0] sm:$0xff]  }
   0xf   : > { %v3571_v26 = vld [vmem:[%s4708_s1 + $0x130] sm:$0xff]   ;;  %v3575_v30 = vld [vmem:[%s4708_s1 + $0x138] sm:$0xff]   ;;  %v3587_v9 = vld [vmem:[%s4708_s1] sm:$0xff]  }
  0x10   : > { %3172 = vmatpush3.bf16.msra.mxu0 %v3555_v10  ;;  %v3572_v27 = vld [vmem:[%s4708_s1 + $0x1b0] sm:$0xff]   ;;  %s3874_s22 = scalar_lea.vmem %s4707_s0, %s3535_s11  ;;  %v3576_v31 = vld [vmem:[%s4708_s1 + $0x1b8] sm:$0xff]  }
  0x11   : > { %3218 = vmatpush3.bf16.msra.mxu1 %v3556_v11  ;;  %3173 = vmatprep.subr.bf16.mxu0 %v3557_v12  ;;  %v145_v32 = vld [vmem:[%s3874_s22] sm:$0xff]  ;;  %v147_v33 = vld [vmem:[%s3874_s22 + $0x10] sm:$0xff]  ;;  %v146_v37 = vld [vmem:[%s3874_s22 + $0x8] sm:$0xff] }
  0x12   : > { %3219 = vmatprep.subr.bf16.mxu1 %v3558_v13  ;;  %v149_v34 = vld [vmem:[%s3874_s22 + $0x20] sm:$0xff]  ;;  %v3886_v35 = vld [vmem:[%s3874_s22 + $0x30] sm:$0xff]  ;;  %v3888_v36 = vcombine.high %v145_v32, %v147_v33  ;;  %v148_v38 = vld [vmem:[%s3874_s22 + $0x18] sm:$0xff]  ;;  %v3892_v39 = vcombine.low %v145_v32, %v147_v33 }
  0x13   : > { %v3894_v40 = vcombine.low %v147_v33, %v149_v34  ;;  %v3896_v41 = vcombine.high %v147_v33, %v149_v34  ;;  %v3899_v42 = vcombine.high %v149_v34, %v3886_v35  ;;  %v150_v43 = vld [vmem:[%s3874_s22 + $0x28] sm:$0xff]  ;;  %v3903_v44 = vld [vmem:[%s3874_s22 + $0x38] sm:$0xff]  ;;  %v3905_v45 = vcombine.high %v146_v37, %v148_v38 }
  0x14   : > { %3174 = vmatpush3.bf16.msra.mxu0 %v3559_v14  ;;  %v3908_v46 = vcombine.low %v149_v34, %v3886_v35  ;;  %v3910_v47 = vcombine.low %v146_v37, %v148_v38  ;;  %v380_v48 = vshrl.u32 %v3888_v36, 16  ;;  %v382_v49 = vshll.u32 %v3888_v36, 16  ;;  %v3589_v13 = vld [vmem:[%s4708_s1 + $0x48] sm:$0xff]   ;;  %v3975_v33 = vld [vmem:[%s3874_s22 + $0x58] sm:$0xff] }
  0x15   : > { %3220 = vmatpush3.bf16.msra.mxu1 %v3560_v15  ;;  %3175 = vmatprep.subr.bf16.mxu0 %v3561_v16  ;;  %v3915_v50 = vcombine.high %v150_v43, %v3903_v44  ;;  %v368_v51 = vshrl.u32 %v3892_v39, 16  ;;  %v387_v53 = vshll.u32 %v3899_v42, 16  ;;  %v404_v54 = vshrl.u32 %v3905_v45, 16 }
  0x16   : > { %3221 = vmatprep.subr.bf16.mxu1 %v3562_v17  ;;  %v406_v55 = vshll.u32 %v3905_v45, 16  ;;  %v370_v56 = vshll.u32 %v3892_v39, 16  ;;  %v384_v57 = vrot.slane %v382_v49, 1  ;;  %v375_v59 = vshll.u32 %v3908_v46, 16 }
  0x17   : > { %v411_v58 = vshll.u32 %v3915_v50, 16  ;;  %v3928_v60 = vcombine.low %v150_v43, %v3903_v44  ;;  %v389_v62 = vrot.slane %v387_v53, 1  ;;  %v392_v1 = vshrl.u32 %v3910_v47, 16 }
  0x18   : > { %3176 = vmatpush3.bf16.msra.mxu0 %v3563_v18  ;;  %v408_v63 = vrot.slane %v406_v55, 1  ;;  %v372_v0 = vrot.slane %v370_v56, 1  ;;  %v385_v2 = vor.u32 %v384_v57, %v380_v48  ;;  %v377_v4 = vrot.slane %v375_v59, 1  ;;  %v3588_v18 = vld [vmem:[%s4708_s1 + $0x80] sm:$0xff]   ;;  %v3599_v55 = vld [vmem:[%s4708_s1 + $0x10] sm:$0xff]  }
  0x19   : > { %3222 = vmatpush3.bf16.msra.mxu1 %v3564_v19  ;;  %3177 = vmatprep.subr.bf16.mxu0 %v3565_v20  ;;  %v413_v3 = vrot.slane %v411_v58, 1  ;;  %v394_v5 = vshll.u32 %v3910_v47, 16  ;;  %v399_v8 = vshll.u32 %v3928_v60, 16  ;;  %v3939_v10 = vcombine.low %v148_v38, %v150_v43  ;;  %v3590_v20 = vld [vmem:[%s4708_s1 + $0xc8] sm:$0xff]  }
  0x1a   : > { %3223 = vmatprep.subr.bf16.mxu1 %v3566_v21  ;;  %v409_v6 = vor.u32 %v408_v63, %v404_v54  ;;  %v373_v7 = vor.u32 %v372_v0, %v368_v51  ;;  %v390_v11 = vsel %vm366_vm0, %v385_v2, %v389_v62  ;;  %v3945_v14 = vcombine.high %v148_v38, %v150_v43  ;;  %v3597_v51 = vld [vmem:[%s4708_s1 + $0x50] sm:$0xff]  }
  0x1b   : > { %v396_v12 = vrot.slane %v394_v5, 1  ;;  %767 = vmatprep.mubr.bf16.mxu0 %v390_v11  ;;  %v401_v17 = vrot.slane %v399_v8, 1  ;;  %v423_v21 = vshrl.u32 %v3899_v42, 16  ;;  %v3598_v54 = vld [vmem:[%s4708_s1 + $0xd0] sm:$0xff]  }
  0x1c   : > { %3178 = vmatpush3.bf16.msra.mxu0 %v3567_v22  ;;  %v414_v15 = vsel %vm366_vm0, %v409_v6, %v413_v3  ;;  %v378_v16 = vsel %vm366_vm0, %v373_v7, %v377_v4  ;;  %v3591_v22 = vld [vmem:[%s4708_s1 + $0x8] sm:$0xff]   ;;  %v4021_v7 = vld [vmem:[%s3874_s22 + $0x78] sm:$0xff] }
  0x1d   : > { %3224 = vmatpush3.bf16.msra.mxu1 %v3568_v23  ;;  %3179 = vmatprep.subr.bf16.mxu0 %v3569_v24  ;;  %v397_v19 = vor.u32 %v396_v12, %v392_v1  ;;  %v439_v23 = vshrl.u32 %v3915_v50, 16  ;;  %v425_v32 = vor.u32 %v423_v21, %v389_v62  ;;  %v157_v1 = vld [vmem:[%s3874_s22 + $0x60] sm:$0xff]  ;;  %v158_v6 = vld [vmem:[%s3874_s22 + $0x68] sm:$0xff] }
  0x1e   : > { %3225 = vmatprep.subr.bf16.mxu1 %v3570_v25  ;;  %839 = vmatprep.mubr.bf16.mxu1 %v414_v15  ;;  %v3592_v25 = vld [vmem:[%s4708_s1 + $0x88] sm:$0xff]  }
  0x1f   : > { %v402_v24 = vsel %vm366_vm0, %v397_v19, %v401_v17  ;;  %v441_v43 = vor.u32 %v439_v23, %v413_v3  ;;  %v3604_v19 = vld [vmem:[%s4708_s1 + $0xd8] sm:$0xff]  }
  0x20   : > { %3180 = vmatpush3.bf16.msra.mxu0 %v3571_v26  ;;  %v153_v26 = vld [vmem:[%s3874_s22 + $0x40] sm:$0xff] }
  0x21   : > { %3226 = vmatpush3.bf16.msra.mxu1 %v3572_v27  ;;  %3181 = vmatprep.subr.bf16.mxu0 %v3573_v28  ;;  %v3966_v27 = vld [vmem:[%s3874_s22 + $0x50] sm:$0xff]  ;;  %v154_v28 = vld [vmem:[%s3874_s22 + $0x48] sm:$0xff]  ;;  %v3981_v37 = vcombine.low %v3886_v35, %v153_v26  ;;  %v4001_v56 = vcombine.high %v3886_v35, %v153_v26 }
  0x22   : > { %3227 = vmatprep.subr.bf16.mxu1 %v3574_v29  ;;  %v415_v29 = vshrl.u32 %v3908_v46, 16  ;;  %v3978_v34 = vcombine.low %v153_v26, %v3966_v27  ;;  %v3984_v38 = vcombine.high %v154_v28, %v3975_v33  ;;  %v3987_v49 = vcombine.low %v154_v28, %v3975_v33  ;;  %v3600_v35 = vld [vmem:[%s4708_s1 + $0x90] sm:$0xff]  }
  0x23   : > { %v4004_v57 = vcombine.low %v3903_v44, %v154_v28  ;;  %v4009_v62 = vcombine.high %v3903_v44, %v154_v28  ;;  %v4024_v44 = vcombine.high %v3966_v27, %v157_v1  ;;  %v3607_v28 = vld [vmem:[%s4708_s1 + $0x18] sm:$0xff]  }
  0x24   : > { %3182 = vmatpush3.bf16.msra.mxu0 %v3575_v30  ;;  %v431_v30 = vshrl.u32 %v3928_v60, 16  ;;  %v417_v48 = vor.u32 %v415_v29, %v377_v4  ;;  %v419_v53 = vshll.u32 %v3978_v34, 16  ;;  %v443_v58 = vshll.u32 %v3984_v38, 16  ;;  %v4016_v4 = vld [vmem:[%s3874_s22 + $0x70] sm:$0xff]  ;;  %v3608_v29 = vld [vmem:[%s4708_s1 + $0x98] sm:$0xff]  }
  0x25   : > { %3228 = vmatpush3.bf16.msra.mxu1 %v3576_v31  ;;  %3259 = vmatprep.subr.bf16.mxu0 %v3585_v52  ;;  %v3972_v31 = vcombine.high %v153_v26, %v3966_v27  ;;  %v4029_v11 = vcombine.high %v157_v1, %v4016_v4  ;;  %v471_v12 = vshrl.u32 %v3984_v38, 16  ;;  %v447_v23 = vshrl.u32 %v3978_v34, 16 }
  0x26   : > { %3305 = vmatprep.subr.bf16.mxu1 %v3586_v61  ;;  %v433_v59 = vor.u32 %v431_v30, %v401_v17  ;;  %v435_v61 = vshll.u32 %v3987_v49, 16  ;;  %v421_v0 = vrot.slane %v419_v53, 1  ;;  %v445_v2 = vrot.slane %v443_v58, 1  ;;  %v3610_v58 = vld [vmem:[%s4708_s1 + $0xe0] sm:$0xff]  }
  0x27   : > { %768 = vmatmul.mubr.bf16.vlgmr.msra.gmra.mrb[0].mxu0 %v378_v16  ;;  %v427_v52 = vshll.u32 %v3972_v31, 16  ;;  %v455_v5 = vshrl.u32 %v3972_v31, 16  ;;  %v463_v26 = vshrl.u32 %v3987_v49, 16  ;;  %v4060_v30 = vcombine.high %v3975_v33, %v158_v6 }
  0x28   : > { %3260 = vmatpush3.bf16.msra.mxu0 %v3587_v9  ;;  %840 = vmatmul.mubr.bf16.vlgmr.msra.gmra.mrb[0].mxu1 %v402_v24  ;;  %v437_v3 = vrot.slane %v435_v61, 1  ;;  %v422_v9 = vsel %vm366_vm0, %v417_v48, %v421_v0  ;;  %v446_v15 = vsel %vm366_vm0, %v441_v43, %v445_v2  ;;  %v473_v21 = vor.u32 %v471_v12, %v445_v2  ;;  %v161_v2 = vld [vmem:[%s3874_s22 + $0x80] sm:$0xff] }
  0x29   : > { %3261 = vmatprep.subr.bf16.mxu0 %v3589_v13  ;;  %3306 = vmatpush3.bf16.msra.mxu1 %v3588_v18  ;;  %v429_v63 = vrot.slane %v427_v52, 1  ;;  %v3603_v13 = vld [vmem:[%s4708_s1 + $0x58] sm:$0xff]   ;;  %v4038_v18 = vcombine.high %v158_v6, %v4021_v7  ;;  %v449_v43 = vor.u32 %v447_v23, %v421_v0  ;;  %v4092_v12 = vcombine.low %v161_v2, %v161_v2 }
  0x2a   : > { %3307 = vmatprep.subr.bf16.mxu1 %v3590_v20  ;;  %v438_v16 = vsel %vm366_vm0, %v433_v59, %v437_v3  ;;  %847 = vmatprep.mubr.bf16.mxu1 %v446_v15  ;;  %v459_v20 = vshll.u32 %v4029_v11, 16  ;;  %v465_v53 = vor.u32 %v463_v26, %v437_v3  ;;  %v4074_v59 = vcombine.low %v3975_v33, %v158_v6  ;;  %v3618_v26 = vld [vmem:[%s4708_s1 + $0xe8] sm:$0xff]  }
  0x2b   : > { %v430_v8 = vsel %vm366_vm0, %v425_v32, %v429_v63  ;;  %v457_v17 = vor.u32 %v455_v5, %v429_v63  ;;  %v475_v24 = vshll.u32 %v4038_v18, 16  ;;  %v3611_v63 = vld [vmem:[%s4708_s1 + $0x20] sm:$0xff]   ;;  %v487_v3 = vshrl.u32 %v4029_v11, 16 }
  0x2c   : > { %3262 = vmatpush3.bf16.msra.mxu0 %v3591_v22  ;;  %775 = vmatprep.mubr.bf16.mxu0 %v430_v8  ;;  %v4045_v22 = vcombine.low %v157_v1, %v4016_v4  ;;  %v461_v32 = vrot.slane %v459_v20, 1  ;;  %v162_v8 = vld [vmem:[%s3874_s22 + $0x88] sm:$0xff]  ;;  %v483_v23 = vshll.u32 %v4092_v12, 16 }
  0x2d   : > { %3263 = vmatprep.subr.bf16.mxu0 %v3597_v51  ;;  %3308 = vmatpush3.bf16.msra.mxu1 %v3592_v25  ;;  %v4050_v25 = vcombine.low %v158_v6, %v4021_v7  ;;  %v4064_v51 = vcombine.low %v3966_v27, %v157_v1  ;;  %v477_v52 = vrot.slane %v475_v24, 1  ;;  %v3612_v1 = vld [vmem:[%s4708_s1 + $0xa0] sm:$0xff]   ;;  %v4088_v6 = vcombine.high %v161_v2, %v161_v2 }
  0x2e   : > { %3309 = vmatprep.subr.bf16.mxu1 %v3598_v54  ;;  %v451_v48 = vshll.u32 %v4045_v22, 16  ;;  %v462_v27 = vsel %vm366_vm0, %v457_v17, %v461_v32  ;;  %v4094_v15 = vcombine.high %v162_v8, %v162_v8  ;;  %v4097_v17 = vcombine.low %v162_v8, %v162_v8 }
  0x2f   : > { %776 = vmatmul.mubr.bf16.gmra.mrb[4].mxu0 %v422_v9  ;;  %v467_v54 = vshll.u32 %v4050_v25, 16  ;;  %v478_v0 = vsel %vm366_vm0, %v473_v21, %v477_v52  ;;  %v503_v9 = vshrl.u32 %v4038_v18, 16  ;;  %v491_v20 = vshll.u32 %v4088_v6, 16 }
  0x30   : > { %3264 = vmatpush3.bf16.msra.mxu0 %v3599_v55  ;;  %848 = vmatmul.mubr.bf16.gmra.mrb[4].mxu1 %v438_v16  ;;  %v3609_v55 = vld [vmem:[%s4708_s1 + $0x60] sm:$0xff]   ;;  %v453_v61 = vrot.slane %v451_v48, 1  ;;  %v479_v16 = vshrl.u32 %v4045_v22, 16  ;;  %v495_v24 = vshrl.u32 %v4050_v25, 16  ;;  %v3620_v48 = vld [vmem:[%s4708_s1 + $0xa8] sm:$0xff]  }
  0x31   : > { %3265 = vmatprep.subr.bf16.mxu0 %v3603_v13  ;;  %3310 = vmatpush3.bf16.msra.mxu1 %v3600_v35  ;;  %v469_v35 = vrot.slane %v467_v54, 1  ;;  %v489_v13 = vor.u32 %v487_v3, %v461_v32  ;;  %v505_v21 = vor.u32 %v503_v9, %v477_v52  ;;  %v499_v32 = vshll.u32 %v4097_v17, 16 }
  0x32   : > { %3311 = vmatprep.subr.bf16.mxu1 %v3604_v19  ;;  %783 = vmatprep.mubr.bf16.mxu0 %v462_v27  ;;  %v454_v33 = vsel %vm366_vm0, %v449_v43, %v453_v61  ;;  %v3617_v19 = vld [vmem:[%s4708_s1 + $0x68] sm:$0xff]   ;;  %v4117_v52 = vcombine.high %v4016_v4, %v161_v2  ;;  %v485_v54 = vrot.slane %v483_v23, 1  ;;  %v514_v3 = vshrl.u32 %v4088_v6, 16 }
  0x33   : > { %855 = vmatprep.mubr.bf16.mxu1 %v478_v0  ;;  %v470_v5 = vsel %vm366_vm0, %v465_v53, %v469_v35  ;;  %v3619_v43 = vld [vmem:[%s4708_s1 + $0x28] sm:$0xff]   ;;  %v493_v53 = vrot.slane %v491_v20, 1  ;;  %v4126_v0 = vcombine.low %v4021_v7, %v162_v8  ;;  %v517_v20 = vshrl.u32 %v4097_v17, 16 }
  0x34   : > { %3266 = vmatpush3.bf16.msra.mxu0 %v3607_v28  ;;  %v507_v28 = vshll.u32 %v4094_v15, 16  ;;  %v1405_v23 = vshrl.u32 %v3896_v41, 16 }
  0x35   : > { %3267 = vmatprep.subr.bf16.mxu0 %v3609_v55  ;;  %3312 = vmatpush3.bf16.msra.mxu1 %v3608_v29  ;;  %v481_v29 = vor.u32 %v479_v16, %v453_v61  ;;  %v497_v55 = vor.u32 %v495_v24, %v469_v35  ;;  %v501_v61 = vrot.slane %v499_v32, 1  ;;  %v3621_v35 = vld [vmem:[%s4708_s1 + $0x70] sm:$0xff]   ;;  %v3626_v24 = vld [vmem:[%s4708_s1 + $0xf8] sm:$0xff]  }
  0x36   : > { %3313 = vmatprep.subr.bf16.mxu1 %v3610_v58  ;;  %v4120_v58 = vcombine.high %v4021_v7, %v162_v8  ;;  %v509_v27 = vrot.slane %v507_v28, 1  ;;  %v520_v7 = vshrl.u32 %v4094_v15, 16  ;;  %v3623_v8 = vld [vmem:[%s4708_s1 + $0x30] sm:$0xff]   ;;  %v3627_v28 = vld [vmem:[%s4708_s1 + $0x38] sm:$0xff]  }
  0x37   : > { %784 = vmatmul.mubr.bf16.gmra.mrb[8].mxu0 %v454_v33  ;;  %v486_v33 = vsel %vm366_vm0, %v481_v29, %v485_v54  ;;  %v502_v9 = vsel %vm366_vm0, %v497_v55, %v501_v61  ;;  %v1412_v29 = vshll.u32 %v4001_v56, 16 }
  0x38   : > { %3268 = vmatpush3.bf16.msra.mxu0 %v3611_v63  ;;  %856 = vmatmul.mubr.bf16.gmra.mrb[8].mxu1 %v470_v5  ;;  %v4123_v63 = vcombine.low %v4016_v4, %v161_v2  ;;  %v510_v5 = vsel %vm366_vm0, %v505_v21, %v509_v27  ;;  %v3622_v4 = vld [vmem:[%s4708_s1 + $0xf0] sm:$0xff]   ;;  %v516_v2 = vor.u32 %v514_v3, %v493_v53  ;;  %v3625_v21 = vld [vmem:[%s4708_s1 + $0x78] sm:$0xff]  }
  0x39   : > { %3314 = vmatpush3.bf16.msra.mxu1 %v3612_v1  ;;  %3269 = vmatprep.subr.bf16.mxu0 %v3617_v19  ;;  %v494_v1 = vsel %vm366_vm0, %v489_v13, %v493_v53  ;;  %v511_v13 = vshrl.u32 %v4092_v12, 16  ;;  %v522_v16 = vor.u32 %v520_v7, %v509_v27  ;;  %v3624_v19 = vld [vmem:[%s4708_s1 + $0xb0] sm:$0xff]   ;;  %v519_v53 = vor.u32 %v517_v20, %v501_v61  ;;  %v3630_v27 = vld [vmem:[%s4708_s1 + $0x2c0] sm:$0xff]  }
  0x3a   : > { %3315 = vmatprep.subr.bf16.mxu1 %v3618_v26  ;;  %791 = vmatprep.mubr.bf16.mxu0 %v494_v1  ;;  %v1407_v26 = vshll.u32 %v3896_v41, 16  ;;  %v3629_v41 = vld [vmem:[%s4708_s1 + $0x240] sm:$0xff]   ;;  %v1414_v55 = vrot.slane %v1412_v29, 1  ;;  %v1393_v7 = vshrl.u32 %v3894_v40, 16 }
  0x3b   : > { %863 = vmatprep.mubr.bf16.mxu1 %v510_v5  ;;  %v513_v32 = vor.u32 %v511_v13, %v485_v54  ;;  %v1429_v54 = vshrl.u32 %v3945_v14, 16  ;;  %v3634_v13 = vld [vmem:[%s4708_s1 + $0x2c8] sm:$0xff]  }
  0x3c   : > { %3270 = vmatpush3.bf16.msra.mxu0 %v3619_v43  ;;  %v3628_v43 = vld [vmem:[%s4708_s1 + $0xb8] sm:$0xff]  }
  0x3d   : > { %3316 = vmatpush3.bf16.msra.mxu1 %v3620_v48  ;;  %3271 = vmatprep.subr.bf16.mxu0 %v3621_v35  ;;  %v1409_v48 = vrot.slane %v1407_v26, 1  ;;  %v1436_v35 = vshll.u32 %v4009_v62, 16  ;;  %v3637_v26 = vld [vmem:[%s4708_s1 + $0x250] sm:$0xff]  }
  0x3e   : > { %3317 = vmatprep.subr.bf16.mxu1 %v3622_v4 }
  0x3f   : > { %792 = vmatmul.mubr.bf16.gmra.mrb[12].mxu0 %v486_v33  ;;  %v1410_v1 = vor.u32 %v1409_v48, %v1405_v23  ;;  %v1431_v33 = vshll.u32 %v3945_v14, 16  ;;  %v1438_v5 = vrot.slane %v1436_v35, 1  ;;  %v3632_v14 = vld [vmem:[%s4708_s1 + $0x280] sm:$0xff]   ;;  %v1417_v23 = vshrl.u32 %v3939_v10, 16  ;;  %v3644_v35 = vld [vmem:[%s4708_s1 + $0x298] sm:$0xff]  }
  0x40   : > { %864 = vmatmul.mubr.bf16.gmra.mrb[12].mxu1 %v502_v9  ;;  %799 = vmatprep.mubr.bf16.mxu0 %v516_v2  ;;  %v3631_v9 = vld [vmem:[%s4708_s1 + $0x200] sm:$0xff]   ;;  %v1395_v2 = vshll.u32 %v3894_v40, 16  ;;  %v3636_v40 = vld [vmem:[%s4708_s1 + $0x288] sm:$0xff]  }
  0x41   : > { %871 = vmatprep.mubr.bf16.mxu1 %v522_v16  ;;  %3272 = vmatpush3.bf16.msra.mxu0 %v3623_v8  ;;  %v4172_v61 = vsel %vm366_vm0, %v1410_v1, %v1414_v55  ;;  %v1433_v3 = vrot.slane %v1431_v33, 1  ;;  %v1400_v8 = vshll.u32 %v3981_v37, 16 }
  0x42   : > { %3318 = vmatpush3.bf16.msra.mxu1 %v3624_v19  ;;  %3273 = vmatprep.subr.bf16.mxu0 %v3625_v21  ;;  %v1397_v16 = vrot.slane %v1395_v2, 1  ;;  %v3635_v19 = vld [vmem:[%s4708_s1 + $0x208] sm:$0xff]  }
  0x43   : > { %3319 = vmatprep.subr.bf16.mxu1 %v3626_v24  ;;  %v1434_v4 = vor.u32 %v1433_v3, %v1429_v54  ;;  %v1402_v20 = vrot.slane %v1400_v8, 1  ;;  %v1419_v24 = vshll.u32 %v3939_v10, 16  ;;  %v3639_v10 = vld [vmem:[%s4708_s1 + $0x210] sm:$0xff]   ;;  %v1464_v54 = vshrl.u32 %v4009_v62, 16  ;;  %v3649_v2 = vld [vmem:[%s4708_s1 + $0x268] sm:$0xff]  }
  0x44   : > { %v1398_v21 = vor.u32 %v1397_v16, %v1393_v7  ;;  %v1456_v7 = vshrl.u32 %v4004_v57, 16  ;;  %v3650_v8 = vld [vmem:[%s4708_s1 + $0x2e8] sm:$0xff]   ;;  %v1460_v16 = vshll.u32 %v4074_v59, 16 }
  0x45   : > { %3274 = vmatpush3.bf16.msra.mxu0 %v3627_v28  ;;  %v1424_v28 = vshll.u32 %v4004_v57, 16  ;;  %v1421_v29 = vrot.slane %v1419_v24, 1  ;;  %v1466_v3 = vor.u32 %v1464_v54, %v1438_v5  ;;  %v3651_v57 = vld [vmem:[%s4708_s1 + $0x228] sm:$0xff]   ;;  %v1484_v24 = vshll.u32 %v4117_v52, 16 }
  0x46   : > { %3320 = vmatpush3.bf16.msra.mxu1 %v3628_v43  ;;  %3351 = vmatprep.subr.bf16.mxu0 %v3629_v41  ;;  %v3640_v43 = vld [vmem:[%s4708_s1 + $0x290] sm:$0xff]   ;;  %v3642_v41 = vld [vmem:[%s4708_s1 + $0x2d8] sm:$0xff]   ;;  %v1492_v54 = vshll.u32 %v4126_v0, 16 }
  0x47   : > { %800 = vmatmul.mubr.bf16.gmra.mrb[16].mxu0 %v513_v32  ;;  %3397 = vmatprep.subr.bf16.mxu1 %v3630_v27  ;;  %v1426_v32 = vrot.slane %v1424_v28, 1  ;;  %v1422_v48 = vor.u32 %v1421_v29, %v1417_v23  ;;  %v3655_v28 = vld [vmem:[%s4708_s1 + $0x230] sm:$0xff]  }
  0x48   : > { %872 = vmatmul.mubr.bf16.gmra.mrb[16].mxu1 %v519_v53  ;;  %1123 = vmatprep.mubr.bf16.mxu0 %v3888_v36  ;;  %v3633_v36 = vld [vmem:[%s4708_s1 + $0x248] sm:$0xff]   ;;  %v3641_v53 = vld [vmem:[%s4708_s1 + $0x258] sm:$0xff]   ;;  %v3656_v29 = vld [vmem:[%s4708_s1 + $0x2b0] sm:$0xff]  }
  0x49   : > { %1195 = vmatprep.mubr.bf16.mxu1 %v3905_v45  ;;  %v4189_v45 = vsel %vm366_vm0, %v1434_v4, %v1438_v5  ;;  %v4232_v27 = vsel %vm366_vm0, %v1422_v48, %v1426_v32  ;;  %v3658_v48 = vld [vmem:[%s4708_s1 + $0x2f8] sm:$0xff]  }
  0x4f   : > { %1124 = vmatmul.mubr.bf16.vlgmr.msra.gmra.mrb[20].mxu0 %v3892_v39  ;;  %v4209_v39 = vsel %vm366_vm0, %v1398_v21, %v1402_v20  ;;  %v1462_v21 = vrot.slane %v1460_v16, 1  ;;  %v3694_v16 = vld [vmem:[%s4708_s1 + $0x3e0] sm:$0xff]  }
  0x50   : > { %1196 = vmatmul.mubr.bf16.vlgmr.msra.gmra.mrb[20].mxu1 %v3910_v47  ;;  %3352 = vmatpush3.bf16.msra.mxu0 %v3631_v9  ;;  %v3638_v47 = vld [vmem:[%s4708_s1 + $0x2d0] sm:$0xff]   ;;  %v1468_v9 = vshll.u32 %v4060_v30, 16 }
  0x51   : > { %3398 = vmatpush3.bf16.msra.mxu1 %v3632_v14  ;;  %3353 = vmatprep.subr.bf16.mxu0 %v3633_v36  ;;  %v1444_v14 = vshll.u32 %v4064_v51, 16 }
  0x52   : > { %3399 = vmatprep.subr.bf16.mxu1 %v3634_v13  ;;  %1131 = vmatprep.mubr.bf16.mxu0 %v3899_v42  ;;  %v1448_v42 = vshrl.u32 %v4001_v56, 16  ;;  %v3643_v56 = vld [vmem:[%s4708_s1 + $0x218] sm:$0xff]   ;;  %v1470_v5 = vrot.slane %v1468_v9, 1  ;;  %v1458_v13 = vor.u32 %v1456_v7, %v1426_v32  ;;  %v3673_v9 = vld [vmem:[%s4708_s1 + $0x348] sm:$0xff]  }
  0x53   : > { %1203 = vmatprep.mubr.bf16.mxu1 %v3915_v50  ;;  %v1452_v50 = vshll.u32 %v4024_v44, 16  ;;  %v1446_v36 = vrot.slane %v1444_v14, 1  ;;  %v3657_v32 = vld [vmem:[%s4708_s1 + $0x278] sm:$0xff]   ;;  %v1528_v14 = vshrl.u32 %v4120_v58, 16 }
  0x54   : > { %3354 = vmatpush3.bf16.msra.mxu0 %v3635_v19  ;;  %v1450_v1 = vor.u32 %v1448_v42, %v1414_v55  ;;  %v3646_v55 = vld [vmem:[%s4708_s1 + $0x2e0] sm:$0xff]  }
  0x55   : > { %3400 = vmatpush3.bf16.msra.mxu1 %v3636_v40  ;;  %3355 = vmatprep.subr.bf16.mxu0 %v3637_v26  ;;  %v1454_v33 = vrot.slane %v1452_v50, 1  ;;  %v3652_v40 = vld [vmem:[%s4708_s1 + $0x2a8] sm:$0xff]   ;;  %v1496_v26 = vshrl.u32 %v4060_v30, 16 }
  0x56   : > { %3401 = vmatprep.subr.bf16.mxu1 %v3638_v47 }
  0x57   : > { %1132 = vmatmul.mubr.bf16.gmra.mrb[24].mxu0 %v3908_v46  ;;  %v3645_v46 = vld [vmem:[%s4708_s1 + $0x260] sm:$0xff]   ;;  %v4249_v62 = vsel %vm366_vm0, %v1450_v1, %v1454_v33  ;;  %v1498_v47 = vor.u32 %v1496_v26, %v1470_v5 }
  0x58   : > { %1204 = vmatmul.mubr.bf16.gmra.mrb[24].mxu1 %v3928_v60  ;;  %3356 = vmatpush3.bf16.msra.mxu0 %v3639_v10  ;;  %v1440_v60 = vshrl.u32 %v3981_v37, 16  ;;  %v3648_v37 = vld [vmem:[%s4708_s1 + $0x2a0] sm:$0xff]   ;;  %v1472_v10 = vshrl.u32 %v4064_v51, 16  ;;  %v3659_v51 = vld [vmem:[%s4708_s1 + $0x238] sm:$0xff]  }
  0x59   : > { %3402 = vmatpush3.bf16.msra.mxu1 %v3640_v43  ;;  %1139 = vmatprep.mubr.bf16.mxu0 %v3972_v31  ;;  %v3647_v31 = vld [vmem:[%s4708_s1 + $0x220] sm:$0xff]  }
  0x5a   : > { %1211 = vmatprep.mubr.bf16.mxu1 %v3984_v38  ;;  %3357 = vmatprep.subr.bf16.mxu0 %v3641_v53  ;;  %v1442_v4 = vor.u32 %v1440_v60, %v1402_v20  ;;  %v4264_v38 = vsel %vm366_vm0, %v1466_v3, %v1470_v5  ;;  %v1480_v20 = vshrl.u32 %v4024_v44, 16  ;;  %v4296_v44 = vsel %vm366_vm0, %v1458_v13, %v1462_v21  ;;  %v3672_v3 = vld [vmem:[%s4708_s1 + $0x380] sm:$0xff]   ;;  %v3682_v60 = vld [vmem:[%s4708_s1 + $0x3d0] sm:$0xff]  }
  0x5b   : > { %3403 = vmatprep.subr.bf16.mxu1 %v3642_v41  ;;  %v1474_v42 = vor.u32 %v1472_v10, %v1446_v36  ;;  %v1476_v53 = vshll.u32 %v4123_v63, 16  ;;  %v3660_v41 = vld [vmem:[%s4708_s1 + $0x2b8] sm:$0xff]   ;;  %v3683_v5 = vld [vmem:[%s4708_s1 + $0x310] sm:$0xff]   ;;  %v3704_v10 = vld [vmem:[%s4708_s1 + $0x3a8] sm:$0xff]  }
  0x5c   : > { %3358 = vmatpush3.bf16.msra.mxu0 %v3643_v56  ;;  %v4279_v19 = vsel %vm366_vm0, %v1442_v4, %v1446_v36  ;;  %v1482_v23 = vor.u32 %v1480_v20, %v1454_v33  ;;  %v4350_v56 = vrot.slane %v1492_v54, 1  ;;  %v3687_v4 = vld [vmem:[%s4708_s1 + $0x358] sm:$0xff]   ;;  %v3693_v36 = vld [vmem:[%s4708_s1 + $0x360] sm:$0xff]  }
  0x5d   : > { %3404 = vmatpush3.bf16.msra.mxu1 %v3644_v35  ;;  %3359 = vmatprep.subr.bf16.mxu0 %v3645_v46  ;;  %v3671_v35 = vld [vmem:[%s4708_s1 + $0x300] sm:$0xff]   ;;  %v4384_v46 = vld [vmem:[%s3874_s22 + $0x98] sm:$0xff] }
  0x5e   : > { %3405 = vmatprep.subr.bf16.mxu1 %v3646_v55  ;;  %v4437_v13 = vcombine.low %v4384_v46, %v4384_v46  ;;  %v3695_v20 = vld [vmem:[%s4708_s1 + $0x320] sm:$0xff]   ;;  %v3721_v54 = vld [vmem:[%s3874_s22 + $0x1c] ss:$16 sps:$4 sm:$0xfe]  }
  0x5f   : > { %1140 = vmatmul.mubr.bf16.gmra.mrb[28].mxu0 %v3978_v34  ;;  %v3653_v34 = vld [vmem:[%s4708_s1 + $0x270] sm:$0xff]  }
  0x60   : > { %1212 = vmatmul.mubr.bf16.gmra.mrb[28].mxu1 %v3987_v49  ;;  %3360 = vmatpush3.bf16.msra.mxu0 %v3647_v31  ;;  %v3654_v49 = vld [vmem:[%s4708_s1 + $0x2f0] sm:$0xff]   ;;  %v1512_v31 = vshrl.u32 %v4117_v52, 16  ;;  %v3691_v52 = vld [vmem:[%s4708_s1 + $0x318] sm:$0xff]  }
  0x61   : > { %3406 = vmatpush3.bf16.msra.mxu1 %v3648_v37  ;;  %1147 = vmatprep.mubr.bf16.mxu0 %v4029_v11  ;;  %v4299_v11 = vrot.slane %v1484_v24, 1  ;;  %v3688_v37 = vld [vmem:[%s4708_s1 + $0x3d8] sm:$0xff]   ;;  %v1524_v24 = vshll.u32 %v4437_v13, 16 }
  0x62   : > { %1219 = vmatprep.mubr.bf16.mxu1 %v4038_v18  ;;  %3361 = vmatprep.subr.bf16.mxu0 %v3649_v2  ;;  %v1500_v18 = vshll.u32 %v4120_v58, 16  ;;  %v3692_v58 = vld [vmem:[%s4708_s1 + $0x398] sm:$0xff]  }
  0x63   : > { %3407 = vmatprep.subr.bf16.mxu1 %v3650_v8  ;;  %v4310_v30 = vsel %vm366_vm0, %v1482_v23, %v4299_v11  ;;  %v1504_v8 = vshrl.u32 %v4123_v63, 16  ;;  %v1520_v23 = vshrl.u32 %v4126_v0, 16  ;;  %v3703_v0 = vld [vmem:[%s4708_s1 + $0x328] sm:$0xff]  }
  0x64   : > { %3362 = vmatpush3.bf16.msra.mxu0 %v3651_v57  ;;  %v4316_v43 = vrot.slane %v1500_v18, 1  ;;  %v1514_v57 = vor.u32 %v1512_v31, %v4299_v11  ;;  %v3702_v11 = vld [vmem:[%s4708_s1 + $0x3e8] sm:$0xff]  }
  0x65   : > { %3408 = vmatpush3.bf16.msra.mxu1 %v3652_v40  ;;  %3363 = vmatprep.subr.bf16.mxu0 %v3653_v34  ;;  %v3722_v31 = vld [vmem:[%s3874_s22 + $0x38] ss:$16 sps:$4 sm:$0xff]  }
  0x66   : > { %3409 = vmatprep.subr.bf16.mxu1 %v3654_v49  ;;  %v4330_v50 = vsel %vm366_vm0, %v1498_v47, %v4316_v43  ;;  %v1530_v63 = vor.u32 %v1528_v14, %v4316_v43 }
  0x67   : > { %1148 = vmatmul.mubr.bf16.gmra.mrb[32].mxu0 %v4045_v22  ;;  %v1488_v22 = vshrl.u32 %v4074_v59, 16  ;;  %v3670_v59 = vld [vmem:[%s4708_s1 + $0x3c0] sm:$0xff]  }
  0x68   : > { %1220 = vmatmul.mubr.bf16.gmra.mrb[32].mxu1 %v4050_v25  ;;  %1155 = vmatprep.mubr.bf16.mxu0 %v4088_v6  ;;  %v4337_v25 = vrot.slane %v1476_v53, 1  ;;  %v3669_v6 = vld [vmem:[%s4708_s1 + $0x340] sm:$0xff]  }
  0x69   : > { %1227 = vmatprep.mubr.bf16.mxu1 %v4094_v15  ;;  %3364 = vmatpush3.bf16.msra.mxu0 %v3655_v28  ;;  %v1490_v1 = vor.u32 %v1488_v22, %v1462_v21  ;;  %v3696_v21 = vld [vmem:[%s4708_s1 + $0x3a0] sm:$0xff]  }
  0x6a   : > { %3410 = vmatpush3.bf16.msra.mxu1 %v3656_v29  ;;  %3365 = vmatprep.subr.bf16.mxu0 %v3657_v32  ;;  %v4348_v15 = vsel %vm366_vm0, %v1474_v42, %v4337_v25  ;;  %v1506_v28 = vor.u32 %v1504_v8, %v4337_v25  ;;  %v1522_v29 = vor.u32 %v1520_v23, %v4350_v56  ;;  %v3705_v32 = vld [vmem:[%s4708_s1 + $0x370] sm:$0xff]  }
  0x6b   : > { %3411 = vmatprep.subr.bf16.mxu1 %v3658_v48  ;;  %v4354_v33 = vsel %vm366_vm0, %v1490_v1, %v4350_v56  ;;  %v3706_v48 = vld [vmem:[%s4708_s1 + $0x3f0] sm:$0xff]   ;;  %v3710_v56 = vld [vmem:[%s4708_s1 + $0x3f8] sm:$0xff]  }
  0x6c   : > { %v3707_v42 = vld [vmem:[%s4708_s1 + $0x330] sm:$0xff]  }
  0x6d   : > { %3366 = vmatpush3.bf16.msra.mxu0 %v3659_v51  ;;  %v3715_v22 = vld [vmem:[%s3874_s22 + $0x14] ss:$16 sps:$4 sm:$0xfe]  }
  0x6e   : > { %3412 = vmatpush3.bf16.msra.mxu1 %v3660_v41  ;;  %3443 = vmatprep.subr.bf16.mxu0 %v3669_v6  ;;  %v3709_v6 = vld [vmem:[%s4708_s1 + $0x378] sm:$0xff]   ;;  %v3718_v1 = vld [vmem:[%s3874_s22 + $0x34] ss:$16 sps:$4 sm:$0xff]  }
  0x6f   : > { %1156 = vmatmul.mubr.bf16.gmra.mrb[36].mxu0 %v4092_v12  ;;  %3489 = vmatprep.subr.bf16.mxu1 %v3670_v59  ;;  %v3674_v12 = vld [vmem:[%s4708_s1 + $0x3c8] sm:$0xff]  }
  0x70   : > { %1228 = vmatmul.mubr.bf16.gmra.mrb[36].mxu1 %v4097_v17  ;;  %1792 = vmatprep.mubr.bf16.mxu0 %v4172_v61  ;;  %v3675_v17 = vld [vmem:[%s4708_s1 + $0x308] sm:$0xff]  }
  0x71   : > { %1864 = vmatprep.mubr.bf16.mxu1 %v4189_v45  ;;  %v3676_v61 = vld [vmem:[%s4708_s1 + $0x388] sm:$0xff]   ;;  %v4380_v45 = vld [vmem:[%s3874_s22 + $0x90] sm:$0xff] }
  0x72   : > { %v4395_v55 = vcombine.high %v4380_v45, %v4380_v45  ;;  %v4428_v2 = vcombine.low %v4380_v45, %v4380_v45  ;;  %v3724_v59 = vld [vmem:[%s3874_s22 + $0x3c] ss:$16 sps:$4 sm:$0xff]  }
  0x74   : > { %v1508_v34 = vshll.u32 %v4428_v2, 16  ;;  %v1539_v18 = vshrl.u32 %v4395_v55, 16 }
  0x76   : > { %v1510_v47 = vrot.slane %v1508_v34, 1 }
  0x77   : > { %1793 = vmatmul.mubr.bf16.vlgmr.msra.gmra.mrb[40].mxu0 %v4209_v39  ;;  %v3681_v39 = vld [vmem:[%s4708_s1 + $0x350] sm:$0xff]  }
  0x78   : > { %1865 = vmatmul.mubr.bf16.vlgmr.msra.gmra.mrb[40].mxu1 %v4232_v27  ;;  %3444 = vmatpush3.bf16.msra.mxu0 %v3671_v35  ;;  %v4400_v27 = vcombine.high %v4384_v46, %v4384_v46  ;;  %v1511_v53 = vsel %vm366_vm0, %v1506_v28, %v1510_v47  ;;  %v3711_v35 = vld [vmem:[%s4708_s1 + $0x338] sm:$0xff]  }
  0x79   : > { %3490 = vmatpush3.bf16.msra.mxu1 %v3672_v3  ;;  %3445 = vmatprep.subr.bf16.mxu0 %v3673_v9  ;;  %v2082_v3 = vrot.slane %v3715_v22, 1  ;;  %v2083_v9 = vrot.slane %v3718_v1, 1 }
  0x7a   : > { %3491 = vmatprep.subr.bf16.mxu1 %v3674_v12  ;;  %1800 = vmatprep.mubr.bf16.mxu0 %v4249_v62  ;;  %v3684_v62 = vld [vmem:[%s4708_s1 + $0x390] sm:$0xff]   ;;  %v1532_v7 = vshll.u32 %v4400_v27, 16  ;;  %v1545_v43 = vshrl.u32 %v4400_v27, 16  ;;  %v3712_v12 = vld [vmem:[%s4708_s1 + $0x3b8] sm:$0xff]  }
  0x7b   : > { %1872 = vmatprep.mubr.bf16.mxu1 %v4264_v38  ;;  %v1516_v38 = vshll.u32 %v4395_v55, 16  ;;  %v3716_v27 = vld [vmem:[%s3874_s22 + $0x30] ss:$16 sps:$4 sm:$0xff]  }
  0x7c   : > { %3446 = vmatpush3.bf16.msra.mxu0 %v3675_v17  ;;  %v1534_v40 = vrot.slane %v1532_v7, 1  ;;  %v2088_v17 = vrot.slane %v3721_v54, 1 }
  0x7d   : > { %3492 = vmatpush3.bf16.msra.mxu1 %v3676_v61  ;;  %3447 = vmatprep.subr.bf16.mxu0 %v3681_v39  ;;  %v2089_v61 = vrot.slane %v3724_v59, 1 }
  0x7e   : > { %3493 = vmatprep.subr.bf16.mxu1 %v3682_v60  ;;  %v1535_v26 = vsel %vm366_vm0, %v1530_v63, %v1534_v40  ;;  %v1547_v25 = vor.u32 %v1545_v43, %v1534_v40  ;;  %v3713_v60 = vld [vmem:[%s3874_s22 + $0x10] ss:$16 sps:$4 sm:$0xfe]   ;;  %v3733_v40 = vld [vmem:[%s3874_s22 + $0x7c] ss:$16 sps:$4 sm:$0xff]  }
  0x7f   : > { %1801 = vmatmul.mubr.bf16.gmra.mrb[44].mxu0 %v4279_v19  ;;  %v1518_v19 = vrot.slane %v1516_v38, 1  ;;  %v2090_v14 = vsel %vm2078_vm1, %v2088_v17, %v2089_v61  ;;  %v2079_v38 = vrot.slane %v3713_v60, 1 }
  0x80   : > { %1873 = vmatmul.mubr.bf16.gmra.mrb[44].mxu1 %v4296_v44  ;;  %3448 = vmatpush3.bf16.msra.mxu0 %v3683_v5  ;;  %v3701_v44 = vld [vmem:[%s4708_s1 + $0x368] sm:$0xff]  }
  0x81   : > { %3494 = vmatpush3.bf16.msra.mxu1 %v3684_v62  ;;  %1808 = vmatprep.mubr.bf16.mxu0 %v4310_v30  ;;  %v1519_v49 = vsel %vm366_vm0, %v1514_v57, %v1518_v19  ;;  %v1526_v30 = vrot.slane %v1524_v24, 1  ;;  %v1541_v51 = vor.u32 %v1539_v18, %v1518_v19  ;;  %v3719_v5 = vld [vmem:[%s3874_s22 + $0x18] ss:$16 sps:$4 sm:$0xfe]   ;;  %v2084_v62 = vsel %vm2078_vm1, %v2082_v3, %v2083_v9 }
  0x82   : > { %1880 = vmatprep.mubr.bf16.mxu1 %v4330_v50  ;;  %3449 = vmatprep.subr.bf16.mxu0 %v3687_v4  ;;  %v3708_v50 = vld [vmem:[%s4708_s1 + $0x3b0] sm:$0xff]   ;;  %v2085_v7 = vrot.slane %v3719_v5, 1  ;;  %v3730_v19 = vld [vmem:[%s3874_s22 + $0x58] ss:$16 sps:$4 sm:$0xff]   ;;  %v2105_v24 = vrot.slane %v3733_v40, 1 }
  0x83   : > { %3495 = vmatprep.subr.bf16.mxu1 %v3688_v37  ;;  %v1527_v41 = vsel %vm366_vm0, %v1522_v29, %v1526_v30  ;;  %v3725_v4 = vld [vmem:[%s3874_s22 + $0x54] ss:$16 sps:$4 sm:$0xff]   ;;  %v3727_v37 = vld [vmem:[%s3874_s22 + $0x5c] ss:$16 sps:$4 sm:$0xff]   ;;  %v2095_v34 = vrot.slane %v3730_v19, 1 }
  0x84   : > { %3450 = vmatpush3.bf16.msra.mxu0 %v3691_v52  ;;  %v2080_v52 = vrot.slane %v3716_v27, 1 }
  0x85   : > { %3496 = vmatpush3.bf16.msra.mxu1 %v3692_v58  ;;  %3451 = vmatprep.subr.bf16.mxu0 %v3693_v36  ;;  %v2086_v58 = vrot.slane %v3722_v31, 1  ;;  %v2097_v36 = vrot.slane %v3727_v37, 1 }
  0x86   : > { %3497 = vmatprep.subr.bf16.mxu1 %v3694_v16  ;;  %v2081_v8 = vsel %vm2078_vm1, %v2079_v38, %v2080_v52 }
  0x87   : > { %1809 = vmatmul.mubr.bf16.gmra.mrb[48].mxu0 %v4348_v15  ;;  %v1536_v15 = vshrl.u32 %v4428_v2, 16  ;;  %v2093_v2 = vrot.slane %v3725_v4, 1  ;;  %v2087_v16 = vsel %vm2078_vm1, %v2085_v7, %v2086_v58  ;;  %v2098_v63 = vsel %vm2078_vm1, %v2089_v61, %v2097_v36 }
  0x88   : > { %1881 = vmatmul.mubr.bf16.gmra.mrb[48].mxu1 %v4354_v33  ;;  %3452 = vmatpush3.bf16.msra.mxu0 %v3695_v20  ;;  %v1542_v33 = vshrl.u32 %v4437_v13, 16  ;;  %v3729_v13 = vld [vmem:[%s3874_s22 + $0x50] ss:$16 sps:$4 sm:$0xff]   ;;  %v3731_v20 = vld [vmem:[%s3874_s22 + $0x74] ss:$16 sps:$4 sm:$0xff]   ;;  %v2106_v29 = vsel %vm2078_vm1, %v2097_v36, %v2105_v24 }
  0x89   : > { %3498 = vmatpush3.bf16.msra.mxu1 %v3696_v21  ;;  %1816 = vmatprep.mubr.bf16.mxu0 %v1519_v49  ;;  %v1538_v39 = vor.u32 %v1536_v15, %v1510_v47  ;;  %v2094_v57 = vsel %vm2078_vm1, %v2083_v9, %v2093_v2  ;;  %v2091_v21 = vrot.slane %v3729_v13, 1  ;;  %v2101_v23 = vrot.slane %v3731_v20, 1  ;;  %v1931_v49 = vld [vmem:[%s3874_s22 + $0xa0] sm:$0x11]  ;;  %v3736_v47 = vld [vmem:[%s3874_s22 + $0x78] ss:$16 sps:$4 sm:$0xff]  }
  0x8a   : > { %1888 = vmatprep.mubr.bf16.mxu1 %v1535_v26  ;;  %3453 = vmatprep.subr.bf16.mxu0 %v3701_v44  ;;  %v1544_v55 = vor.u32 %v1542_v33, %v1526_v30  ;;  %v1932_v44 = vld [vmem:[%s3874_s22 + $0xa8] sm:$0x11]  ;;  %v3130_v18 = vcombine.high %v4380_v45, %v1931_v49 }
  0x8b   : > { %3499 = vmatprep.subr.bf16.mxu1 %v3702_v11  ;;  %v2092_v26 = vsel %vm2078_vm1, %v2080_v52, %v2091_v21  ;;  %v3735_v11 = vld [vmem:[%s3874_s22 + $0x70] ss:$16 sps:$4 sm:$0xff]   ;;  %v2102_v28 = vsel %vm2078_vm1, %v2093_v2, %v2101_v23  ;;  %v3132_v30 = vcombine.high %v4384_v46, %v1932_v44  ;;  %v3131_v22 = vcombine.low %v4384_v46, %v1932_v44  ;;  %s3536_s22 = smul.u32 72, %s4711_s10 }
  0x8c   : > { %3454 = vmatpush3.bf16.msra.mxu0 %v3703_v0  ;;  %v2096_v0 = vsel %vm2078_vm1, %v2086_v58, %v2095_v34  ;;  %v2109_v43 = vrot.slane %v3130_v18, 1 }
  0x8d   : > { %3500 = vmatpush3.bf16.msra.mxu1 %v3704_v10  ;;  %3455 = vmatprep.subr.bf16.mxu0 %v3705_v32  ;;  %v2099_v10 = vrot.slane %v3735_v11, 1  ;;  %v2103_v32 = vrot.slane %v3736_v47, 1  ;;  %s143_s20 = scalar_lea.vmem %s4709_s2, %s3536_s22 }
  0x8e   : > { %3501 = vmatprep.subr.bf16.mxu1 %v3706_v48  ;;  %v2113_v48 = vrot.slane %v3132_v30, 1 }
  0x8f   : > { %1817 = vmatmul.mubr.bf16.gmra.mrb[52].mxu0 %v1511_v53  ;;  %v3129_v53 = vcombine.low %v4380_v45, %v1931_v49 }
  0x90   : > { %1889 = vmatmul.mubr.bf16.gmra.mrb[52].mxu1 %v1527_v41  ;;  %1824 = vmatprep.mubr.bf16.mxu0 %v1541_v51  ;;  %v2104_v51 = vsel %vm2078_vm1, %v2095_v34, %v2103_v32  ;;  %v2114_v41 = vsel %vm2078_vm1, %v2105_v24, %v2113_v48 }
  0x91   : > { %1896 = vmatprep.mubr.bf16.mxu1 %v1547_v25  ;;  %3456 = vmatpush3.bf16.msra.mxu0 %v3707_v42  ;;  %v2100_v42 = vsel %vm2078_vm1, %v2091_v21, %v2099_v10  ;;  %v2107_v25 = vrot.slane %v3129_v53, 1 }
  0x92   : > { %3502 = vmatpush3.bf16.msra.mxu1 %v3708_v50  ;;  %3457 = vmatprep.subr.bf16.mxu0 %v3709_v6  ;;  %v2110_v50 = vsel %vm2078_vm1, %v2101_v23, %v2109_v43  ;;  %v2111_v6 = vrot.slane %v3131_v22, 1 }
  0x93   : > { %3503 = vmatprep.subr.bf16.mxu1 %v3710_v56  ;;  %v2108_v1 = vsel %vm2078_vm1, %v2099_v10, %v2107_v25 }
  0x94   : > { %v2112_v54 = vsel %vm2078_vm1, %v2103_v32, %v2111_v6 }
  0x95   : > { %3458 = vmatpush3.bf16.msra.mxu0 %v3711_v35 }
  0x96   : > { %3504 = vmatpush3.bf16.msra.mxu1 %v3712_v12 }
  0x97   : > { %1825 = vmatmul.mubr.bf16.gmra.mrb[56].mxu0 %v1538_v39 }
  0x98   : > { %1897 = vmatmul.mubr.bf16.gmra.mrb[56].mxu1 %v1544_v55  ;;  %2359 = vmatprep.mubr.bf16.mxu0 %v2084_v62 }
  0x99   : > { %2431 = vmatprep.mubr.bf16.mxu1 %v2090_v14 }
  0x9f   : > { %2360 = vmatmul.mubr.bf16.vlgmr.msra.gmra.mrb[60].mxu0 %v2081_v8 }
  0xa0   : > { %2432 = vmatmul.mubr.bf16.vlgmr.msra.gmra.mrb[60].mxu1 %v2087_v16  ;;  %2367 = vmatprep.mubr.bf16.mxu0 %v2094_v57 }
  0xa1   : > { %2439 = vmatprep.mubr.bf16.mxu1 %v2098_v63 }
  0xa7   : > { %2368 = vmatmul.mubr.bf16.gmra.mrb[64].mxu0 %v2092_v26 }
  0xa8   : > { %2440 = vmatmul.mubr.bf16.gmra.mrb[64].mxu1 %v2096_v0  ;;  %2375 = vmatprep.mubr.bf16.mxu0 %v2102_v28 }
  0xa9   : > { %2447 = vmatprep.mubr.bf16.mxu1 %v2106_v29 }
  0xaf   : > { %2376 = vmatmul.mubr.bf16.gmra.mrb[68].mxu0 %v2100_v42 }
  0xb0   : > { %2448 = vmatmul.mubr.bf16.gmra.mrb[68].mxu1 %v2104_v51  ;;  %2383 = vmatprep.mubr.bf16.mxu0 %v2110_v50 }
  0xb1   : > { %2455 = vmatprep.mubr.bf16.mxu1 %v2114_v41 }
  0xb7   : > { %2384 = vmatmul.mubr.bf16.gmra.mrb[72].mxu0 %v2108_v1 }
  0xb8   : > { %2456 = vmatmul.mubr.bf16.gmra.mrb[72].mxu1 %v2112_v54  ;;  %2391 = vmatprep.mubr.bf16.mxu0 %v2109_v43 }
  0xb9   : > { %2463 = vmatprep.mubr.bf16.mxu1 %v2113_v48 }
  0xbf   : > { %2392 = vmatmul.mubr.bf16.gmra.mrb[76].mxu0 %v2107_v25 }
  0xc0   : > { %2464 = vmatmul.mubr.bf16.gmra.mrb[76].mxu1 %v2111_v6 }
  0xfa   : > { %v3183_v45 = vpop.f32.mrb[0].mxu0 }
  0xfb   : > { %v3184_v46 = vpop.f32.mrb[1].mxu0  ;;  %v3229_v56 = vpop.f32.mrb[0].mxu1 }
  0xfc   : > { %v3185_v59 = vadd.f32 %v3184_v46, %v3183_v45  ;;  %v3186_v15 = vpop.f32.mrb[2].mxu0  ;;  %v3230_v35 = vpop.f32.mrb[1].mxu1 }
  0xfd   : > { %v3187_v33 = vpop.f32.mrb[3].mxu0  ;;  %v3231_v9 = vadd.f32 %v3230_v35, %v3229_v56  ;;  %v3232_v12 = vpop.f32.mrb[2].mxu1 }
  0xfe   : > { %v3188_v3 = vadd.f32 %v3187_v33, %v3186_v15  ;;  %v3233_v17 = vpop.f32.mrb[3].mxu1 }
  0xff   : > { %v4540_v61 = vadd.f32 %v3231_v9, %v3185_v59  ;;  %v3234_v39 = vadd.f32 %v3233_v17, %v3232_v12 }
 0x101   : > { %v4542_v60 = vadd.f32 %v3234_v39, %v3188_v3 }
 0x102   : > { %v3189_v55 = vpop.f32.mrb[4].mxu0 }
 0x103   : > { %v3235_v27 = vpop.f32.mrb[4].mxu1  ;;  %v3190_v5 = vpop.f32.mrb[5].mxu0 }
 0x104   : > { %v3191_v62 = vadd.f32 %v3190_v5, %v3189_v55  ;;  %v3236_v31 = vpop.f32.mrb[5].mxu1  ;;  %v3192_v4 = vpop.f32.mrb[6].mxu0 }
 0x105   : > { %v3237_v14 = vadd.f32 %v3236_v31, %v3235_v27  ;;  %v3238_v37 = vpop.f32.mrb[6].mxu1  ;;  %v3193_v38 = vpop.f32.mrb[7].mxu0 }
 0x106   : > { %v3194_v52 = vadd.f32 %v3193_v38, %v3192_v4  ;;  %v3239_v7 = vpop.f32.mrb[7].mxu1 }
 0x107   : > { %v4544_v58 = vadd.f32 %v3237_v14, %v3191_v62  ;;  %v3240_v2 = vadd.f32 %v3239_v7, %v3238_v37 }
 0x109   : > { %v4546_v36 = vadd.f32 %v3240_v2, %v3194_v52 }
 0x10a   : > { %v3195_v8 = vpop.f32.mrb[8].mxu0 }
 0x10b   : > { %v3241_v13 = vpop.f32.mrb[8].mxu1  ;;  %v3196_v16 = vpop.f32.mrb[9].mxu0 }
 0x10c   : > { %v3197_v57 = vadd.f32 %v3196_v16, %v3195_v8  ;;  %v3242_v19 = vpop.f32.mrb[9].mxu1  ;;  %v3198_v20 = vpop.f32.mrb[10].mxu0 }
 0x10d   : > { %v3243_v63 = vadd.f32 %v3242_v19, %v3241_v13  ;;  %v3244_v40 = vpop.f32.mrb[10].mxu1  ;;  %v3199_v21 = vpop.f32.mrb[11].mxu0 }
 0x10e   : > { %v3200_v34 = vadd.f32 %v3199_v21, %v3198_v20  ;;  %v3245_v23 = vpop.f32.mrb[11].mxu1 }
 0x10f   : > { %v4548_v24 = vadd.f32 %v3243_v63, %v3197_v57  ;;  %v3246_v49 = vadd.f32 %v3245_v23, %v3244_v40 }
 0x111   : > { %v4550_v44 = vadd.f32 %v3246_v49, %v3200_v34 }
 0x112   : > { %v3201_v26 = vpop.f32.mrb[12].mxu0 }
 0x113   : > { %v3247_v11 = vpop.f32.mrb[12].mxu1  ;;  %v3202_v0 = vpop.f32.mrb[13].mxu0 }
 0x114   : > { %v3203_v28 = vadd.f32 %v3202_v0, %v3201_v26  ;;  %v3248_v47 = vpop.f32.mrb[13].mxu1  ;;  %v3204_v18 = vpop.f32.mrb[14].mxu0 }
 0x115   : > { %v3249_v29 = vadd.f32 %v3248_v47, %v3247_v11  ;;  %v3250_v30 = vpop.f32.mrb[14].mxu1  ;;  %v3205_v10 = vpop.f32.mrb[15].mxu0 }
 0x116   : > { %v3206_v32 = vadd.f32 %v3205_v10, %v3204_v18  ;;  %v3251_v43 = vpop.f32.mrb[15].mxu1 }
 0x117   : > { %v4552_v48 = vadd.f32 %v3249_v29, %v3203_v28  ;;  %v3252_v42 = vadd.f32 %v3251_v43, %v3250_v30 }
 0x119   : > { %v4554_v53 = vadd.f32 %v3252_v42, %v3206_v32 }
 0x11a   : > { %v3207_v51 = vpop.f32.mrb[16].mxu0 }
 0x11b   : > { %v3253_v50 = vpop.f32.mrb[16].mxu1  ;;  %v3208_v22 = vpop.f32.mrb[17].mxu0 }
 0x11c   : > { %v3209_v41 = vadd.f32 %v3208_v22, %v3207_v51  ;;  %v3254_v25 = vpop.f32.mrb[17].mxu1  ;;  %v3210_v6 = vpop.f32.mrb[18].mxu0 }
 0x11d   : > { %v3255_v1 = vadd.f32 %v3254_v25, %v3253_v50  ;;  %v3256_v54 = vpop.f32.mrb[18].mxu1  ;;  %v3211_v45 = vpop.f32.mrb[19].mxu0 }
 0x11e   : > { %v3257_v46 = vpop.f32.mrb[19].mxu1 }
 0x11f   : > { %v4556_v59 = vadd.f32 %v3255_v1, %v3209_v41 }
 0x122   : > { %v3275_v15 = vpop.f32.mrb[20].mxu0 }
 0x123   : > { %v3321_v56 = vpop.f32.mrb[20].mxu1  ;;  %v3276_v33 = vpop.f32.mrb[21].mxu0 }
 0x124   : > { %v3277_v35 = vadd.f32 %v3276_v33, %v3275_v15  ;;  %v3322_v3 = vpop.f32.mrb[21].mxu1  ;;  %v3278_v9 = vpop.f32.mrb[22].mxu0 }
 0x125   : > { %v3323_v12 = vadd.f32 %v3322_v3, %v3321_v56  ;;  %v3324_v17 = vpop.f32.mrb[22].mxu1  ;;  %v3279_v39 = vpop.f32.mrb[23].mxu0 }
 0x126   : > { %v1126_v55 = vadd.f32 %v3277_v35, %v4540_v61  ;;  %v3280_v27 = vadd.f32 %v3279_v39, %v3278_v9  ;;  %v3325_v5 = vpop.f32.mrb[23].mxu1 }
 0x127   : > { %v3326_v62 = vadd.f32 %v3325_v5, %v3324_v17 }
 0x128   : > { %v4559_v31 = vadd.f32 %v3323_v12, %v1126_v55  ;;  %v1129_v4 = vadd.f32 %v3280_v27, %v4542_v60 }
 0x12a   : > { %v4562_v14 = vadd.f32 %v3326_v62, %v1129_v4  ;;  %v3281_v37 = vpop.f32.mrb[24].mxu0 }
 0x12b   : > { %v3327_v38 = vpop.f32.mrb[24].mxu1  ;;  %v3282_v52 = vpop.f32.mrb[25].mxu0 }
 0x12c   : > { %v3283_v7 = vadd.f32 %v3282_v52, %v3281_v37  ;;  %v3328_v2 = vpop.f32.mrb[25].mxu1  ;;  %v3284_v8 = vpop.f32.mrb[26].mxu0 }
 0x12d   : > { %v3329_v13 = vadd.f32 %v3328_v2, %v3327_v38  ;;  %v3330_v16 = vpop.f32.mrb[26].mxu1  ;;  %v3285_v57 = vpop.f32.mrb[27].mxu0 }
 0x12e   : > { %v1134_v61 = vadd.f32 %v3283_v7, %v4544_v58  ;;  %v3286_v19 = vadd.f32 %v3285_v57, %v3284_v8  ;;  %v3331_v20 = vpop.f32.mrb[27].mxu1 }
 0x12f   : > { %v3332_v63 = vadd.f32 %v3331_v20, %v3330_v16 }
 0x130   : > { %v4565_v40 = vadd.f32 %v3329_v13, %v1134_v61  ;;  %v1137_v60 = vadd.f32 %v3286_v19, %v4546_v36 }
 0x132   : > { %v4568_v21 = vadd.f32 %v3332_v63, %v1137_v60  ;;  %v3287_v34 = vpop.f32.mrb[28].mxu0 }
 0x133   : > { %v3333_v23 = vpop.f32.mrb[28].mxu1  ;;  %v3288_v49 = vpop.f32.mrb[29].mxu0 }
 0x134   : > { %v3289_v26 = vadd.f32 %v3288_v49, %v3287_v34  ;;  %v3334_v11 = vpop.f32.mrb[29].mxu1  ;;  %v3290_v0 = vpop.f32.mrb[30].mxu0 }
 0x135   : > { %v3335_v28 = vadd.f32 %v3334_v11, %v3333_v23  ;;  %v3336_v47 = vpop.f32.mrb[30].mxu1  ;;  %v3291_v18 = vpop.f32.mrb[31].mxu0 }
 0x136   : > { %v1142_v58 = vadd.f32 %v3289_v26, %v4548_v24  ;;  %v3292_v29 = vadd.f32 %v3291_v18, %v3290_v0  ;;  %v3337_v30 = vpop.f32.mrb[31].mxu1 }
 0x137   : > { %v3338_v10 = vadd.f32 %v3337_v30, %v3336_v47 }
 0x138   : > { %v4571_v32 = vadd.f32 %v3335_v28, %v1142_v58  ;;  %v1145_v36 = vadd.f32 %v3292_v29, %v4550_v44 }
 0x13a   : > { %v4574_v43 = vadd.f32 %v3338_v10, %v1145_v36  ;;  %v3293_v42 = vpop.f32.mrb[32].mxu0 }
 0x13b   : > { %v3339_v51 = vpop.f32.mrb[32].mxu1  ;;  %v3294_v50 = vpop.f32.mrb[33].mxu0 }
 0x13c   : > { %v3295_v22 = vadd.f32 %v3294_v50, %v3293_v42  ;;  %v3340_v41 = vpop.f32.mrb[33].mxu1  ;;  %v3296_v25 = vpop.f32.mrb[34].mxu0 }
 0x13d   : > { %v3341_v6 = vadd.f32 %v3340_v41, %v3339_v51  ;;  %v3342_v1 = vpop.f32.mrb[34].mxu1  ;;  %v3297_v54 = vpop.f32.mrb[35].mxu0 }
 0x13e   : > { %v1150_v24 = vadd.f32 %v3295_v22, %v4552_v48  ;;  %v3298_v45 = vadd.f32 %v3297_v54, %v3296_v25  ;;  %v3343_v46 = vpop.f32.mrb[35].mxu1 }
 0x13f   : > { %v3344_v15 = vadd.f32 %v3343_v46, %v3342_v1 }
 0x140   : > { %v4577_v56 = vadd.f32 %v3341_v6, %v1150_v24  ;;  %v1153_v44 = vadd.f32 %v3298_v45, %v4554_v53 }
 0x142   : > { %v4580_v33 = vadd.f32 %v3344_v15, %v1153_v44  ;;  %v3299_v35 = vpop.f32.mrb[36].mxu0 }
 0x143   : > { %v3345_v3 = vpop.f32.mrb[36].mxu1  ;;  %v3300_v9 = vpop.f32.mrb[37].mxu0 }
 0x144   : > { %v3301_v12 = vadd.f32 %v3300_v9, %v3299_v35  ;;  %v3346_v17 = vpop.f32.mrb[37].mxu1  ;;  %v3302_v39 = vpop.f32.mrb[38].mxu0 }
 0x145   : > { %v3347_v55 = vadd.f32 %v3346_v17, %v3345_v3  ;;  %v3348_v27 = vpop.f32.mrb[38].mxu1  ;;  %v3303_v5 = vpop.f32.mrb[39].mxu0 }
 0x146   : > { %v1158_v48 = vadd.f32 %v3301_v12, %v4556_v59  ;;  %v3349_v62 = vpop.f32.mrb[39].mxu1 }
 0x148   : > { %v4583_v4 = vadd.f32 %v3347_v55, %v1158_v48 }
 0x14a   : > { %v3367_v37 = vpop.f32.mrb[40].mxu0 }
 0x14b   : > { %v3413_v38 = vpop.f32.mrb[40].mxu1  ;;  %v3368_v52 = vpop.f32.mrb[41].mxu0 }
 0x14c   : > { %v3369_v53 = vadd.f32 %v3368_v52, %v3367_v37  ;;  %v3414_v7 = vpop.f32.mrb[41].mxu1  ;;  %v3370_v2 = vpop.f32.mrb[42].mxu0 }
 0x14d   : > { %v3415_v8 = vadd.f32 %v3414_v7, %v3413_v38  ;;  %v3416_v13 = vpop.f32.mrb[42].mxu1  ;;  %v3371_v16 = vpop.f32.mrb[43].mxu0 }
 0x14e   : > { %v3372_v57 = vadd.f32 %v3371_v16, %v3370_v2  ;;  %v3417_v61 = vpop.f32.mrb[43].mxu1 }
 0x14f   : > { %v1867_v19 = vadd.f32 %v3415_v8, %v3369_v53  ;;  %v3418_v20 = vadd.f32 %v3417_v61, %v3416_v13 }
 0x151   : > { %v4586_v63 = vadd.f32 %v1867_v19, %v4559_v31  ;;  %v1870_v59 = vadd.f32 %v3418_v20, %v3372_v57 }
 0x152   : > { %v3373_v60 = vpop.f32.mrb[44].mxu0 }
 0x153   : > { %v4589_v34 = vadd.f32 %v1870_v59, %v4562_v14  ;;  %v3419_v23 = vpop.f32.mrb[44].mxu1  ;;  %v3374_v49 = vpop.f32.mrb[45].mxu0 }
 0x154   : > { %v3375_v26 = vadd.f32 %v3374_v49, %v3373_v60  ;;  %v3420_v11 = vpop.f32.mrb[45].mxu1  ;;  %v3376_v0 = vpop.f32.mrb[46].mxu0 }
 0x155   : > { %v3421_v28 = vadd.f32 %v3420_v11, %v3419_v23  ;;  %v3422_v47 = vpop.f32.mrb[46].mxu1  ;;  %v3377_v18 = vpop.f32.mrb[47].mxu0 }
 0x156   : > { %v3378_v58 = vadd.f32 %v3377_v18, %v3376_v0  ;;  %v3423_v29 = vpop.f32.mrb[47].mxu1 }
 0x157   : > { %v1875_v30 = vadd.f32 %v3421_v28, %v3375_v26  ;;  %v3424_v10 = vadd.f32 %v3423_v29, %v3422_v47 }
 0x159   : > { %v4592_v31 = vadd.f32 %v1875_v30, %v4565_v40  ;;  %v1878_v36 = vadd.f32 %v3424_v10, %v3378_v58 }
 0x15a   : > { %v3379_v42 = vpop.f32.mrb[48].mxu0 }
 0x15b   : > { %v4595_v14 = vadd.f32 %v1878_v36, %v4568_v21  ;;  %v3425_v51 = vpop.f32.mrb[48].mxu1  ;;  %v3380_v50 = vpop.f32.mrb[49].mxu0 }
 0x15c   : > { %v3381_v22 = vadd.f32 %v3380_v50, %v3379_v42  ;;  %v3426_v41 = vpop.f32.mrb[49].mxu1  ;;  %v3382_v25 = vpop.f32.mrb[50].mxu0 }
 0x15d   : > { %v3427_v6 = vadd.f32 %v3426_v41, %v3425_v51  ;;  %v3428_v1 = vpop.f32.mrb[50].mxu1  ;;  %v3383_v54 = vpop.f32.mrb[51].mxu0 }
 0x15e   : > { %v3384_v24 = vadd.f32 %v3383_v54, %v3382_v25  ;;  %v3429_v45 = vpop.f32.mrb[51].mxu1 }
 0x15f   : > { %v1883_v46 = vadd.f32 %v3427_v6, %v3381_v22  ;;  %v3430_v15 = vadd.f32 %v3429_v45, %v3428_v1 }
 0x161   : > { %v4598_v40 = vadd.f32 %v1883_v46, %v4571_v32  ;;  %v1886_v44 = vadd.f32 %v3430_v15, %v3384_v24 }
 0x162   : > { %v3385_v35 = vpop.f32.mrb[52].mxu0 }
 0x163   : > { %v4601_v21 = vadd.f32 %v1886_v44, %v4574_v43  ;;  %v3431_v3 = vpop.f32.mrb[52].mxu1  ;;  %v3386_v9 = vpop.f32.mrb[53].mxu0 }
 0x164   : > { %v3387_v12 = vadd.f32 %v3386_v9, %v3385_v35  ;;  %v3432_v17 = vpop.f32.mrb[53].mxu1  ;;  %v3388_v39 = vpop.f32.mrb[54].mxu0 }
 0x165   : > { %v3433_v55 = vadd.f32 %v3432_v17, %v3431_v3  ;;  %v3434_v27 = vpop.f32.mrb[54].mxu1  ;;  %v3389_v5 = vpop.f32.mrb[55].mxu0 }
 0x166   : > { %v3390_v48 = vadd.f32 %v3389_v5, %v3388_v39  ;;  %v3435_v62 = vpop.f32.mrb[55].mxu1 }
 0x167   : > { %v1891_v37 = vadd.f32 %v3433_v55, %v3387_v12  ;;  %v3436_v38 = vadd.f32 %v3435_v62, %v3434_v27 }
 0x169   : > { %v4604_v32 = vadd.f32 %v1891_v37, %v4577_v56  ;;  %v1894_v52 = vadd.f32 %v3436_v38, %v3390_v48 }
 0x16a   : > { %v3391_v53 = vpop.f32.mrb[56].mxu0 }
 0x16b   : > { %v4607_v43 = vadd.f32 %v1894_v52, %v4580_v33  ;;  %v3437_v7 = vpop.f32.mrb[56].mxu1  ;;  %v3392_v2 = vpop.f32.mrb[57].mxu0 }
 0x16c   : > { %v3393_v8 = vadd.f32 %v3392_v2, %v3391_v53  ;;  %v3438_v13 = vpop.f32.mrb[57].mxu1  ;;  %v3394_v16 = vpop.f32.mrb[58].mxu0 }
 0x16d   : > { %v3439_v57 = vadd.f32 %v3438_v13, %v3437_v7  ;;  %v3440_v61 = vpop.f32.mrb[58].mxu1  ;;  %v3395_v19 = vpop.f32.mrb[59].mxu0 }
 0x16e   : > { %v3441_v20 = vpop.f32.mrb[59].mxu1 }
 0x16f   : > { %v1899_v59 = vadd.f32 %v3439_v57, %v3393_v8 }
 0x171   : > { %v4610_v60 = vadd.f32 %v1899_v59, %v4583_v4 }
 0x172   : > { %v3459_v56 = vpop.f32.mrb[60].mxu0 }
 0x173   : > { %v3505_v23 = vpop.f32.mrb[60].mxu1  ;;  %v3460_v49 = vpop.f32.mrb[61].mxu0 }
 0x174   : > { %v3461_v26 = vadd.f32 %v3460_v49, %v3459_v56  ;;  %v3506_v11 = vpop.f32.mrb[61].mxu1  ;;  %v3462_v33 = vpop.f32.mrb[62].mxu0 }
 0x175   : > { %v3507_v0 = vadd.f32 %v3506_v11, %v3505_v23  ;;  %v3508_v28 = vpop.f32.mrb[62].mxu1  ;;  %v3463_v47 = vpop.f32.mrb[63].mxu0 }
 0x176   : > { %v3464_v18 = vadd.f32 %v3463_v47, %v3462_v33  ;;  %v3509_v58 = vpop.f32.mrb[63].mxu1 }
 0x177   : > { %v2434_v29 = vadd.f32 %v3507_v0, %v3461_v26  ;;  %v3510_v30 = vadd.f32 %v3509_v58, %v3508_v28 }
 0x179   : > { %v4613_v10 = vadd.f32 %v2434_v29, %v4586_v63  ;;  %v2437_v36 = vadd.f32 %v3510_v30, %v3464_v18 }
 0x17a   : > { %v3465_v42 = vpop.f32.mrb[64].mxu0 }
 0x17b   : > { %v2480_v4 = vrot.slane %v4613_v10, 4  ;;  %v2487_v51 = vmul.f32 %v4613_v10, %v4613_v10  ;;  %v4619_v50 = vadd.f32 %v2437_v36, %v4589_v34  ;;  %v3511_v22 = vpop.f32.mrb[64].mxu1  ;;  %v3466_v41 = vpop.f32.mrb[65].mxu0 }
 0x17c   : > { %v3467_v25 = vadd.f32 %v3466_v41, %v3465_v42  ;;  %v3512_v6 = vpop.f32.mrb[65].mxu1  ;;  %v3468_v1 = vpop.f32.mrb[66].mxu0 }
 0x17d   : > { %v2481_v54 = vadd.f32 %v2480_v4, %v4613_v10  ;;  %v2488_v24 = vrot.slane %v2487_v51, 4  ;;  %v3514_v63 = vpop.f32.mrb[66].mxu1  ;;  %v3469_v45 = vpop.f32.mrb[67].mxu0  ;;  %v3513_v46 = vadd.f32 %v3512_v6, %v3511_v22  ;;  %v2509_v55 = vmul.f32 %v4619_v50, %v4619_v50 }
 0x17e   : > { %v3470_v15 = vadd.f32 %v3469_v45, %v3468_v1  ;;  %v3515_v44 = vpop.f32.mrb[67].mxu1  ;;  %v2498_v62 = vrot.slane %v4619_v50, 1 }
 0x17f   : > { %v2482_v35 = vrot.slane %v2481_v54, 2  ;;  %v2489_v3 = vadd.f32 %v2488_v24, %v2487_v51  ;;  %v3516_v9 = vadd.f32 %v3515_v44, %v3514_v63  ;;  %v2442_v12 = vadd.f32 %v3513_v46, %v3467_v25 }
 0x180   : > { %v2513_v59 = vrot.slane %v2509_v55, 1 }
 0x181   : > { %v2483_v17 = vadd.f32 %v2482_v35, %v2481_v54  ;;  %v2490_v34 = vrot.slane %v2489_v3, 2  ;;  %v2445_v39 = vadd.f32 %v3516_v9, %v3470_v15  ;;  %v4625_v27 = vadd.f32 %v2442_v12, %v4592_v31 }
 0x182   : > { %v3471_v5 = vpop.f32.mrb[68].mxu0 }
 0x183   : > { %v2491_v48 = vadd.f32 %v2490_v34, %v2489_v3  ;;  %v4629_v37 = vadd.f32 %v2445_v39, %v4595_v14  ;;  %v3517_v38 = vpop.f32.mrb[68].mxu1  ;;  %v3472_v52 = vpop.f32.mrb[69].mxu0  ;;  %v2484_v53 = vrot.slane %v2483_v17, 1  ;;  %v2499_v7 = vrot.slane %v4625_v27, 1 }
 0x184   : > { %v2510_v2 = vmul.f32 %v4625_v27, %v4625_v27  ;;  %v3473_v8 = vadd.f32 %v3472_v52, %v3471_v5  ;;  %v3518_v13 = vpop.f32.mrb[69].mxu1  ;;  %v3474_v31 = vpop.f32.mrb[70].mxu0  ;;  %v2526_v16 = vrot.slane %v4625_v27, 2 }
 0x185   : > { %v2527_v57 = vrot.slane %v4629_v37, 2  ;;  %v4638_v14 = vmul.f32 %v4629_v37, %v4629_v37  ;;  %v3520_v61 = vpop.f32.mrb[70].mxu1  ;;  %v3475_v19 = vpop.f32.mrb[71].mxu0  ;;  %v2492_v20 = vrot.slane %v2491_v48, 1  ;;  %v2500_v56 = vsel %vm2078_vm1, %v2498_v62, %v2499_v7 }
 0x186   : > { %v2514_v23 = vrot.slane %v2510_v2, 1  ;;  %v3521_v49 = vpop.f32.mrb[71].mxu1  ;;  %v2502_v26 = vrot.slane %v2500_v56, 4  ;;  %v2539_v11 = vrot.slane %v2510_v2, 2  ;;  %v2485_v28 = vadd.f32 %v2484_v53, %v2483_v17 }
 0x187   : > { %v2528_v33 = vsel %vm2525_vm2, %v2526_v16, %v2527_v57  ;;  %v2540_v0 = vrot.slane %v4638_v14, 2  ;;  %v3519_v58 = vadd.f32 %v3518_v13, %v3517_v38  ;;  %v3476_v42 = vadd.f32 %v3475_v19, %v3474_v31 }
 0x188   : > { %v2515_v47 = vsel %vm2078_vm1, %v2513_v59, %v2514_v23  ;;  %v2530_v18 = vrot.slane %v2528_v33, 4  ;;  %v2503_v29 = vadd.f32 %v2502_v26, %v2500_v56  ;;  %v3522_v41 = vadd.f32 %v3521_v49, %v3520_v61 }
 0x189   : > { %v2517_v30 = vrot.slane %v2515_v47, 4  ;;  %v2541_v36 = vsel %vm2525_vm2, %v2539_v11, %v2540_v0  ;;  %v2450_v22 = vadd.f32 %v3519_v58, %v3473_v8  ;;  %v2493_v6 = vadd.f32 %v2492_v20, %v2491_v48 }
 0x18a   : > { %v2531_v4 = vadd.f32 %v2530_v18, %v2528_v33  ;;  %v2543_v51 = vrot.slane %v2541_v36, 4  ;;  %v3477_v25 = vpop.f32.mrb[72].mxu0  ;;  %v2504_v1 = vrot.slane %v2503_v29, 2  ;;  %v2552_v24 = vrot.slane %v4629_v37, 3 }
 0x18b   : > { %v2518_v54 = vadd.f32 %v2517_v30, %v2515_v47  ;;  %v3523_v63 = vpop.f32.mrb[72].mxu1  ;;  %v3478_v45 = vpop.f32.mrb[73].mxu0  ;;  %v4647_v44 = vadd.f32 %v2450_v22, %v4598_v40  ;;  %v2453_v35 = vadd.f32 %v3522_v41, %v3476_v42  ;;  %v2565_v2 = vrot.slane %v4638_v14, 3 }
 0x18c   : > { %v2532_v46 = vrot.slane %v2531_v4, 2  ;;  %v2544_v15 = vadd.f32 %v2543_v51, %v2541_v36  ;;  %v3524_v3 = vpop.f32.mrb[73].mxu1  ;;  %v3480_v9 = vpop.f32.mrb[74].mxu0  ;;  %v2505_v12 = vadd.f32 %v2504_v1, %v2503_v29  ;;  %v3479_v34 = vadd.f32 %v3478_v45, %v3477_v25 }
 0x18d   : > { %v2519_v17 = vrot.slane %v2518_v54, 2  ;;  %v3525_v39 = vadd.f32 %v3524_v3, %v3523_v63  ;;  %v3526_v55 = vpop.f32.mrb[74].mxu1  ;;  %v3481_v5 = vpop.f32.mrb[75].mxu0  ;;  %v2553_v38 = vrot.slane %v4647_v44, 3  ;;  %v2563_v52 = vmul.f32 %v4647_v44, %v4647_v44 }
 0x18e   : > { %v2533_v48 = vadd.f32 %v2532_v46, %v2531_v4  ;;  %v2545_v62 = vrot.slane %v2544_v15, 2  ;;  %v3527_v53 = vpop.f32.mrb[75].mxu1  ;;  %v2506_v7 = vrot.slane %v2505_v12, 1  ;;  %v4654_v8 = vadd.f32 %v2453_v35, %v4601_v21 }
 0x18f   : > { %v2520_v40 = vadd.f32 %v2519_v17, %v2518_v54  ;;  %v2554_v16 = vsel %vm2551_vm3, %v2552_v24, %v2553_v38  ;;  %v2566_v57 = vrot.slane %v2563_v52, 3  ;;  %v2578_v59 = vrot.slane %v4647_v44, 4 }
 0x190   : > { %v2534_v13 = vrot.slane %v2533_v48, 1  ;;  %v2546_v31 = vadd.f32 %v2545_v62, %v2544_v15  ;;  %v2507_v61 = vadd.f32 %v2506_v7, %v2505_v12  ;;  %v2556_v20 = vrot.slane %v2554_v16, 4 }
 0x191   : > { %v2521_v19 = vrot.slane %v2520_v40, 1  ;;  %v2567_v49 = vsel %vm2551_vm3, %v2565_v2, %v2566_v57  ;;  %v2579_v26 = vrot.slane %v4654_v8, 4  ;;  %v2589_v30 = vmul.f32 %v4654_v8, %v4654_v8 }
 0x192   : > { %v2535_v56 = vadd.f32 %v2534_v13, %v2533_v48  ;;  %v2547_v23 = vrot.slane %v2546_v31, 1  ;;  %v3483_v14 = vpop.f32.mrb[76].mxu0  ;;  %v2508_v11 = vadd.f32 %v2507_v61, %v2485_v28  ;;  %v2557_v33 = vadd.f32 %v2556_v20, %v2554_v16 }
 0x193   : > { %v2522_v21 = vadd.f32 %v2521_v19, %v2520_v40  ;;  %v2569_v0 = vrot.slane %v2567_v49, 4  ;;  %v3529_v47 = vpop.f32.mrb[76].mxu1  ;;  %v3484_v18 = vpop.f32.mrb[77].mxu0  ;;  %v2580_v29 = vsel %vm2577_vm4, %v2578_v59, %v2579_v26  ;;  %v2591_v1 = vrot.slane %v2563_v52, 4 }
 0x194   : > { %v2548_v58 = vadd.f32 %v2547_v23, %v2546_v31  ;;  %v3530_v36 = vpop.f32.mrb[77].mxu1  ;;  %v3486_v42 = vpop.f32.mrb[78].mxu0  ;;  %v2536_v51 = vadd.f32 %v2535_v56, %v2508_v11  ;;  %v2558_v22 = vrot.slane %v2557_v33, 2  ;;  %v2582_v54 = vrot.slane %v2580_v29, 4 }
 0x195   : > { %v2523_v4 = vadd.f32 %v2522_v21, %v2493_v6  ;;  %v2570_v41 = vadd.f32 %v2569_v0, %v2567_v49  ;;  %v3532_v25 = vpop.f32.mrb[78].mxu1  ;;  %v3487_v28 = vpop.f32.mrb[79].mxu0  ;;  %v2592_v24 = vrot.slane %v2589_v30, 4  ;;  %v2458_v63 = vadd.f32 %v3525_v39, %v3479_v34 }
 0x196   : > { %v3533_v45 = vpop.f32.mrb[79].mxu1  ;;  %v2559_v15 = vadd.f32 %v2558_v22, %v2557_v33  ;;  %v3482_v3 = vadd.f32 %v3481_v5, %v3480_v9  ;;  %v2583_v12 = vadd.f32 %v2582_v54, %v2580_v29  ;;  %v3528_v48 = vadd.f32 %v3527_v53, %v3526_v55 }
 0x197   : > { %v2549_v46 = vadd.f32 %v2548_v58, %v2523_v4  ;;  %v2571_v35 = vrot.slane %v2570_v41, 2  ;;  %v2593_v17 = vsel %vm2577_vm4, %v2591_v1, %v2592_v24  ;;  %v4665_v6 = vadd.f32 %v2458_v63, %v4604_v32 }
 0x198   : > { %v2560_v62 = vrot.slane %v2559_v15, 1  ;;  %v2595_v7 = vrot.slane %v2593_v17, 4  ;;  %v3485_v52 = vadd.f32 %v3484_v18, %v3483_v14  ;;  %v2584_v40 = vrot.slane %v2583_v12, 2 }
 0x199   : > { %v2572_v38 = vadd.f32 %v2571_v35, %v2570_v41  ;;  %v2604_v34 = vrot.slane %v4654_v8, 5  ;;  %v2605_v39 = vrot.slane %v4665_v6, 5  ;;  %v2615_v9 = vmul.f32 %v4665_v6, %v4665_v6 }
 0x19a   : > { %v2561_v5 = vadd.f32 %v2560_v62, %v2559_v15  ;;  %v2596_v13 = vadd.f32 %v2595_v7, %v2593_v17  ;;  %v2461_v31 = vadd.f32 %v3528_v48, %v3482_v3  ;;  %v2585_v16 = vadd.f32 %v2584_v40, %v2583_v12 }
 0x19b   : > { %v2573_v2 = vrot.slane %v2572_v38, 1  ;;  %v2617_v32 = vrot.slane %v2589_v30, 5  ;;  %v2606_v55 = vsel %vm2603_vm5, %v2604_v34, %v2605_v39  ;;  %v2618_v53 = vrot.slane %v2615_v9, 5 }
 0x19c   : > { %v2562_v57 = vadd.f32 %v2561_v5, %v2536_v51  ;;  %v2597_v19 = vrot.slane %v2596_v13, 2  ;;  %v2608_v20 = vrot.slane %v2606_v55, 4  ;;  %v2586_v59 = vrot.slane %v2585_v16, 1 }
 0x19d   : > { %v2574_v61 = vadd.f32 %v2573_v2, %v2572_v38  ;;  %v2619_v56 = vsel %vm2603_vm5, %v2617_v32, %v2618_v53  ;;  %v4674_v23 = vadd.f32 %v2461_v31, %v4607_v43  ;;  %v3531_v49 = vadd.f32 %v3530_v36, %v3529_v47 }
 0x19e   : > { %v2598_v14 = vadd.f32 %v2597_v19, %v2596_v13  ;;  %v2609_v11 = vadd.f32 %v2608_v20, %v2606_v55  ;;  %v2621_v21 = vrot.slane %v2619_v56, 4  ;;  %v2587_v33 = vadd.f32 %v2586_v59, %v2585_v16 }
 0x19f   : > { %v2575_v26 = vadd.f32 %v2574_v61, %v2549_v46  ;;  %v2630_v0 = vrot.slane %v4665_v6, 6  ;;  %v2631_v18 = vrot.slane %v4674_v23, 6  ;;  %v2641_v58 = vmul.f32 %v4674_v23, %v4674_v23 }
 0x1a0   : > { %v2599_v29 = vrot.slane %v2598_v14, 1  ;;  %v2610_v30 = vrot.slane %v2609_v11, 2  ;;  %v2622_v42 = vadd.f32 %v2621_v21, %v2619_v56  ;;  %v2466_v4 = vadd.f32 %v3531_v49, %v3485_v52 }
 0x1a1   : > { %v2588_v51 = vadd.f32 %v2587_v33, %v2562_v57  ;;  %v2643_v43 = vrot.slane %v2615_v9, 6  ;;  %v2632_v47 = vsel %vm2629_vm6, %v2630_v0, %v2631_v18  ;;  %v2644_v36 = vrot.slane %v2641_v58, 6 }
 0x1a2   : > { %v2600_v22 = vadd.f32 %v2599_v29, %v2598_v14  ;;  %v2611_v41 = vadd.f32 %v2610_v30, %v2609_v11  ;;  %v2623_v25 = vrot.slane %v2622_v42, 2  ;;  %v2634_v28 = vrot.slane %v2632_v47, 4 }
 0x1a3   : > { %v2645_v1 = vsel %vm2629_vm6, %v2643_v43, %v2644_v36  ;;  %v4683_v54 = vadd.f32 %v2466_v4, %v4610_v60  ;;  %v2656_v35 = vrot.slane %v4674_v23, 7  ;;  %v2669_v7 = vrot.slane %v2641_v58, 7 }
 0x1a4   : > { %v2601_v24 = vadd.f32 %v2600_v22, %v2575_v26  ;;  %v2612_v63 = vrot.slane %v2611_v41, 1  ;;  %v2624_v45 = vadd.f32 %v2623_v25, %v2622_v42  ;;  %v2635_v46 = vadd.f32 %v2634_v28, %v2632_v47 }
 0x1a5   : > { %v2647_v15 = vrot.slane %v2645_v1, 4  ;;  %v2657_v3 = vrot.slane %v4683_v54, 7  ;;  %v2667_v12 = vmul.f32 %v4683_v54, %v4683_v54 }
 0x1a6   : > { %v2613_v17 = vadd.f32 %v2612_v63, %v2611_v41  ;;  %v2625_v48 = vrot.slane %v2624_v45, 1  ;;  %v2636_v62 = vrot.slane %v2635_v46, 2 }
 0x1a7   : > { %v2648_v38 = vadd.f32 %v2647_v15, %v2645_v1  ;;  %v2658_v60 = vsel %vm2655_vm7, %v2656_v35, %v2657_v3  ;;  %v2670_v52 = vrot.slane %v2667_v12, 7 }
 0x1a8   : > { %v2614_v40 = vadd.f32 %v2613_v17, %v2588_v51  ;;  %v2626_v34 = vadd.f32 %v2625_v48, %v2624_v45  ;;  %v2637_v39 = vadd.f32 %v2636_v62, %v2635_v46  ;;  %v2660_v9 = vrot.slane %v2658_v60, 4 }
 0x1a9   : > { %v2649_v5 = vrot.slane %v2648_v38, 2  ;;  %v2671_v2 = vsel %vm2655_vm7, %v2669_v7, %v2670_v52 }
 0x1aa   : > { %v2638_v13 = vrot.slane %v2637_v39, 1  ;;  %v2627_v31 = vadd.f32 %v2626_v34, %v2601_v24  ;;  %v2661_v16 = vadd.f32 %v2660_v9, %v2658_v60  ;;  %v2673_v32 = vrot.slane %v2671_v2, 4 }
 0x1ab   : > { %v2650_v55 = vadd.f32 %v2649_v5, %v2648_v38 }
 0x1ac   : > { %v2639_v53 = vadd.f32 %v2638_v13, %v2637_v39  ;;  %v2662_v57 = vrot.slane %v2661_v16, 2  ;;  %v2674_v61 = vadd.f32 %v2673_v32, %v2671_v2 }
 0x1ad   : > { %v2651_v19 = vrot.slane %v2650_v55, 1 }
 0x1ae   : > { %v2640_v20 = vadd.f32 %v2639_v53, %v2614_v40  ;;  %v2663_v59 = vadd.f32 %v2662_v57, %v2661_v16  ;;  %v2675_v56 = vrot.slane %v2674_v61, 2 }
 0x1af   : > { %v2652_v49 = vadd.f32 %v2651_v19, %v2650_v55 }
 0x1b0   : > { %v2664_v26 = vrot.slane %v2663_v59, 1  ;;  %v2676_v14 = vadd.f32 %v2675_v56, %v2674_v61 }
 0x1b1   : > { %v2653_v11 = vadd.f32 %v2652_v49, %v2627_v31 }
 0x1b2   : > { %v2665_v21 = vadd.f32 %v2664_v26, %v2663_v59  ;;  %v2677_v33 = vrot.slane %v2676_v14, 1 }
 0x1b4   : > { %v2666_v0 = vadd.f32 %v2665_v21, %v2640_v20  ;;  %v2678_v18 = vadd.f32 %v2677_v33, %v2676_v14 }
 0x1b6   : > { %v2679_v58 = vadd.f32 %v2678_v18, %v2653_v11  ;;  %v2680_v29 = vmul.f32 0.015625, %v2666_v0 }
 0x1b8   : > { %v2681_v30 = vmul.f32 0.015625, %v2679_v58  ;;  %v2682_v42 = vmul.f32 %v2680_v29, %v2680_v29  ;;  %v2685_v4 = vsub.f32 %v4613_v10, %v2680_v29  ;;  %v2686_v51 = vsub.f32 %v4619_v50, %v2680_v29 }
 0x1b9   : > { %v2687_v43 = vsub.f32 %v4625_v27, %v2680_v29  ;;  %v2688_v47 = vsub.f32 %v4629_v37, %v2680_v29  ;;  %v2689_v36 = vsub.f32 %v4647_v44, %v2680_v29  ;;  %v2690_v22 = vsub.f32 %v4654_v8, %v2680_v29 }
 0x1ba   : > { %v2683_v41 = vsub.f32 %v2681_v30, %v2682_v42  ;;  %v2691_v25 = vsub.f32 %v4665_v6, %v2680_v29  ;;  %v2692_v28 = vsub.f32 %v4674_v23, %v2680_v29  ;;  %v2693_v1 = vsub.f32 %v4683_v54, %v2680_v29 }
 0x1bc   : > { %v2684_v24 = vmax.f32 %v2683_v41, 0.0 }
 0x1be   : > { %v2694_v63 = vadd.f32 1e-05, %v2684_v24 }
 0x1c0   : > { %3741 = vrsqrt.f32 %v2694_v63 }
 0x1ca   : > { %v3742_v10 = vpop.eup %3741 }
 0x1cb   : > { %v2696_v50 = vmul.f32 %v3742_v10, %v2685_v4  ;;  %v2697_v27 = vmul.f32 %v3742_v10, %v2686_v51  ;;  %v2698_v45 = vmul.f32 %v3742_v10, %v2687_v43  ;;  %v2699_v37 = vmul.f32 %v3742_v10, %v2688_v47 }
 0x1cc   : > { %v2700_v44 = vmul.f32 %v3742_v10, %v2689_v36  ;;  %v2701_v8 = vmul.f32 %v3742_v10, %v2690_v22  ;;  %v2702_v6 = vmul.f32 %v3742_v10, %v2691_v25  ;;  %v2703_v46 = vmul.f32 %v3742_v10, %v2692_v28 }
 0x1cd   : > { %v2704_v23 = vmul.f32 %v3742_v10, %v2693_v1  ;;  %v2705_v15 = vmax.f32 %v2696_v50, 0.0  ;;  %v2706_v54 = vmax.f32 %v2697_v27, 0.0  ;;  %v2707_v35 = vmax.f32 %v2698_v45, 0.0 }
 0x1ce   : > { %v2708_v3 = vmax.f32 %v2699_v37, 0.0  ;;  %v2709_v12 = vmax.f32 %v2700_v44, 0.0  ;;  %v2710_v17 = vmax.f32 %v2701_v8, 0.0  ;;  %v2711_v48 = vmax.f32 %v2702_v6, 0.0 }
 0x1cf   : > { %v2712_v62 = vmax.f32 %v2703_v46, 0.0  ;;  %v2713_v38 = vmax.f32 %v2704_v23, 0.0  ;;  %2714 = vst [vmem:[%s143_s20] sm:$0xff] %v2705_v15  ;;  %2715 = vst [vmem:[%s143_s20 + $0x8] sm:$0xff] %v2706_v54 }
 0x1d0   : > { %2716 = vst [vmem:[%s143_s20 + $0x10] sm:$0xff] %v2707_v35  ;;  %2717 = vst [vmem:[%s143_s20 + $0x18] sm:$0xff] %v2708_v3 }
 0x1d1   : > { %2718 = vst [vmem:[%s143_s20 + $0x20] sm:$0xff] %v2709_v12  ;;  %2719 = vst [vmem:[%s143_s20 + $0x28] sm:$0xff] %v2710_v17 }
 0x1d2   : > { %2720 = vst [vmem:[%s143_s20 + $0x30] sm:$0xff] %v2711_v48  ;;  %2721 = vst [vmem:[%s143_s20 + $0x38] sm:$0xff] %v2712_v62 }
 0x1d3   : > { %2722 = vst [vmem:[%s143_s20 + $0x40] sm:$0x7f] %v2713_v38 }
 0x1d4 PF: > { %s12_s9 = sadd.s32 1, %s3749_s9  }
 0x1d5   : > { %p9_p4 = scmp.ge.s32.totalorder %s12_s9, 4  }
 0x1d7   :  { %11 = sbr.rel (!%p9_p4) target bundleno = 1 (0x1), region = 61 }

// kernel: content_encoder_forward.9
= control target key start
LH: loop header
LB: loop body
LE: loop exit
PB: predicated region body
PF: predicated region fallthrough
CT: control target
= control target key end

     0   :  { %s3641_s9 = smov 0   ;;  %s4671_s0 = inlined_call_operand.vmem [shape: bf16[2,25,512], index: 0, kind: input, shape index: {}]   ;;  %s4672_s1 = inlined_call_operand.vmem [shape: bf16[4,512,256], index: 1, kind: input, shape index: {}]   ;;  %s4673_s2 = inlined_call_operand.vmem [shape: f32[2,19,256], index: 2, kind: output, shape index: {}]  }
   0x1 LB: > { %s2656_s10 = sadd.s32 4294967295, %s3624_s9   ;;  %p2660_p0 = scmp.ge.s32.totalorder %s3624_s9, 1  ;;  %s3624_s9 = sphi %s3641_s9, %s12_s9  }
   0x2   : > { %p112_p1 = scmp.lt.s32.totalorder %s3624_s9, 3 }
   0x4   : > { %p113_p2 = pnand %p2660_p0, %p112_p1 }
   0x5   : > { %v3202_v0 = vld [vmem:[%s4672_s1 + $0x204] ss:$8 sps:$4 sm:$0xff] (!%p113_p2)   ;;  %v3206_v2 = vld [vmem:[%s4672_s1 + $0x200] ss:$8 sps:$4 sm:$0xff] (!%p113_p2)   ;;  %v3208_v4 = vld [vmem:[%s4672_s1 + $0x214] ss:$8 sps:$4 sm:$0xff] (!%p113_p2)  }
   0x6   : > { %116 = sbr.rel (%p113_p2) target bundleno = 553 (0x229), region = 28  ;;  %v3204_v1 = vld [vmem:[%s4672_s1 + $0x404] ss:$8 sps:$4 sm:$0xff] (!%p113_p2)   ;;  %694 = vmatprep.subr.bf16.mxu1 (!%p113_p2), %v3202_v0  ;;  %v3207_v3 = vld [vmem:[%s4672_s1 + $0x400] ss:$8 sps:$4 sm:$0xff] (!%p113_p2)   ;;  %p134_p3 = scmp.lt.s32.totalorder (!%p113_p2), %s2656_s10, 1 }
   0x7   : > { %1712 = vmatprep.subr.bf16.mxu0 (!%p113_p2), %v3204_v1  ;;  %695 = vmatpush1.bf16.msra.mxu1 (!%p113_p2), %v3206_v2  ;;  %v3210_v5 = vld [vmem:[%s4672_s1 + $0x414] ss:$8 sps:$4 sm:$0xff] (!%p113_p2)   ;;  %v3212_v6 = vld [vmem:[%s4672_s1 + $0x210] ss:$8 sps:$4 sm:$0xff] (!%p113_p2)   ;;  %v3214_v8 = vld [vmem:[%s4672_s1 + $0x224] ss:$8 sps:$4 sm:$0xff] (!%p113_p2)  }
   0x8   : > { %1713 = vmatpush1.bf16.msra.mxu0 (!%p113_p2), %v3207_v3  ;;  %696 = vmatprep.subr.bf16.mxu1 (!%p113_p2), %v3208_v4  ;;  %v3213_v7 = vld [vmem:[%s4672_s1 + $0x410] ss:$8 sps:$4 sm:$0xff] (!%p113_p2)   ;;  %v3216_v9 = vld [vmem:[%s4672_s1 + $0x424] ss:$8 sps:$4 sm:$0xff] (!%p113_p2)   ;;  %v3218_v10 = vld [vmem:[%s4672_s1 + $0x220] ss:$8 sps:$4 sm:$0xff] (!%p113_p2)  }
   0x9   : > { %1714 = vmatprep.subr.bf16.mxu0 (!%p113_p2), %v3210_v5  ;;  %v3219_v11 = vld [vmem:[%s4672_s1 + $0x420] ss:$8 sps:$4 sm:$0xff] (!%p113_p2)   ;;  %v3220_v12 = vld [vmem:[%s4672_s1 + $0x234] ss:$8 sps:$4 sm:$0xff] (!%p113_p2)   ;;  %v3224_v14 = vld [vmem:[%s4672_s1 + $0x230] ss:$8 sps:$4 sm:$0xff] (!%p113_p2)  }
   0xa   : > { %v3222_v13 = vld [vmem:[%s4672_s1 + $0x434] ss:$8 sps:$4 sm:$0xff] (!%p113_p2)   ;;  %v3225_v15 = vld [vmem:[%s4672_s1 + $0x430] ss:$8 sps:$4 sm:$0xff] (!%p113_p2)   ;;  %v3226_v16 = vld [vmem:[%s4672_s1 + $0x244] ss:$8 sps:$4 sm:$0xff] (!%p113_p2)  }
   0xb   : > { %697 = vmatpush1.bf16.msra.mxu1 (!%p113_p2), %v3212_v6  ;;  %v3228_v17 = vld [vmem:[%s4672_s1 + $0x444] ss:$8 sps:$4 sm:$0xff] (!%p113_p2)   ;;  %v3230_v18 = vld [vmem:[%s4672_s1 + $0x240] ss:$8 sps:$4 sm:$0xff] (!%p113_p2)   ;;  %v3232_v20 = vld [vmem:[%s4672_s1 + $0x254] ss:$8 sps:$4 sm:$0xff] (!%p113_p2)  }
   0xc   : > { %1715 = vmatpush1.bf16.msra.mxu0 (!%p113_p2), %v3213_v7  ;;  %698 = vmatprep.subr.bf16.mxu1 (!%p113_p2), %v3214_v8  ;;  %v3231_v19 = vld [vmem:[%s4672_s1 + $0x440] ss:$8 sps:$4 sm:$0xff] (!%p113_p2)   ;;  %v3234_v21 = vld [vmem:[%s4672_s1 + $0x454] ss:$8 sps:$4 sm:$0xff] (!%p113_p2)   ;;  %v3236_v22 = vld [vmem:[%s4672_s1 + $0x250] ss:$8 sps:$4 sm:$0xff] (!%p113_p2)  }
   0xd   : > { %1716 = vmatprep.subr.bf16.mxu0 %v3216_v9  ;;  %v3237_v23 = vld [vmem:[%s4672_s1 + $0x450] ss:$8 sps:$4 sm:$0xff]   ;;  %v3238_v24 = vld [vmem:[%s4672_s1 + $0x264] ss:$8 sps:$4 sm:$0xff]   ;;  %v3242_v26 = vld [vmem:[%s4672_s1 + $0x260] ss:$8 sps:$4 sm:$0xff]  }
   0xe   : > { %v3240_v25 = vld [vmem:[%s4672_s1 + $0x464] ss:$8 sps:$4 sm:$0xff]   ;;  %v3243_v27 = vld [vmem:[%s4672_s1 + $0x460] ss:$8 sps:$4 sm:$0xff]   ;;  %v3244_v28 = vld [vmem:[%s4672_s1 + $0x274] ss:$8 sps:$4 sm:$0xff]  }
   0xf   : > { %699 = vmatpush1.bf16.msra.mxu1 %v3218_v10  ;;  %v3246_v29 = vld [vmem:[%s4672_s1 + $0x474] ss:$8 sps:$4 sm:$0xff]   ;;  %v3248_v30 = vld [vmem:[%s4672_s1 + $0x270] ss:$8 sps:$4 sm:$0xff]   ;;  %v3250_v32 = vld [vmem:[%s4672_s1 + $0x284] ss:$8 sps:$4 sm:$0xff]  }
  0x10   : > { %1717 = vmatpush1.bf16.msra.mxu0 %v3219_v11  ;;  %700 = vmatprep.subr.bf16.mxu1 %v3220_v12  ;;  %v3249_v31 = vld [vmem:[%s4672_s1 + $0x470] ss:$8 sps:$4 sm:$0xff]   ;;  %v3252_v33 = vld [vmem:[%s4672_s1 + $0x484] ss:$8 sps:$4 sm:$0xff]   ;;  %v3254_v34 = vld [vmem:[%s4672_s1 + $0x280] ss:$8 sps:$4 sm:$0xff]  }
  0x11   : > { %1718 = vmatprep.subr.bf16.mxu0 %v3222_v13  ;;  %v3255_v35 = vld [vmem:[%s4672_s1 + $0x480] ss:$8 sps:$4 sm:$0xff]   ;;  %v3256_v36 = vld [vmem:[%s4672_s1 + $0x294] ss:$8 sps:$4 sm:$0xff]   ;;  %s4675_s10 = smov (!%p134_p3, %s2656_s10), 1  ;;  %vm1925_vm2 = vcmask 1044480  }
  0x12   : > { %v3258_v37 = vld [vmem:[%s4672_s1 + $0x494] ss:$8 sps:$4 sm:$0xff]   ;;  %v3260_v38 = vld [vmem:[%s4672_s1 + $0x290] ss:$8 sps:$4 sm:$0xff]   ;;  %v3262_v40 = vld [vmem:[%s4672_s1 + $0x2a4] ss:$8 sps:$4 sm:$0xff]  }
  0x13   : > { %701 = vmatpush1.bf16.msra.mxu1 %v3224_v14  ;;  %v3261_v39 = vld [vmem:[%s4672_s1 + $0x490] ss:$8 sps:$4 sm:$0xff]   ;;  %s3138_s15 = sshll.u32 %s4675_s10, 6  ;;  %v3264_v41 = vld [vmem:[%s4672_s1 + $0x4a4] ss:$8 sps:$4 sm:$0xff]   ;;  %vm2374_vm3 = vcmask 1043456  }
  0x14   : > { %1719 = vmatpush1.bf16.msra.mxu0 %v3225_v15  ;;  %702 = vmatprep.subr.bf16.mxu1 %v3226_v16  ;;  %v3266_v42 = vld [vmem:[%s4672_s1 + $0x2a0] ss:$8 sps:$4 sm:$0xff]   ;;  %s3791_s24 = scalar_lea.vmem %s4671_s0, %s3138_s15  ;;  %v3268_v44 = vld [vmem:[%s4672_s1 + $0x2b4] ss:$8 sps:$4 sm:$0xff]   ;;  %v3272_v46 = vld [vmem:[%s4672_s1 + $0x2b0] ss:$8 sps:$4 sm:$0xff]  }
  0x15   : > { %1720 = vmatprep.subr.bf16.mxu0 %v3228_v17  ;;  %v3267_v43 = vld [vmem:[%s4672_s1 + $0x4a0] ss:$8 sps:$4 sm:$0xff]   ;;  %v3270_v45 = vld [vmem:[%s4672_s1 + $0x4b4] ss:$8 sps:$4 sm:$0xff]   ;;  %v3273_v47 = vld [vmem:[%s4672_s1 + $0x4b0] ss:$8 sps:$4 sm:$0xff]  }
  0x16   : > { %v144_v48 = vld [vmem:[%s3791_s24] sm:$0xff]  ;;  %v146_v49 = vld [vmem:[%s3791_s24 + $0x10] sm:$0xff]  ;;  %vm305_vm0 = vsmask.f32 7424  ;;  %vm1315_vm1 = vsmask.f32 5376 }
  0x17   : > { %703 = vmatpush1.bf16.msra.mxu1 %v3230_v18  ;;  %v148_v50 = vld [vmem:[%s3791_s24 + $0x20] sm:$0x33]  ;;  %v3814_v53 = vcombine.high %v144_v48, %v146_v49  ;;  %v1226_v55 = vld [vmem:[%s3791_s24] sm:$0xcc]  ;;  %v3833_v0 = vcombine.low %v144_v48, %v146_v49  ;;  %v3280_v5 = vld [vmem:[%s4672_s1 + $0x2d4] ss:$8 sps:$4 sm:$0xff]  }
  0x18   : > { %1721 = vmatpush1.bf16.msra.mxu0 %v3231_v19  ;;  %704 = vmatprep.subr.bf16.mxu1 %v3232_v20  ;;  %v3274_v51 = vld [vmem:[%s4672_s1 + $0x2c4] ss:$8 sps:$4 sm:$0xff]   ;;  %v3816_v54 = vcombine.high %v148_v50, %v148_v50  ;;  %v2929_v60 = vcombine.high %v1226_v55, %v146_v49  ;;  %v3278_v61 = vld [vmem:[%s4672_s1 + $0x2c0] ss:$8 sps:$4 sm:$0xff]   ;;  %v3282_v6 = vld [vmem:[%s4672_s1 + $0x4d4] ss:$8 sps:$4 sm:$0xff]   ;;  %v3843_v9 = vcombine.low %v148_v50, %v148_v50 }
  0x19   : > { %1722 = vmatprep.subr.bf16.mxu0 %v3234_v21  ;;  %v3276_v52 = vld [vmem:[%s4672_s1 + $0x4c4] ss:$8 sps:$4 sm:$0xff]   ;;  %v319_v57 = vshrl.u32 %v3814_v53, 16  ;;  %v321_v58 = vshll.u32 %v3814_v53, 16  ;;  %v3279_v62 = vld [vmem:[%s4672_s1 + $0x4c0] ss:$8 sps:$4 sm:$0xff]   ;;  %v2928_v14 = vcombine.low %v1226_v55, %v146_v49 }
  0x1a   : > { %v3820_v56 = vld [vmem:[%s3791_s24 + $0x20] sm:$0xff]  ;;  %v326_v59 = vshll.u32 %v3816_v54, 16  ;;  %v1334_v3 = vshrl.u32 %v2929_v60, 16  ;;  %v1337_v4 = vshll.u32 %v2929_v60, 16  ;;  %v3284_v10 = vld [vmem:[%s4672_s1 + $0x2d0] ss:$8 sps:$4 sm:$0xff]  }
  0x1b   : > { %705 = vmatpush1.bf16.msra.mxu1 %v3236_v22  ;;  %v2933_v63 = vcombine.high %v3820_v56, %v3820_v56  ;;  %v323_v1 = vrot.slane %v321_v58, 1  ;;  %v3285_v15 = vld [vmem:[%s4672_s1 + $0x4d0] ss:$8 sps:$4 sm:$0xff]   ;;  %v309_v18 = vshll.u32 %v3833_v0, 16  ;;  %v2932_v19 = vcombine.low %v3820_v56, %v3820_v56  ;;  %v3286_v20 = vld [vmem:[%s4672_s1 + $0x2e4] ss:$8 sps:$4 sm:$0xff]  }
  0x1c   : > { %1723 = vmatpush1.bf16.msra.mxu0 %v3237_v23  ;;  %706 = vmatprep.subr.bf16.mxu1 %v3238_v24  ;;  %v3835_v2 = vrot.slane %v326_v59, 1  ;;  %v1336_v12 = vrot.slane %v1334_v3, 2  ;;  %v1339_v13 = vrot.slane %v1337_v4, 3  ;;  %v1317_v23 = vshrl.u32 %v2928_v14, 16  ;;  %v3307_v48 = vld [vmem:[%s4672_s1 + $0x504] ss:$8 sps:$4 sm:$0xff]  }
  0x1d   : > { %1724 = vmatprep.subr.bf16.mxu0 %v3240_v25  ;;  %v1342_v7 = vshrl.u32 %v2933_v63, 16  ;;  %v1345_v8 = vshll.u32 %v2933_v63, 16  ;;  %v324_v11 = vor.u32 %v323_v1, %v319_v57  ;;  %v1320_v24 = vshll.u32 %v2928_v14, 16  ;;  %v3288_v25 = vld [vmem:[%s4672_s1 + $0x4e4] ss:$8 sps:$4 sm:$0xff]   ;;  %s3193_s22 = smul.u32 48, %s4675_s10 }
  0x1e   : > { %v1340_v22 = vor.u32 %v1339_v13, %v1336_v12  ;;  %v357_v49 = vshrl.u32 %v3816_v54, 16  ;;  %v3300_v50 = vld [vmem:[%s4672_s1 + $0x300] ss:$8 sps:$4 sm:$0xff]   ;;  %v3314_v57 = vld [vmem:[%s4672_s1 + $0x314] ss:$8 sps:$4 sm:$0xff]   ;;  %vm2413_vm4 = vcmask 1042432  }
  0x1f   : > { %707 = vmatpush1.bf16.msra.mxu1 %v3242_v26  ;;  %v1344_v16 = vrot.slane %v1342_v7, 2  ;;  %v1347_v17 = vrot.slane %v1345_v8, 3  ;;  %v329_v21 = vsel %vm305_vm0, %v324_v11, %v3835_v2  ;;  %v3317_v58 = vld [vmem:[%s4672_s1 + $0x514] ss:$8 sps:$4 sm:$0xff]   ;;  %v3312_v60 = vld [vmem:[%s4672_s1 + $0x310] ss:$8 sps:$4 sm:$0xff]   ;;  %s143_s26 = scalar_lea.vmem %s4673_s2, %s3193_s22 }
  0x20   : > { %1725 = vmatpush1.bf16.msra.mxu0 %v3243_v27  ;;  %708 = vmatprep.subr.bf16.mxu1 %v3244_v28  ;;  %v1325_v27 = vshrl.u32 %v2932_v19, 16  ;;  %v1328_v28 = vshll.u32 %v2932_v19, 16  ;;  %v359_v59 = vor.u32 %v357_v49, %v3835_v2  ;;  %v3320_v63 = vld [vmem:[%s4672_s1 + $0x324] ss:$8 sps:$4 sm:$0xff]   ;;  %v3318_v2 = vld [vmem:[%s4672_s1 + $0x320] ss:$8 sps:$4 sm:$0xff]  }
  0x21   : > { %1726 = vmatprep.subr.bf16.mxu0 %v3246_v29  ;;  %v1348_v26 = vor.u32 %v1347_v17, %v1344_v16  ;;  %v3290_v29 = vld [vmem:[%s4672_s1 + $0x2e0] ss:$8 sps:$4 sm:$0xff]   ;;  %726 = vmatprep.mubr.bf16.mxu1 %v329_v21  ;;  %v3323_v1 = vld [vmem:[%s4672_s1 + $0x524] ss:$8 sps:$4 sm:$0xff]   ;;  %v3324_v7 = vld [vmem:[%s4672_s1 + $0x330] ss:$8 sps:$4 sm:$0xff]  }
  0x22   : > { %v3321_v3 = vld [vmem:[%s4672_s1 + $0x520] ss:$8 sps:$4 sm:$0xff]   ;;  %v3327_v8 = vld [vmem:[%s4672_s1 + $0x530] ss:$8 sps:$4 sm:$0xff]   ;;  %v3335_v11 = vld [vmem:[%s4672_s1 + $0x544] ss:$8 sps:$4 sm:$0xff]  }
  0x23   : > { %709 = vmatpush1.bf16.msra.mxu1 %v3248_v30  ;;  %v3291_v30 = vld [vmem:[%s4672_s1 + $0x4e0] ss:$8 sps:$4 sm:$0xff]   ;;  %v3338_v14 = vld [vmem:[%s4672_s1 + $0x354] ss:$8 sps:$4 sm:$0xff]   ;;  %v3336_v16 = vld [vmem:[%s4672_s1 + $0x350] ss:$8 sps:$4 sm:$0xff]  }
  0x24   : > { %1727 = vmatpush1.bf16.msra.mxu0 %v3249_v31  ;;  %710 = vmatprep.subr.bf16.mxu1 %v3250_v32  ;;  %v3292_v31 = vld [vmem:[%s4672_s1 + $0x2f4] ss:$8 sps:$4 sm:$0xff]   ;;  %v1349_v32 = vsel %vm1315_vm1, %v1340_v22, %v1348_v26  ;;  %v3330_v12 = vld [vmem:[%s4672_s1 + $0x340] ss:$8 sps:$4 sm:$0xff]   ;;  %v3339_v17 = vld [vmem:[%s4672_s1 + $0x550] ss:$8 sps:$4 sm:$0xff]  }
  0x25   : > { %1728 = vmatprep.subr.bf16.mxu0 %v3252_v33  ;;  %v307_v33 = vshrl.u32 %v3833_v0, 16  ;;  %1744 = vmatprep.mubr.bf16.mxu0 %v1349_v32  ;;  %v3333_v13 = vld [vmem:[%s4672_s1 + $0x540] ss:$8 sps:$4 sm:$0xff]   ;;  %v3347_v19 = vld [vmem:[%s4672_s1 + $0x564] ss:$8 sps:$4 sm:$0xff]   ;;  %vm2510_vm5 = vcmask 1040384  }
  0x26   : > { %v3345_v21 = vld [vmem:[%s4672_s1 + $0x560] ss:$8 sps:$4 sm:$0xff]   ;;  %v3350_v22 = vld [vmem:[%s4672_s1 + $0x374] ss:$8 sps:$4 sm:$0xff]  }
  0x27   : > { %711 = vmatpush1.bf16.msra.mxu1 %v3254_v34  ;;  %v311_v34 = vrot.slane %v309_v18, 1  ;;  %v3344_v18 = vld [vmem:[%s4672_s1 + $0x364] ss:$8 sps:$4 sm:$0xff]  }
  0x28   : > { %1729 = vmatpush1.bf16.msra.mxu0 %v3255_v35  ;;  %712 = vmatprep.subr.bf16.mxu1 %v3256_v36  ;;  %v314_v35 = vshll.u32 %v3843_v9, 16  ;;  %v1319_v36 = vrot.slane %v1317_v23, 2  ;;  %v3353_v23 = vld [vmem:[%s4672_s1 + $0x574] ss:$8 sps:$4 sm:$0xff]  }
  0x29   : > { %1730 = vmatprep.subr.bf16.mxu0 %v3258_v37  ;;  %v1322_v37 = vrot.slane %v1320_v24, 3  ;;  %v3979_v24 = vld [vmem:[%s3791_s24 + $0x8] sm:$0xff] }
  0x2b   : > { %713 = vmatpush1.bf16.msra.mxu1 %v3260_v38  ;;  %v1327_v38 = vrot.slane %v1325_v27, 2 }
  0x2c   : > { %1731 = vmatpush1.bf16.msra.mxu0 %v3261_v39  ;;  %714 = vmatprep.subr.bf16.mxu1 %v3262_v40  ;;  %v1330_v39 = vrot.slane %v1328_v28, 3  ;;  %v3294_v40 = vld [vmem:[%s4672_s1 + $0x4f4] ss:$8 sps:$4 sm:$0xff]   ;;  %v3348_v28 = vld [vmem:[%s4672_s1 + $0x370] ss:$8 sps:$4 sm:$0xff]  }
  0x2d   : > { %1732 = vmatprep.subr.bf16.mxu0 %v3264_v41  ;;  %v3296_v41 = vld [vmem:[%s4672_s1 + $0x2f0] ss:$8 sps:$4 sm:$0xff]  }
  0x2f   : > { %715 = vmatpush1.bf16.msra.mxu1 %v3266_v42  ;;  %v3297_v42 = vld [vmem:[%s4672_s1 + $0x4f0] ss:$8 sps:$4 sm:$0xff]  }
  0x30   : > { %1733 = vmatpush1.bf16.msra.mxu0 %v3267_v43  ;;  %716 = vmatprep.subr.bf16.mxu1 %v3268_v44  ;;  %v3302_v43 = vld [vmem:[%s4672_s1 + $0x304] ss:$8 sps:$4 sm:$0xff]   ;;  %v312_v44 = vor.u32 %v311_v34, %v307_v33 }
  0x31   : > { %1734 = vmatprep.subr.bf16.mxu0 %v3270_v45  ;;  %v316_v45 = vrot.slane %v314_v35, 1  ;;  %v4007_v34 = vld [vmem:[%s3791_s24 + $0x28] sm:$0xff] }
  0x33   : > { %717 = vmatpush1.bf16.msra.mxu1 %v3272_v46  ;;  %v1323_v46 = vor.u32 %v1322_v37, %v1319_v36  ;;  %v3356_v36 = vld [vmem:[%s4672_s1 + $0x384] ss:$8 sps:$4 sm:$0xff]  }
  0x34   : > { %1735 = vmatpush1.bf16.msra.mxu0 %v3273_v47  ;;  %718 = vmatprep.subr.bf16.mxu1 %v3274_v51  ;;  %v1331_v47 = vor.u32 %v1330_v39, %v1327_v38  ;;  %v3305_v51 = vld [vmem:[%s4672_s1 + $0x500] ss:$8 sps:$4 sm:$0xff]   ;;  %v3359_v37 = vld [vmem:[%s4672_s1 + $0x584] ss:$8 sps:$4 sm:$0xff]   ;;  %v2935_v39 = vcombine.high %v4007_v34, %v4007_v34 }
  0x35   : > { %1736 = vmatprep.subr.bf16.mxu0 %v3276_v52  ;;  %v317_v52 = vsel %vm305_vm0, %v312_v44, %v316_v45  ;;  %v3357_v44 = vld [vmem:[%s4672_s1 + $0x580] ss:$8 sps:$4 sm:$0xff]  }
  0x36   : > { %v1332_v55 = vsel %vm1315_vm1, %v1323_v46, %v1331_v47  ;;  %v1376_v46 = vshrl.u32 %v2935_v39, 16 }
  0x37   : > { %719 = vmatpush1.bf16.msra.mxu1 %v3278_v61  ;;  %v3315_v61 = vld [vmem:[%s4672_s1 + $0x510] ss:$8 sps:$4 sm:$0xff]  }
  0x38   : > { %1737 = vmatpush1.bf16.msra.mxu0 %v3279_v62  ;;  %720 = vmatprep.subr.bf16.mxu1 %v3280_v5  ;;  %v354_v62 = vshrl.u32 %v3843_v9, 16  ;;  %v3326_v5 = vld [vmem:[%s4672_s1 + $0x334] ss:$8 sps:$4 sm:$0xff]  }
  0x39   : > { %1738 = vmatprep.subr.bf16.mxu0 %v3282_v6  ;;  %v3329_v6 = vld [vmem:[%s4672_s1 + $0x534] ss:$8 sps:$4 sm:$0xff]  }
  0x3a   : > { %v356_v4 = vor.u32 %v354_v62, %v316_v45  ;;  %v3363_v62 = vld [vmem:[%s4672_s1 + $0x590] ss:$8 sps:$4 sm:$0xff]  }
  0x3b   : > { %721 = vmatpush1.bf16.msra.mxu1 %v3284_v10  ;;  %v3332_v10 = vld [vmem:[%s4672_s1 + $0x344] ss:$8 sps:$4 sm:$0xff]  }
  0x3c   : > { %1739 = vmatpush1.bf16.msra.mxu0 %v3285_v15  ;;  %722 = vmatprep.subr.bf16.mxu1 %v3286_v20  ;;  %v3341_v15 = vld [vmem:[%s4672_s1 + $0x554] ss:$8 sps:$4 sm:$0xff]   ;;  %v3342_v20 = vld [vmem:[%s4672_s1 + $0x360] ss:$8 sps:$4 sm:$0xff]  }
  0x3d   : > { %1740 = vmatprep.subr.bf16.mxu0 %v3288_v25  ;;  %v3982_v25 = vld [vmem:[%s3791_s24 + $0x18] sm:$0xff] }
  0x3e   : > { %v3989_v27 = vcombine.high %v3979_v24, %v3982_v25 }
  0x3f   : > { %723 = vmatpush1.bf16.msra.mxu1 %v3290_v29  ;;  %v3351_v29 = vld [vmem:[%s4672_s1 + $0x570] ss:$8 sps:$4 sm:$0xff]  }
  0x40   : > { %1741 = vmatpush1.bf16.msra.mxu0 %v3291_v30  ;;  %724 = vmatprep.subr.bf16.mxu1 %v3292_v31  ;;  %v4002_v31 = vld [vmem:[%s3791_s24 + $0x8] sm:$0xcc]  ;;  %v343_v32 = vshrl.u32 %v3989_v27, 16  ;;  %v345_v33 = vshll.u32 %v3989_v27, 16 }
  0x41   : > { %1742 = vmatprep.subr.bf16.mxu0 %v3294_v40  ;;  %v2931_v35 = vcombine.high %v4002_v31, %v3982_v25  ;;  %v3354_v40 = vld [vmem:[%s4672_s1 + $0x380] ss:$8 sps:$4 sm:$0xff]  }
  0x43   : > { %725 = vmatpush1.bf16.msra.mxu1 %v3296_v41  ;;  %v347_v41 = vrot.slane %v345_v33, 1  ;;  %v3390_v33 = vld [vmem:[%s4672_s1 + $0x3e0] ss:$8 sps:$4 sm:$0xff]  }
  0x44   : > { %1743 = vmatpush1.bf16.msra.mxu0 %v3297_v42  ;;  %745 = vmatprep.subr.bf16.mxu1 %v3302_v43  ;;  %v1368_v42 = vshrl.u32 %v2931_v35, 16  ;;  %v1371_v43 = vshll.u32 %v2931_v35, 16  ;;  %v3398_v35 = vld [vmem:[%s4672_s1 + $0x3f4] ss:$8 sps:$4 sm:$0xff]  }
  0x45   : > { %1763 = vmatprep.subr.bf16.mxu0 %v3307_v48  ;;  %v3362_v48 = vld [vmem:[%s4672_s1 + $0x394] ss:$8 sps:$4 sm:$0xff]   ;;  %v348_v49 = vor.u32 %v347_v41, %v343_v32  ;;  %v3395_v32 = vld [vmem:[%s4672_s1 + $0x5e4] ss:$8 sps:$4 sm:$0xff]  }
  0x46   : > { %727 = vmatmul.mubr.bf16.vlgmr.msra.gmra.mrb[0].mxu1 %v317_v52  ;;  %v3365_v52 = vld [vmem:[%s4672_s1 + $0x594] ss:$8 sps:$4 sm:$0xff]  }
  0x47   : > { %1745 = vmatmul.mubr.bf16.vlgmr.msra.gmra.mrb[0].mxu0 %v1332_v55  ;;  %746 = vmatpush1.bf16.msra.mxu1 %v3300_v50  ;;  %v1370_v50 = vrot.slane %v1368_v42, 2  ;;  %v1378_v55 = vrot.slane %v1376_v46, 2  ;;  %v3399_v46 = vld [vmem:[%s4672_s1 + $0x5f0] ss:$8 sps:$4 sm:$0xff]  }
  0x48   : > { %1764 = vmatpush1.bf16.msra.mxu0 %v3305_v51  ;;  %747 = vmatprep.subr.bf16.mxu1 %v3314_v57  ;;  %v1373_v51 = vrot.slane %v1371_v43, 3  ;;  %v3401_v43 = vld [vmem:[%s4672_s1 + $0x5f4] ss:$8 sps:$4 sm:$0xff]  }
  0x49   : > { %1765 = vmatprep.subr.bf16.mxu0 %v3317_v58  ;;  %736 = vmatprep.mubr.bf16.mxu1 %v359_v59 }
  0x4a   : > { %1754 = vmatprep.mubr.bf16.mxu0 %v1348_v26  ;;  %v3985_v26 = vld [vmem:[%s3791_s24 + $0x28] sm:$0x33]  ;;  %v1374_v59 = vor.u32 %v1373_v51, %v1370_v50 }
  0x4b   : > { %748 = vmatpush1.bf16.msra.mxu1 %v3312_v60  ;;  %v3999_v30 = vcombine.high %v3985_v26, %v3985_v26  ;;  %v3360_v60 = vld [vmem:[%s4672_s1 + $0x390] ss:$8 sps:$4 sm:$0xff]  }
  0x4c   : > { %1766 = vmatpush1.bf16.msra.mxu0 %v3315_v61  ;;  %749 = vmatprep.subr.bf16.mxu1 %v3320_v63  ;;  %v3368_v63 = vld [vmem:[%s4672_s1 + $0x3a4] ss:$8 sps:$4 sm:$0xff]  }
  0x4d   : > { %1767 = vmatprep.subr.bf16.mxu0 %v3323_v1  ;;  %v350_v38 = vshll.u32 %v3999_v30, 16  ;;  %v3371_v1 = vld [vmem:[%s4672_s1 + $0x5a4] ss:$8 sps:$4 sm:$0xff]  }
  0x4e   : > { %737 = vmatmul.mubr.bf16.gmra.mrb[4].mxu1 %v356_v4  ;;  %v3369_v4 = vld [vmem:[%s4672_s1 + $0x5a0] ss:$8 sps:$4 sm:$0xff]  }
  0x4f   : > { %1755 = vmatmul.mubr.bf16.gmra.mrb[4].mxu0 %v1331_v47  ;;  %750 = vmatpush1.bf16.msra.mxu1 %v3318_v2  ;;  %v4026_v45 = vrot.slane %v350_v38, 1  ;;  %v1379_v47 = vshll.u32 %v2935_v39, 16 }
  0x50   : > { %1768 = vmatpush1.bf16.msra.mxu0 %v3321_v3  ;;  %751 = vmatprep.subr.bf16.mxu1 %v3326_v5  ;;  %v3366_v3 = vld [vmem:[%s4672_s1 + $0x3a0] ss:$8 sps:$4 sm:$0xff]   ;;  %v3374_v5 = vld [vmem:[%s4672_s1 + $0x3b4] ss:$8 sps:$4 sm:$0xff]  }
  0x51   : > { %1769 = vmatprep.subr.bf16.mxu0 %v3329_v6  ;;  %v1381_v57 = vrot.slane %v1379_v47, 3  ;;  %v353_v58 = vsel %vm305_vm0, %v348_v49, %v4026_v45  ;;  %v3377_v6 = vld [vmem:[%s4672_s1 + $0x5b4] ss:$8 sps:$4 sm:$0xff]   ;;  %v3408_v47 = vld [vmem:[%s4672_s1 + $0x4] ss:$8 sps:$4 sm:$0xff]  }
  0x52   : > { %777 = vmatprep.mubr.bf16.mxu1 %v353_v58  ;;  %v3413_v58 = vld [vmem:[%s4672_s1 + $0x600] ss:$8 sps:$4 sm:$0xff]  }
  0x53   : > { %752 = vmatpush1.bf16.msra.mxu1 %v3324_v7  ;;  %v4039_v61 = vor.u32 %v1381_v57, %v1378_v55  ;;  %v3372_v7 = vld [vmem:[%s4672_s1 + $0x3b0] ss:$8 sps:$4 sm:$0xff]   ;;  %v363_v55 = vshrl.u32 %v3999_v30, 16  ;;  %v3406_v57 = vld [vmem:[%s4672_s1] ss:$8 sps:$4 sm:$0xff]  }
  0x54   : > { %1770 = vmatpush1.bf16.msra.mxu0 %v3327_v8  ;;  %753 = vmatprep.subr.bf16.mxu1 %v3332_v10  ;;  %v3375_v8 = vld [vmem:[%s4672_s1 + $0x5b0] ss:$8 sps:$4 sm:$0xff]   ;;  %v3380_v10 = vld [vmem:[%s4672_s1 + $0x3c4] ss:$8 sps:$4 sm:$0xff]  }
  0x55   : > { %1771 = vmatprep.subr.bf16.mxu0 %v3335_v11  ;;  %v1383_v2 = vsel %vm1315_vm1, %v1374_v59, %v4039_v61  ;;  %v3383_v11 = vld [vmem:[%s4672_s1 + $0x5c4] ss:$8 sps:$4 sm:$0xff]  }
  0x56   : > { %1795 = vmatprep.mubr.bf16.mxu0 %v1383_v2  ;;  %v3416_v2 = vld [vmem:[%s4672_s1 + $0x10] ss:$8 sps:$4 sm:$0xff]  }
  0x57   : > { %754 = vmatpush1.bf16.msra.mxu1 %v3330_v12  ;;  %v3378_v12 = vld [vmem:[%s4672_s1 + $0x3c0] ss:$8 sps:$4 sm:$0xff]  }
  0x58   : > { %1772 = vmatpush1.bf16.msra.mxu0 %v3333_v13  ;;  %755 = vmatprep.subr.bf16.mxu1 %v3338_v14  ;;  %v3381_v13 = vld [vmem:[%s4672_s1 + $0x5c0] ss:$8 sps:$4 sm:$0xff]   ;;  %v4084_v14 = vcombine.low %v3979_v24, %v3982_v25 }
  0x59   : > { %1773 = vmatprep.subr.bf16.mxu0 %v3341_v15  ;;  %v3386_v15 = vld [vmem:[%s4672_s1 + $0x3d4] ss:$8 sps:$4 sm:$0xff]  }
  0x5b   : > { %756 = vmatpush1.bf16.msra.mxu1 %v3336_v16  ;;  %v2930_v16 = vcombine.low %v4002_v31, %v3982_v25 }
  0x5c   : > { %1774 = vmatpush1.bf16.msra.mxu0 %v3339_v17  ;;  %757 = vmatprep.subr.bf16.mxu1 %v3344_v18  ;;  %v2934_v17 = vcombine.low %v4007_v34, %v4007_v34  ;;  %v3389_v18 = vld [vmem:[%s4672_s1 + $0x5d4] ss:$8 sps:$4 sm:$0xff]  }
  0x5d   : > { %1775 = vmatprep.subr.bf16.mxu0 %v3347_v19  ;;  %v3384_v19 = vld [vmem:[%s4672_s1 + $0x3d0] ss:$8 sps:$4 sm:$0xff]   ;;  %v1351_v24 = vshrl.u32 %v2930_v16, 16 }
  0x5e   : > { %v1362_v31 = vshll.u32 %v2934_v17, 16 }
  0x5f   : > { %758 = vmatpush1.bf16.msra.mxu1 %v3342_v20  ;;  %v3387_v20 = vld [vmem:[%s4672_s1 + $0x5d0] ss:$8 sps:$4 sm:$0xff]   ;;  %v1353_v39 = vrot.slane %v1351_v24, 2  ;;  %v3442_v24 = vld [vmem:[%s4672_s1 + $0x54] ss:$8 sps:$4 sm:$0xff]  }
  0x60   : > { %1776 = vmatpush1.bf16.msra.mxu0 %v3345_v21  ;;  %759 = vmatprep.subr.bf16.mxu1 %v3350_v22  ;;  %v3392_v21 = vld [vmem:[%s4672_s1 + $0x3e4] ss:$8 sps:$4 sm:$0xff]   ;;  %v4107_v22 = vcombine.low %v3985_v26, %v3985_v26  ;;  %v3393_v26 = vld [vmem:[%s4672_s1 + $0x5e0] ss:$8 sps:$4 sm:$0xff]   ;;  %v1364_v42 = vrot.slane %v1362_v31, 3 }
  0x61   : > { %1777 = vmatprep.subr.bf16.mxu0 %v3353_v23  ;;  %v333_v23 = vshll.u32 %v4084_v14, 16  ;;  %v3448_v31 = vld [vmem:[%s4672_s1 + $0x64] ss:$8 sps:$4 sm:$0xff]  }
  0x62   : > { %v338_v38 = vshll.u32 %v4107_v22, 16 }
  0x63   : > { %760 = vmatpush1.bf16.msra.mxu1 %v3348_v28  ;;  %v1354_v28 = vshll.u32 %v2930_v16, 16 }
  0x64   : > { %1778 = vmatpush1.bf16.msra.mxu0 %v3351_v29  ;;  %761 = vmatprep.subr.bf16.mxu1 %v3356_v36  ;;  %v1359_v29 = vshrl.u32 %v2934_v17, 16  ;;  %v331_v36 = vshrl.u32 %v4084_v14, 16  ;;  %v340_v49 = vrot.slane %v338_v38, 1  ;;  %v3436_v17 = vld [vmem:[%s4672_s1 + $0x44] ss:$8 sps:$4 sm:$0xff]  }
  0x65   : > { %1779 = vmatprep.subr.bf16.mxu0 %v3359_v37  ;;  %v335_v37 = vrot.slane %v333_v23, 1  ;;  %v3437_v23 = vld [vmem:[%s4672_s1 + $0x640] ss:$8 sps:$4 sm:$0xff]   ;;  %v3455_v38 = vld [vmem:[%s4672_s1 + $0x670] ss:$8 sps:$4 sm:$0xff]  }
  0x66   : > { %v1361_v41 = vrot.slane %v1359_v29, 2  ;;  %v3443_v29 = vld [vmem:[%s4672_s1 + $0x650] ss:$8 sps:$4 sm:$0xff]  }
  0x67   : > { %762 = vmatpush1.bf16.msra.mxu1 %v3354_v40  ;;  %v1356_v40 = vrot.slane %v1354_v28, 3  ;;  %v3440_v28 = vld [vmem:[%s4672_s1 + $0x50] ss:$8 sps:$4 sm:$0xff]  }
  0x68   : > { %1780 = vmatpush1.bf16.msra.mxu0 %v3357_v44  ;;  %763 = vmatprep.subr.bf16.mxu1 %v3362_v48  ;;  %v3396_v44 = vld [vmem:[%s4672_s1 + $0x3f0] ss:$8 sps:$4 sm:$0xff]   ;;  %v336_v48 = vor.u32 %v335_v37, %v331_v36  ;;  %v1365_v51 = vor.u32 %v1364_v42, %v1361_v41  ;;  %v3457_v36 = vld [vmem:[%s4672_s1 + $0x674] ss:$8 sps:$4 sm:$0xff]   ;;  %v3458_v41 = vld [vmem:[%s4672_s1 + $0x80] ss:$8 sps:$4 sm:$0xff]  }
  0x69   : > { %1781 = vmatprep.subr.bf16.mxu0 %v3365_v52  ;;  %v1357_v50 = vor.u32 %v1356_v40, %v1353_v39  ;;  %v3415_v52 = vld [vmem:[%s4672_s1 + $0x604] ss:$8 sps:$4 sm:$0xff]   ;;  %v3452_v37 = vld [vmem:[%s4672_s1 + $0x70] ss:$8 sps:$4 sm:$0xff]   ;;  %v3461_v42 = vld [vmem:[%s4672_s1 + $0x680] ss:$8 sps:$4 sm:$0xff]  }
  0x6a   : > { %v341_v59 = vsel %vm305_vm0, %v336_v48, %v340_v49  ;;  %v3460_v39 = vld [vmem:[%s4672_s1 + $0x84] ss:$8 sps:$4 sm:$0xff]  }
  0x6b   : > { %764 = vmatpush1.bf16.msra.mxu1 %v3360_v60  ;;  %v1366_v60 = vsel %vm1315_vm1, %v1357_v50, %v1365_v51  ;;  %v3463_v40 = vld [vmem:[%s4672_s1 + $0x684] ss:$8 sps:$4 sm:$0xff]   ;;  %v3470_v50 = vld [vmem:[%s4672_s1 + $0xa0] ss:$8 sps:$4 sm:$0xff]  }
  0x6c   : > { %1782 = vmatpush1.bf16.msra.mxu0 %v3363_v62  ;;  %765 = vmatprep.subr.bf16.mxu1 %v3368_v63  ;;  %v3418_v62 = vld [vmem:[%s4672_s1 + $0x14] ss:$8 sps:$4 sm:$0xff]   ;;  %v3472_v48 = vld [vmem:[%s4672_s1 + $0xa4] ss:$8 sps:$4 sm:$0xff]  }
  0x6d   : > { %1783 = vmatprep.subr.bf16.mxu0 %v3371_v1  ;;  %v3421_v63 = vld [vmem:[%s4672_s1 + $0x614] ss:$8 sps:$4 sm:$0xff]   ;;  %v365_v1 = vor.u32 %v363_v55, %v4026_v45  ;;  %v3427_v45 = vld [vmem:[%s4672_s1 + $0x624] ss:$8 sps:$4 sm:$0xff]  }
  0x6e   : > { %v3481_v55 = vld [vmem:[%s4672_s1 + $0x6b4] ss:$8 sps:$4 sm:$0xff]  }
  0x6f   : > { %766 = vmatpush1.bf16.msra.mxu1 %v3366_v3  ;;  %v3419_v3 = vld [vmem:[%s4672_s1 + $0x610] ss:$8 sps:$4 sm:$0xff]  }
  0x70   : > { %1784 = vmatpush1.bf16.msra.mxu0 %v3369_v4  ;;  %767 = vmatprep.subr.bf16.mxu1 %v3374_v5  ;;  %v360_v4 = vshrl.u32 %v4107_v22, 16  ;;  %v3424_v5 = vld [vmem:[%s4672_s1 + $0x24] ss:$8 sps:$4 sm:$0xff]  }
  0x71   : > { %1785 = vmatprep.subr.bf16.mxu0 %v3377_v6  ;;  %v3422_v6 = vld [vmem:[%s4672_s1 + $0x20] ss:$8 sps:$4 sm:$0xff]  }
  0x73   : > { %768 = vmatpush1.bf16.msra.mxu1 %v3372_v7  ;;  %v3425_v7 = vld [vmem:[%s4672_s1 + $0x620] ss:$8 sps:$4 sm:$0xff]  }
  0x74   : > { %1786 = vmatpush1.bf16.msra.mxu0 %v3375_v8  ;;  %769 = vmatprep.subr.bf16.mxu1 %v3380_v10  ;;  %v362_v8 = vor.u32 %v360_v4, %v340_v49  ;;  %v3430_v10 = vld [vmem:[%s4672_s1 + $0x34] ss:$8 sps:$4 sm:$0xff]   ;;  %v3475_v49 = vld [vmem:[%s4672_s1 + $0x6a4] ss:$8 sps:$4 sm:$0xff]   ;;  %v3491_v4 = vld [vmem:[%s4672_s1 + $0x6d0] ss:$8 sps:$4 sm:$0xff]  }
  0x75   : > { %1787 = vmatprep.subr.bf16.mxu0 %v3383_v11  ;;  %v3428_v11 = vld [vmem:[%s4672_s1 + $0x30] ss:$8 sps:$4 sm:$0xff]  }
  0x77   : > { %770 = vmatpush1.bf16.msra.mxu1 %v3378_v12  ;;  %v4185_v12 = vld [vmem:[%s3791_s24 + $0x30] sm:$0x11] }
  0x78   : > { %1788 = vmatpush1.bf16.msra.mxu0 %v3381_v13  ;;  %771 = vmatprep.subr.bf16.mxu1 %v3386_v15  ;;  %v3431_v13 = vld [vmem:[%s4672_s1 + $0x630] ss:$8 sps:$4 sm:$0xff]   ;;  %v3511_v15 = vld [vmem:[%s3791_s24 + $0x4] ss:$16 sps:$4 sm:$0xf8]   ;;  %v3069_v16 = vcombine.high %v3820_v56, %v4185_v12 }
  0x79   : > { %1789 = vmatprep.subr.bf16.mxu0 %v3389_v18  ;;  %v3439_v18 = vld [vmem:[%s4672_s1 + $0x644] ss:$8 sps:$4 sm:$0xff]  }
  0x7b   : > { %772 = vmatpush1.bf16.msra.mxu1 %v3384_v19  ;;  %v1929_v19 = vrot.slane %v3511_v15, 3  ;;  %v3500_v15 = vld [vmem:[%s4672_s1 + $0xf0] ss:$8 sps:$4 sm:$0xff]  }
  0x7c   : > { %1790 = vmatpush1.bf16.msra.mxu0 %v3387_v20  ;;  %773 = vmatprep.subr.bf16.mxu1 %v3392_v21  ;;  %v4199_v20 = vrot.slane %v3069_v16, 3  ;;  %v3434_v21 = vld [vmem:[%s4672_s1 + $0x40] ss:$8 sps:$4 sm:$0xff]  }
  0x7d   : > { %1791 = vmatprep.subr.bf16.mxu0 %v3395_v32  ;;  %v3451_v32 = vld [vmem:[%s4672_s1 + $0x664] ss:$8 sps:$4 sm:$0xff]  }
  0x7e   : > { %v1931_v56 = vsel %vm1925_vm2, %v1929_v19, %v4199_v20  ;;  %v3516_v19 = vld [vmem:[%s4672_s1 + $0x704] ss:$8 sps:$4 sm:$0xff]  }
  0x7f   : > { %774 = vmatpush1.bf16.msra.mxu1 %v3390_v33  ;;  %v3446_v33 = vld [vmem:[%s4672_s1 + $0x60] ss:$8 sps:$4 sm:$0xff]  }
  0x80   : > { %1792 = vmatpush1.bf16.msra.mxu0 %v3393_v26  ;;  %775 = vmatprep.subr.bf16.mxu1 %v3398_v35  ;;  %v3449_v26 = vld [vmem:[%s4672_s1 + $0x660] ss:$8 sps:$4 sm:$0xff]   ;;  %v3454_v35 = vld [vmem:[%s4672_s1 + $0x74] ss:$8 sps:$4 sm:$0xff]  }
  0x81   : > { %1793 = vmatprep.subr.bf16.mxu0 %v3401_v43  ;;  %v3466_v43 = vld [vmem:[%s4672_s1 + $0x94] ss:$8 sps:$4 sm:$0xff]  }
  0x83   : > { %776 = vmatpush1.bf16.msra.mxu1 %v3396_v44  ;;  %v3469_v44 = vld [vmem:[%s4672_s1 + $0x694] ss:$8 sps:$4 sm:$0xff]  }
  0x84   : > { %1794 = vmatpush1.bf16.msra.mxu0 %v3399_v46  ;;  %1124 = vmatprep.subr.bf16.mxu1 %v3408_v47  ;;  %v3464_v46 = vld [vmem:[%s4672_s1 + $0x90] ss:$8 sps:$4 sm:$0xff]  }
  0x85   : > { %2266 = vmatprep.subr.bf16.mxu0 %v3415_v52  ;;  %v3467_v47 = vld [vmem:[%s4672_s1 + $0x690] ss:$8 sps:$4 sm:$0xff]   ;;  %v3478_v52 = vld [vmem:[%s4672_s1 + $0xb4] ss:$8 sps:$4 sm:$0xff]  }
  0x86   : > { %778 = vmatmul.mubr.bf16.vlgmr.msra.gmra.mrb[0].mxu1 %v341_v59  ;;  %v3484_v59 = vld [vmem:[%s4672_s1 + $0xc4] ss:$8 sps:$4 sm:$0xff]  }
  0x87   : > { %1796 = vmatmul.mubr.bf16.vlgmr.msra.gmra.mrb[0].mxu0 %v1366_v60  ;;  %1125 = vmatpush1.bf16.msra.mxu1 %v3406_v57  ;;  %v3476_v57 = vld [vmem:[%s4672_s1 + $0xb0] ss:$8 sps:$4 sm:$0xff]   ;;  %v3487_v60 = vld [vmem:[%s4672_s1 + $0x6c4] ss:$8 sps:$4 sm:$0xff]  }
  0x88   : > { %2267 = vmatpush1.bf16.msra.mxu0 %v3413_v58  ;;  %1126 = vmatprep.subr.bf16.mxu1 %v3418_v62  ;;  %v3479_v58 = vld [vmem:[%s4672_s1 + $0x6b0] ss:$8 sps:$4 sm:$0xff]   ;;  %v3482_v62 = vld [vmem:[%s4672_s1 + $0xc0] ss:$8 sps:$4 sm:$0xff]  }
  0x89   : > { %2268 = vmatprep.subr.bf16.mxu0 %v3421_v63  ;;  %787 = vmatprep.mubr.bf16.mxu1 %v365_v1  ;;  %v3485_v63 = vld [vmem:[%s4672_s1 + $0x6c0] ss:$8 sps:$4 sm:$0xff]   ;;  %v3490_v1 = vld [vmem:[%s4672_s1 + $0xd4] ss:$8 sps:$4 sm:$0xff]  }
  0x8a   : > { %1805 = vmatprep.mubr.bf16.mxu0 %v4039_v61  ;;  %v3433_v61 = vld [vmem:[%s4672_s1 + $0x634] ss:$8 sps:$4 sm:$0xff]  }
  0x8b   : > { %1127 = vmatpush1.bf16.msra.mxu1 %v3416_v2  ;;  %v3493_v2 = vld [vmem:[%s4672_s1 + $0x6d4] ss:$8 sps:$4 sm:$0xff]  }
  0x8c   : > { %2269 = vmatpush1.bf16.msra.mxu0 %v3419_v3  ;;  %1128 = vmatprep.subr.bf16.mxu1 %v3424_v5  ;;  %v3488_v3 = vld [vmem:[%s4672_s1 + $0xd0] ss:$8 sps:$4 sm:$0xff]   ;;  %v3496_v5 = vld [vmem:[%s4672_s1 + $0xe4] ss:$8 sps:$4 sm:$0xff]  }
  0x8d   : > { %2270 = vmatprep.subr.bf16.mxu0 %v3427_v45  ;;  %v3499_v45 = vld [vmem:[%s4672_s1 + $0x6e4] ss:$8 sps:$4 sm:$0xff]  }
  0x8e   : > { %788 = vmatmul.mubr.bf16.gmra.mrb[4].mxu1 %v362_v8  ;;  %v3509_v8 = vld [vmem:[%s3791_s24] ss:$16 sps:$4 sm:$0xf8]  }
  0x8f   : > { %1806 = vmatmul.mubr.bf16.gmra.mrb[4].mxu0 %v1365_v51  ;;  %1129 = vmatpush1.bf16.msra.mxu1 %v3422_v6  ;;  %v3473_v51 = vld [vmem:[%s4672_s1 + $0x6a0] ss:$8 sps:$4 sm:$0xff]   ;;  %v1926_v16 = vrot.slane %v3509_v8, 3  ;;  %v3579_v8 = vld [vmem:[%s4672_s1 + $0x1b4] ss:$8 sps:$4 sm:$0xff]  }
  0x90   : > { %2271 = vmatpush1.bf16.msra.mxu0 %v3425_v7  ;;  %1130 = vmatprep.subr.bf16.mxu1 %v3430_v10  ;;  %v3494_v6 = vld [vmem:[%s4672_s1 + $0xe0] ss:$8 sps:$4 sm:$0xff]  }
  0x91   : > { %2272 = vmatprep.subr.bf16.mxu0 %v3433_v61  ;;  %1156 = vmatprep.mubr.bf16.mxu1 %v3814_v53  ;;  %v3445_v53 = vld [vmem:[%s4672_s1 + $0x654] ss:$8 sps:$4 sm:$0xff]   ;;  %v3497_v7 = vld [vmem:[%s4672_s1 + $0x6e0] ss:$8 sps:$4 sm:$0xff]  }
  0x92   : > { %2298 = vmatprep.mubr.bf16.mxu0 %v1931_v56  ;;  %v3615_v10 = vld [vmem:[%s3791_s24 + $0x20] sm:$0xff] }
  0x93   : > { %1131 = vmatpush1.bf16.msra.mxu1 %v3428_v11  ;;  %v3068_v61 = vcombine.low %v3615_v10, %v4185_v12  ;;  %v3502_v11 = vld [vmem:[%s4672_s1 + $0xf4] ss:$8 sps:$4 sm:$0xff]   ;;  %v3503_v12 = vld [vmem:[%s4672_s1 + $0x6f0] ss:$8 sps:$4 sm:$0xff]   ;;  %v3506_v56 = vld [vmem:[%s4672_s1 + $0x100] ss:$8 sps:$4 sm:$0xff]  }
  0x94   : > { %2273 = vmatpush1.bf16.msra.mxu0 %v3431_v13  ;;  %1132 = vmatprep.subr.bf16.mxu1 %v3436_v17  ;;  %v3505_v13 = vld [vmem:[%s4672_s1 + $0x6f4] ss:$8 sps:$4 sm:$0xff]  }
  0x95   : > { %2274 = vmatprep.subr.bf16.mxu0 %v3439_v18  ;;  %v1927_v17 = vrot.slane %v3068_v61, 3  ;;  %v3508_v18 = vld [vmem:[%s4672_s1 + $0x104] ss:$8 sps:$4 sm:$0xff]   ;;  %v3582_v10 = vld [vmem:[%s4672_s1 + $0x7b4] ss:$8 sps:$4 sm:$0xff]  }
  0x96   : > { %v3577_v61 = vld [vmem:[%s4672_s1 + $0x1b0] ss:$8 sps:$4 sm:$0xff]  }
  0x97   : > { %1133 = vmatpush1.bf16.msra.mxu1 %v3434_v21  ;;  %v3514_v21 = vld [vmem:[%s4672_s1 + $0x700] ss:$8 sps:$4 sm:$0xff]  }
  0x98   : > { %2275 = vmatpush1.bf16.msra.mxu0 %v3437_v23  ;;  %1134 = vmatprep.subr.bf16.mxu1 %v3442_v24  ;;  %v1928_v23 = vsel %vm1925_vm2, %v1926_v16, %v1927_v17  ;;  %v4359_v24 = vld [vmem:[%s3791_s24 + $0x8] sm:$0x88] }
  0x99   : > { %2276 = vmatprep.subr.bf16.mxu0 %v3445_v53  ;;  %v4362_v53 = vld [vmem:[%s3791_s24 + $0x38] sm:$0x11]  ;;  %v3586_v16 = vld [vmem:[%s4672_s1 + $0x7c0] ss:$8 sps:$4 sm:$0xff]  }
  0x9b   : > { %1135 = vmatpush1.bf16.msra.mxu1 %v3440_v28  ;;  %v3519_v28 = vld [vmem:[%s4672_s1 + $0x114] ss:$8 sps:$4 sm:$0xff]  }
  0x9c   : > { %2277 = vmatpush1.bf16.msra.mxu0 %v3443_v29  ;;  %1136 = vmatprep.subr.bf16.mxu1 %v3448_v31  ;;  %v3522_v29 = vld [vmem:[%s4672_s1 + $0x714] ss:$8 sps:$4 sm:$0xff]   ;;  %v3067_v31 = vcombine.high %v4359_v24, %v3982_v25  ;;  %v3528_v25 = vld [vmem:[%s4672_s1 + $0x724] ss:$8 sps:$4 sm:$0xff]  }
  0x9d   : > { %2278 = vmatprep.subr.bf16.mxu0 %v3451_v32  ;;  %v3071_v32 = vcombine.high %v4007_v34, %v4362_v53 }
  0x9e   : > { %v1935_v34 = vrot.slane %v3067_v31, 3  ;;  %v3616_v31 = vld [vmem:[%s3791_s24 + $0x18] sm:$0xff] }
  0x9f   : > { %1137 = vmatpush1.bf16.msra.mxu1 %v3446_v33  ;;  %v3517_v33 = vld [vmem:[%s4672_s1 + $0x110] ss:$8 sps:$4 sm:$0xff]  }
  0xa0   : > { %2279 = vmatpush1.bf16.msra.mxu0 %v3449_v26  ;;  %1138 = vmatprep.subr.bf16.mxu1 %v3454_v35  ;;  %v3520_v26 = vld [vmem:[%s4672_s1 + $0x710] ss:$8 sps:$4 sm:$0xff]   ;;  %v4389_v35 = vrot.slane %v3071_v32, 3  ;;  %v3066_v32 = vcombine.low %v4359_v24, %v3616_v31 }
  0xa1   : > { %2280 = vmatprep.subr.bf16.mxu0 %v3457_v36  ;;  %v3523_v36 = vld [vmem:[%s4672_s1 + $0x120] ss:$8 sps:$4 sm:$0xff]   ;;  %v3604_v24 = vld [vmem:[%s4672_s1 + $0x7f0] ss:$8 sps:$4 sm:$0xff]  }
  0xa3   : > { %1139 = vmatpush1.bf16.msra.mxu1 %v3452_v37  ;;  %v3526_v37 = vld [vmem:[%s4672_s1 + $0x720] ss:$8 sps:$4 sm:$0xff]  }
  0xa4   : > { %2281 = vmatpush1.bf16.msra.mxu0 %v3455_v38  ;;  %1140 = vmatprep.subr.bf16.mxu1 %v3460_v39  ;;  %v1937_v38 = vsel %vm1925_vm2, %v1935_v34, %v4389_v35  ;;  %v3529_v39 = vld [vmem:[%s4672_s1 + $0x130] ss:$8 sps:$4 sm:$0xff]  }
  0xa5   : > { %2282 = vmatprep.subr.bf16.mxu0 %v3463_v40  ;;  %v3532_v40 = vld [vmem:[%s4672_s1 + $0x730] ss:$8 sps:$4 sm:$0xff]  }
  0xa6   : > { %v3601_v34 = vld [vmem:[%s4672_s1 + $0x1f0] ss:$8 sps:$4 sm:$0xff]  }
  0xa7   : > { %1141 = vmatpush1.bf16.msra.mxu1 %v3458_v41  ;;  %v3540_v41 = vld [vmem:[%s4672_s1 + $0x744] ss:$8 sps:$4 sm:$0xff]  }
  0xa8   : > { %2283 = vmatpush1.bf16.msra.mxu0 %v3461_v42  ;;  %1142 = vmatprep.subr.bf16.mxu1 %v3466_v43  ;;  %v3535_v42 = vld [vmem:[%s4672_s1 + $0x140] ss:$8 sps:$4 sm:$0xff]  }
  0xa9   : > { %2284 = vmatprep.subr.bf16.mxu0 %v3469_v44  ;;  %v3538_v43 = vld [vmem:[%s4672_s1 + $0x740] ss:$8 sps:$4 sm:$0xff]   ;;  %v3543_v44 = vld [vmem:[%s4672_s1 + $0x154] ss:$8 sps:$4 sm:$0xff]  }
  0xab   : > { %1143 = vmatpush1.bf16.msra.mxu1 %v3464_v46  ;;  %v3541_v46 = vld [vmem:[%s4672_s1 + $0x150] ss:$8 sps:$4 sm:$0xff]  }
  0xac   : > { %2285 = vmatpush1.bf16.msra.mxu0 %v3467_v47  ;;  %1144 = vmatprep.subr.bf16.mxu1 %v3472_v48  ;;  %v3544_v47 = vld [vmem:[%s4672_s1 + $0x750] ss:$8 sps:$4 sm:$0xff]   ;;  %v3549_v48 = vld [vmem:[%s4672_s1 + $0x164] ss:$8 sps:$4 sm:$0xff]  }
  0xad   : > { %2286 = vmatprep.subr.bf16.mxu0 %v3475_v49  ;;  %v3552_v49 = vld [vmem:[%s4672_s1 + $0x764] ss:$8 sps:$4 sm:$0xff]  }
  0xaf   : > { %1145 = vmatpush1.bf16.msra.mxu1 %v3470_v50  ;;  %v3547_v50 = vld [vmem:[%s4672_s1 + $0x160] ss:$8 sps:$4 sm:$0xff]  }
  0xb0   : > { %2287 = vmatpush1.bf16.msra.mxu0 %v3473_v51  ;;  %1146 = vmatprep.subr.bf16.mxu1 %v3478_v52  ;;  %v3550_v51 = vld [vmem:[%s4672_s1 + $0x760] ss:$8 sps:$4 sm:$0xff]   ;;  %v3555_v52 = vld [vmem:[%s4672_s1 + $0x174] ss:$8 sps:$4 sm:$0xff]  }
  0xb1   : > { %2288 = vmatprep.subr.bf16.mxu0 %v3481_v55  ;;  %v3558_v55 = vld [vmem:[%s4672_s1 + $0x774] ss:$8 sps:$4 sm:$0xff]  }
  0xb3   : > { %1147 = vmatpush1.bf16.msra.mxu1 %v3476_v57  ;;  %v3553_v57 = vld [vmem:[%s4672_s1 + $0x170] ss:$8 sps:$4 sm:$0xff]  }
  0xb4   : > { %2289 = vmatpush1.bf16.msra.mxu0 %v3479_v58  ;;  %1148 = vmatprep.subr.bf16.mxu1 %v3484_v59  ;;  %v3556_v58 = vld [vmem:[%s4672_s1 + $0x770] ss:$8 sps:$4 sm:$0xff]   ;;  %v3561_v59 = vld [vmem:[%s4672_s1 + $0x184] ss:$8 sps:$4 sm:$0xff]  }
  0xb5   : > { %2290 = vmatprep.subr.bf16.mxu0 %v3487_v60  ;;  %v3564_v60 = vld [vmem:[%s4672_s1 + $0x784] ss:$8 sps:$4 sm:$0xff]  }
  0xb7   : > { %1149 = vmatpush1.bf16.msra.mxu1 %v3482_v62  ;;  %v3559_v62 = vld [vmem:[%s4672_s1 + $0x180] ss:$8 sps:$4 sm:$0xff]  }
  0xb8   : > { %2291 = vmatpush1.bf16.msra.mxu0 %v3485_v63  ;;  %1150 = vmatprep.subr.bf16.mxu1 %v3490_v1  ;;  %v3562_v63 = vld [vmem:[%s4672_s1 + $0x780] ss:$8 sps:$4 sm:$0xff]   ;;  %v3567_v1 = vld [vmem:[%s4672_s1 + $0x194] ss:$8 sps:$4 sm:$0xff]  }
  0xb9   : > { %2292 = vmatprep.subr.bf16.mxu0 %v3493_v2  ;;  %v3570_v2 = vld [vmem:[%s4672_s1 + $0x794] ss:$8 sps:$4 sm:$0xff]  }
  0xbb   : > { %1151 = vmatpush1.bf16.msra.mxu1 %v3488_v3  ;;  %v3565_v3 = vld [vmem:[%s4672_s1 + $0x190] ss:$8 sps:$4 sm:$0xff]  }
  0xbc   : > { %2293 = vmatpush1.bf16.msra.mxu0 %v3491_v4  ;;  %1152 = vmatprep.subr.bf16.mxu1 %v3496_v5  ;;  %v3568_v4 = vld [vmem:[%s4672_s1 + $0x790] ss:$8 sps:$4 sm:$0xff]   ;;  %v3573_v5 = vld [vmem:[%s4672_s1 + $0x1a4] ss:$8 sps:$4 sm:$0xff]  }
  0xbd   : > { %2294 = vmatprep.subr.bf16.mxu0 %v3499_v45  ;;  %v3576_v45 = vld [vmem:[%s4672_s1 + $0x7a4] ss:$8 sps:$4 sm:$0xff]  }
  0xbf   : > { %1153 = vmatpush1.bf16.msra.mxu1 %v3494_v6  ;;  %v3571_v6 = vld [vmem:[%s4672_s1 + $0x1a0] ss:$8 sps:$4 sm:$0xff]  }
  0xc0   : > { %2295 = vmatpush1.bf16.msra.mxu0 %v3497_v7  ;;  %1154 = vmatprep.subr.bf16.mxu1 %v3502_v11  ;;  %v3574_v7 = vld [vmem:[%s4672_s1 + $0x7a0] ss:$8 sps:$4 sm:$0xff]   ;;  %v3580_v11 = vld [vmem:[%s4672_s1 + $0x7b0] ss:$8 sps:$4 sm:$0xff]  }
  0xc1   : > { %2296 = vmatprep.subr.bf16.mxu0 %v3505_v13  ;;  %v3585_v13 = vld [vmem:[%s4672_s1 + $0x1c4] ss:$8 sps:$4 sm:$0xff]  }
  0xc3   : > { %1155 = vmatpush1.bf16.msra.mxu1 %v3500_v15  ;;  %v3588_v15 = vld [vmem:[%s4672_s1 + $0x7c4] ss:$8 sps:$4 sm:$0xff]  }
  0xc4   : > { %2297 = vmatpush1.bf16.msra.mxu0 %v3503_v12  ;;  %1175 = vmatprep.subr.bf16.mxu1 %v3508_v18  ;;  %v3583_v12 = vld [vmem:[%s4672_s1 + $0x1c0] ss:$8 sps:$4 sm:$0xff]   ;;  %v3594_v18 = vld [vmem:[%s4672_s1 + $0x7d4] ss:$8 sps:$4 sm:$0xff]  }
  0xc5   : > { %2317 = vmatprep.subr.bf16.mxu0 %v3516_v19  ;;  %v3589_v19 = vld [vmem:[%s4672_s1 + $0x1d0] ss:$8 sps:$4 sm:$0xff]  }
  0xc6   : > { %1157 = vmatmul.mubr.bf16.vlgmr.msra.gmra.mrb[0].mxu1 %v3833_v0  ;;  %v3525_v0 = vld [vmem:[%s4672_s1 + $0x124] ss:$8 sps:$4 sm:$0xff]  }
  0xc7   : > { %2299 = vmatmul.mubr.bf16.vlgmr.msra.gmra.mrb[0].mxu0 %v1928_v23  ;;  %1176 = vmatpush1.bf16.msra.mxu1 %v3506_v56  ;;  %v3592_v56 = vld [vmem:[%s4672_s1 + $0x7d0] ss:$8 sps:$4 sm:$0xff]   ;;  %v3600_v23 = vld [vmem:[%s4672_s1 + $0x7e4] ss:$8 sps:$4 sm:$0xff]  }
  0xc8   : > { %2318 = vmatpush1.bf16.msra.mxu0 %v3514_v21  ;;  %1177 = vmatprep.subr.bf16.mxu1 %v3519_v28  ;;  %v3597_v21 = vld [vmem:[%s4672_s1 + $0x1e4] ss:$8 sps:$4 sm:$0xff]   ;;  %v3595_v28 = vld [vmem:[%s4672_s1 + $0x1e0] ss:$8 sps:$4 sm:$0xff]  }
  0xc9   : > { %2319 = vmatprep.subr.bf16.mxu0 %v3522_v29  ;;  %1166 = vmatprep.mubr.bf16.mxu1 %v3816_v54  ;;  %v3531_v54 = vld [vmem:[%s4672_s1 + $0x134] ss:$8 sps:$4 sm:$0xff]   ;;  %v3598_v29 = vld [vmem:[%s4672_s1 + $0x7e0] ss:$8 sps:$4 sm:$0xff]  }
  0xca   : > { %2308 = vmatprep.mubr.bf16.mxu0 %v4199_v20  ;;  %v3534_v20 = vld [vmem:[%s4672_s1 + $0x734] ss:$8 sps:$4 sm:$0xff]  }
  0xcb   : > { %1178 = vmatpush1.bf16.msra.mxu1 %v3517_v33  ;;  %v3617_v33 = vld [vmem:[%s3791_s24 + $0x28] sm:$0xff] }
  0xcc   : > { %2320 = vmatpush1.bf16.msra.mxu0 %v3520_v26  ;;  %1179 = vmatprep.subr.bf16.mxu1 %v3525_v0  ;;  %v3070_v26 = vcombine.low %v3617_v33, %v4362_v53  ;;  %v3603_v0 = vld [vmem:[%s4672_s1 + $0x1f4] ss:$8 sps:$4 sm:$0xff]   ;;  %v1932_v53 = vrot.slane %v3066_v32, 3 }
  0xcd   : > { %2321 = vmatprep.subr.bf16.mxu0 %v3528_v25  ;;  %v3606_v25 = vld [vmem:[%s4672_s1 + $0x7f4] ss:$8 sps:$4 sm:$0xff]  }
  0xce   : > { %1167 = vmatmul.mubr.bf16.gmra.mrb[4].mxu1 %v3843_v9  ;;  %v3537_v9 = vld [vmem:[%s4672_s1 + $0x144] ss:$8 sps:$4 sm:$0xff]  }
  0xcf   : > { %2309 = vmatmul.mubr.bf16.gmra.mrb[4].mxu0 %v1927_v17  ;;  %1180 = vmatpush1.bf16.msra.mxu1 %v3523_v36  ;;  %v3591_v17 = vld [vmem:[%s4672_s1 + $0x1d4] ss:$8 sps:$4 sm:$0xff]   ;;  %v1933_v36 = vrot.slane %v3070_v26, 3 }
  0xd0   : > { %2322 = vmatpush1.bf16.msra.mxu0 %v3526_v37  ;;  %1181 = vmatprep.subr.bf16.mxu1 %v3531_v54 }
  0xd1   : > { %2323 = vmatprep.subr.bf16.mxu0 %v3534_v20  ;;  %1207 = vmatprep.mubr.bf16.mxu1 %v3989_v27  ;;  %v3546_v27 = vld [vmem:[%s4672_s1 + $0x754] ss:$8 sps:$4 sm:$0xff]   ;;  %v1934_v37 = vsel %vm1925_vm2, %v1932_v53, %v1933_v36 }
  0xd2   : > { %2349 = vmatprep.mubr.bf16.mxu0 %v1937_v38 }
  0xd3   : > { %1182 = vmatpush1.bf16.msra.mxu1 %v3529_v39 }
  0xd4   : > { %2324 = vmatpush1.bf16.msra.mxu0 %v3532_v40  ;;  %1183 = vmatprep.subr.bf16.mxu1 %v3537_v9 }
  0xd5   : > { %2325 = vmatprep.subr.bf16.mxu0 %v3540_v41 }
  0xd7   : > { %1184 = vmatpush1.bf16.msra.mxu1 %v3535_v42 }
  0xd8   : > { %2326 = vmatpush1.bf16.msra.mxu0 %v3538_v43  ;;  %1185 = vmatprep.subr.bf16.mxu1 %v3543_v44 }
  0xd9   : > { %2327 = vmatprep.subr.bf16.mxu0 %v3546_v27 }
  0xdb   : > { %1186 = vmatpush1.bf16.msra.mxu1 %v3541_v46 }
  0xdc   : > { %2328 = vmatpush1.bf16.msra.mxu0 %v3544_v47  ;;  %1187 = vmatprep.subr.bf16.mxu1 %v3549_v48 }
  0xdd   : > { %2329 = vmatprep.subr.bf16.mxu0 %v3552_v49 }
  0xdf   : > { %1188 = vmatpush1.bf16.msra.mxu1 %v3547_v50 }
  0xe0   : > { %2330 = vmatpush1.bf16.msra.mxu0 %v3550_v51  ;;  %1189 = vmatprep.subr.bf16.mxu1 %v3555_v52 }
  0xe1   : > { %2331 = vmatprep.subr.bf16.mxu0 %v3558_v55 }
  0xe3   : > { %1190 = vmatpush1.bf16.msra.mxu1 %v3553_v57 }
  0xe4   : > { %2332 = vmatpush1.bf16.msra.mxu0 %v3556_v58  ;;  %1191 = vmatprep.subr.bf16.mxu1 %v3561_v59 }
  0xe5   : > { %2333 = vmatprep.subr.bf16.mxu0 %v3564_v60 }
  0xe7   : > { %1192 = vmatpush1.bf16.msra.mxu1 %v3559_v62 }
  0xe8   : > { %2334 = vmatpush1.bf16.msra.mxu0 %v3562_v63  ;;  %1193 = vmatprep.subr.bf16.mxu1 %v3567_v1 }
  0xe9   : > { %2335 = vmatprep.subr.bf16.mxu0 %v3570_v2 }
  0xeb   : > { %1194 = vmatpush1.bf16.msra.mxu1 %v3565_v3 }
  0xec   : > { %2336 = vmatpush1.bf16.msra.mxu0 %v3568_v4  ;;  %1195 = vmatprep.subr.bf16.mxu1 %v3573_v5 }
  0xed   : > { %2337 = vmatprep.subr.bf16.mxu0 %v3576_v45 }
  0xef   : > { %1196 = vmatpush1.bf16.msra.mxu1 %v3571_v6 }
  0xf0   : > { %2338 = vmatpush1.bf16.msra.mxu0 %v3574_v7  ;;  %1197 = vmatprep.subr.bf16.mxu1 %v3579_v8 }
  0xf1   : > { %2339 = vmatprep.subr.bf16.mxu0 %v3582_v10 }
  0xf3   : > { %1198 = vmatpush1.bf16.msra.mxu1 %v3577_v61 }
  0xf4   : > { %2340 = vmatpush1.bf16.msra.mxu0 %v3580_v11  ;;  %1199 = vmatprep.subr.bf16.mxu1 %v3585_v13 }
  0xf5   : > { %2341 = vmatprep.subr.bf16.mxu0 %v3588_v15 }
  0xf7   : > { %1200 = vmatpush1.bf16.msra.mxu1 %v3583_v12 }
  0xf8   : > { %2342 = vmatpush1.bf16.msra.mxu0 %v3586_v16  ;;  %1201 = vmatprep.subr.bf16.mxu1 %v3591_v17 }
  0xf9   : > { %2343 = vmatprep.subr.bf16.mxu0 %v3594_v18 }
  0xfb   : > { %1202 = vmatpush1.bf16.msra.mxu1 %v3589_v19 }
  0xfc   : > { %2344 = vmatpush1.bf16.msra.mxu0 %v3592_v56  ;;  %1203 = vmatprep.subr.bf16.mxu1 %v3597_v21 }
  0xfd   : > { %2345 = vmatprep.subr.bf16.mxu0 %v3600_v23 }
  0xff   : > { %1204 = vmatpush1.bf16.msra.mxu1 %v3595_v28 }
 0x100   : > { %2346 = vmatpush1.bf16.msra.mxu0 %v3598_v29  ;;  %1205 = vmatprep.subr.bf16.mxu1 %v3603_v0 }
 0x101   : > { %2347 = vmatprep.subr.bf16.mxu0 %v3606_v25 }
 0x103   : > { %1206 = vmatpush1.bf16.msra.mxu1 %v3601_v34 }
 0x104   : > { %2348 = vmatpush1.bf16.msra.mxu0 %v3604_v24 }
 0x106   : > { %1208 = vmatmul.mubr.bf16.vlgmr.msra.gmra.mrb[0].mxu1 %v4084_v14 }
 0x107   : > { %2350 = vmatmul.mubr.bf16.vlgmr.msra.gmra.mrb[0].mxu0 %v1934_v37  ;;  %1217 = vmatprep.mubr.bf16.mxu1 %v3999_v30 }
 0x108   : > { %2359 = vmatprep.mubr.bf16.mxu0 %v4389_v35 }
 0x10e   : > { %1218 = vmatmul.mubr.bf16.gmra.mrb[4].mxu1 %v4107_v22 }
 0x10f   : > { %2360 = vmatmul.mubr.bf16.gmra.mrb[4].mxu0 %v1933_v36 }
 0x1d9   : > { %v1209_v54 = vpop.f32.mrb[0].mxu1 }
 0x1da   : > { %v2351_v20 = vpop.f32.mrb[0].mxu0  ;;  %v1211_v39 = vpop.f32.mrb[1].mxu1 }
 0x1db   : > { %v4566_v38 = vadd.f32 %v2351_v20, %v1209_v54  ;;  %v2353_v40 = vpop.f32.mrb[1].mxu0  ;;  %v1213_v41 = vpop.f32.mrb[2].mxu1 }
 0x1dc   : > { %v4568_v9 = vadd.f32 %v2353_v40, %v1211_v39  ;;  %v2355_v42 = vpop.f32.mrb[2].mxu0  ;;  %v1215_v43 = vpop.f32.mrb[3].mxu1 }
 0x1dd   : > { %v2375_v30 = vsel %vm2374_vm3, %v4566_v38, 0.0  ;;  %v2391_v14 = vmul.f32 %v4566_v38, %v4566_v38  ;;  %v2414_v22 = vrot.slane %v4566_v38, 5  ;;  %v4575_v35 = vadd.f32 %v2355_v42, %v1213_v41  ;;  %v2357_v44 = vpop.f32.mrb[3].mxu0 }
 0x1de   : > { %v2376_v27 = vrot.slane %v2375_v30, 4  ;;  %v2382_v46 = vsel %vm2374_vm3, %v4568_v9, 0.0  ;;  %v4581_v47 = vmul.f32 %v4568_v9, %v4568_v9  ;;  %v2417_v48 = vrot.slane %v4568_v9, 5 }
 0x1df   : > { %v2393_v49 = vsel %vm2374_vm3, %v2391_v14, 0.0  ;;  %v2444_v50 = vrot.slane %v2391_v14, 5  ;;  %v2383_v51 = vrot.slane %v2382_v46, 4  ;;  %v2415_v52 = vrot.slane %v4575_v35, 5 }
 0x1e0   : > { %v2377_v55 = vadd.f32 %v2376_v27, %v2375_v30  ;;  %v2394_v57 = vrot.slane %v2393_v49, 4  ;;  %v2400_v58 = vsel %vm2374_vm3, %v4581_v47, 0.0  ;;  %v2447_v59 = vrot.slane %v4581_v47, 5 }
 0x1e1   : > { %v2384_v60 = vadd.f32 %v2383_v51, %v2382_v46  ;;  %v2401_v62 = vrot.slane %v2400_v58, 4  ;;  %v2416_v63 = vsel %vm2413_vm4, %v2414_v22, %v2415_v52  ;;  %v4592_v1 = vmul.f32 %v4575_v35, %v4575_v35  ;;  %v1219_v45 = vpop.f32.mrb[4].mxu1 }
 0x1e2   : > { %v2378_v2 = vrot.slane %v2377_v55, 2  ;;  %v2395_v3 = vadd.f32 %v2394_v57, %v2393_v49  ;;  %v2422_v4 = vsel %vm2374_vm3, %v2416_v63, 0.0  ;;  %v2468_v5 = vrot.slane %v4575_v35, 2  ;;  %v2361_v6 = vpop.f32.mrb[4].mxu0  ;;  %v4597_v11 = vpop.f32.mrb[5].mxu1 }
 0x1e3   : > { %v2385_v7 = vrot.slane %v2384_v60, 2  ;;  %v2402_v8 = vadd.f32 %v2401_v62, %v2400_v58  ;;  %v2423_v10 = vrot.slane %v2422_v4, 4  ;;  %v2445_v61 = vrot.slane %v4592_v1, 5  ;;  %v4599_v13 = vpop.f32.mrb[5].mxu0  ;;  %v1223_v18 = vpop.f32.mrb[6].mxu1 }
 0x1e4   : > { %v2379_v15 = vadd.f32 %v2378_v2, %v2377_v55  ;;  %v2396_v12 = vrot.slane %v2395_v3, 2  ;;  %v2472_v16 = vsel %vm2374_vm3, %v2468_v5, 0.0  ;;  %v2488_v17 = vrot.slane %v4592_v1, 2  ;;  %v2365_v19 = vpop.f32.mrb[6].mxu0  ;;  %v1224_v29 = vpop.f32.mrb[7].mxu1 }
 0x1e5   : > { %v2386_v56 = vadd.f32 %v2385_v7, %v2384_v60  ;;  %v2403_v21 = vrot.slane %v2402_v8, 2  ;;  %v2424_v23 = vadd.f32 %v2423_v10, %v2422_v4  ;;  %v2446_v28 = vsel %vm2413_vm4, %v2444_v50, %v2445_v61  ;;  %v2366_v31 = vpop.f32.mrb[7].mxu0 }
 0x1e6   : > { %v2380_v32 = vrot.slane %v2379_v15, 1  ;;  %v2397_v33 = vadd.f32 %v2396_v12, %v2395_v3  ;;  %v2452_v26 = vsel %vm2374_vm3, %v2446_v28, 0.0  ;;  %v2473_v0 = vrot.slane %v2472_v16, 4 }
 0x1e7   : > { %v2387_v25 = vrot.slane %v2386_v56, 1  ;;  %v2404_v34 = vadd.f32 %v2403_v21, %v2402_v8  ;;  %v2425_v24 = vrot.slane %v2424_v23, 2  ;;  %v2453_v53 = vrot.slane %v2452_v26, 4 }
 0x1e8   : > { %v2381_v36 = vadd.f32 %v2380_v32, %v2379_v15  ;;  %v2398_v37 = vrot.slane %v2397_v33, 1  ;;  %v2474_v54 = vadd.f32 %v2473_v0, %v2472_v16  ;;  %v2492_v20 = vsel %vm2374_vm3, %v2488_v17, 0.0 }
 0x1e9   : > { %v4606_v39 = vadd.f32 %v2387_v25, %v2386_v56  ;;  %v2405_v40 = vrot.slane %v2404_v34, 1  ;;  %v2454_v41 = vadd.f32 %v2453_v53, %v2452_v26  ;;  %v2493_v42 = vrot.slane %v2492_v20, 4 }
 0x1ea   : > { %v2399_v30 = vadd.f32 %v2398_v37, %v2397_v33  ;;  %v2475_v14 = vrot.slane %v2474_v54, 2  ;;  %v2511_v22 = vrot.slane %v4575_v35, 7  ;;  %v4609_v27 = vadd.f32 %v2357_v44, %v1215_v43 }
 0x1eb   : > { %v4611_v46 = vadd.f32 %v2405_v40, %v2404_v34  ;;  %v2455_v49 = vrot.slane %v2454_v41, 2  ;;  %v2494_v50 = vadd.f32 %v2493_v42, %v2492_v20  ;;  %v4613_v51 = vadd.f32 %v2361_v6, %v1219_v45 }
 0x1ec   : > { %v2476_v52 = vadd.f32 %v2475_v14, %v2474_v54  ;;  %v2418_v55 = vrot.slane %v4609_v27, 5  ;;  %v4618_v57 = vmul.f32 %v4609_v27, %v4609_v27  ;;  %v2469_v58 = vrot.slane %v4609_v27, 2 }
 0x1ed   : > { %v2495_v60 = vrot.slane %v2494_v50, 2  ;;  %v2514_v43 = vrot.slane %v4609_v27, 7  ;;  %v2426_v44 = vadd.f32 %v2425_v24, %v2424_v23  ;;  %v2456_v62 = vadd.f32 %v2455_v49, %v2454_v41 }
 0x1ee   : > { %v2419_v63 = vsel %vm2413_vm4, %v2417_v48, %v2418_v55  ;;  %v2448_v2 = vrot.slane %v4618_v57, 5  ;;  %v2479_v3 = vsel %vm2374_vm3, %v2469_v58, 0.0  ;;  %v2489_v4 = vrot.slane %v4618_v57, 2 }
 0x1ef   : > { %v2496_v5 = vadd.f32 %v2495_v60, %v2494_v50  ;;  %v2429_v45 = vsel %vm2374_vm3, %v2419_v63, 0.0  ;;  %v2480_v6 = vrot.slane %v2479_v3, 4  ;;  %v2427_v7 = vrot.slane %v2426_v44, 1 }
 0x1f0   : > { %v2430_v8 = vrot.slane %v2429_v45, 4  ;;  %v2449_v10 = vsel %vm2413_vm4, %v2447_v59, %v2448_v2  ;;  %v2499_v61 = vsel %vm2374_vm3, %v2489_v4, 0.0  ;;  %v2457_v15 = vrot.slane %v2456_v62, 1 }
 0x1f1   : > { %v2459_v48 = vsel %vm2374_vm3, %v2449_v10, 0.0  ;;  %v2481_v12 = vadd.f32 %v2480_v6, %v2479_v3  ;;  %v2500_v16 = vrot.slane %v2499_v61, 4  ;;  %v2428_v17 = vadd.f32 %v2427_v7, %v2426_v44 }
 0x1f2   : > { %v2431_v18 = vadd.f32 %v2430_v8, %v2429_v45  ;;  %v2460_v19 = vrot.slane %v2459_v48, 4  ;;  %v2458_v56 = vadd.f32 %v2457_v15, %v2456_v62  ;;  %v2477_v21 = vrot.slane %v2476_v52, 1 }
 0x1f3   : > { %v2482_v23 = vrot.slane %v2481_v12, 2  ;;  %v2501_v28 = vadd.f32 %v2500_v16, %v2499_v61  ;;  %v2436_v29 = vadd.f32 %v2428_v17, %v2381_v36  ;;  %v2497_v31 = vrot.slane %v2496_v5, 1 }
 0x1f4   : > { %v2432_v32 = vrot.slane %v2431_v18, 2  ;;  %v2461_v47 = vadd.f32 %v2460_v19, %v2459_v48  ;;  %v2466_v33 = vadd.f32 %v2458_v56, %v2399_v30  ;;  %v2478_v59 = vadd.f32 %v2477_v21, %v2476_v52 }
 0x1f5   : > { %v2483_v26 = vadd.f32 %v2482_v23, %v2481_v12  ;;  %v2502_v0 = vrot.slane %v2501_v28, 2  ;;  %v2498_v25 = vadd.f32 %v2497_v31, %v2496_v5  ;;  %v2512_v34 = vrot.slane %v4613_v51, 7 }
 0x1f6   : > { %v2462_v24 = vrot.slane %v2461_v47, 2  ;;  %v2486_v53 = vadd.f32 %v2478_v59, %v2436_v29  ;;  %v2535_v37 = vmul.f32 %v4613_v51, %v4613_v51  ;;  %v2539_v54 = vrot.slane %v4592_v1, 7 }
 0x1f7   : > { %v2503_v20 = vadd.f32 %v2502_v0, %v2501_v28  ;;  %v2506_v40 = vadd.f32 %v2498_v25, %v2466_v33  ;;  %v2513_v36 = vsel %vm2510_vm5, %v2511_v22, %v2512_v34  ;;  %v4641_v41 = vadd.f32 %v4599_v13, %v4597_v11 }
 0x1f8   : > { %v2519_v42 = vsel %vm2374_vm3, %v2513_v36, 0.0  ;;  %v2540_v30 = vrot.slane %v2535_v37, 7  ;;  %v2433_v14 = vadd.f32 %v2432_v32, %v2431_v18  ;;  %v2463_v49 = vadd.f32 %v2462_v24, %v2461_v47 }
 0x1f9   : > { %v2520_v50 = vrot.slane %v2519_v42, 4  ;;  %v2484_v52 = vrot.slane %v2483_v26, 1  ;;  %v2504_v55 = vrot.slane %v2503_v20, 1  ;;  %v2515_v58 = vrot.slane %v4641_v41, 7 }
 0x1fa   : > { %v2541_v1 = vsel %vm2510_vm5, %v2539_v54, %v2540_v30  ;;  %v2434_v60 = vrot.slane %v2433_v14, 1  ;;  %v2464_v44 = vrot.slane %v2463_v49, 1  ;;  %v2536_v22 = vmul.f32 %v4641_v41, %v4641_v41 }
 0x1fb   : > { %v2521_v62 = vadd.f32 %v2520_v50, %v2519_v42  ;;  %v2547_v11 = vsel %vm2374_vm3, %v2541_v1, 0.0  ;;  %v2485_v13 = vadd.f32 %v2484_v52, %v2483_v26  ;;  %v2505_v63 = vadd.f32 %v2504_v55, %v2503_v20 }
 0x1fc   : > { %v2548_v2 = vrot.slane %v2547_v11, 4  ;;  %v2435_v3 = vadd.f32 %v2434_v60, %v2433_v14  ;;  %v2465_v4 = vadd.f32 %v2464_v44, %v2463_v49  ;;  %v2516_v5 = vsel %vm2510_vm5, %v2514_v43, %v2515_v58 }
 0x1fd   : > { %v2522_v45 = vrot.slane %v2521_v62, 2  ;;  %v2526_v6 = vsel %vm2374_vm3, %v2516_v5, 0.0  ;;  %v2542_v7 = vrot.slane %v4618_v57, 7  ;;  %v2543_v8 = vrot.slane %v2536_v22, 7 }
 0x1fe   : > { %v2549_v10 = vadd.f32 %v2548_v2, %v2547_v11  ;;  %v2437_v61 = vadd.f32 %v2435_v3, %v4606_v39  ;;  %v2467_v15 = vadd.f32 %v2465_v4, %v4611_v46  ;;  %v2527_v48 = vrot.slane %v2526_v6, 4 }
 0x1ff   : > { %v2523_v12 = vadd.f32 %v2522_v45, %v2521_v62  ;;  %v2544_v16 = vsel %vm2510_vm5, %v2542_v7, %v2543_v8 }
 0x200   : > { %v2550_v17 = vrot.slane %v2549_v10, 2  ;;  %v2487_v18 = vadd.f32 %v2485_v13, %v2437_v61  ;;  %v2507_v19 = vadd.f32 %v2505_v63, %v2467_v15  ;;  %v2528_v56 = vadd.f32 %v2527_v48, %v2526_v6 }
 0x201   : > { %v2524_v43 = vrot.slane %v2523_v12, 1  ;;  %v2554_v21 = vsel %vm2374_vm3, %v2544_v16, 0.0 }
 0x202   : > { %v2551_v23 = vadd.f32 %v2550_v17, %v2549_v10  ;;  %v2529_v28 = vrot.slane %v2528_v56, 2  ;;  %v2555_v57 = vrot.slane %v2554_v21, 4 }
 0x203   : > { %v2525_v29 = vadd.f32 %v2524_v43, %v2523_v12 }
 0x204   : > { %v2552_v31 = vrot.slane %v2551_v23, 1  ;;  %v2530_v32 = vadd.f32 %v2529_v28, %v2528_v56  ;;  %v2556_v39 = vadd.f32 %v2555_v57, %v2554_v21 }
 0x205   : > { %v2533_v47 = vadd.f32 %v2525_v29, %v2486_v53 }
 0x206   : > { %v2553_v46 = vadd.f32 %v2552_v31, %v2551_v23  ;;  %v2531_v33 = vrot.slane %v2530_v32, 1  ;;  %v2557_v59 = vrot.slane %v2556_v39, 2 }
 0x207   : > { %v2563_v26 = vmul.f32 0.0625, %v2533_v47 }
 0x208   : > { %v2561_v0 = vadd.f32 %v2553_v46, %v2506_v40  ;;  %v2532_v25 = vadd.f32 %v2531_v33, %v2530_v32  ;;  %v2558_v34 = vadd.f32 %v2557_v59, %v2556_v39 }
 0x209   : > { %v2567_v24 = vmul.f32 %v2563_v26, %v2563_v26  ;;  %v2573_v37 = vsub.f32 %v4566_v38, %v2563_v26  ;;  %v2575_v54 = vsub.f32 %v4575_v35, %v2563_v26  ;;  %v2577_v20 = vsub.f32 %v4613_v51, %v2563_v26 }
 0x20a   : > { %v2565_v36 = vmul.f32 0.0625, %v2561_v0  ;;  %v2534_v42 = vadd.f32 %v2532_v25, %v2487_v18  ;;  %v2559_v30 = vrot.slane %v2558_v34, 1 }
 0x20c   : > { %v2569_v14 = vsub.f32 %v2565_v36, %v2567_v24  ;;  %v2560_v53 = vadd.f32 %v2559_v30, %v2558_v34  ;;  %v2564_v49 = vmul.f32 0.0625, %v2534_v42 }
 0x20e   : > { %v2571_v50 = vmax.f32 %v2569_v14, 0.0  ;;  %v2562_v52 = vadd.f32 %v2560_v53, %v2507_v19  ;;  %v2568_v55 = vmul.f32 %v2564_v49, %v2564_v49  ;;  %v2574_v40 = vsub.f32 %v4568_v9, %v2564_v49 }
 0x20f   : > { %v2576_v58 = vsub.f32 %v4609_v27, %v2564_v49  ;;  %v2578_v38 = vsub.f32 %v4641_v41, %v2564_v49 }
 0x210   : > { %v2579_v1 = vadd.f32 1e-05, %v2571_v50  ;;  %v2566_v35 = vmul.f32 0.0625, %v2562_v52 }
 0x212   : > { %3611 = vrsqrt.f32 %v2579_v1  ;;  %v2570_v51 = vsub.f32 %v2566_v35, %v2568_v55 }
 0x214   : > { %v2572_v60 = vmax.f32 %v2570_v51, 0.0 }
 0x216   : > { %v2580_v44 = vadd.f32 1e-05, %v2572_v60 }
 0x218   : > { %3613 = vrsqrt.f32 %v2580_v44 }
 0x21c   : > { %v3612_v22 = vpop.eup %3611 }
 0x21d   : > { %v2583_v62 = vmul.f32 %v3612_v22, %v2573_v37  ;;  %v2585_v11 = vmul.f32 %v3612_v22, %v2575_v54  ;;  %v2587_v13 = vmul.f32 %v3612_v22, %v2577_v20 }
 0x21f   : > { %v2589_v9 = vmax.f32 %v2583_v62, 0.0  ;;  %v2591_v27 = vmax.f32 %v2585_v11, 0.0  ;;  %v2593_v63 = vmax.f32 %v2587_v13, 0.0 }
 0x221   : > { %2595 = vst [vmem:[%s143_s26] sm:$0xff] %v2589_v9  ;;  %2597 = vst [vmem:[%s143_s26 + $0x10] sm:$0xff] %v2591_v27 }
 0x222   : > { %2599 = vst [vmem:[%s143_s26 + $0x20] sm:$0x7] %v2593_v63  ;;  %v3614_v41 = vpop.eup %3613 }
 0x223   : > { %v2584_v2 = vmul.f32 %v3614_v41, %v2574_v40  ;;  %v2586_v3 = vmul.f32 %v3614_v41, %v2576_v58  ;;  %v2588_v4 = vmul.f32 %v3614_v41, %v2578_v38 }
 0x225   : > { %v2590_v5 = vmax.f32 %v2584_v2, 0.0  ;;  %v2592_v45 = vmax.f32 %v2586_v3, 0.0  ;;  %v2594_v6 = vmax.f32 %v2588_v4, 0.0 }
 0x227   : > { %2596 = vst [vmem:[%s143_s26 + $0x8] sm:$0xff] %v2590_v5  ;;  %2598 = vst [vmem:[%s143_s26 + $0x18] sm:$0xff] %v2592_v45 }
 0x228   : > { %2600 = vst [vmem:[%s143_s26 + $0x28] sm:$0x7] %v2594_v6 }
 0x229 PF: > { %s12_s9 = sadd.s32 1, %s3624_s9  }
 0x22a   : > { %p9_p4 = scmp.ge.s32.totalorder %s12_s9, 4  }
 0x22c   :  { %11 = sbr.rel (!%p9_p4) target bundleno = 1 (0x1), region = 61 }

// kernel: content_encoder_forward.10
= control target key start
LH: loop header
LB: loop body
LE: loop exit
PB: predicated region body
PF: predicated region fallthrough
CT: control target
= control target key end

     0   :  { %s4076_s9 = smov 0   ;;  %s5239_s0 = inlined_call_operand.vmem [shape: bf16[2,36,256], index: 0, kind: input, shape index: {}]   ;;  %s5240_s1 = inlined_call_operand.vmem [shape: bf16[9,256,256], index: 1, kind: input, shape index: {}]   ;;  %s5241_s2 = inlined_call_operand.vmem [shape: f32[2,22,256], index: 2, kind: output, shape index: {}]  }
   0x1 LB: > { %s2908_s10 = sadd.s32 4294967295, %s4059_s9   ;;  %p2912_p0 = scmp.ge.s32.totalorder %s4059_s9, 1  ;;  %s4059_s9 = sphi %s4076_s9, %s12_s9  }
   0x2   : > { %p112_p1 = scmp.lt.s32.totalorder %s4059_s9, 3 }
   0x4   : > { %p113_p2 = pnand %p2912_p0, %p112_p1 }
   0x5   : > { %v3589_v0 = vld [vmem:[%s5240_s1 + $0x104] ss:$8 sps:$4 sm:$0xff] (!%p113_p2)   ;;  %v3593_v2 = vld [vmem:[%s5240_s1 + $0x100] ss:$8 sps:$4 sm:$0xff] (!%p113_p2)   ;;  %v3595_v4 = vld [vmem:[%s5240_s1 + $0x114] ss:$8 sps:$4 sm:$0xff] (!%p113_p2)  }
   0x6   : > { %116 = sbr.rel (%p113_p2) target bundleno = 610 (0x262), region = 28  ;;  %v3591_v1 = vld [vmem:[%s5240_s1 + $0x404] ss:$8 sps:$4 sm:$0xff] (!%p113_p2)   ;;  %421 = vmatprep.subr.bf16.mxu1 (!%p113_p2), %v3589_v0  ;;  %v3594_v3 = vld [vmem:[%s5240_s1 + $0x400] ss:$8 sps:$4 sm:$0xff] (!%p113_p2)   ;;  %p134_p3 = scmp.lt.s32.totalorder (!%p113_p2), %s2908_s10, 1 }
   0x7   : > { %1478 = vmatprep.subr.bf16.mxu0 (!%p113_p2), %v3591_v1  ;;  %422 = vmatpush1.bf16.msra.mxu1 (!%p113_p2), %v3593_v2  ;;  %v3597_v5 = vld [vmem:[%s5240_s1 + $0x414] ss:$8 sps:$4 sm:$0xff] (!%p113_p2)   ;;  %v3599_v6 = vld [vmem:[%s5240_s1 + $0x110] ss:$8 sps:$4 sm:$0xff] (!%p113_p2)   ;;  %v3601_v8 = vld [vmem:[%s5240_s1 + $0x124] ss:$8 sps:$4 sm:$0xff] (!%p113_p2)  }
   0x8   : > { %1479 = vmatpush1.bf16.msra.mxu0 (!%p113_p2), %v3594_v3  ;;  %423 = vmatprep.subr.bf16.mxu1 (!%p113_p2), %v3595_v4  ;;  %v3600_v7 = vld [vmem:[%s5240_s1 + $0x410] ss:$8 sps:$4 sm:$0xff] (!%p113_p2)   ;;  %v3603_v9 = vld [vmem:[%s5240_s1 + $0x424] ss:$8 sps:$4 sm:$0xff] (!%p113_p2)   ;;  %v3605_v10 = vld [vmem:[%s5240_s1 + $0x120] ss:$8 sps:$4 sm:$0xff] (!%p113_p2)  }
   0x9   : > { %1480 = vmatprep.subr.bf16.mxu0 (!%p113_p2), %v3597_v5  ;;  %v3606_v11 = vld [vmem:[%s5240_s1 + $0x420] ss:$8 sps:$4 sm:$0xff] (!%p113_p2)   ;;  %v3607_v12 = vld [vmem:[%s5240_s1 + $0x134] ss:$8 sps:$4 sm:$0xff] (!%p113_p2)   ;;  %v3611_v14 = vld [vmem:[%s5240_s1 + $0x130] ss:$8 sps:$4 sm:$0xff] (!%p113_p2)  }
   0xa   : > { %v3609_v13 = vld [vmem:[%s5240_s1 + $0x434] ss:$8 sps:$4 sm:$0xff] (!%p113_p2)   ;;  %v3612_v15 = vld [vmem:[%s5240_s1 + $0x430] ss:$8 sps:$4 sm:$0xff] (!%p113_p2)   ;;  %v3613_v16 = vld [vmem:[%s5240_s1 + $0x144] ss:$8 sps:$4 sm:$0xff] (!%p113_p2)  }
   0xb   : > { %424 = vmatpush1.bf16.msra.mxu1 (!%p113_p2), %v3599_v6  ;;  %v3615_v17 = vld [vmem:[%s5240_s1 + $0x444] ss:$8 sps:$4 sm:$0xff] (!%p113_p2)   ;;  %v3617_v18 = vld [vmem:[%s5240_s1 + $0x140] ss:$8 sps:$4 sm:$0xff] (!%p113_p2)   ;;  %v3619_v20 = vld [vmem:[%s5240_s1 + $0x154] ss:$8 sps:$4 sm:$0xff] (!%p113_p2)  }
   0xc   : > { %1481 = vmatpush1.bf16.msra.mxu0 (!%p113_p2), %v3600_v7  ;;  %425 = vmatprep.subr.bf16.mxu1 (!%p113_p2), %v3601_v8  ;;  %v3618_v19 = vld [vmem:[%s5240_s1 + $0x440] ss:$8 sps:$4 sm:$0xff] (!%p113_p2)   ;;  %v3621_v21 = vld [vmem:[%s5240_s1 + $0x454] ss:$8 sps:$4 sm:$0xff] (!%p113_p2)   ;;  %v3623_v22 = vld [vmem:[%s5240_s1 + $0x150] ss:$8 sps:$4 sm:$0xff] (!%p113_p2)  }
   0xd   : > { %1482 = vmatprep.subr.bf16.mxu0 %v3603_v9  ;;  %v3624_v23 = vld [vmem:[%s5240_s1 + $0x450] ss:$8 sps:$4 sm:$0xff]   ;;  %v3625_v24 = vld [vmem:[%s5240_s1 + $0x164] ss:$8 sps:$4 sm:$0xff]   ;;  %v3629_v26 = vld [vmem:[%s5240_s1 + $0x160] ss:$8 sps:$4 sm:$0xff]  }
   0xe   : > { %v3627_v25 = vld [vmem:[%s5240_s1 + $0x464] ss:$8 sps:$4 sm:$0xff]   ;;  %v3630_v27 = vld [vmem:[%s5240_s1 + $0x460] ss:$8 sps:$4 sm:$0xff]   ;;  %v3631_v28 = vld [vmem:[%s5240_s1 + $0x174] ss:$8 sps:$4 sm:$0xff]  }
   0xf   : > { %426 = vmatpush1.bf16.msra.mxu1 %v3605_v10  ;;  %v3633_v29 = vld [vmem:[%s5240_s1 + $0x474] ss:$8 sps:$4 sm:$0xff]   ;;  %v3635_v30 = vld [vmem:[%s5240_s1 + $0x170] ss:$8 sps:$4 sm:$0xff]   ;;  %v3637_v32 = vld [vmem:[%s5240_s1 + $0x184] ss:$8 sps:$4 sm:$0xff]  }
  0x10   : > { %1483 = vmatpush1.bf16.msra.mxu0 %v3606_v11  ;;  %427 = vmatprep.subr.bf16.mxu1 %v3607_v12  ;;  %v3636_v31 = vld [vmem:[%s5240_s1 + $0x470] ss:$8 sps:$4 sm:$0xff]   ;;  %v3639_v33 = vld [vmem:[%s5240_s1 + $0x484] ss:$8 sps:$4 sm:$0xff]   ;;  %v3641_v34 = vld [vmem:[%s5240_s1 + $0x180] ss:$8 sps:$4 sm:$0xff]  }
  0x11   : > { %1484 = vmatprep.subr.bf16.mxu0 %v3609_v13  ;;  %v3642_v35 = vld [vmem:[%s5240_s1 + $0x480] ss:$8 sps:$4 sm:$0xff]   ;;  %s5243_s10 = smov (!%p134_p3, %s2908_s10), 1  ;;  %v3643_v36 = vld [vmem:[%s5240_s1 + $0x194] ss:$8 sps:$4 sm:$0xff]   ;;  %vm731_vm2 = vcmask 1046528  }
  0x12   : > { %v3645_v37 = vld [vmem:[%s5240_s1 + $0x494] ss:$8 sps:$4 sm:$0xff]   ;;  %v3647_v38 = vld [vmem:[%s5240_s1 + $0x190] ss:$8 sps:$4 sm:$0xff]   ;;  %s3579_s11 = smul.u32 40, %s5243_s10  ;;  %vm1846_vm3 = vcmask 1045504  }
  0x13   : > { %428 = vmatpush1.bf16.msra.mxu1 %v3611_v14  ;;  %v3648_v39 = vld [vmem:[%s5240_s1 + $0x490] ss:$8 sps:$4 sm:$0xff]   ;;  %v3649_v40 = vld [vmem:[%s5240_s1 + $0x1a4] ss:$8 sps:$4 sm:$0xff]   ;;  %v3653_v42 = vld [vmem:[%s5240_s1 + $0x1a0] ss:$8 sps:$4 sm:$0xff]  }
  0x14   : > { %1485 = vmatpush1.bf16.msra.mxu0 %v3612_v15  ;;  %429 = vmatprep.subr.bf16.mxu1 %v3613_v16  ;;  %v3651_v41 = vld [vmem:[%s5240_s1 + $0x4a4] ss:$8 sps:$4 sm:$0xff]   ;;  %v3654_v43 = vld [vmem:[%s5240_s1 + $0x4a0] ss:$8 sps:$4 sm:$0xff]   ;;  %s4226_s24 = scalar_lea.vmem %s5239_s0, %s3579_s11  ;;  %v3655_v44 = vld [vmem:[%s5240_s1 + $0x1b4] ss:$8 sps:$4 sm:$0xff]  }
  0x15   : > { %1486 = vmatprep.subr.bf16.mxu0 %v3615_v17  ;;  %v3657_v45 = vld [vmem:[%s5240_s1 + $0x4b4] ss:$8 sps:$4 sm:$0xff]   ;;  %v3659_v46 = vld [vmem:[%s5240_s1 + $0x1b0] ss:$8 sps:$4 sm:$0xff]   ;;  %v144_v48 = vld [vmem:[%s4226_s24] sm:$0xff]  ;;  %vm1012_vm4 = vcmask 1044480  }
  0x16   : > { %v3660_v47 = vld [vmem:[%s5240_s1 + $0x4b0] ss:$8 sps:$4 sm:$0xff]   ;;  %v4242_v49 = vld [vmem:[%s4226_s24 + $0x8] sm:$0xff]  ;;  %vm226_vm0 = vsmask.f32 7424  ;;  %vm2635_vm6 = vcmask 1043456  }
  0x17   : > { %430 = vmatpush1.bf16.msra.mxu1 %v3617_v18  ;;  %v4245_v50 = vld [vmem:[%s4226_s24 + $0x10] sm:$0xff]  ;;  %v3661_v51 = vld [vmem:[%s5240_s1 + $0x1c4] ss:$8 sps:$4 sm:$0xff]   ;;  %v4254_v53 = vcombine.high %v144_v48, %v4242_v49  ;;  %vm1279_vm1 = vsmask.f32 4352  ;;  %v4279_v0 = vcombine.low %v144_v48, %v4242_v49  ;;  %vm2674_vm7 = vcmask 1041408  }
  0x18   : > { %1487 = vmatpush1.bf16.msra.mxu0 %v3618_v19  ;;  %431 = vmatprep.subr.bf16.mxu1 %v3619_v20  ;;  %v3663_v52 = vld [vmem:[%s5240_s1 + $0x4c4] ss:$8 sps:$4 sm:$0xff]   ;;  %v4258_v54 = vcombine.high %v4245_v50, %v4245_v50  ;;  %v4262_v56 = vld [vmem:[%s4226_s24 + $0x18] sm:$0x77]  ;;  %v3665_v61 = vld [vmem:[%s5240_s1 + $0x1c0] ss:$8 sps:$4 sm:$0xff]   ;;  %v4293_v9 = vcombine.low %v4245_v50, %v4245_v50 }
  0x19   : > { %1488 = vmatprep.subr.bf16.mxu0 %v3621_v21  ;;  %v959_v55 = vld [vmem:[%s4226_s24] sm:$0x88]  ;;  %v240_v57 = vshrl.u32 %v4254_v53, 16  ;;  %v242_v58 = vshll.u32 %v4254_v53, 16  ;;  %v3184_v63 = vcombine.high %v4245_v50, %v4262_v56  ;;  %v3667_v5 = vld [vmem:[%s5240_s1 + $0x1d4] ss:$8 sps:$4 sm:$0xff]   ;;  %v3183_v19 = vcombine.low %v4245_v50, %v4262_v56 }
  0x1a   : > { %v247_v59 = vshll.u32 %v4258_v54, 16  ;;  %v4268_v60 = vcombine.high %v959_v55, %v4242_v49  ;;  %v3666_v62 = vld [vmem:[%s5240_s1 + $0x4c0] ss:$8 sps:$4 sm:$0xff]   ;;  %v3669_v6 = vld [vmem:[%s5240_s1 + $0x4d4] ss:$8 sps:$4 sm:$0xff]   ;;  %v4299_v14 = vcombine.low %v959_v55, %v4242_v49  ;;  %v230_v18 = vshll.u32 %v4279_v0, 16 }
  0x1b   : > { %432 = vmatpush1.bf16.msra.mxu1 %v3623_v22  ;;  %v244_v1 = vrot.slane %v242_v58, 1  ;;  %v1306_v7 = vshrl.u32 %v3184_v63, 16  ;;  %v1309_v8 = vshll.u32 %v3184_v63, 16  ;;  %v3671_v10 = vld [vmem:[%s5240_s1 + $0x1d0] ss:$8 sps:$4 sm:$0xff]   ;;  %s3580_s3 = smul.u32 48, %s5243_s10 }
  0x1c   : > { %1489 = vmatpush1.bf16.msra.mxu0 %v3624_v23  ;;  %433 = vmatprep.subr.bf16.mxu1 %v3625_v24  ;;  %v4281_v2 = vrot.slane %v247_v59, 1  ;;  %v1298_v3 = vshrl.u32 %v4268_v60, 16  ;;  %v1301_v4 = vshll.u32 %v4268_v60, 16  ;;  %v3672_v15 = vld [vmem:[%s5240_s1 + $0x4d0] ss:$8 sps:$4 sm:$0xff]   ;;  %v1281_v23 = vshrl.u32 %v4299_v14, 16 }
  0x1d   : > { %1490 = vmatprep.subr.bf16.mxu0 %v3627_v25  ;;  %v245_v11 = vor.u32 %v244_v1, %v240_v57  ;;  %v1308_v16 = vrot.slane %v1306_v7, 3  ;;  %v1311_v17 = vrot.slane %v1309_v8, 4  ;;  %v3673_v20 = vld [vmem:[%s5240_s1 + $0x1e4] ss:$8 sps:$4 sm:$0xff]   ;;  %v1284_v24 = vshll.u32 %v4299_v14, 16  ;;  %s143_s6 = scalar_lea.vmem %s5241_s2, %s3580_s3 }
  0x1e   : > { %v1300_v12 = vrot.slane %v1298_v3, 3  ;;  %v1303_v13 = vrot.slane %v1301_v4, 4  ;;  %v3675_v25 = vld [vmem:[%s5240_s1 + $0x4e4] ss:$8 sps:$4 sm:$0xff]   ;;  %v3692_v55 = vld [vmem:[%s5240_s1 + $0x500] ss:$8 sps:$4 sm:$0xff]  }
  0x1f   : > { %434 = vmatpush1.bf16.msra.mxu1 %v3629_v26  ;;  %v250_v21 = vsel %vm226_vm0, %v245_v11, %v4281_v2  ;;  %v1312_v26 = vor.u32 %v1311_v17, %v1308_v16  ;;  %v3694_v48 = vld [vmem:[%s5240_s1 + $0x504] ss:$8 sps:$4 sm:$0xff]   ;;  %v3701_v59 = vld [vmem:[%s5240_s1 + $0x14] ss:$8 sps:$4 sm:$0xff]   ;;  %v3699_v63 = vld [vmem:[%s5240_s1 + $0x10] ss:$8 sps:$4 sm:$0xff]   ;;  %v3250_v11 = vcombine.high %v4242_v49, %v4245_v50 }
  0x20   : > { %1491 = vmatpush1.bf16.msra.mxu0 %v3630_v27  ;;  %435 = vmatprep.subr.bf16.mxu1 %v3631_v28  ;;  %v1304_v22 = vor.u32 %v1303_v13, %v1300_v12  ;;  %v1289_v27 = vshrl.u32 %v3183_v19, 16  ;;  %v1292_v28 = vshll.u32 %v3183_v19, 16  ;;  %v3702_v1 = vld [vmem:[%s5240_s1 + $0x510] ss:$8 sps:$4 sm:$0xff]   ;;  %v251_v3 = vshrl.u32 %v4293_v9, 16 }
  0x21   : > { %1492 = vmatprep.subr.bf16.mxu0 %v3633_v29  ;;  %v3677_v29 = vld [vmem:[%s5240_s1 + $0x1e0] ss:$8 sps:$4 sm:$0xff]   ;;  %453 = vmatprep.mubr.bf16.mxu1 %v250_v21  ;;  %v3707_v4 = vld [vmem:[%s5240_s1 + $0x24] ss:$8 sps:$4 sm:$0xff]   ;;  %v3713_v8 = vld [vmem:[%s5240_s1 + $0x34] ss:$8 sps:$4 sm:$0xff]  }
  0x22   : > { %v3711_v12 = vld [vmem:[%s5240_s1 + $0x30] ss:$8 sps:$4 sm:$0xff]   ;;  %v3722_v16 = vld [vmem:[%s5240_s1 + $0x544] ss:$8 sps:$4 sm:$0xff]   ;;  %v3717_v17 = vld [vmem:[%s5240_s1 + $0x40] ss:$8 sps:$4 sm:$0xff]  }
  0x23   : > { %436 = vmatpush1.bf16.msra.mxu1 %v3635_v30  ;;  %v3678_v30 = vld [vmem:[%s5240_s1 + $0x4e0] ss:$8 sps:$4 sm:$0xff]   ;;  %v3714_v13 = vld [vmem:[%s5240_s1 + $0x530] ss:$8 sps:$4 sm:$0xff]   ;;  %v3725_v19 = vld [vmem:[%s5240_s1 + $0x54] ss:$8 sps:$4 sm:$0xff]  }
  0x24   : > { %1493 = vmatpush1.bf16.msra.mxu0 %v3636_v31  ;;  %437 = vmatprep.subr.bf16.mxu1 %v3637_v32  ;;  %v3679_v31 = vld [vmem:[%s5240_s1 + $0x1f4] ss:$8 sps:$4 sm:$0xff]   ;;  %v1313_v32 = vsel %vm1279_vm1, %v1304_v22, %v1312_v26  ;;  %v3726_v21 = vld [vmem:[%s5240_s1 + $0x550] ss:$8 sps:$4 sm:$0xff]   ;;  %v3731_v22 = vld [vmem:[%s5240_s1 + $0x64] ss:$8 sps:$4 sm:$0xff]  }
  0x25   : > { %1494 = vmatprep.subr.bf16.mxu0 %v3639_v33  ;;  %v228_v33 = vshrl.u32 %v4279_v0, 16  ;;  %1510 = vmatprep.mubr.bf16.mxu0 %v1313_v32  ;;  %v3741_v32 = vld [vmem:[%s5240_s1 + $0x80] ss:$8 sps:$4 sm:$0xff]   ;;  %vm2113_vm5 = vsmask.f32 5376 }
  0x27   : > { %438 = vmatpush1.bf16.msra.mxu1 %v3641_v34  ;;  %v232_v34 = vrot.slane %v230_v18, 1  ;;  %v3720_v18 = vld [vmem:[%s5240_s1 + $0x540] ss:$8 sps:$4 sm:$0xff]  }
  0x28   : > { %1495 = vmatpush1.bf16.msra.mxu0 %v3642_v35  ;;  %439 = vmatprep.subr.bf16.mxu1 %v3643_v36  ;;  %v235_v35 = vshll.u32 %v4293_v9, 16  ;;  %v1283_v36 = vrot.slane %v1281_v23, 3  ;;  %v3734_v23 = vld [vmem:[%s5240_s1 + $0x564] ss:$8 sps:$4 sm:$0xff]  }
  0x29   : > { %1496 = vmatprep.subr.bf16.mxu0 %v3645_v37  ;;  %v1286_v37 = vrot.slane %v1284_v24, 4  ;;  %v3729_v24 = vld [vmem:[%s5240_s1 + $0x60] ss:$8 sps:$4 sm:$0xff]  }
  0x2b   : > { %440 = vmatpush1.bf16.msra.mxu1 %v3647_v38  ;;  %v1291_v38 = vrot.slane %v1289_v27, 3  ;;  %v3740_v27 = vld [vmem:[%s5240_s1 + $0x574] ss:$8 sps:$4 sm:$0xff]  }
  0x2c   : > { %1497 = vmatpush1.bf16.msra.mxu0 %v3648_v39  ;;  %441 = vmatprep.subr.bf16.mxu1 %v3649_v40  ;;  %v1294_v39 = vrot.slane %v1292_v28, 4  ;;  %v3681_v40 = vld [vmem:[%s5240_s1 + $0x4f4] ss:$8 sps:$4 sm:$0xff]   ;;  %v3735_v28 = vld [vmem:[%s5240_s1 + $0x70] ss:$8 sps:$4 sm:$0xff]  }
  0x2d   : > { %1498 = vmatprep.subr.bf16.mxu0 %v3651_v41  ;;  %v3683_v41 = vld [vmem:[%s5240_s1 + $0x1f0] ss:$8 sps:$4 sm:$0xff]  }
  0x2f   : > { %442 = vmatpush1.bf16.msra.mxu1 %v3653_v42  ;;  %v3684_v42 = vld [vmem:[%s5240_s1 + $0x4f0] ss:$8 sps:$4 sm:$0xff]  }
  0x30   : > { %1499 = vmatpush1.bf16.msra.mxu0 %v3654_v43  ;;  %443 = vmatprep.subr.bf16.mxu1 %v3655_v44  ;;  %v3689_v43 = vld [vmem:[%s5240_s1 + $0x4] ss:$8 sps:$4 sm:$0xff]   ;;  %v233_v44 = vor.u32 %v232_v34, %v228_v33  ;;  %v3744_v33 = vld [vmem:[%s5240_s1 + $0x580] ss:$8 sps:$4 sm:$0xff]   ;;  %v3749_v34 = vld [vmem:[%s5240_s1 + $0x94] ss:$8 sps:$4 sm:$0xff]  }
  0x31   : > { %1500 = vmatprep.subr.bf16.mxu0 %v3657_v45  ;;  %v237_v45 = vrot.slane %v235_v35, 1  ;;  %v3752_v35 = vld [vmem:[%s5240_s1 + $0x594] ss:$8 sps:$4 sm:$0xff]  }
  0x33   : > { %444 = vmatpush1.bf16.msra.mxu1 %v3659_v46  ;;  %v1287_v46 = vor.u32 %v1286_v37, %v1283_v36  ;;  %v238_v57 = vsel %vm226_vm0, %v233_v44, %v237_v45  ;;  %v253_v7 = vor.u32 %v251_v3, %v237_v45  ;;  %v3747_v36 = vld [vmem:[%s5240_s1 + $0x90] ss:$8 sps:$4 sm:$0xff]   ;;  %v3788_v3 = vld [vmem:[%s5240_s1 + $0x5f4] ss:$8 sps:$4 sm:$0xff]  }
  0x34   : > { %1501 = vmatpush1.bf16.msra.mxu0 %v3660_v47  ;;  %445 = vmatprep.subr.bf16.mxu1 %v3661_v51  ;;  %v1295_v47 = vor.u32 %v1294_v39, %v1291_v38  ;;  %v254_v51 = vshrl.u32 %v4258_v54, 16  ;;  %v3750_v37 = vld [vmem:[%s5240_s1 + $0x590] ss:$8 sps:$4 sm:$0xff]   ;;  %v3755_v38 = vld [vmem:[%s5240_s1 + $0xa4] ss:$8 sps:$4 sm:$0xff]  }
  0x35   : > { %1502 = vmatprep.subr.bf16.mxu0 %v3663_v52  ;;  %v3687_v52 = vld [vmem:[%s5240_s1] ss:$8 sps:$4 sm:$0xff]   ;;  %v3758_v39 = vld [vmem:[%s5240_s1 + $0x5a4] ss:$8 sps:$4 sm:$0xff]   ;;  %v3759_v44 = vld [vmem:[%s5240_s1 + $0xb0] ss:$8 sps:$4 sm:$0xff]  }
  0x36   : > { %v1296_v58 = vsel %vm1279_vm1, %v1287_v46, %v1295_v47  ;;  %v3762_v45 = vld [vmem:[%s5240_s1 + $0x5b0] ss:$8 sps:$4 sm:$0xff]   ;;  %v3767_v46 = vld [vmem:[%s5240_s1 + $0xc4] ss:$8 sps:$4 sm:$0xff]  }
  0x37   : > { %446 = vmatpush1.bf16.msra.mxu1 %v3665_v61  ;;  %v3704_v61 = vld [vmem:[%s5240_s1 + $0x514] ss:$8 sps:$4 sm:$0xff]  }
  0x38   : > { %1503 = vmatpush1.bf16.msra.mxu0 %v3666_v62  ;;  %447 = vmatprep.subr.bf16.mxu1 %v3667_v5  ;;  %v256_v62 = vor.u32 %v254_v51, %v4281_v2  ;;  %v3710_v2 = vld [vmem:[%s5240_s1 + $0x524] ss:$8 sps:$4 sm:$0xff]   ;;  %v3705_v5 = vld [vmem:[%s5240_s1 + $0x20] ss:$8 sps:$4 sm:$0xff]  }
  0x39   : > { %1504 = vmatprep.subr.bf16.mxu0 %v3669_v6  ;;  %v3708_v6 = vld [vmem:[%s5240_s1 + $0x520] ss:$8 sps:$4 sm:$0xff]  }
  0x3a   : > { %v3768_v51 = vld [vmem:[%s5240_s1 + $0x5c0] ss:$8 sps:$4 sm:$0xff]  }
  0x3b   : > { %448 = vmatpush1.bf16.msra.mxu1 %v3671_v10  ;;  %v3716_v10 = vld [vmem:[%s5240_s1 + $0x534] ss:$8 sps:$4 sm:$0xff]  }
  0x3c   : > { %1505 = vmatpush1.bf16.msra.mxu0 %v3672_v15  ;;  %449 = vmatprep.subr.bf16.mxu1 %v3673_v20  ;;  %v3719_v15 = vld [vmem:[%s5240_s1 + $0x44] ss:$8 sps:$4 sm:$0xff]   ;;  %v3723_v20 = vld [vmem:[%s5240_s1 + $0x50] ss:$8 sps:$4 sm:$0xff]  }
  0x3d   : > { %1506 = vmatprep.subr.bf16.mxu0 %v3675_v25  ;;  %v3732_v25 = vld [vmem:[%s5240_s1 + $0x560] ss:$8 sps:$4 sm:$0xff]  }
  0x3f   : > { %450 = vmatpush1.bf16.msra.mxu1 %v3677_v29  ;;  %v3738_v29 = vld [vmem:[%s5240_s1 + $0x570] ss:$8 sps:$4 sm:$0xff]  }
  0x40   : > { %1507 = vmatpush1.bf16.msra.mxu0 %v3678_v30  ;;  %451 = vmatprep.subr.bf16.mxu1 %v3679_v31  ;;  %v3743_v30 = vld [vmem:[%s5240_s1 + $0x84] ss:$8 sps:$4 sm:$0xff]  }
  0x41   : > { %1508 = vmatprep.subr.bf16.mxu0 %v3681_v40  ;;  %v3746_v31 = vld [vmem:[%s5240_s1 + $0x584] ss:$8 sps:$4 sm:$0xff]   ;;  %v3753_v40 = vld [vmem:[%s5240_s1 + $0xa0] ss:$8 sps:$4 sm:$0xff]  }
  0x43   : > { %452 = vmatpush1.bf16.msra.mxu1 %v3683_v41  ;;  %v3756_v41 = vld [vmem:[%s5240_s1 + $0x5a0] ss:$8 sps:$4 sm:$0xff]  }
  0x44   : > { %1509 = vmatpush1.bf16.msra.mxu0 %v3684_v42  ;;  %641 = vmatprep.subr.bf16.mxu1 %v3689_v43  ;;  %v3761_v42 = vld [vmem:[%s5240_s1 + $0xb4] ss:$8 sps:$4 sm:$0xff]  }
  0x45   : > { %1736 = vmatprep.subr.bf16.mxu0 %v3694_v48  ;;  %v3764_v43 = vld [vmem:[%s5240_s1 + $0x5b4] ss:$8 sps:$4 sm:$0xff]   ;;  %v3765_v48 = vld [vmem:[%s5240_s1 + $0xc0] ss:$8 sps:$4 sm:$0xff]  }
  0x46   : > { %454 = vmatmul.mubr.bf16.vlgmr.msra.gmra.mrb[0].mxu1 %v238_v57  ;;  %v3771_v57 = vld [vmem:[%s5240_s1 + $0xd0] ss:$8 sps:$4 sm:$0xff]  }
  0x47   : > { %1511 = vmatmul.mubr.bf16.vlgmr.msra.gmra.mrb[0].mxu0 %v1296_v58  ;;  %642 = vmatpush1.bf16.msra.mxu1 %v3687_v52  ;;  %v3773_v52 = vld [vmem:[%s5240_s1 + $0xd4] ss:$8 sps:$4 sm:$0xff]   ;;  %v3774_v58 = vld [vmem:[%s5240_s1 + $0x5d0] ss:$8 sps:$4 sm:$0xff]  }
  0x48   : > { %1737 = vmatpush1.bf16.msra.mxu0 %v3692_v55  ;;  %643 = vmatprep.subr.bf16.mxu1 %v3701_v59  ;;  %v3776_v55 = vld [vmem:[%s5240_s1 + $0x5d4] ss:$8 sps:$4 sm:$0xff]   ;;  %v3779_v59 = vld [vmem:[%s5240_s1 + $0xe4] ss:$8 sps:$4 sm:$0xff]  }
  0x49   : > { %1738 = vmatprep.subr.bf16.mxu0 %v3704_v61  ;;  %463 = vmatprep.mubr.bf16.mxu1 %v256_v62  ;;  %v3782_v61 = vld [vmem:[%s5240_s1 + $0x5e4] ss:$8 sps:$4 sm:$0xff]   ;;  %v3777_v62 = vld [vmem:[%s5240_s1 + $0xe0] ss:$8 sps:$4 sm:$0xff]  }
  0x4a   : > { %1520 = vmatprep.mubr.bf16.mxu0 %v1312_v26  ;;  %v3737_v26 = vld [vmem:[%s5240_s1 + $0x74] ss:$8 sps:$4 sm:$0xff]  }
  0x4b   : > { %644 = vmatpush1.bf16.msra.mxu1 %v3699_v63  ;;  %v3780_v63 = vld [vmem:[%s5240_s1 + $0x5e0] ss:$8 sps:$4 sm:$0xff]  }
  0x4c   : > { %1739 = vmatpush1.bf16.msra.mxu0 %v3702_v1  ;;  %645 = vmatprep.subr.bf16.mxu1 %v3707_v4  ;;  %v3785_v1 = vld [vmem:[%s5240_s1 + $0xf4] ss:$8 sps:$4 sm:$0xff]   ;;  %v3783_v4 = vld [vmem:[%s5240_s1 + $0xf0] ss:$8 sps:$4 sm:$0xff]  }
  0x4d   : > { %1740 = vmatprep.subr.bf16.mxu0 %v3710_v2  ;;  %v3786_v2 = vld [vmem:[%s5240_s1 + $0x5f0] ss:$8 sps:$4 sm:$0xff]  }
  0x4e   : > { %464 = vmatmul.mubr.bf16.gmra.mrb[4].mxu1 %v253_v7  ;;  %v3789_v7 = vld [vmem:[%s5240_s1 + $0x200] ss:$8 sps:$4 sm:$0xff]  }
  0x4f   : > { %1521 = vmatmul.mubr.bf16.gmra.mrb[4].mxu0 %v1295_v47  ;;  %646 = vmatpush1.bf16.msra.mxu1 %v3705_v5  ;;  %v3770_v47 = vld [vmem:[%s5240_s1 + $0x5c4] ss:$8 sps:$4 sm:$0xff]  }
  0x50   : > { %1741 = vmatpush1.bf16.msra.mxu0 %v3708_v6  ;;  %647 = vmatprep.subr.bf16.mxu1 %v3713_v8  ;;  %v3791_v5 = vld [vmem:[%s5240_s1 + $0x204] ss:$8 sps:$4 sm:$0xff]   ;;  %v3249_v8 = vcombine.low %v4242_v49, %v4245_v50 }
  0x51   : > { %1742 = vmatprep.subr.bf16.mxu0 %v3716_v10  ;;  %673 = vmatprep.mubr.bf16.mxu1 %v4254_v53  ;;  %v3728_v53 = vld [vmem:[%s5240_s1 + $0x554] ss:$8 sps:$4 sm:$0xff]   ;;  %v3795_v6 = vld [vmem:[%s5240_s1 + $0x604] ss:$8 sps:$4 sm:$0xff]  }
  0x52   : > { %1768 = vmatprep.mubr.bf16.mxu0 %v3250_v11  ;;  %v146_v10 = vld [vmem:[%s4226_s24 + $0x10] sm:$0x77]  ;;  %v3793_v11 = vld [vmem:[%s5240_s1 + $0x600] ss:$8 sps:$4 sm:$0xff]  }
  0x53   : > { %648 = vmatpush1.bf16.msra.mxu1 %v3711_v12  ;;  %v3799_v12 = vld [vmem:[%s5240_s1 + $0x214] ss:$8 sps:$4 sm:$0xff]  }
  0x54   : > { %1743 = vmatpush1.bf16.msra.mxu0 %v3714_v13  ;;  %649 = vmatprep.subr.bf16.mxu1 %v3719_v15  ;;  %v3802_v13 = vld [vmem:[%s5240_s1 + $0x614] ss:$8 sps:$4 sm:$0xff]   ;;  %v2984_v15 = vcombine.high %v146_v10, %v146_v10 }
  0x55   : > { %1744 = vmatprep.subr.bf16.mxu0 %v3722_v16  ;;  %v3252_v16 = vcombine.high %v4262_v56, %v4262_v56 }
  0x57   : > { %650 = vmatpush1.bf16.msra.mxu1 %v3717_v17  ;;  %v3797_v17 = vld [vmem:[%s5240_s1 + $0x210] ss:$8 sps:$4 sm:$0xff]  }
  0x58   : > { %1745 = vmatpush1.bf16.msra.mxu0 %v3720_v18  ;;  %651 = vmatprep.subr.bf16.mxu1 %v3725_v19  ;;  %v3800_v18 = vld [vmem:[%s5240_s1 + $0x610] ss:$8 sps:$4 sm:$0xff]   ;;  %v4569_v19 = vld [vmem:[%s4226_s24] sm:$0xee] }
  0x59   : > { %1746 = vmatprep.subr.bf16.mxu0 %v3728_v53  ;;  %v3808_v53 = vld [vmem:[%s5240_s1 + $0x624] ss:$8 sps:$4 sm:$0xff]  }
  0x5b   : > { %652 = vmatpush1.bf16.msra.mxu1 %v3723_v20  ;;  %v3050_v20 = vcombine.high %v4569_v19, %v4242_v49 }
  0x5c   : > { %1747 = vmatpush1.bf16.msra.mxu0 %v3726_v21  ;;  %653 = vmatprep.subr.bf16.mxu1 %v3731_v22  ;;  %v3251_v21 = vcombine.low %v4262_v56, %v4262_v56  ;;  %v4582_v22 = vld [vmem:[%s4226_s24 + $0x8] sm:$0xcc] }
  0x5d   : > { %1748 = vmatprep.subr.bf16.mxu0 %v3734_v23  ;;  %v4585_v23 = vld [vmem:[%s4226_s24 + $0x18] sm:$0xff]  ;;  %v4596_v49 = vcombine.high %v4582_v22, %v4245_v50  ;;  %v3806_v56 = vld [vmem:[%s5240_s1 + $0x620] ss:$8 sps:$4 sm:$0xff]  }
  0x5e   : > { %v3814_v50 = vld [vmem:[%s5240_s1 + $0x634] ss:$8 sps:$4 sm:$0xff]  }
  0x5f   : > { %654 = vmatpush1.bf16.msra.mxu1 %v3729_v24  ;;  %v4588_v24 = vld [vmem:[%s4226_s24 + $0x20] sm:$0x11] }
  0x60   : > { %1749 = vmatpush1.bf16.msra.mxu0 %v3732_v25  ;;  %655 = vmatprep.subr.bf16.mxu1 %v3737_v26  ;;  %v3803_v25 = vld [vmem:[%s5240_s1 + $0x220] ss:$8 sps:$4 sm:$0xff]   ;;  %v2983_v26 = vcombine.low %v146_v10, %v146_v10  ;;  %v3862_v10 = vld [vmem:[%s5240_s1 + $0x6b4] ss:$8 sps:$4 sm:$0xff]  }
  0x61   : > { %1750 = vmatprep.subr.bf16.mxu0 %v3740_v27  ;;  %v735_v27 = vrot.slane %v3050_v20, 1  ;;  %v3872_v20 = vld [vmem:[%s5240_s1 + $0x6d0] ss:$8 sps:$4 sm:$0xff]  }
  0x63   : > { %656 = vmatpush1.bf16.msra.mxu1 %v3735_v28  ;;  %v736_v28 = vrot.slane %v4258_v54, 1  ;;  %v3909_v54 = vld [vmem:[%s5240_s1 + $0x320] ss:$8 sps:$4 sm:$0xff]  }
  0x64   : > { %1751 = vmatpush1.bf16.msra.mxu0 %v3738_v29  ;;  %657 = vmatprep.subr.bf16.mxu1 %v3743_v30  ;;  %v3320_v29 = vcombine.high %v4585_v23, %v4588_v24  ;;  %v3811_v30 = vld [vmem:[%s5240_s1 + $0x234] ss:$8 sps:$4 sm:$0xff]  }
  0x65   : > { %1752 = vmatprep.subr.bf16.mxu0 %v3746_v31  ;;  %v1850_v31 = vrot.slane %v4596_v49, 2 }
  0x67   : > { %658 = vmatpush1.bf16.msra.mxu1 %v3741_v32  ;;  %v4610_v32 = vrot.slane %v3320_v29, 2  ;;  %v4051_v29 = vld [vmem:[%s4226_s24 + $0x8] sm:$0xff] }
  0x68   : > { %1753 = vmatpush1.bf16.msra.mxu0 %v3744_v33  ;;  %659 = vmatprep.subr.bf16.mxu1 %v3749_v34  ;;  %v737_v33 = vsel %vm731_vm2, %v735_v27, %v736_v28  ;;  %v3809_v34 = vld [vmem:[%s5240_s1 + $0x230] ss:$8 sps:$4 sm:$0xff]   ;;  %v3880_v27 = vld [vmem:[%s5240_s1 + $0x6e0] ss:$8 sps:$4 sm:$0xff]  }
  0x69   : > { %1754 = vmatprep.subr.bf16.mxu0 %v3752_v35  ;;  %v3812_v35 = vld [vmem:[%s5240_s1 + $0x630] ss:$8 sps:$4 sm:$0xff]  }
  0x6b   : > { %660 = vmatpush1.bf16.msra.mxu1 %v3747_v36  ;;  %v1852_v36 = vsel %vm1846_vm3, %v1850_v31, %v4610_v32 }
  0x6c   : > { %1755 = vmatpush1.bf16.msra.mxu0 %v3750_v37  ;;  %661 = vmatprep.subr.bf16.mxu1 %v3755_v38  ;;  %v3817_v37 = vld [vmem:[%s5240_s1 + $0x244] ss:$8 sps:$4 sm:$0xff]  }
  0x6d   : > { %1756 = vmatprep.subr.bf16.mxu0 %v3758_v39  ;;  %v3820_v38 = vld [vmem:[%s5240_s1 + $0x644] ss:$8 sps:$4 sm:$0xff]   ;;  %v3815_v39 = vld [vmem:[%s5240_s1 + $0x240] ss:$8 sps:$4 sm:$0xff]  }
  0x6f   : > { %662 = vmatpush1.bf16.msra.mxu1 %v3753_v40  ;;  %v3818_v40 = vld [vmem:[%s5240_s1 + $0x640] ss:$8 sps:$4 sm:$0xff]  }
  0x70   : > { %1757 = vmatpush1.bf16.msra.mxu0 %v3756_v41  ;;  %663 = vmatprep.subr.bf16.mxu1 %v3761_v42  ;;  %v3823_v41 = vld [vmem:[%s5240_s1 + $0x254] ss:$8 sps:$4 sm:$0xff]  }
  0x71   : > { %1758 = vmatprep.subr.bf16.mxu0 %v3764_v43  ;;  %v3826_v42 = vld [vmem:[%s5240_s1 + $0x654] ss:$8 sps:$4 sm:$0xff]   ;;  %v3821_v43 = vld [vmem:[%s5240_s1 + $0x250] ss:$8 sps:$4 sm:$0xff]  }
  0x73   : > { %664 = vmatpush1.bf16.msra.mxu1 %v3759_v44  ;;  %v3824_v44 = vld [vmem:[%s5240_s1 + $0x650] ss:$8 sps:$4 sm:$0xff]  }
  0x74   : > { %1759 = vmatpush1.bf16.msra.mxu0 %v3762_v45  ;;  %665 = vmatprep.subr.bf16.mxu1 %v3767_v46  ;;  %v3829_v45 = vld [vmem:[%s5240_s1 + $0x264] ss:$8 sps:$4 sm:$0xff]  }
  0x75   : > { %1760 = vmatprep.subr.bf16.mxu0 %v3770_v47  ;;  %v3832_v46 = vld [vmem:[%s5240_s1 + $0x664] ss:$8 sps:$4 sm:$0xff]   ;;  %v3827_v47 = vld [vmem:[%s5240_s1 + $0x260] ss:$8 sps:$4 sm:$0xff]  }
  0x77   : > { %666 = vmatpush1.bf16.msra.mxu1 %v3765_v48  ;;  %v3830_v48 = vld [vmem:[%s5240_s1 + $0x660] ss:$8 sps:$4 sm:$0xff]  }
  0x78   : > { %1761 = vmatpush1.bf16.msra.mxu0 %v3768_v51  ;;  %667 = vmatprep.subr.bf16.mxu1 %v3773_v52  ;;  %v3835_v51 = vld [vmem:[%s5240_s1 + $0x274] ss:$8 sps:$4 sm:$0xff]  }
  0x79   : > { %1762 = vmatprep.subr.bf16.mxu0 %v3776_v55  ;;  %v3838_v52 = vld [vmem:[%s5240_s1 + $0x674] ss:$8 sps:$4 sm:$0xff]   ;;  %v3833_v55 = vld [vmem:[%s5240_s1 + $0x270] ss:$8 sps:$4 sm:$0xff]  }
  0x7b   : > { %668 = vmatpush1.bf16.msra.mxu1 %v3771_v57  ;;  %v3836_v57 = vld [vmem:[%s5240_s1 + $0x670] ss:$8 sps:$4 sm:$0xff]  }
  0x7c   : > { %1763 = vmatpush1.bf16.msra.mxu0 %v3774_v58  ;;  %669 = vmatprep.subr.bf16.mxu1 %v3779_v59  ;;  %v3841_v58 = vld [vmem:[%s5240_s1 + $0x284] ss:$8 sps:$4 sm:$0xff]  }
  0x7d   : > { %1764 = vmatprep.subr.bf16.mxu0 %v3782_v61  ;;  %v3844_v59 = vld [vmem:[%s5240_s1 + $0x684] ss:$8 sps:$4 sm:$0xff]   ;;  %v3839_v61 = vld [vmem:[%s5240_s1 + $0x280] ss:$8 sps:$4 sm:$0xff]  }
  0x7f   : > { %670 = vmatpush1.bf16.msra.mxu1 %v3777_v62  ;;  %v3842_v62 = vld [vmem:[%s5240_s1 + $0x680] ss:$8 sps:$4 sm:$0xff]  }
  0x80   : > { %1765 = vmatpush1.bf16.msra.mxu0 %v3780_v63  ;;  %671 = vmatprep.subr.bf16.mxu1 %v3785_v1  ;;  %v3847_v63 = vld [vmem:[%s5240_s1 + $0x294] ss:$8 sps:$4 sm:$0xff]  }
  0x81   : > { %1766 = vmatprep.subr.bf16.mxu0 %v3788_v3  ;;  %v3850_v1 = vld [vmem:[%s5240_s1 + $0x694] ss:$8 sps:$4 sm:$0xff]   ;;  %v3845_v3 = vld [vmem:[%s5240_s1 + $0x290] ss:$8 sps:$4 sm:$0xff]  }
  0x83   : > { %672 = vmatpush1.bf16.msra.mxu1 %v3783_v4  ;;  %v3848_v4 = vld [vmem:[%s5240_s1 + $0x690] ss:$8 sps:$4 sm:$0xff]  }
  0x84   : > { %1767 = vmatpush1.bf16.msra.mxu0 %v3786_v2  ;;  %902 = vmatprep.subr.bf16.mxu1 %v3791_v5  ;;  %v3853_v2 = vld [vmem:[%s5240_s1 + $0x2a4] ss:$8 sps:$4 sm:$0xff]  }
  0x85   : > { %2017 = vmatprep.subr.bf16.mxu0 %v3795_v6  ;;  %v3856_v5 = vld [vmem:[%s5240_s1 + $0x6a4] ss:$8 sps:$4 sm:$0xff]   ;;  %v3851_v6 = vld [vmem:[%s5240_s1 + $0x2a0] ss:$8 sps:$4 sm:$0xff]  }
  0x86   : > { %674 = vmatmul.mubr.bf16.vlgmr.msra.gmra.mrb[0].mxu1 %v4279_v0  ;;  %v3805_v0 = vld [vmem:[%s5240_s1 + $0x224] ss:$8 sps:$4 sm:$0xff]  }
  0x87   : > { %1769 = vmatmul.mubr.bf16.vlgmr.msra.gmra.mrb[0].mxu0 %v3249_v8  ;;  %903 = vmatpush1.bf16.msra.mxu1 %v3789_v7  ;;  %v3854_v7 = vld [vmem:[%s5240_s1 + $0x6a0] ss:$8 sps:$4 sm:$0xff]   ;;  %v3859_v8 = vld [vmem:[%s5240_s1 + $0x2b4] ss:$8 sps:$4 sm:$0xff]  }
  0x88   : > { %2018 = vmatpush1.bf16.msra.mxu0 %v3793_v11  ;;  %904 = vmatprep.subr.bf16.mxu1 %v3799_v12  ;;  %v3857_v11 = vld [vmem:[%s5240_s1 + $0x2b0] ss:$8 sps:$4 sm:$0xff]  }
  0x89   : > { %2019 = vmatprep.subr.bf16.mxu0 %v3802_v13  ;;  %683 = vmatprep.mubr.bf16.mxu1 %v2984_v15  ;;  %v3860_v12 = vld [vmem:[%s5240_s1 + $0x6b0] ss:$8 sps:$4 sm:$0xff]   ;;  %v3865_v13 = vld [vmem:[%s5240_s1 + $0x2c4] ss:$8 sps:$4 sm:$0xff]  }
  0x8a   : > { %1778 = vmatprep.mubr.bf16.mxu0 %v3252_v16  ;;  %v3868_v15 = vld [vmem:[%s5240_s1 + $0x6c4] ss:$8 sps:$4 sm:$0xff]   ;;  %v3863_v16 = vld [vmem:[%s5240_s1 + $0x2c0] ss:$8 sps:$4 sm:$0xff]  }
  0x8b   : > { %905 = vmatpush1.bf16.msra.mxu1 %v3797_v17  ;;  %v3866_v17 = vld [vmem:[%s5240_s1 + $0x6c0] ss:$8 sps:$4 sm:$0xff]  }
  0x8c   : > { %2020 = vmatpush1.bf16.msra.mxu0 %v3800_v18  ;;  %906 = vmatprep.subr.bf16.mxu1 %v3805_v0  ;;  %v3871_v18 = vld [vmem:[%s5240_s1 + $0x2d4] ss:$8 sps:$4 sm:$0xff]  }
  0x8d   : > { %2021 = vmatprep.subr.bf16.mxu0 %v3808_v53  ;;  %v3874_v0 = vld [vmem:[%s5240_s1 + $0x6d4] ss:$8 sps:$4 sm:$0xff]   ;;  %v3869_v53 = vld [vmem:[%s5240_s1 + $0x2d0] ss:$8 sps:$4 sm:$0xff]  }
  0x8e   : > { %684 = vmatmul.mubr.bf16.gmra.mrb[4].mxu1 %v2983_v26  ;;  %v3876_v26 = vld [vmem:[%s5240_s1 + $0x2e0] ss:$8 sps:$4 sm:$0xff]  }
  0x8f   : > { %1779 = vmatmul.mubr.bf16.gmra.mrb[4].mxu0 %v3251_v21  ;;  %907 = vmatpush1.bf16.msra.mxu1 %v3803_v25  ;;  %v3878_v21 = vld [vmem:[%s5240_s1 + $0x2e4] ss:$8 sps:$4 sm:$0xff]  }
  0x90   : > { %2022 = vmatpush1.bf16.msra.mxu0 %v3806_v56  ;;  %908 = vmatprep.subr.bf16.mxu1 %v3811_v30  ;;  %v3882_v25 = vld [vmem:[%s5240_s1 + $0x6e4] ss:$8 sps:$4 sm:$0xff]   ;;  %v3887_v56 = vld [vmem:[%s5240_s1 + $0x2f4] ss:$8 sps:$4 sm:$0xff]   ;;  %v3049_v30 = vcombine.low %v4569_v19, %v4051_v29  ;;  %v3885_v19 = vld [vmem:[%s5240_s1 + $0x2f0] ss:$8 sps:$4 sm:$0xff]  }
  0x91   : > { %2023 = vmatprep.subr.bf16.mxu0 %v3814_v50  ;;  %934 = vmatprep.mubr.bf16.mxu1 %v737_v33  ;;  %v4761_v50 = vld [vmem:[%s4226_s24 + $0x10] sm:$0xff]  ;;  %v3319_v33 = vcombine.low %v4585_v23, %v4588_v24 }
  0x92   : > { %2049 = vmatprep.mubr.bf16.mxu0 %v1852_v36  ;;  %v4765_v31 = vcombine.low %v4582_v22, %v4761_v50  ;;  %v3888_v36 = vld [vmem:[%s5240_s1 + $0x6f0] ss:$8 sps:$4 sm:$0xff]   ;;  %v733_v22 = vrot.slane %v4293_v9, 1  ;;  %v732_v24 = vrot.slane %v3049_v30, 1  ;;  %v3932_v29 = vld [vmem:[%s5240_s1 + $0x754] ss:$8 sps:$4 sm:$0xff]  }
  0x93   : > { %909 = vmatpush1.bf16.msra.mxu1 %v3809_v34  ;;  %v2074_v34 = vld [vmem:[%s4226_s24 + $0x20] sm:$0x33]  ;;  %v3927_v30 = vld [vmem:[%s5240_s1 + $0x350] ss:$8 sps:$4 sm:$0xff]  }
  0x94   : > { %2024 = vmatpush1.bf16.msra.mxu0 %v3812_v35  ;;  %910 = vmatprep.subr.bf16.mxu1 %v3817_v37  ;;  %v3890_v35 = vld [vmem:[%s5240_s1 + $0x6f4] ss:$8 sps:$4 sm:$0xff]   ;;  %v4781_v37 = vcombine.high %v4585_v23, %v2074_v34 }
  0x95   : > { %2025 = vmatprep.subr.bf16.mxu0 %v3820_v38  ;;  %v3895_v38 = vld [vmem:[%s5240_s1 + $0x304] ss:$8 sps:$4 sm:$0xff]  }
  0x97   : > { %911 = vmatpush1.bf16.msra.mxu1 %v3815_v39  ;;  %v1848_v39 = vrot.slane %v3319_v33, 2  ;;  %v3930_v33 = vld [vmem:[%s5240_s1 + $0x750] ss:$8 sps:$4 sm:$0xff]  }
  0x98   : > { %2026 = vmatpush1.bf16.msra.mxu0 %v3818_v40  ;;  %912 = vmatprep.subr.bf16.mxu1 %v3823_v41  ;;  %v1847_v40 = vrot.slane %v4765_v31, 2  ;;  %v3902_v41 = vld [vmem:[%s5240_s1 + $0x704] ss:$8 sps:$4 sm:$0xff]  }
  0x99   : > { %2027 = vmatprep.subr.bf16.mxu0 %v3826_v42  ;;  %v3893_v42 = vld [vmem:[%s5240_s1 + $0x300] ss:$8 sps:$4 sm:$0xff]  }
  0x9b   : > { %913 = vmatpush1.bf16.msra.mxu1 %v3821_v43  ;;  %v2132_v43 = vshrl.u32 %v4596_v49, 16 }
  0x9c   : > { %2028 = vmatpush1.bf16.msra.mxu0 %v3824_v44  ;;  %914 = vmatprep.subr.bf16.mxu1 %v3829_v45  ;;  %v3900_v44 = vld [vmem:[%s5240_s1 + $0x700] ss:$8 sps:$4 sm:$0xff]   ;;  %v2135_v45 = vshll.u32 %v4596_v49, 16  ;;  %v3908_v49 = vld [vmem:[%s5240_s1 + $0x714] ss:$8 sps:$4 sm:$0xff]  }
  0x9d   : > { %2029 = vmatprep.subr.bf16.mxu0 %v3832_v46  ;;  %v2140_v46 = vshrl.u32 %v4781_v37, 16 }
  0x9f   : > { %915 = vmatpush1.bf16.msra.mxu1 %v3827_v47  ;;  %v2143_v47 = vshll.u32 %v4781_v37, 16 }
  0xa0   : > { %2030 = vmatpush1.bf16.msra.mxu0 %v3830_v48  ;;  %916 = vmatprep.subr.bf16.mxu1 %v3835_v51  ;;  %v734_v48 = vsel %vm731_vm2, %v732_v24, %v733_v22  ;;  %v1849_v51 = vsel %vm1846_vm3, %v1847_v40, %v1848_v39  ;;  %v3944_v24 = vld [vmem:[%s5240_s1 + $0x774] ss:$8 sps:$4 sm:$0xff]   ;;  %v3947_v40 = vld [vmem:[%s5240_s1 + $0x384] ss:$8 sps:$4 sm:$0xff]  }
  0xa1   : > { %2031 = vmatprep.subr.bf16.mxu0 %v3838_v52  ;;  %v3905_v52 = vld [vmem:[%s5240_s1 + $0x314] ss:$8 sps:$4 sm:$0xff]  }
  0xa3   : > { %917 = vmatpush1.bf16.msra.mxu1 %v3833_v55  ;;  %v4808_v55 = vld [vmem:[%s4226_s24 + $0x18] sm:$0x33] }
  0xa4   : > { %2032 = vmatpush1.bf16.msra.mxu0 %v3836_v57  ;;  %918 = vmatprep.subr.bf16.mxu1 %v3841_v58  ;;  %v2134_v57 = vrot.slane %v2132_v43, 2  ;;  %v3903_v58 = vld [vmem:[%s5240_s1 + $0x310] ss:$8 sps:$4 sm:$0xff]   ;;  %v3948_v43 = vld [vmem:[%s5240_s1 + $0x780] ss:$8 sps:$4 sm:$0xff]  }
  0xa5   : > { %2033 = vmatprep.subr.bf16.mxu0 %v3844_v59  ;;  %v3118_v59 = vcombine.high %v4761_v50, %v4808_v55 }
  0xa7   : > { %919 = vmatpush1.bf16.msra.mxu1 %v3839_v61  ;;  %v2137_v61 = vrot.slane %v2135_v45, 3  ;;  %v3956_v45 = vld [vmem:[%s5240_s1 + $0x794] ss:$8 sps:$4 sm:$0xff]  }
  0xa8   : > { %2034 = vmatpush1.bf16.msra.mxu0 %v3842_v62  ;;  %920 = vmatprep.subr.bf16.mxu1 %v3847_v63  ;;  %v2142_v62 = vrot.slane %v2140_v46, 2  ;;  %v2145_v63 = vrot.slane %v2143_v47, 3  ;;  %v3951_v46 = vld [vmem:[%s5240_s1 + $0x390] ss:$8 sps:$4 sm:$0xff]  }
  0xa9   : > { %2035 = vmatprep.subr.bf16.mxu0 %v3850_v1  ;;  %v3906_v1 = vld [vmem:[%s5240_s1 + $0x710] ss:$8 sps:$4 sm:$0xff]  }
  0xaa   : > { %v3954_v47 = vld [vmem:[%s5240_s1 + $0x790] ss:$8 sps:$4 sm:$0xff]  }
  0xab   : > { %921 = vmatpush1.bf16.msra.mxu1 %v3845_v3  ;;  %v3911_v3 = vld [vmem:[%s5240_s1 + $0x324] ss:$8 sps:$4 sm:$0xff]  }
  0xac   : > { %2036 = vmatpush1.bf16.msra.mxu0 %v3848_v4  ;;  %922 = vmatprep.subr.bf16.mxu1 %v3853_v2  ;;  %v3914_v4 = vld [vmem:[%s5240_s1 + $0x724] ss:$8 sps:$4 sm:$0xff]   ;;  %v1016_v2 = vrot.slane %v4268_v60, 3  ;;  %v3912_v60 = vld [vmem:[%s5240_s1 + $0x720] ss:$8 sps:$4 sm:$0xff]  }
  0xad   : > { %2037 = vmatprep.subr.bf16.mxu0 %v3856_v5  ;;  %v4832_v5 = vcombine.low %v4585_v23, %v2074_v34  ;;  %v3935_v34 = vld [vmem:[%s5240_s1 + $0x364] ss:$8 sps:$4 sm:$0xff]  }
  0xaf   : > { %923 = vmatpush1.bf16.msra.mxu1 %v3851_v6  ;;  %v4834_v6 = vrot.slane %v3118_v59, 3  ;;  %v3963_v59 = vld [vmem:[%s5240_s1 + $0x3b0] ss:$8 sps:$4 sm:$0xff]  }
  0xb0   : > { %2038 = vmatpush1.bf16.msra.mxu0 %v3854_v7  ;;  %924 = vmatprep.subr.bf16.mxu1 %v3859_v8  ;;  %v2138_v7 = vor.u32 %v2137_v61, %v2134_v57  ;;  %v4836_v8 = vor.u32 %v2145_v63, %v2142_v62  ;;  %v3965_v57 = vld [vmem:[%s5240_s1 + $0x3b4] ss:$8 sps:$4 sm:$0xff]   ;;  %v3966_v61 = vld [vmem:[%s5240_s1 + $0x7b0] ss:$8 sps:$4 sm:$0xff]   ;;  %v3971_v62 = vld [vmem:[%s5240_s1 + $0x3c4] ss:$8 sps:$4 sm:$0xff]  }
  0xb1   : > { %2039 = vmatprep.subr.bf16.mxu0 %v3862_v10  ;;  %v2369_v10 = vld [vmem:[%s4226_s24 + $0x8] sm:$0x88] }
  0xb2   : > { %v3451_v23 = vcombine.low %v2369_v10, %v4761_v50  ;;  %v3974_v63 = vld [vmem:[%s5240_s1 + $0x7c4] ss:$8 sps:$4 sm:$0xff]  }
  0xb3   : > { %925 = vmatpush1.bf16.msra.mxu1 %v3857_v11  ;;  %v2409_v11 = vrot.slane %v4832_v5, 3 }
  0xb4   : > { %2040 = vmatpush1.bf16.msra.mxu0 %v3860_v12  ;;  %926 = vmatprep.subr.bf16.mxu1 %v3865_v13  ;;  %v3917_v12 = vld [vmem:[%s5240_s1 + $0x334] ss:$8 sps:$4 sm:$0xff]  }
  0xb5   : > { %2041 = vmatprep.subr.bf16.mxu0 %v3868_v15  ;;  %v3920_v13 = vld [vmem:[%s5240_s1 + $0x734] ss:$8 sps:$4 sm:$0xff]   ;;  %v2408_v15 = vrot.slane %v3451_v23, 3  ;;  %v2123_v23 = vshrl.u32 %v4832_v5, 16 }
  0xb7   : > { %927 = vmatpush1.bf16.msra.mxu1 %v3863_v16 }
  0xb8   : > { %2042 = vmatpush1.bf16.msra.mxu0 %v3866_v17  ;;  %928 = vmatprep.subr.bf16.mxu1 %v3871_v18  ;;  %v1018_v17 = vsel %vm1012_vm4, %v1016_v2, %v4834_v6  ;;  %v2147_v18 = vsel %vm2113_vm5, %v2138_v7, %v4836_v8  ;;  %v3980_v2 = vld [vmem:[%s5240_s1 + $0x7d4] ss:$8 sps:$4 sm:$0xff]   ;;  %v2115_v7 = vshrl.u32 %v4765_v31, 16 }
  0xb9   : > { %2043 = vmatprep.subr.bf16.mxu0 %v3874_v0  ;;  %v3915_v0 = vld [vmem:[%s5240_s1 + $0x330] ss:$8 sps:$4 sm:$0xff]  }
  0xbb   : > { %929 = vmatpush1.bf16.msra.mxu1 %v3869_v53  ;;  %v3918_v53 = vld [vmem:[%s5240_s1 + $0x730] ss:$8 sps:$4 sm:$0xff]  }
  0xbc   : > { %2044 = vmatpush1.bf16.msra.mxu0 %v3872_v20  ;;  %930 = vmatprep.subr.bf16.mxu1 %v3878_v21  ;;  %v4875_v20 = vsel %vm1012_vm4, %v2408_v15, %v2409_v11  ;;  %v3923_v21 = vld [vmem:[%s5240_s1 + $0x344] ss:$8 sps:$4 sm:$0xff]  }
  0xbd   : > { %2045 = vmatprep.subr.bf16.mxu0 %v3882_v25  ;;  %v3926_v25 = vld [vmem:[%s5240_s1 + $0x744] ss:$8 sps:$4 sm:$0xff]  }
  0xbf   : > { %931 = vmatpush1.bf16.msra.mxu1 %v3876_v26  ;;  %v3921_v26 = vld [vmem:[%s5240_s1 + $0x340] ss:$8 sps:$4 sm:$0xff]  }
  0xc0   : > { %2046 = vmatpush1.bf16.msra.mxu0 %v3880_v27  ;;  %932 = vmatprep.subr.bf16.mxu1 %v3887_v56  ;;  %v3924_v27 = vld [vmem:[%s5240_s1 + $0x740] ss:$8 sps:$4 sm:$0xff]   ;;  %v3929_v56 = vld [vmem:[%s5240_s1 + $0x354] ss:$8 sps:$4 sm:$0xff]  }
  0xc1   : > { %2047 = vmatprep.subr.bf16.mxu0 %v3890_v35  ;;  %v3938_v35 = vld [vmem:[%s5240_s1 + $0x764] ss:$8 sps:$4 sm:$0xff]  }
  0xc3   : > { %933 = vmatpush1.bf16.msra.mxu1 %v3885_v19  ;;  %v3933_v19 = vld [vmem:[%s5240_s1 + $0x360] ss:$8 sps:$4 sm:$0xff]  }
  0xc4   : > { %2048 = vmatpush1.bf16.msra.mxu0 %v3888_v36  ;;  %1183 = vmatprep.subr.bf16.mxu1 %v3895_v38  ;;  %v3936_v36 = vld [vmem:[%s5240_s1 + $0x760] ss:$8 sps:$4 sm:$0xff]   ;;  %v3939_v38 = vld [vmem:[%s5240_s1 + $0x370] ss:$8 sps:$4 sm:$0xff]  }
  0xc5   : > { %2312 = vmatprep.subr.bf16.mxu0 %v3902_v41  ;;  %v3950_v41 = vld [vmem:[%s5240_s1 + $0x784] ss:$8 sps:$4 sm:$0xff]  }
  0xc6   : > { %935 = vmatmul.mubr.bf16.vlgmr.msra.gmra.mrb[0].mxu1 %v734_v48  ;;  %v3959_v48 = vld [vmem:[%s5240_s1 + $0x3a4] ss:$8 sps:$4 sm:$0xff]  }
  0xc7   : > { %2050 = vmatmul.mubr.bf16.vlgmr.msra.gmra.mrb[0].mxu0 %v1849_v51  ;;  %1184 = vmatpush1.bf16.msra.mxu1 %v3893_v42  ;;  %v3945_v42 = vld [vmem:[%s5240_s1 + $0x380] ss:$8 sps:$4 sm:$0xff]   ;;  %v3962_v51 = vld [vmem:[%s5240_s1 + $0x7a4] ss:$8 sps:$4 sm:$0xff]  }
  0xc8   : > { %2313 = vmatpush1.bf16.msra.mxu0 %v3900_v44  ;;  %1185 = vmatprep.subr.bf16.mxu1 %v3905_v52  ;;  %v3953_v44 = vld [vmem:[%s5240_s1 + $0x394] ss:$8 sps:$4 sm:$0xff]   ;;  %v3957_v52 = vld [vmem:[%s5240_s1 + $0x3a0] ss:$8 sps:$4 sm:$0xff]  }
  0xc9   : > { %2314 = vmatprep.subr.bf16.mxu0 %v3908_v49  ;;  %944 = vmatprep.mubr.bf16.mxu1 %v736_v28  ;;  %v3452_v28 = vcombine.high %v2369_v10, %v4761_v50  ;;  %v3960_v49 = vld [vmem:[%s5240_s1 + $0x7a0] ss:$8 sps:$4 sm:$0xff]   ;;  %v2118_v10 = vshll.u32 %v4765_v31, 16  ;;  %v3983_v31 = vld [vmem:[%s5240_s1 + $0x3e4] ss:$8 sps:$4 sm:$0xff]  }
  0xca   : > { %2059 = vmatprep.mubr.bf16.mxu0 %v4610_v32  ;;  %v2412_v32 = vrot.slane %v4781_v37, 3  ;;  %v4017_v37 = vld [vmem:[%s5240_s1 + $0x864] ss:$8 sps:$4 sm:$0xff]  }
  0xcb   : > { %1186 = vmatpush1.bf16.msra.mxu1 %v3903_v58  ;;  %v2411_v16 = vrot.slane %v3452_v28, 3  ;;  %v3968_v58 = vld [vmem:[%s5240_s1 + $0x7b4] ss:$8 sps:$4 sm:$0xff]   ;;  %v2126_v28 = vshll.u32 %v4832_v5, 16  ;;  %v2120_v15 = vrot.slane %v2118_v10, 3 }
  0xcc   : > { %2315 = vmatpush1.bf16.msra.mxu0 %v3906_v1  ;;  %1187 = vmatprep.subr.bf16.mxu1 %v3911_v3  ;;  %v3969_v1 = vld [vmem:[%s5240_s1 + $0x3c0] ss:$8 sps:$4 sm:$0xff]  }
  0xcd   : > { %2316 = vmatprep.subr.bf16.mxu0 %v3914_v4  ;;  %v4870_v9 = vsel %vm1012_vm4, %v2411_v16, %v2412_v32  ;;  %v3972_v3 = vld [vmem:[%s5240_s1 + $0x7c0] ss:$8 sps:$4 sm:$0xff]   ;;  %v3977_v4 = vld [vmem:[%s5240_s1 + $0x3d4] ss:$8 sps:$4 sm:$0xff]  }
  0xce   : > { %945 = vmatmul.mubr.bf16.gmra.mrb[4].mxu1 %v733_v22  ;;  %v3941_v22 = vld [vmem:[%s5240_s1 + $0x374] ss:$8 sps:$4 sm:$0xff]   ;;  %v3981_v16 = vld [vmem:[%s5240_s1 + $0x3e0] ss:$8 sps:$4 sm:$0xff]  }
  0xcf   : > { %2060 = vmatmul.mubr.bf16.gmra.mrb[4].mxu0 %v1848_v39  ;;  %1188 = vmatpush1.bf16.msra.mxu1 %v3909_v54  ;;  %v3942_v39 = vld [vmem:[%s5240_s1 + $0x770] ss:$8 sps:$4 sm:$0xff]  }
  0xd0   : > { %2317 = vmatpush1.bf16.msra.mxu0 %v3912_v60  ;;  %1189 = vmatprep.subr.bf16.mxu1 %v3917_v12  ;;  %v3975_v54 = vld [vmem:[%s5240_s1 + $0x3d0] ss:$8 sps:$4 sm:$0xff]   ;;  %v3986_v12 = vld [vmem:[%s5240_s1 + $0x7e4] ss:$8 sps:$4 sm:$0xff]  }
  0xd1   : > { %2318 = vmatprep.subr.bf16.mxu0 %v3920_v13  ;;  %1215 = vmatprep.mubr.bf16.mxu1 %v1018_v17  ;;  %v3978_v60 = vld [vmem:[%s5240_s1 + $0x7d0] ss:$8 sps:$4 sm:$0xff]   ;;  %v2117_v13 = vrot.slane %v2115_v7, 2  ;;  %v3984_v17 = vld [vmem:[%s5240_s1 + $0x7e0] ss:$8 sps:$4 sm:$0xff]  }
  0xd2   : > { %2344 = vmatprep.mubr.bf16.mxu0 %v2147_v18  ;;  %v3117_v18 = vcombine.low %v4761_v50, %v4808_v55  ;;  %v3990_v50 = vld [vmem:[%s5240_s1 + $0x7f0] ss:$8 sps:$4 sm:$0xff]  }
  0xd3   : > { %1190 = vmatpush1.bf16.msra.mxu1 %v3915_v0  ;;  %v2125_v0 = vrot.slane %v2123_v23, 2 }
  0xd4   : > { %2319 = vmatpush1.bf16.msra.mxu0 %v3918_v53  ;;  %1191 = vmatprep.subr.bf16.mxu1 %v3923_v21  ;;  %v2128_v53 = vrot.slane %v2126_v28, 3  ;;  %v3989_v21 = vld [vmem:[%s5240_s1 + $0x3f4] ss:$8 sps:$4 sm:$0xff]   ;;  %v1014_v55 = vrot.slane %v3117_v18, 3 }
  0xd5   : > { %2320 = vmatprep.subr.bf16.mxu0 %v3926_v25  ;;  %v3992_v25 = vld [vmem:[%s5240_s1 + $0x7f4] ss:$8 sps:$4 sm:$0xff]  }
  0xd7   : > { %1192 = vmatpush1.bf16.msra.mxu1 %v3921_v26  ;;  %v3987_v26 = vld [vmem:[%s5240_s1 + $0x3f0] ss:$8 sps:$4 sm:$0xff]  }
  0xd8   : > { %2321 = vmatpush1.bf16.msra.mxu0 %v3924_v27  ;;  %1193 = vmatprep.subr.bf16.mxu1 %v3929_v56  ;;  %v1013_v27 = vrot.slane %v4299_v14, 3  ;;  %v2121_v56 = vor.u32 %v2120_v15, %v2117_v13  ;;  %v4002_v14 = vld [vmem:[%s5240_s1 + $0x814] ss:$8 sps:$4 sm:$0xff]  }
  0xd9   : > { %2322 = vmatprep.subr.bf16.mxu0 %v3932_v29  ;;  %v2129_v29 = vor.u32 %v2128_v53, %v2125_v0 }
  0xdb   : > { %1194 = vmatpush1.bf16.msra.mxu1 %v3927_v30  ;;  %v3999_v30 = vld [vmem:[%s5240_s1 + $0x804] ss:$8 sps:$4 sm:$0xff]  }
  0xdc   : > { %2323 = vmatpush1.bf16.msra.mxu0 %v3930_v33  ;;  %1195 = vmatprep.subr.bf16.mxu1 %v3935_v34  ;;  %v1015_v33 = vsel %vm1012_vm4, %v1013_v27, %v1014_v55  ;;  %v2130_v34 = vsel %vm2113_vm5, %v2121_v56, %v2129_v29 }
  0xdd   : > { %2324 = vmatprep.subr.bf16.mxu0 %v3938_v35  ;;  %v3997_v35 = vld [vmem:[%s5240_s1 + $0x800] ss:$8 sps:$4 sm:$0xff]  }
  0xdf   : > { %1196 = vmatpush1.bf16.msra.mxu1 %v3933_v19  ;;  %v4000_v19 = vld [vmem:[%s5240_s1 + $0x810] ss:$8 sps:$4 sm:$0xff]  }
  0xe0   : > { %2325 = vmatpush1.bf16.msra.mxu0 %v3936_v36  ;;  %1197 = vmatprep.subr.bf16.mxu1 %v3941_v22  ;;  %v4005_v36 = vld [vmem:[%s5240_s1 + $0x824] ss:$8 sps:$4 sm:$0xff]   ;;  %v4003_v22 = vld [vmem:[%s5240_s1 + $0x820] ss:$8 sps:$4 sm:$0xff]  }
  0xe1   : > { %2326 = vmatprep.subr.bf16.mxu0 %v3944_v24  ;;  %v4008_v24 = vld [vmem:[%s5240_s1 + $0x834] ss:$8 sps:$4 sm:$0xff]  }
  0xe3   : > { %1198 = vmatpush1.bf16.msra.mxu1 %v3939_v38  ;;  %v4009_v38 = vld [vmem:[%s5240_s1 + $0x840] ss:$8 sps:$4 sm:$0xff]  }
  0xe4   : > { %2327 = vmatpush1.bf16.msra.mxu0 %v3942_v39  ;;  %1199 = vmatprep.subr.bf16.mxu1 %v3947_v40  ;;  %v4014_v39 = vld [vmem:[%s5240_s1 + $0x854] ss:$8 sps:$4 sm:$0xff]  }
  0xe5   : > { %2328 = vmatprep.subr.bf16.mxu0 %v3950_v41  ;;  %v4020_v40 = vld [vmem:[%s5240_s1 + $0x874] ss:$8 sps:$4 sm:$0xff]   ;;  %v4018_v41 = vld [vmem:[%s5240_s1 + $0x870] ss:$8 sps:$4 sm:$0xff]  }
  0xe7   : > { %1200 = vmatpush1.bf16.msra.mxu1 %v3945_v42  ;;  %v4023_v42 = vld [vmem:[%s5240_s1 + $0x884] ss:$8 sps:$4 sm:$0xff]  }
  0xe8   : > { %2329 = vmatpush1.bf16.msra.mxu0 %v3948_v43  ;;  %1201 = vmatprep.subr.bf16.mxu1 %v3953_v44  ;;  %v4021_v43 = vld [vmem:[%s5240_s1 + $0x880] ss:$8 sps:$4 sm:$0xff]   ;;  %v4026_v44 = vld [vmem:[%s5240_s1 + $0x894] ss:$8 sps:$4 sm:$0xff]  }
  0xe9   : > { %2330 = vmatprep.subr.bf16.mxu0 %v3956_v45  ;;  %v4024_v45 = vld [vmem:[%s5240_s1 + $0x890] ss:$8 sps:$4 sm:$0xff]  }
  0xeb   : > { %1202 = vmatpush1.bf16.msra.mxu1 %v3951_v46  ;;  %v4029_v46 = vld [vmem:[%s5240_s1 + $0x8a4] ss:$8 sps:$4 sm:$0xff]  }
  0xec   : > { %2331 = vmatpush1.bf16.msra.mxu0 %v3954_v47  ;;  %1203 = vmatprep.subr.bf16.mxu1 %v3959_v48  ;;  %v4027_v47 = vld [vmem:[%s5240_s1 + $0x8a0] ss:$8 sps:$4 sm:$0xff]   ;;  %v4032_v48 = vld [vmem:[%s5240_s1 + $0x8b4] ss:$8 sps:$4 sm:$0xff]  }
  0xed   : > { %2332 = vmatprep.subr.bf16.mxu0 %v3962_v51  ;;  %v4030_v51 = vld [vmem:[%s5240_s1 + $0x8b0] ss:$8 sps:$4 sm:$0xff]  }
  0xef   : > { %1204 = vmatpush1.bf16.msra.mxu1 %v3957_v52  ;;  %v4035_v52 = vld [vmem:[%s5240_s1 + $0x8c4] ss:$8 sps:$4 sm:$0xff]  }
  0xf0   : > { %2333 = vmatpush1.bf16.msra.mxu0 %v3960_v49  ;;  %1205 = vmatprep.subr.bf16.mxu1 %v3965_v57  ;;  %v4033_v49 = vld [vmem:[%s5240_s1 + $0x8c0] ss:$8 sps:$4 sm:$0xff]   ;;  %v4038_v57 = vld [vmem:[%s5240_s1 + $0x8d4] ss:$8 sps:$4 sm:$0xff]  }
  0xf1   : > { %2334 = vmatprep.subr.bf16.mxu0 %v3968_v58  ;;  %v4036_v58 = vld [vmem:[%s5240_s1 + $0x8d0] ss:$8 sps:$4 sm:$0xff]  }
  0xf3   : > { %1206 = vmatpush1.bf16.msra.mxu1 %v3963_v59  ;;  %v4041_v59 = vld [vmem:[%s5240_s1 + $0x8e4] ss:$8 sps:$4 sm:$0xff]  }
  0xf4   : > { %2335 = vmatpush1.bf16.msra.mxu0 %v3966_v61  ;;  %1207 = vmatprep.subr.bf16.mxu1 %v3971_v62  ;;  %v4039_v61 = vld [vmem:[%s5240_s1 + $0x8e0] ss:$8 sps:$4 sm:$0xff]   ;;  %v4044_v62 = vld [vmem:[%s5240_s1 + $0x8f4] ss:$8 sps:$4 sm:$0xff]  }
  0xf5   : > { %2336 = vmatprep.subr.bf16.mxu0 %v3974_v63  ;;  %v4042_v63 = vld [vmem:[%s5240_s1 + $0x8f0] ss:$8 sps:$4 sm:$0xff]  }
  0xf7   : > { %1208 = vmatpush1.bf16.msra.mxu1 %v3969_v1 }
  0xf8   : > { %2337 = vmatpush1.bf16.msra.mxu0 %v3972_v3  ;;  %1209 = vmatprep.subr.bf16.mxu1 %v3977_v4 }
  0xf9   : > { %2338 = vmatprep.subr.bf16.mxu0 %v3980_v2 }
  0xfb   : > { %1210 = vmatpush1.bf16.msra.mxu1 %v3975_v54 }
  0xfc   : > { %2339 = vmatpush1.bf16.msra.mxu0 %v3978_v60  ;;  %1211 = vmatprep.subr.bf16.mxu1 %v3983_v31 }
  0xfd   : > { %2340 = vmatprep.subr.bf16.mxu0 %v3986_v12 }
  0xff   : > { %1212 = vmatpush1.bf16.msra.mxu1 %v3981_v16 }
 0x100   : > { %2341 = vmatpush1.bf16.msra.mxu0 %v3984_v17  ;;  %1213 = vmatprep.subr.bf16.mxu1 %v3989_v21 }
 0x101   : > { %2342 = vmatprep.subr.bf16.mxu0 %v3992_v25 }
 0x103   : > { %1214 = vmatpush1.bf16.msra.mxu1 %v3987_v26 }
 0x104   : > { %2343 = vmatpush1.bf16.msra.mxu0 %v3990_v50  ;;  %3487 = vmatprep.subr.bf16.mxu1 %v3999_v30 }
 0x105   : > { %2578 = vmatprep.subr.bf16.mxu0 %v3999_v30 }
 0x106   : > { %1216 = vmatmul.mubr.bf16.vlgmr.msra.gmra.mrb[0].mxu1 %v1015_v33 }
 0x107   : > { %2345 = vmatmul.mubr.bf16.vlgmr.msra.gmra.mrb[0].mxu0 %v2130_v34  ;;  %3503 = vmatpush1.bf16.msra.mxu1 %v3997_v35 }
 0x108   : > { %2579 = vmatpush1.bf16.msra.mxu0 %v3997_v35  ;;  %3488 = vmatprep.subr.bf16.mxu1 %v4002_v14 }
 0x109   : > { %2580 = vmatprep.subr.bf16.mxu0 %v4002_v14  ;;  %1225 = vmatprep.mubr.bf16.mxu1 %v4834_v6  ;;  %v4006_v6 = vld [vmem:[%s5240_s1 + $0x830] ss:$8 sps:$4 sm:$0xff]  }
 0x10a   : > { %2354 = vmatprep.mubr.bf16.mxu0 %v4836_v8  ;;  %v4011_v8 = vld [vmem:[%s5240_s1 + $0x844] ss:$8 sps:$4 sm:$0xff]  }
 0x10b   : > { %3504 = vmatpush1.bf16.msra.mxu1 %v4000_v19 }
 0x10c   : > { %2581 = vmatpush1.bf16.msra.mxu0 %v4000_v19  ;;  %3489 = vmatprep.subr.bf16.mxu1 %v4005_v36 }
 0x10d   : > { %2582 = vmatprep.subr.bf16.mxu0 %v4005_v36 }
 0x10e   : > { %1226 = vmatmul.mubr.bf16.gmra.mrb[4].mxu1 %v1014_v55 }
 0x10f   : > { %2355 = vmatmul.mubr.bf16.gmra.mrb[4].mxu0 %v2129_v29  ;;  %3505 = vmatpush1.bf16.msra.mxu1 %v4003_v22 }
 0x110   : > { %2583 = vmatpush1.bf16.msra.mxu0 %v4003_v22  ;;  %3490 = vmatprep.subr.bf16.mxu1 %v4008_v24 }
 0x111   : > { %2584 = vmatprep.subr.bf16.mxu0 %v4008_v24  ;;  %2610 = vmatprep.mubr.bf16.mxu0 %v4870_v9  ;;  %v4012_v9 = vld [vmem:[%s5240_s1 + $0x850] ss:$8 sps:$4 sm:$0xff]  }
 0x112   : > { %2620 = vmatprep.mubr.bf16.mxu1 %v2412_v32  ;;  %v4015_v32 = vld [vmem:[%s5240_s1 + $0x860] ss:$8 sps:$4 sm:$0xff]  }
 0x113   : > { %3506 = vmatpush1.bf16.msra.mxu1 %v4006_v6 }
 0x114   : > { %2585 = vmatpush1.bf16.msra.mxu0 %v4006_v6  ;;  %3491 = vmatprep.subr.bf16.mxu1 %v4011_v8 }
 0x115   : > { %2586 = vmatprep.subr.bf16.mxu0 %v4011_v8 }
 0x117   : > { %3507 = vmatpush1.bf16.msra.mxu1 %v4009_v38 }
 0x118   : > { %2587 = vmatpush1.bf16.msra.mxu0 %v4009_v38  ;;  %3492 = vmatprep.subr.bf16.mxu1 %v4014_v39 }
 0x119   : > { %2588 = vmatprep.subr.bf16.mxu0 %v4014_v39 }
 0x11b   : > { %3508 = vmatpush1.bf16.msra.mxu1 %v4012_v9 }
 0x11c   : > { %2589 = vmatpush1.bf16.msra.mxu0 %v4012_v9  ;;  %3493 = vmatprep.subr.bf16.mxu1 %v4017_v37 }
 0x11d   : > { %2590 = vmatprep.subr.bf16.mxu0 %v4017_v37 }
 0x11f   : > { %3509 = vmatpush1.bf16.msra.mxu1 %v4015_v32 }
 0x120   : > { %2591 = vmatpush1.bf16.msra.mxu0 %v4015_v32  ;;  %3494 = vmatprep.subr.bf16.mxu1 %v4020_v40 }
 0x121   : > { %2592 = vmatprep.subr.bf16.mxu0 %v4020_v40 }
 0x123   : > { %3510 = vmatpush1.bf16.msra.mxu1 %v4018_v41 }
 0x124   : > { %2593 = vmatpush1.bf16.msra.mxu0 %v4018_v41  ;;  %3495 = vmatprep.subr.bf16.mxu1 %v4023_v42 }
 0x125   : > { %2594 = vmatprep.subr.bf16.mxu0 %v4023_v42 }
 0x127   : > { %3511 = vmatpush1.bf16.msra.mxu1 %v4021_v43 }
 0x128   : > { %2595 = vmatpush1.bf16.msra.mxu0 %v4021_v43  ;;  %3496 = vmatprep.subr.bf16.mxu1 %v4026_v44 }
 0x129   : > { %2596 = vmatprep.subr.bf16.mxu0 %v4026_v44 }
 0x12b   : > { %3512 = vmatpush1.bf16.msra.mxu1 %v4024_v45 }
 0x12c   : > { %2597 = vmatpush1.bf16.msra.mxu0 %v4024_v45  ;;  %3497 = vmatprep.subr.bf16.mxu1 %v4029_v46 }
 0x12d   : > { %2598 = vmatprep.subr.bf16.mxu0 %v4029_v46 }
 0x12f   : > { %3513 = vmatpush1.bf16.msra.mxu1 %v4027_v47 }
 0x130   : > { %2599 = vmatpush1.bf16.msra.mxu0 %v4027_v47  ;;  %3498 = vmatprep.subr.bf16.mxu1 %v4032_v48 }
 0x131   : > { %2600 = vmatprep.subr.bf16.mxu0 %v4032_v48 }
 0x133   : > { %3514 = vmatpush1.bf16.msra.mxu1 %v4030_v51 }
 0x134   : > { %2601 = vmatpush1.bf16.msra.mxu0 %v4030_v51  ;;  %3499 = vmatprep.subr.bf16.mxu1 %v4035_v52 }
 0x135   : > { %2602 = vmatprep.subr.bf16.mxu0 %v4035_v52 }
 0x137   : > { %3515 = vmatpush1.bf16.msra.mxu1 %v4033_v49 }
 0x138   : > { %2603 = vmatpush1.bf16.msra.mxu0 %v4033_v49  ;;  %3500 = vmatprep.subr.bf16.mxu1 %v4038_v57 }
 0x139   : > { %2604 = vmatprep.subr.bf16.mxu0 %v4038_v57 }
 0x13b   : > { %3516 = vmatpush1.bf16.msra.mxu1 %v4036_v58 }
 0x13c   : > { %2605 = vmatpush1.bf16.msra.mxu0 %v4036_v58  ;;  %3501 = vmatprep.subr.bf16.mxu1 %v4041_v59 }
 0x13d   : > { %2606 = vmatprep.subr.bf16.mxu0 %v4041_v59 }
 0x13f   : > { %3517 = vmatpush1.bf16.msra.mxu1 %v4039_v61 }
 0x140   : > { %2607 = vmatpush1.bf16.msra.mxu0 %v4039_v61  ;;  %3502 = vmatprep.subr.bf16.mxu1 %v4044_v62 }
 0x141   : > { %2608 = vmatprep.subr.bf16.mxu0 %v4044_v62 }
 0x143   : > { %3518 = vmatpush1.bf16.msra.mxu1 %v4042_v63 }
 0x144   : > { %2609 = vmatpush1.bf16.msra.mxu0 %v4042_v63 }
 0x146   : > { %2621 = vmatmul.mubr.bf16.vlgmr.msra.gmra.mrb[8].mxu1 %v2409_v11 }
 0x147   : > { %2611 = vmatmul.mubr.bf16.vlgmr.msra.gmra.mrb[0].mxu0 %v4875_v20 }
 0x1d9   : > { %v1217_v1 = vpop.f32.mrb[0].mxu1 }
 0x1da   : > { %v1219_v3 = vpop.f32.mrb[1].mxu1 }
 0x1db   : > { %v5134_v4 = vpop.f32.mrb[2].mxu1 }
 0x1dc   : > { %v5136_v2 = vpop.f32.mrb[3].mxu1 }
 0x1e1   : > { %v1227_v7 = vpop.f32.mrb[4].mxu1 }
 0x1e2   : > { %v2356_v10 = vpop.f32.mrb[4].mxu0  ;;  %v1229_v60 = vpop.f32.mrb[5].mxu1 }
 0x1e3   : > { %v3523_v54 = vadd.f32 %v2356_v10, %v1227_v7  ;;  %v2358_v23 = vpop.f32.mrb[5].mxu0  ;;  %v1231_v31 = vpop.f32.mrb[6].mxu1 }
 0x1e4   : > { %v3525_v28 = vadd.f32 %v2358_v23, %v1229_v60  ;;  %v2360_v12 = vpop.f32.mrb[6].mxu0  ;;  %v1232_v13 = vpop.f32.mrb[7].mxu1 }
 0x1e5   : > { %v2361_v15 = vpop.f32.mrb[7].mxu0 }
 0x219   : > { %v2622_v5 = vpop.f32.mrb[8].mxu1 }
 0x21a   : > { %v2612_v20 = vpop.f32.mrb[0].mxu0  ;;  %v5140_v16 = vadd.f32 %v3523_v54, %v2622_v5  ;;  %v2624_v18 = vpop.f32.mrb[9].mxu1 }
 0x21b   : > { %v5138_v11 = vadd.f32 %v2612_v20, %v1217_v1  ;;  %v2614_v17 = vpop.f32.mrb[1].mxu0  ;;  %v5144_v53 = vadd.f32 %v3525_v28, %v2624_v18  ;;  %v2626_v25 = vpop.f32.mrb[10].mxu1 }
 0x21c   : > { %v5142_v0 = vadd.f32 %v2614_v17, %v1219_v3  ;;  %v2616_v21 = vpop.f32.mrb[2].mxu0  ;;  %v2771_v55 = vrot.slane %v5140_v16, 2  ;;  %v2627_v56 = vpop.f32.mrb[11].mxu1  ;;  %v2791_v30 = vmul.f32 %v5140_v16, %v5140_v16 }
 0x21d   : > { %v2636_v26 = vsel %vm2635_vm6, %v5138_v11, 0.0  ;;  %v5150_v50 = vmul.f32 %v5138_v11, %v5138_v11  ;;  %v2618_v27 = vpop.f32.mrb[3].mxu0  ;;  %v2772_v43 = vrot.slane %v5144_v53, 2  ;;  %v2792_v47 = vmul.f32 %v5144_v53, %v5144_v53 }
 0x21e   : > { %v2637_v29 = vrot.slane %v2636_v26, 4  ;;  %v2643_v33 = vsel %vm2635_vm6, %v5142_v0, 0.0  ;;  %v5159_v34 = vmul.f32 %v5142_v0, %v5142_v0  ;;  %v2775_v14 = vsel %vm2635_vm6, %v2771_v55, 0.0 }
 0x21f   : > { %v2654_v35 = vsel %vm2635_vm6, %v5150_v50, 0.0  ;;  %v2644_v19 = vrot.slane %v2643_v33, 4  ;;  %v2776_v24 = vrot.slane %v2775_v14, 4  ;;  %v2795_v6 = vrot.slane %v2791_v30, 2 }
 0x220   : > { %v2638_v36 = vadd.f32 %v2637_v29, %v2636_v26  ;;  %v2655_v22 = vrot.slane %v2654_v35, 4  ;;  %v2661_v38 = vsel %vm2635_vm6, %v5159_v34, 0.0  ;;  %v2782_v49 = vsel %vm2635_vm6, %v2772_v43, 0.0 }
 0x221   : > { %v2645_v8 = vadd.f32 %v2644_v19, %v2643_v33  ;;  %v2777_v37 = vadd.f32 %v2776_v24, %v2775_v14  ;;  %v2799_v32 = vsel %vm2635_vm6, %v2795_v6, 0.0  ;;  %v2662_v42 = vrot.slane %v2661_v38, 4 }
 0x222   : > { %v2639_v39 = vrot.slane %v2638_v36, 2  ;;  %v2656_v9 = vadd.f32 %v2655_v22, %v2654_v35  ;;  %v2800_v40 = vrot.slane %v2799_v32, 4  ;;  %v2783_v59 = vrot.slane %v2782_v49, 4 }
 0x223   : > { %v2646_v41 = vrot.slane %v2645_v8, 2  ;;  %v2778_v46 = vrot.slane %v2777_v37, 2  ;;  %v2663_v52 = vadd.f32 %v2662_v42, %v2661_v38  ;;  %v2796_v3 = vrot.slane %v2792_v47, 2 }
 0x224   : > { %v2640_v44 = vadd.f32 %v2639_v39, %v2638_v36  ;;  %v2657_v45 = vrot.slane %v2656_v9, 2  ;;  %v2801_v48 = vadd.f32 %v2800_v40, %v2799_v32  ;;  %v2675_v10 = vrot.slane %v5138_v11, 6 }
 0x225   : > { %v2647_v51 = vadd.f32 %v2646_v41, %v2645_v8  ;;  %v2779_v58 = vadd.f32 %v2778_v46, %v2777_v37  ;;  %v2664_v1 = vrot.slane %v2663_v52, 2  ;;  %v2705_v54 = vrot.slane %v5150_v50, 6 }
 0x226   : > { %v2658_v57 = vadd.f32 %v2657_v45, %v2656_v9  ;;  %v2641_v61 = vrot.slane %v2640_v44, 1  ;;  %v2802_v62 = vrot.slane %v2801_v48, 2  ;;  %v2678_v23 = vrot.slane %v5142_v0, 6 }
 0x227   : > { %v2648_v63 = vrot.slane %v2647_v51, 1  ;;  %v2780_v60 = vrot.slane %v2779_v58, 1  ;;  %v5174_v28 = vadd.f32 %v2783_v59, %v2782_v49  ;;  %v5177_v31 = vadd.f32 %v2616_v21, %v5134_v4 }
 0x228   : > { %v2659_v7 = vrot.slane %v2658_v57, 1  ;;  %v5180_v12 = vadd.f32 %v2618_v27, %v5136_v2  ;;  %v5182_v13 = vadd.f32 %v2641_v61, %v2640_v44  ;;  %v5184_v15 = vadd.f32 %v2802_v62, %v2801_v48 }
 0x229   : > { %v5186_v20 = vadd.f32 %v2648_v63, %v2647_v51  ;;  %v2708_v5 = vrot.slane %v5159_v34, 6  ;;  %v5189_v17 = vadd.f32 %v2664_v1, %v2663_v52  ;;  %v2806_v18 = vsel %vm2635_vm6, %v2796_v3, 0.0 }
 0x22a   : > { %v2676_v25 = vrot.slane %v5177_v31, 6  ;;  %v2699_v4 = vmul.f32 %v5177_v31, %v5177_v31  ;;  %v5195_v21 = vadd.f32 %v2659_v7, %v2658_v57  ;;  %v5197_v2 = vadd.f32 %v2780_v60, %v2779_v58 }
 0x22b   : > { %v2729_v26 = vrot.slane %v5177_v31, 4  ;;  %v2679_v50 = vrot.slane %v5180_v12, 6  ;;  %v2785_v55 = vrot.slane %v5174_v28, 2  ;;  %v2807_v30 = vrot.slane %v2806_v18, 4 }
 0x22c   : > { %v2677_v27 = vsel %vm2674_vm7, %v2675_v10, %v2676_v25  ;;  %v2706_v56 = vrot.slane %v2699_v4, 6  ;;  %v2749_v29 = vrot.slane %v2699_v4, 4  ;;  %v2700_v35 = vmul.f32 %v5180_v12, %v5180_v12 }
 0x22d   : > { %v2683_v33 = vsel %vm2635_vm6, %v2677_v27, 0.0  ;;  %v2733_v34 = vsel %vm2635_vm6, %v2729_v26, 0.0  ;;  %v2804_v24 = vrot.slane %v5184_v15, 1  ;;  %v2680_v38 = vsel %vm2674_vm7, %v2678_v23, %v2679_v50 }
 0x22e   : > { %v2684_v14 = vrot.slane %v2683_v33, 4  ;;  %v2707_v19 = vsel %vm2674_vm7, %v2705_v54, %v2706_v56  ;;  %v2734_v36 = vrot.slane %v2733_v34, 4  ;;  %v2753_v22 = vsel %vm2635_vm6, %v2749_v29, 0.0 }
 0x22f   : > { %v2713_v6 = vsel %vm2635_vm6, %v2707_v19, 0.0  ;;  %v2754_v8 = vrot.slane %v2753_v22, 4  ;;  %v2690_v32 = vsel %vm2635_vm6, %v2680_v38, 0.0  ;;  %v2808_v40 = vadd.f32 %v2807_v30, %v2806_v18 }
 0x230   : > { %v2685_v39 = vadd.f32 %v2684_v14, %v2683_v33  ;;  %v2714_v9 = vrot.slane %v2713_v6, 4  ;;  %v2735_v37 = vadd.f32 %v2734_v36, %v2733_v34  ;;  %v2691_v42 = vrot.slane %v2690_v32, 4 }
 0x231   : > { %v2755_v41 = vadd.f32 %v2754_v8, %v2753_v22  ;;  %v2709_v43 = vrot.slane %v2700_v35, 6  ;;  %v2730_v47 = vrot.slane %v5180_v12, 4  ;;  %v2750_v49 = vrot.slane %v2700_v35, 4 }
 0x232   : > { %v2686_v44 = vrot.slane %v2685_v39, 2  ;;  %v2715_v45 = vadd.f32 %v2714_v9, %v2713_v6  ;;  %v2736_v46 = vrot.slane %v2735_v37, 2  ;;  %v2692_v51 = vadd.f32 %v2691_v42, %v2690_v32 }
 0x233   : > { %v2756_v48 = vrot.slane %v2755_v41, 2  ;;  %v2710_v52 = vsel %vm2674_vm7, %v2708_v5, %v2709_v43  ;;  %v2740_v3 = vsel %vm2635_vm6, %v2730_v47, 0.0  ;;  %v2666_v23 = vrot.slane %v5189_v17, 1 }
 0x234   : > { %v2687_v57 = vadd.f32 %v2686_v44, %v2685_v39  ;;  %v2716_v58 = vrot.slane %v2715_v45, 2  ;;  %v2737_v59 = vadd.f32 %v2736_v46, %v2735_v37  ;;  %v2720_v61 = vsel %vm2635_vm6, %v2710_v52, 0.0 }
 0x235   : > { %v2757_v62 = vadd.f32 %v2756_v48, %v2755_v41  ;;  %v2693_v63 = vrot.slane %v2692_v51, 2  ;;  %v2721_v1 = vrot.slane %v2720_v61, 4  ;;  %v2741_v60 = vrot.slane %v2740_v3, 4 }
 0x236   : > { %v2688_v7 = vrot.slane %v2687_v57, 1  ;;  %v2717_v10 = vadd.f32 %v2716_v58, %v2715_v45  ;;  %v2738_v54 = vrot.slane %v2737_v59, 1  ;;  %v2760_v5 = vsel %vm2635_vm6, %v2750_v49, 0.0 }
 0x237   : > { %v2694_v18 = vadd.f32 %v2693_v63, %v2692_v51  ;;  %v2722_v25 = vadd.f32 %v2721_v1, %v2720_v61  ;;  %v2758_v50 = vrot.slane %v2757_v62, 1  ;;  %v2742_v27 = vadd.f32 %v2741_v60, %v2740_v3 }
 0x238   : > { %v2689_v4 = vadd.f32 %v2688_v7, %v2687_v57  ;;  %v2718_v26 = vrot.slane %v2717_v10, 1  ;;  %v2809_v56 = vrot.slane %v2808_v40, 2  ;;  %v2761_v33 = vrot.slane %v2760_v5, 4 }
 0x239   : > { %v2695_v29 = vrot.slane %v2694_v18, 1  ;;  %v2723_v30 = vrot.slane %v2722_v25, 2  ;;  %v2739_v14 = vadd.f32 %v2738_v54, %v2737_v59  ;;  %v2743_v19 = vrot.slane %v2742_v27, 2 }
 0x23a   : > { %v2697_v34 = vadd.f32 %v2689_v4, %v5182_v13  ;;  %v2719_v35 = vadd.f32 %v2718_v26, %v2717_v10  ;;  %v2786_v36 = vadd.f32 %v2785_v55, %v5174_v28  ;;  %v2762_v8 = vadd.f32 %v2761_v33, %v2760_v5 }
 0x23b   : > { %v2696_v22 = vadd.f32 %v2695_v29, %v2694_v18  ;;  %v2724_v6 = vadd.f32 %v2723_v30, %v2722_v25  ;;  %v2759_v9 = vadd.f32 %v2758_v50, %v2757_v62  ;;  %v2744_v37 = vadd.f32 %v2743_v19, %v2742_v27 }
 0x23c   : > { %v2727_v38 = vadd.f32 %v2719_v35, %v5195_v21  ;;  %v2747_v39 = vadd.f32 %v2739_v14, %v2697_v34  ;;  %v2810_v32 = vadd.f32 %v2809_v56, %v2808_v40  ;;  %v2763_v43 = vrot.slane %v2762_v8, 2 }
 0x23d   : > { %v2698_v41 = vadd.f32 %v2696_v22, %v5186_v20  ;;  %v2725_v42 = vrot.slane %v2724_v6, 1  ;;  %v2805_v13 = vadd.f32 %v2804_v24, %v5184_v15  ;;  %v2745_v46 = vrot.slane %v2744_v37, 1 }
 0x23e   : > { %v2767_v44 = vadd.f32 %v2759_v9, %v2727_v38  ;;  %v2789_v45 = vadd.f32 %v5197_v2, %v2747_v39  ;;  %v2667_v28 = vadd.f32 %v2666_v23, %v5189_v17  ;;  %v2787_v55 = vrot.slane %v2786_v36, 1 }
 0x23f   : > { %v2726_v47 = vadd.f32 %v2725_v42, %v2724_v6  ;;  %v2764_v48 = vadd.f32 %v2763_v43, %v2762_v8  ;;  %v2811_v52 = vrot.slane %v2810_v32, 1  ;;  %v2746_v40 = vadd.f32 %v2745_v46, %v2744_v37 }
 0x240   : > { %v2813_v21 = vadd.f32 %v2805_v13, %v2767_v44  ;;  %v2815_v51 = vmul.f32 0.0625, %v2789_v45  ;;  %v2788_v24 = vadd.f32 %v2787_v55, %v2786_v36 }
 0x241   : > { %v2728_v49 = vadd.f32 %v2726_v47, %v2667_v28  ;;  %v2765_v57 = vrot.slane %v2764_v48, 1  ;;  %v2748_v61 = vadd.f32 %v2746_v40, %v2698_v41  ;;  %v2812_v63 = vadd.f32 %v2811_v52, %v2810_v32 }
 0x242   : > { %v2817_v20 = vmul.f32 0.0625, %v2813_v21  ;;  %v2819_v58 = vmul.f32 %v2815_v51, %v2815_v51  ;;  %v2825_v59 = vsub.f32 %v5138_v11, %v2815_v51  ;;  %v2827_v15 = vsub.f32 %v5177_v31, %v2815_v51 }
 0x243   : > { %v2829_v2 = vsub.f32 %v5140_v16, %v2815_v51  ;;  %v2766_v17 = vadd.f32 %v2765_v57, %v2764_v48  ;;  %v2790_v3 = vadd.f32 %v2788_v24, %v2748_v61 }
 0x244   : > { %v2821_v62 = vsub.f32 %v2817_v20, %v2819_v58 }
 0x245   : > { %v2768_v1 = vadd.f32 %v2766_v17, %v2728_v49  ;;  %v2816_v54 = vmul.f32 0.0625, %v2790_v3 }
 0x246   : > { %v2823_v7 = vmax.f32 %v2821_v62, 0.0 }
 0x247   : > { %v2814_v10 = vadd.f32 %v2812_v63, %v2768_v1  ;;  %v2820_v18 = vmul.f32 %v2816_v54, %v2816_v54  ;;  %v2826_v11 = vsub.f32 %v5142_v0, %v2816_v54  ;;  %v2828_v31 = vsub.f32 %v5180_v12, %v2816_v54 }
 0x248   : > { %v2831_v60 = vadd.f32 1e-05, %v2823_v7  ;;  %v2830_v16 = vsub.f32 %v5144_v53, %v2816_v54 }
 0x249   : > { %v2818_v23 = vmul.f32 0.0625, %v2814_v10 }
 0x24a   : > { %4047 = vrsqrt.f32 %v2831_v60 }
 0x24b   : > { %v2822_v25 = vsub.f32 %v2818_v23, %v2820_v18 }
 0x24d   : > { %v2824_v5 = vmax.f32 %v2822_v25, 0.0 }
 0x24f   : > { %v2832_v4 = vadd.f32 1e-05, %v2824_v5 }
 0x251   : > { %4049 = vrsqrt.f32 %v2832_v4 }
 0x254   : > { %v4048_v26 = vpop.eup %4047 }
 0x255   : > { %v2835_v50 = vmul.f32 %v4048_v26, %v2825_v59  ;;  %v2837_v27 = vmul.f32 %v4048_v26, %v2827_v15  ;;  %v2839_v56 = vmul.f32 %v4048_v26, %v2829_v2 }
 0x257   : > { %v2841_v29 = vmax.f32 %v2835_v50, 0.0  ;;  %v2843_v0 = vmax.f32 %v2837_v27, 0.0  ;;  %v2845_v30 = vmax.f32 %v2839_v56, 0.0 }
 0x259   : > { %2847 = vst [vmem:[%s143_s6] sm:$0xff] %v2841_v29  ;;  %2849 = vst [vmem:[%s143_s6 + $0x10] sm:$0xff] %v2843_v0 }
 0x25a   : > { %2851 = vst [vmem:[%s143_s6 + $0x20] sm:$0x3f] %v2845_v30 }
 0x25b   : > { %v4050_v53 = vpop.eup %4049 }
 0x25c   : > { %v2836_v12 = vmul.f32 %v4050_v53, %v2826_v11  ;;  %v2838_v33 = vmul.f32 %v4050_v53, %v2828_v31  ;;  %v2840_v34 = vmul.f32 %v4050_v53, %v2830_v16 }
 0x25e   : > { %v2842_v35 = vmax.f32 %v2836_v12, 0.0  ;;  %v2844_v14 = vmax.f32 %v2838_v33, 0.0  ;;  %v2846_v19 = vmax.f32 %v2840_v34, 0.0 }
 0x260   : > { %2848 = vst [vmem:[%s143_s6 + $0x8] sm:$0xff] %v2842_v35  ;;  %2850 = vst [vmem:[%s143_s6 + $0x18] sm:$0xff] %v2844_v14 }
 0x261   : > { %2852 = vst [vmem:[%s143_s6 + $0x28] sm:$0x3f] %v2846_v19 }
 0x262 PF: > { %s12_s9 = sadd.s32 1, %s4059_s9  }
 0x263   : > { %p9_p4 = scmp.ge.s32.totalorder %s12_s9, 4  }
 0x265   :  { %11 = sbr.rel (!%p9_p4) target bundleno = 1 (0x1), region = 66 }

// kernel: content_encoder_forward.11
= control target key start
LH: loop header
LB: loop body
LE: loop exit
PB: predicated region body
PF: predicated region fallthrough
CT: control target
= control target key end

     0   :  { %s4147_s12 = smov 0   ;;  %s5313_s0 = inlined_call_operand.vmem [shape: bf16[2,36,256], index: 0, kind: input, shape index: {}]   ;;  %s5314_s1 = inlined_call_operand.vmem [shape: bf16[9,256,256], index: 1, kind: input, shape index: {}]   ;;  %s5315_s2 = inlined_call_operand.vmem [shape: f32[2,22,256], index: 2, kind: input, shape index: {}]   ;;  %s5316_s3 = inlined_call_operand.vmem [shape: f32[2,22,256], index: 3, kind: output, shape index: {}]  }
   0x1 LB: > { %s2973_s13 = sadd.s32 4294967295, %s4125_s12   ;;  %p2977_p0 = scmp.ge.s32.totalorder %s4125_s12, 1  ;;  %s4125_s12 = sphi %s4147_s12, %s13_s12  }
   0x2   : > { %p147_p1 = scmp.lt.s32.totalorder %s4125_s12, 3 }
   0x4   : > { %p148_p2 = pnand %p2977_p0, %p147_p1 }
   0x5   : > { %v3655_v0 = vld [vmem:[%s5314_s1 + $0x104] ss:$8 sps:$4 sm:$0xff] (!%p148_p2)   ;;  %v3659_v2 = vld [vmem:[%s5314_s1 + $0x100] ss:$8 sps:$4 sm:$0xff] (!%p148_p2)   ;;  %v3661_v4 = vld [vmem:[%s5314_s1 + $0x114] ss:$8 sps:$4 sm:$0xff] (!%p148_p2)  }
   0x6   : > { %151 = sbr.rel (%p148_p2) target bundleno = 610 (0x262), region = 32  ;;  %v3657_v1 = vld [vmem:[%s5314_s1 + $0x404] ss:$8 sps:$4 sm:$0xff] (!%p148_p2)   ;;  %468 = vmatprep.subr.bf16.mxu1 (!%p148_p2), %v3655_v0  ;;  %v3660_v3 = vld [vmem:[%s5314_s1 + $0x400] ss:$8 sps:$4 sm:$0xff] (!%p148_p2)   ;;  %p176_p3 = scmp.lt.s32.totalorder (!%p148_p2), %s2973_s13, 1 }
   0x7   : > { %1525 = vmatprep.subr.bf16.mxu0 (!%p148_p2), %v3657_v1  ;;  %469 = vmatpush1.bf16.msra.mxu1 (!%p148_p2), %v3659_v2  ;;  %v3663_v5 = vld [vmem:[%s5314_s1 + $0x414] ss:$8 sps:$4 sm:$0xff] (!%p148_p2)   ;;  %v3665_v6 = vld [vmem:[%s5314_s1 + $0x110] ss:$8 sps:$4 sm:$0xff] (!%p148_p2)   ;;  %v3667_v8 = vld [vmem:[%s5314_s1 + $0x124] ss:$8 sps:$4 sm:$0xff] (!%p148_p2)  }
   0x8   : > { %1526 = vmatpush1.bf16.msra.mxu0 (!%p148_p2), %v3660_v3  ;;  %470 = vmatprep.subr.bf16.mxu1 (!%p148_p2), %v3661_v4  ;;  %v3666_v7 = vld [vmem:[%s5314_s1 + $0x410] ss:$8 sps:$4 sm:$0xff] (!%p148_p2)   ;;  %v3669_v9 = vld [vmem:[%s5314_s1 + $0x424] ss:$8 sps:$4 sm:$0xff] (!%p148_p2)   ;;  %v3671_v10 = vld [vmem:[%s5314_s1 + $0x120] ss:$8 sps:$4 sm:$0xff] (!%p148_p2)  }
   0x9   : > { %1527 = vmatprep.subr.bf16.mxu0 (!%p148_p2), %v3663_v5  ;;  %v3672_v11 = vld [vmem:[%s5314_s1 + $0x420] ss:$8 sps:$4 sm:$0xff] (!%p148_p2)   ;;  %v3673_v12 = vld [vmem:[%s5314_s1 + $0x134] ss:$8 sps:$4 sm:$0xff] (!%p148_p2)   ;;  %v3677_v14 = vld [vmem:[%s5314_s1 + $0x130] ss:$8 sps:$4 sm:$0xff] (!%p148_p2)  }
   0xa   : > { %v3675_v13 = vld [vmem:[%s5314_s1 + $0x434] ss:$8 sps:$4 sm:$0xff] (!%p148_p2)   ;;  %v3678_v15 = vld [vmem:[%s5314_s1 + $0x430] ss:$8 sps:$4 sm:$0xff] (!%p148_p2)   ;;  %v3679_v16 = vld [vmem:[%s5314_s1 + $0x144] ss:$8 sps:$4 sm:$0xff] (!%p148_p2)  }
   0xb   : > { %471 = vmatpush1.bf16.msra.mxu1 (!%p148_p2), %v3665_v6  ;;  %v3681_v17 = vld [vmem:[%s5314_s1 + $0x444] ss:$8 sps:$4 sm:$0xff] (!%p148_p2)   ;;  %v3683_v18 = vld [vmem:[%s5314_s1 + $0x140] ss:$8 sps:$4 sm:$0xff] (!%p148_p2)   ;;  %v3685_v20 = vld [vmem:[%s5314_s1 + $0x154] ss:$8 sps:$4 sm:$0xff] (!%p148_p2)  }
   0xc   : > { %1528 = vmatpush1.bf16.msra.mxu0 (!%p148_p2), %v3666_v7  ;;  %472 = vmatprep.subr.bf16.mxu1 (!%p148_p2), %v3667_v8  ;;  %v3684_v19 = vld [vmem:[%s5314_s1 + $0x440] ss:$8 sps:$4 sm:$0xff] (!%p148_p2)   ;;  %v3687_v21 = vld [vmem:[%s5314_s1 + $0x454] ss:$8 sps:$4 sm:$0xff] (!%p148_p2)   ;;  %v3689_v22 = vld [vmem:[%s5314_s1 + $0x150] ss:$8 sps:$4 sm:$0xff] (!%p148_p2)  }
   0xd   : > { %1529 = vmatprep.subr.bf16.mxu0 %v3669_v9  ;;  %v3690_v23 = vld [vmem:[%s5314_s1 + $0x450] ss:$8 sps:$4 sm:$0xff]   ;;  %v3691_v24 = vld [vmem:[%s5314_s1 + $0x164] ss:$8 sps:$4 sm:$0xff]   ;;  %v3695_v26 = vld [vmem:[%s5314_s1 + $0x160] ss:$8 sps:$4 sm:$0xff]  }
   0xe   : > { %v3693_v25 = vld [vmem:[%s5314_s1 + $0x464] ss:$8 sps:$4 sm:$0xff]   ;;  %v3696_v27 = vld [vmem:[%s5314_s1 + $0x460] ss:$8 sps:$4 sm:$0xff]   ;;  %v3697_v28 = vld [vmem:[%s5314_s1 + $0x174] ss:$8 sps:$4 sm:$0xff]  }
   0xf   : > { %473 = vmatpush1.bf16.msra.mxu1 %v3671_v10  ;;  %v3699_v29 = vld [vmem:[%s5314_s1 + $0x474] ss:$8 sps:$4 sm:$0xff]   ;;  %v3701_v30 = vld [vmem:[%s5314_s1 + $0x170] ss:$8 sps:$4 sm:$0xff]   ;;  %v3703_v32 = vld [vmem:[%s5314_s1 + $0x184] ss:$8 sps:$4 sm:$0xff]  }
  0x10   : > { %1530 = vmatpush1.bf16.msra.mxu0 %v3672_v11  ;;  %474 = vmatprep.subr.bf16.mxu1 %v3673_v12  ;;  %v3702_v31 = vld [vmem:[%s5314_s1 + $0x470] ss:$8 sps:$4 sm:$0xff]   ;;  %v3705_v33 = vld [vmem:[%s5314_s1 + $0x484] ss:$8 sps:$4 sm:$0xff]   ;;  %v3707_v34 = vld [vmem:[%s5314_s1 + $0x180] ss:$8 sps:$4 sm:$0xff]  }
  0x11   : > { %1531 = vmatprep.subr.bf16.mxu0 %v3675_v13  ;;  %v3708_v35 = vld [vmem:[%s5314_s1 + $0x480] ss:$8 sps:$4 sm:$0xff]   ;;  %s5318_s13 = smov (!%p176_p3, %s2973_s13), 1  ;;  %v3709_v36 = vld [vmem:[%s5314_s1 + $0x194] ss:$8 sps:$4 sm:$0xff]   ;;  %vm778_vm2 = vcmask 1046528  }
  0x12   : > { %v3711_v37 = vld [vmem:[%s5314_s1 + $0x494] ss:$8 sps:$4 sm:$0xff]   ;;  %v3713_v38 = vld [vmem:[%s5314_s1 + $0x190] ss:$8 sps:$4 sm:$0xff]   ;;  %s3645_s17 = smul.u32 40, %s5318_s13  ;;  %vm1893_vm3 = vcmask 1045504  }
  0x13   : > { %475 = vmatpush1.bf16.msra.mxu1 %v3677_v14  ;;  %v3714_v39 = vld [vmem:[%s5314_s1 + $0x490] ss:$8 sps:$4 sm:$0xff]   ;;  %v3715_v40 = vld [vmem:[%s5314_s1 + $0x1a4] ss:$8 sps:$4 sm:$0xff]   ;;  %v3719_v42 = vld [vmem:[%s5314_s1 + $0x1a0] ss:$8 sps:$4 sm:$0xff]  }
  0x14   : > { %1532 = vmatpush1.bf16.msra.mxu0 %v3678_v15  ;;  %476 = vmatprep.subr.bf16.mxu1 %v3679_v16  ;;  %v3717_v41 = vld [vmem:[%s5314_s1 + $0x4a4] ss:$8 sps:$4 sm:$0xff]   ;;  %v3720_v43 = vld [vmem:[%s5314_s1 + $0x4a0] ss:$8 sps:$4 sm:$0xff]   ;;  %s4297_s30 = scalar_lea.vmem %s5313_s0, %s3645_s17  ;;  %v3721_v44 = vld [vmem:[%s5314_s1 + $0x1b4] ss:$8 sps:$4 sm:$0xff]  }
  0x15   : > { %1533 = vmatprep.subr.bf16.mxu0 %v3681_v17  ;;  %v3723_v45 = vld [vmem:[%s5314_s1 + $0x4b4] ss:$8 sps:$4 sm:$0xff]   ;;  %v3725_v46 = vld [vmem:[%s5314_s1 + $0x1b0] ss:$8 sps:$4 sm:$0xff]   ;;  %v191_v48 = vld [vmem:[%s4297_s30] sm:$0xff]  ;;  %vm1059_vm4 = vcmask 1044480  }
  0x16   : > { %v3726_v47 = vld [vmem:[%s5314_s1 + $0x4b0] ss:$8 sps:$4 sm:$0xff]   ;;  %v4313_v49 = vld [vmem:[%s4297_s30 + $0x8] sm:$0xff]  ;;  %vm273_vm0 = vsmask.f32 7424  ;;  %vm2682_vm6 = vcmask 1043456  }
  0x17   : > { %477 = vmatpush1.bf16.msra.mxu1 %v3683_v18  ;;  %v4316_v50 = vld [vmem:[%s4297_s30 + $0x10] sm:$0xff]  ;;  %v3727_v51 = vld [vmem:[%s5314_s1 + $0x1c4] ss:$8 sps:$4 sm:$0xff]   ;;  %v4325_v53 = vcombine.high %v191_v48, %v4313_v49  ;;  %vm1326_vm1 = vsmask.f32 4352  ;;  %v4350_v0 = vcombine.low %v191_v48, %v4313_v49  ;;  %vm2721_vm7 = vcmask 1041408  }
  0x18   : > { %1534 = vmatpush1.bf16.msra.mxu0 %v3684_v19  ;;  %478 = vmatprep.subr.bf16.mxu1 %v3685_v20  ;;  %v3729_v52 = vld [vmem:[%s5314_s1 + $0x4c4] ss:$8 sps:$4 sm:$0xff]   ;;  %v4329_v54 = vcombine.high %v4316_v50, %v4316_v50  ;;  %v4333_v56 = vld [vmem:[%s4297_s30 + $0x18] sm:$0x77]  ;;  %v3731_v61 = vld [vmem:[%s5314_s1 + $0x1c0] ss:$8 sps:$4 sm:$0xff]   ;;  %v4364_v9 = vcombine.low %v4316_v50, %v4316_v50 }
  0x19   : > { %1535 = vmatprep.subr.bf16.mxu0 %v3687_v21  ;;  %v1006_v55 = vld [vmem:[%s4297_s30] sm:$0x88]  ;;  %v287_v57 = vshrl.u32 %v4325_v53, 16  ;;  %v289_v58 = vshll.u32 %v4325_v53, 16  ;;  %v3250_v63 = vcombine.high %v4316_v50, %v4333_v56  ;;  %v3733_v5 = vld [vmem:[%s5314_s1 + $0x1d4] ss:$8 sps:$4 sm:$0xff]   ;;  %v3249_v19 = vcombine.low %v4316_v50, %v4333_v56 }
  0x1a   : > { %v294_v59 = vshll.u32 %v4329_v54, 16  ;;  %v4339_v60 = vcombine.high %v1006_v55, %v4313_v49  ;;  %v3732_v62 = vld [vmem:[%s5314_s1 + $0x4c0] ss:$8 sps:$4 sm:$0xff]   ;;  %v3735_v6 = vld [vmem:[%s5314_s1 + $0x4d4] ss:$8 sps:$4 sm:$0xff]   ;;  %v4370_v14 = vcombine.low %v1006_v55, %v4313_v49  ;;  %v277_v18 = vshll.u32 %v4350_v0, 16 }
  0x1b   : > { %479 = vmatpush1.bf16.msra.mxu1 %v3689_v22  ;;  %v291_v1 = vrot.slane %v289_v58, 1  ;;  %v1353_v7 = vshrl.u32 %v3250_v63, 16  ;;  %v1356_v8 = vshll.u32 %v3250_v63, 16  ;;  %v3737_v10 = vld [vmem:[%s5314_s1 + $0x1d0] ss:$8 sps:$4 sm:$0xff]   ;;  %s3646_s5 = smul.u32 48, %s5318_s13 }
  0x1c   : > { %1536 = vmatpush1.bf16.msra.mxu0 %v3690_v23  ;;  %480 = vmatprep.subr.bf16.mxu1 %v3691_v24  ;;  %v4352_v2 = vrot.slane %v294_v59, 1  ;;  %v1345_v3 = vshrl.u32 %v4339_v60, 16  ;;  %v1348_v4 = vshll.u32 %v4339_v60, 16  ;;  %v3738_v15 = vld [vmem:[%s5314_s1 + $0x4d0] ss:$8 sps:$4 sm:$0xff]   ;;  %v1328_v23 = vshrl.u32 %v4370_v14, 16 }
  0x1d   : > { %1537 = vmatprep.subr.bf16.mxu0 %v3693_v25  ;;  %v292_v11 = vor.u32 %v291_v1, %v287_v57  ;;  %v1355_v16 = vrot.slane %v1353_v7, 3  ;;  %v1358_v17 = vrot.slane %v1356_v8, 4  ;;  %v3739_v20 = vld [vmem:[%s5314_s1 + $0x1e4] ss:$8 sps:$4 sm:$0xff]   ;;  %v1331_v24 = vshll.u32 %v4370_v14, 16  ;;  %s185_s8 = scalar_lea.vmem %s5315_s2, %s3646_s5  ;;  %s190_s11 = scalar_lea.vmem %s5316_s3, %s3646_s5 }
  0x1e   : > { %v1347_v12 = vrot.slane %v1345_v3, 3  ;;  %v1350_v13 = vrot.slane %v1348_v4, 4  ;;  %v3741_v25 = vld [vmem:[%s5314_s1 + $0x4e4] ss:$8 sps:$4 sm:$0xff]   ;;  %v3758_v55 = vld [vmem:[%s5314_s1 + $0x500] ss:$8 sps:$4 sm:$0xff]  }
  0x1f   : > { %481 = vmatpush1.bf16.msra.mxu1 %v3695_v26  ;;  %v297_v21 = vsel %vm273_vm0, %v292_v11, %v4352_v2  ;;  %v1359_v26 = vor.u32 %v1358_v17, %v1355_v16  ;;  %v3760_v48 = vld [vmem:[%s5314_s1 + $0x504] ss:$8 sps:$4 sm:$0xff]   ;;  %v3767_v59 = vld [vmem:[%s5314_s1 + $0x14] ss:$8 sps:$4 sm:$0xff]   ;;  %v3765_v63 = vld [vmem:[%s5314_s1 + $0x10] ss:$8 sps:$4 sm:$0xff]   ;;  %v3316_v11 = vcombine.high %v4313_v49, %v4316_v50 }
  0x20   : > { %1538 = vmatpush1.bf16.msra.mxu0 %v3696_v27  ;;  %482 = vmatprep.subr.bf16.mxu1 %v3697_v28  ;;  %v1351_v22 = vor.u32 %v1350_v13, %v1347_v12  ;;  %v1336_v27 = vshrl.u32 %v3249_v19, 16  ;;  %v1339_v28 = vshll.u32 %v3249_v19, 16  ;;  %v3768_v1 = vld [vmem:[%s5314_s1 + $0x510] ss:$8 sps:$4 sm:$0xff]   ;;  %v298_v3 = vshrl.u32 %v4364_v9, 16 }
  0x21   : > { %1539 = vmatprep.subr.bf16.mxu0 %v3699_v29  ;;  %v3743_v29 = vld [vmem:[%s5314_s1 + $0x1e0] ss:$8 sps:$4 sm:$0xff]   ;;  %500 = vmatprep.mubr.bf16.mxu1 %v297_v21  ;;  %v3773_v4 = vld [vmem:[%s5314_s1 + $0x24] ss:$8 sps:$4 sm:$0xff]   ;;  %v3779_v8 = vld [vmem:[%s5314_s1 + $0x34] ss:$8 sps:$4 sm:$0xff]  }
  0x22   : > { %v3777_v12 = vld [vmem:[%s5314_s1 + $0x30] ss:$8 sps:$4 sm:$0xff]   ;;  %v3788_v16 = vld [vmem:[%s5314_s1 + $0x544] ss:$8 sps:$4 sm:$0xff]   ;;  %v3783_v17 = vld [vmem:[%s5314_s1 + $0x40] ss:$8 sps:$4 sm:$0xff]  }
  0x23   : > { %483 = vmatpush1.bf16.msra.mxu1 %v3701_v30  ;;  %v3744_v30 = vld [vmem:[%s5314_s1 + $0x4e0] ss:$8 sps:$4 sm:$0xff]   ;;  %v3780_v13 = vld [vmem:[%s5314_s1 + $0x530] ss:$8 sps:$4 sm:$0xff]   ;;  %v3791_v19 = vld [vmem:[%s5314_s1 + $0x54] ss:$8 sps:$4 sm:$0xff]  }
  0x24   : > { %1540 = vmatpush1.bf16.msra.mxu0 %v3702_v31  ;;  %484 = vmatprep.subr.bf16.mxu1 %v3703_v32  ;;  %v3745_v31 = vld [vmem:[%s5314_s1 + $0x1f4] ss:$8 sps:$4 sm:$0xff]   ;;  %v1360_v32 = vsel %vm1326_vm1, %v1351_v22, %v1359_v26  ;;  %v3792_v21 = vld [vmem:[%s5314_s1 + $0x550] ss:$8 sps:$4 sm:$0xff]   ;;  %v3797_v22 = vld [vmem:[%s5314_s1 + $0x64] ss:$8 sps:$4 sm:$0xff]  }
  0x25   : > { %1541 = vmatprep.subr.bf16.mxu0 %v3705_v33  ;;  %v275_v33 = vshrl.u32 %v4350_v0, 16  ;;  %1557 = vmatprep.mubr.bf16.mxu0 %v1360_v32  ;;  %v3807_v32 = vld [vmem:[%s5314_s1 + $0x80] ss:$8 sps:$4 sm:$0xff]   ;;  %vm2160_vm5 = vsmask.f32 5376 }
  0x27   : > { %485 = vmatpush1.bf16.msra.mxu1 %v3707_v34  ;;  %v279_v34 = vrot.slane %v277_v18, 1  ;;  %v3786_v18 = vld [vmem:[%s5314_s1 + $0x540] ss:$8 sps:$4 sm:$0xff]  }
  0x28   : > { %1542 = vmatpush1.bf16.msra.mxu0 %v3708_v35  ;;  %486 = vmatprep.subr.bf16.mxu1 %v3709_v36  ;;  %v282_v35 = vshll.u32 %v4364_v9, 16  ;;  %v1330_v36 = vrot.slane %v1328_v23, 3  ;;  %v3800_v23 = vld [vmem:[%s5314_s1 + $0x564] ss:$8 sps:$4 sm:$0xff]  }
  0x29   : > { %1543 = vmatprep.subr.bf16.mxu0 %v3711_v37  ;;  %v1333_v37 = vrot.slane %v1331_v24, 4  ;;  %v3795_v24 = vld [vmem:[%s5314_s1 + $0x60] ss:$8 sps:$4 sm:$0xff]  }
  0x2b   : > { %487 = vmatpush1.bf16.msra.mxu1 %v3713_v38  ;;  %v1338_v38 = vrot.slane %v1336_v27, 3  ;;  %v3806_v27 = vld [vmem:[%s5314_s1 + $0x574] ss:$8 sps:$4 sm:$0xff]  }
  0x2c   : > { %1544 = vmatpush1.bf16.msra.mxu0 %v3714_v39  ;;  %488 = vmatprep.subr.bf16.mxu1 %v3715_v40  ;;  %v1341_v39 = vrot.slane %v1339_v28, 4  ;;  %v3747_v40 = vld [vmem:[%s5314_s1 + $0x4f4] ss:$8 sps:$4 sm:$0xff]   ;;  %v3801_v28 = vld [vmem:[%s5314_s1 + $0x70] ss:$8 sps:$4 sm:$0xff]  }
  0x2d   : > { %1545 = vmatprep.subr.bf16.mxu0 %v3717_v41  ;;  %v3749_v41 = vld [vmem:[%s5314_s1 + $0x1f0] ss:$8 sps:$4 sm:$0xff]  }
  0x2f   : > { %489 = vmatpush1.bf16.msra.mxu1 %v3719_v42  ;;  %v3750_v42 = vld [vmem:[%s5314_s1 + $0x4f0] ss:$8 sps:$4 sm:$0xff]  }
  0x30   : > { %1546 = vmatpush1.bf16.msra.mxu0 %v3720_v43  ;;  %490 = vmatprep.subr.bf16.mxu1 %v3721_v44  ;;  %v3755_v43 = vld [vmem:[%s5314_s1 + $0x4] ss:$8 sps:$4 sm:$0xff]   ;;  %v280_v44 = vor.u32 %v279_v34, %v275_v33  ;;  %v3810_v33 = vld [vmem:[%s5314_s1 + $0x580] ss:$8 sps:$4 sm:$0xff]   ;;  %v3815_v34 = vld [vmem:[%s5314_s1 + $0x94] ss:$8 sps:$4 sm:$0xff]  }
  0x31   : > { %1547 = vmatprep.subr.bf16.mxu0 %v3723_v45  ;;  %v284_v45 = vrot.slane %v282_v35, 1  ;;  %v3818_v35 = vld [vmem:[%s5314_s1 + $0x594] ss:$8 sps:$4 sm:$0xff]  }
  0x33   : > { %491 = vmatpush1.bf16.msra.mxu1 %v3725_v46  ;;  %v1334_v46 = vor.u32 %v1333_v37, %v1330_v36  ;;  %v285_v57 = vsel %vm273_vm0, %v280_v44, %v284_v45  ;;  %v300_v7 = vor.u32 %v298_v3, %v284_v45  ;;  %v3813_v36 = vld [vmem:[%s5314_s1 + $0x90] ss:$8 sps:$4 sm:$0xff]   ;;  %v3854_v3 = vld [vmem:[%s5314_s1 + $0x5f4] ss:$8 sps:$4 sm:$0xff]  }
  0x34   : > { %1548 = vmatpush1.bf16.msra.mxu0 %v3726_v47  ;;  %492 = vmatprep.subr.bf16.mxu1 %v3727_v51  ;;  %v1342_v47 = vor.u32 %v1341_v39, %v1338_v38  ;;  %v301_v51 = vshrl.u32 %v4329_v54, 16  ;;  %v3816_v37 = vld [vmem:[%s5314_s1 + $0x590] ss:$8 sps:$4 sm:$0xff]   ;;  %v3821_v38 = vld [vmem:[%s5314_s1 + $0xa4] ss:$8 sps:$4 sm:$0xff]  }
  0x35   : > { %1549 = vmatprep.subr.bf16.mxu0 %v3729_v52  ;;  %v3753_v52 = vld [vmem:[%s5314_s1] ss:$8 sps:$4 sm:$0xff]   ;;  %v3824_v39 = vld [vmem:[%s5314_s1 + $0x5a4] ss:$8 sps:$4 sm:$0xff]   ;;  %v3825_v44 = vld [vmem:[%s5314_s1 + $0xb0] ss:$8 sps:$4 sm:$0xff]  }
  0x36   : > { %v1343_v58 = vsel %vm1326_vm1, %v1334_v46, %v1342_v47  ;;  %v3828_v45 = vld [vmem:[%s5314_s1 + $0x5b0] ss:$8 sps:$4 sm:$0xff]   ;;  %v3833_v46 = vld [vmem:[%s5314_s1 + $0xc4] ss:$8 sps:$4 sm:$0xff]  }
  0x37   : > { %493 = vmatpush1.bf16.msra.mxu1 %v3731_v61  ;;  %v3770_v61 = vld [vmem:[%s5314_s1 + $0x514] ss:$8 sps:$4 sm:$0xff]  }
  0x38   : > { %1550 = vmatpush1.bf16.msra.mxu0 %v3732_v62  ;;  %494 = vmatprep.subr.bf16.mxu1 %v3733_v5  ;;  %v303_v62 = vor.u32 %v301_v51, %v4352_v2  ;;  %v3776_v2 = vld [vmem:[%s5314_s1 + $0x524] ss:$8 sps:$4 sm:$0xff]   ;;  %v3771_v5 = vld [vmem:[%s5314_s1 + $0x20] ss:$8 sps:$4 sm:$0xff]  }
  0x39   : > { %1551 = vmatprep.subr.bf16.mxu0 %v3735_v6  ;;  %v3774_v6 = vld [vmem:[%s5314_s1 + $0x520] ss:$8 sps:$4 sm:$0xff]  }
  0x3a   : > { %v3834_v51 = vld [vmem:[%s5314_s1 + $0x5c0] ss:$8 sps:$4 sm:$0xff]  }
  0x3b   : > { %495 = vmatpush1.bf16.msra.mxu1 %v3737_v10  ;;  %v3782_v10 = vld [vmem:[%s5314_s1 + $0x534] ss:$8 sps:$4 sm:$0xff]  }
  0x3c   : > { %1552 = vmatpush1.bf16.msra.mxu0 %v3738_v15  ;;  %496 = vmatprep.subr.bf16.mxu1 %v3739_v20  ;;  %v3785_v15 = vld [vmem:[%s5314_s1 + $0x44] ss:$8 sps:$4 sm:$0xff]   ;;  %v3789_v20 = vld [vmem:[%s5314_s1 + $0x50] ss:$8 sps:$4 sm:$0xff]  }
  0x3d   : > { %1553 = vmatprep.subr.bf16.mxu0 %v3741_v25  ;;  %v3798_v25 = vld [vmem:[%s5314_s1 + $0x560] ss:$8 sps:$4 sm:$0xff]  }
  0x3f   : > { %497 = vmatpush1.bf16.msra.mxu1 %v3743_v29  ;;  %v3804_v29 = vld [vmem:[%s5314_s1 + $0x570] ss:$8 sps:$4 sm:$0xff]  }
  0x40   : > { %1554 = vmatpush1.bf16.msra.mxu0 %v3744_v30  ;;  %498 = vmatprep.subr.bf16.mxu1 %v3745_v31  ;;  %v3809_v30 = vld [vmem:[%s5314_s1 + $0x84] ss:$8 sps:$4 sm:$0xff]  }
  0x41   : > { %1555 = vmatprep.subr.bf16.mxu0 %v3747_v40  ;;  %v3812_v31 = vld [vmem:[%s5314_s1 + $0x584] ss:$8 sps:$4 sm:$0xff]   ;;  %v3819_v40 = vld [vmem:[%s5314_s1 + $0xa0] ss:$8 sps:$4 sm:$0xff]  }
  0x43   : > { %499 = vmatpush1.bf16.msra.mxu1 %v3749_v41  ;;  %v3822_v41 = vld [vmem:[%s5314_s1 + $0x5a0] ss:$8 sps:$4 sm:$0xff]  }
  0x44   : > { %1556 = vmatpush1.bf16.msra.mxu0 %v3750_v42  ;;  %688 = vmatprep.subr.bf16.mxu1 %v3755_v43  ;;  %v3827_v42 = vld [vmem:[%s5314_s1 + $0xb4] ss:$8 sps:$4 sm:$0xff]  }
  0x45   : > { %1783 = vmatprep.subr.bf16.mxu0 %v3760_v48  ;;  %v3830_v43 = vld [vmem:[%s5314_s1 + $0x5b4] ss:$8 sps:$4 sm:$0xff]   ;;  %v3831_v48 = vld [vmem:[%s5314_s1 + $0xc0] ss:$8 sps:$4 sm:$0xff]  }
  0x46   : > { %501 = vmatmul.mubr.bf16.vlgmr.msra.gmra.mrb[0].mxu1 %v285_v57  ;;  %v3837_v57 = vld [vmem:[%s5314_s1 + $0xd0] ss:$8 sps:$4 sm:$0xff]  }
  0x47   : > { %1558 = vmatmul.mubr.bf16.vlgmr.msra.gmra.mrb[0].mxu0 %v1343_v58  ;;  %689 = vmatpush1.bf16.msra.mxu1 %v3753_v52  ;;  %v3839_v52 = vld [vmem:[%s5314_s1 + $0xd4] ss:$8 sps:$4 sm:$0xff]   ;;  %v3840_v58 = vld [vmem:[%s5314_s1 + $0x5d0] ss:$8 sps:$4 sm:$0xff]  }
  0x48   : > { %1784 = vmatpush1.bf16.msra.mxu0 %v3758_v55  ;;  %690 = vmatprep.subr.bf16.mxu1 %v3767_v59  ;;  %v3842_v55 = vld [vmem:[%s5314_s1 + $0x5d4] ss:$8 sps:$4 sm:$0xff]   ;;  %v3845_v59 = vld [vmem:[%s5314_s1 + $0xe4] ss:$8 sps:$4 sm:$0xff]  }
  0x49   : > { %1785 = vmatprep.subr.bf16.mxu0 %v3770_v61  ;;  %510 = vmatprep.mubr.bf16.mxu1 %v303_v62  ;;  %v3848_v61 = vld [vmem:[%s5314_s1 + $0x5e4] ss:$8 sps:$4 sm:$0xff]   ;;  %v3843_v62 = vld [vmem:[%s5314_s1 + $0xe0] ss:$8 sps:$4 sm:$0xff]  }
  0x4a   : > { %1567 = vmatprep.mubr.bf16.mxu0 %v1359_v26  ;;  %v3803_v26 = vld [vmem:[%s5314_s1 + $0x74] ss:$8 sps:$4 sm:$0xff]  }
  0x4b   : > { %691 = vmatpush1.bf16.msra.mxu1 %v3765_v63  ;;  %v3846_v63 = vld [vmem:[%s5314_s1 + $0x5e0] ss:$8 sps:$4 sm:$0xff]  }
  0x4c   : > { %1786 = vmatpush1.bf16.msra.mxu0 %v3768_v1  ;;  %692 = vmatprep.subr.bf16.mxu1 %v3773_v4  ;;  %v3851_v1 = vld [vmem:[%s5314_s1 + $0xf4] ss:$8 sps:$4 sm:$0xff]   ;;  %v3849_v4 = vld [vmem:[%s5314_s1 + $0xf0] ss:$8 sps:$4 sm:$0xff]  }
  0x4d   : > { %1787 = vmatprep.subr.bf16.mxu0 %v3776_v2  ;;  %v3852_v2 = vld [vmem:[%s5314_s1 + $0x5f0] ss:$8 sps:$4 sm:$0xff]  }
  0x4e   : > { %511 = vmatmul.mubr.bf16.gmra.mrb[4].mxu1 %v300_v7  ;;  %v3855_v7 = vld [vmem:[%s5314_s1 + $0x200] ss:$8 sps:$4 sm:$0xff]  }
  0x4f   : > { %1568 = vmatmul.mubr.bf16.gmra.mrb[4].mxu0 %v1342_v47  ;;  %693 = vmatpush1.bf16.msra.mxu1 %v3771_v5  ;;  %v3836_v47 = vld [vmem:[%s5314_s1 + $0x5c4] ss:$8 sps:$4 sm:$0xff]  }
  0x50   : > { %1788 = vmatpush1.bf16.msra.mxu0 %v3774_v6  ;;  %694 = vmatprep.subr.bf16.mxu1 %v3779_v8  ;;  %v3857_v5 = vld [vmem:[%s5314_s1 + $0x204] ss:$8 sps:$4 sm:$0xff]   ;;  %v3315_v8 = vcombine.low %v4313_v49, %v4316_v50 }
  0x51   : > { %1789 = vmatprep.subr.bf16.mxu0 %v3782_v10  ;;  %720 = vmatprep.mubr.bf16.mxu1 %v4325_v53  ;;  %v3794_v53 = vld [vmem:[%s5314_s1 + $0x554] ss:$8 sps:$4 sm:$0xff]   ;;  %v3861_v6 = vld [vmem:[%s5314_s1 + $0x604] ss:$8 sps:$4 sm:$0xff]  }
  0x52   : > { %1815 = vmatprep.mubr.bf16.mxu0 %v3316_v11  ;;  %v193_v10 = vld [vmem:[%s4297_s30 + $0x10] sm:$0x77]  ;;  %v3859_v11 = vld [vmem:[%s5314_s1 + $0x600] ss:$8 sps:$4 sm:$0xff]  }
  0x53   : > { %695 = vmatpush1.bf16.msra.mxu1 %v3777_v12  ;;  %v3865_v12 = vld [vmem:[%s5314_s1 + $0x214] ss:$8 sps:$4 sm:$0xff]  }
  0x54   : > { %1790 = vmatpush1.bf16.msra.mxu0 %v3780_v13  ;;  %696 = vmatprep.subr.bf16.mxu1 %v3785_v15  ;;  %v3868_v13 = vld [vmem:[%s5314_s1 + $0x614] ss:$8 sps:$4 sm:$0xff]   ;;  %v3050_v15 = vcombine.high %v193_v10, %v193_v10 }
  0x55   : > { %1791 = vmatprep.subr.bf16.mxu0 %v3788_v16  ;;  %v3318_v16 = vcombine.high %v4333_v56, %v4333_v56 }
  0x57   : > { %697 = vmatpush1.bf16.msra.mxu1 %v3783_v17  ;;  %v3863_v17 = vld [vmem:[%s5314_s1 + $0x210] ss:$8 sps:$4 sm:$0xff]  }
  0x58   : > { %1792 = vmatpush1.bf16.msra.mxu0 %v3786_v18  ;;  %698 = vmatprep.subr.bf16.mxu1 %v3791_v19  ;;  %v3866_v18 = vld [vmem:[%s5314_s1 + $0x610] ss:$8 sps:$4 sm:$0xff]   ;;  %v4640_v19 = vld [vmem:[%s4297_s30] sm:$0xee] }
  0x59   : > { %1793 = vmatprep.subr.bf16.mxu0 %v3794_v53  ;;  %v3874_v53 = vld [vmem:[%s5314_s1 + $0x624] ss:$8 sps:$4 sm:$0xff]  }
  0x5b   : > { %699 = vmatpush1.bf16.msra.mxu1 %v3789_v20  ;;  %v3116_v20 = vcombine.high %v4640_v19, %v4313_v49 }
  0x5c   : > { %1794 = vmatpush1.bf16.msra.mxu0 %v3792_v21  ;;  %700 = vmatprep.subr.bf16.mxu1 %v3797_v22  ;;  %v3317_v21 = vcombine.low %v4333_v56, %v4333_v56  ;;  %v4653_v22 = vld [vmem:[%s4297_s30 + $0x8] sm:$0xcc] }
  0x5d   : > { %1795 = vmatprep.subr.bf16.mxu0 %v3800_v23  ;;  %v4656_v23 = vld [vmem:[%s4297_s30 + $0x18] sm:$0xff]  ;;  %v4667_v49 = vcombine.high %v4653_v22, %v4316_v50  ;;  %v3872_v56 = vld [vmem:[%s5314_s1 + $0x620] ss:$8 sps:$4 sm:$0xff]  }
  0x5e   : > { %v3880_v50 = vld [vmem:[%s5314_s1 + $0x634] ss:$8 sps:$4 sm:$0xff]  }
  0x5f   : > { %701 = vmatpush1.bf16.msra.mxu1 %v3795_v24  ;;  %v4659_v24 = vld [vmem:[%s4297_s30 + $0x20] sm:$0x11] }
  0x60   : > { %1796 = vmatpush1.bf16.msra.mxu0 %v3798_v25  ;;  %702 = vmatprep.subr.bf16.mxu1 %v3803_v26  ;;  %v3869_v25 = vld [vmem:[%s5314_s1 + $0x220] ss:$8 sps:$4 sm:$0xff]   ;;  %v3049_v26 = vcombine.low %v193_v10, %v193_v10  ;;  %v3928_v10 = vld [vmem:[%s5314_s1 + $0x6b4] ss:$8 sps:$4 sm:$0xff]  }
  0x61   : > { %1797 = vmatprep.subr.bf16.mxu0 %v3806_v27  ;;  %v782_v27 = vrot.slane %v3116_v20, 1  ;;  %v3938_v20 = vld [vmem:[%s5314_s1 + $0x6d0] ss:$8 sps:$4 sm:$0xff]  }
  0x63   : > { %703 = vmatpush1.bf16.msra.mxu1 %v3801_v28  ;;  %v783_v28 = vrot.slane %v4329_v54, 1  ;;  %v3975_v54 = vld [vmem:[%s5314_s1 + $0x320] ss:$8 sps:$4 sm:$0xff]  }
  0x64   : > { %1798 = vmatpush1.bf16.msra.mxu0 %v3804_v29  ;;  %704 = vmatprep.subr.bf16.mxu1 %v3809_v30  ;;  %v3386_v29 = vcombine.high %v4656_v23, %v4659_v24  ;;  %v3877_v30 = vld [vmem:[%s5314_s1 + $0x234] ss:$8 sps:$4 sm:$0xff]  }
  0x65   : > { %1799 = vmatprep.subr.bf16.mxu0 %v3812_v31  ;;  %v1897_v31 = vrot.slane %v4667_v49, 2 }
  0x67   : > { %705 = vmatpush1.bf16.msra.mxu1 %v3807_v32  ;;  %v4681_v32 = vrot.slane %v3386_v29, 2  ;;  %v4117_v29 = vld [vmem:[%s4297_s30 + $0x8] sm:$0xff] }
  0x68   : > { %1800 = vmatpush1.bf16.msra.mxu0 %v3810_v33  ;;  %706 = vmatprep.subr.bf16.mxu1 %v3815_v34  ;;  %v784_v33 = vsel %vm778_vm2, %v782_v27, %v783_v28  ;;  %v3875_v34 = vld [vmem:[%s5314_s1 + $0x230] ss:$8 sps:$4 sm:$0xff]   ;;  %v3946_v27 = vld [vmem:[%s5314_s1 + $0x6e0] ss:$8 sps:$4 sm:$0xff]  }
  0x69   : > { %1801 = vmatprep.subr.bf16.mxu0 %v3818_v35  ;;  %v3878_v35 = vld [vmem:[%s5314_s1 + $0x630] ss:$8 sps:$4 sm:$0xff]  }
  0x6b   : > { %707 = vmatpush1.bf16.msra.mxu1 %v3813_v36  ;;  %v1899_v36 = vsel %vm1893_vm3, %v1897_v31, %v4681_v32 }
  0x6c   : > { %1802 = vmatpush1.bf16.msra.mxu0 %v3816_v37  ;;  %708 = vmatprep.subr.bf16.mxu1 %v3821_v38  ;;  %v3883_v37 = vld [vmem:[%s5314_s1 + $0x244] ss:$8 sps:$4 sm:$0xff]  }
  0x6d   : > { %1803 = vmatprep.subr.bf16.mxu0 %v3824_v39  ;;  %v3886_v38 = vld [vmem:[%s5314_s1 + $0x644] ss:$8 sps:$4 sm:$0xff]   ;;  %v3881_v39 = vld [vmem:[%s5314_s1 + $0x240] ss:$8 sps:$4 sm:$0xff]  }
  0x6f   : > { %709 = vmatpush1.bf16.msra.mxu1 %v3819_v40  ;;  %v3884_v40 = vld [vmem:[%s5314_s1 + $0x640] ss:$8 sps:$4 sm:$0xff]  }
  0x70   : > { %1804 = vmatpush1.bf16.msra.mxu0 %v3822_v41  ;;  %710 = vmatprep.subr.bf16.mxu1 %v3827_v42  ;;  %v3889_v41 = vld [vmem:[%s5314_s1 + $0x254] ss:$8 sps:$4 sm:$0xff]  }
  0x71   : > { %1805 = vmatprep.subr.bf16.mxu0 %v3830_v43  ;;  %v3892_v42 = vld [vmem:[%s5314_s1 + $0x654] ss:$8 sps:$4 sm:$0xff]   ;;  %v3887_v43 = vld [vmem:[%s5314_s1 + $0x250] ss:$8 sps:$4 sm:$0xff]  }
  0x73   : > { %711 = vmatpush1.bf16.msra.mxu1 %v3825_v44  ;;  %v3890_v44 = vld [vmem:[%s5314_s1 + $0x650] ss:$8 sps:$4 sm:$0xff]  }
  0x74   : > { %1806 = vmatpush1.bf16.msra.mxu0 %v3828_v45  ;;  %712 = vmatprep.subr.bf16.mxu1 %v3833_v46  ;;  %v3895_v45 = vld [vmem:[%s5314_s1 + $0x264] ss:$8 sps:$4 sm:$0xff]  }
  0x75   : > { %1807 = vmatprep.subr.bf16.mxu0 %v3836_v47  ;;  %v3898_v46 = vld [vmem:[%s5314_s1 + $0x664] ss:$8 sps:$4 sm:$0xff]   ;;  %v3893_v47 = vld [vmem:[%s5314_s1 + $0x260] ss:$8 sps:$4 sm:$0xff]  }
  0x77   : > { %713 = vmatpush1.bf16.msra.mxu1 %v3831_v48  ;;  %v3896_v48 = vld [vmem:[%s5314_s1 + $0x660] ss:$8 sps:$4 sm:$0xff]  }
  0x78   : > { %1808 = vmatpush1.bf16.msra.mxu0 %v3834_v51  ;;  %714 = vmatprep.subr.bf16.mxu1 %v3839_v52  ;;  %v3901_v51 = vld [vmem:[%s5314_s1 + $0x274] ss:$8 sps:$4 sm:$0xff]  }
  0x79   : > { %1809 = vmatprep.subr.bf16.mxu0 %v3842_v55  ;;  %v3904_v52 = vld [vmem:[%s5314_s1 + $0x674] ss:$8 sps:$4 sm:$0xff]   ;;  %v3899_v55 = vld [vmem:[%s5314_s1 + $0x270] ss:$8 sps:$4 sm:$0xff]  }
  0x7b   : > { %715 = vmatpush1.bf16.msra.mxu1 %v3837_v57  ;;  %v3902_v57 = vld [vmem:[%s5314_s1 + $0x670] ss:$8 sps:$4 sm:$0xff]  }
  0x7c   : > { %1810 = vmatpush1.bf16.msra.mxu0 %v3840_v58  ;;  %716 = vmatprep.subr.bf16.mxu1 %v3845_v59  ;;  %v3907_v58 = vld [vmem:[%s5314_s1 + $0x284] ss:$8 sps:$4 sm:$0xff]  }
  0x7d   : > { %1811 = vmatprep.subr.bf16.mxu0 %v3848_v61  ;;  %v3910_v59 = vld [vmem:[%s5314_s1 + $0x684] ss:$8 sps:$4 sm:$0xff]   ;;  %v3905_v61 = vld [vmem:[%s5314_s1 + $0x280] ss:$8 sps:$4 sm:$0xff]  }
  0x7f   : > { %717 = vmatpush1.bf16.msra.mxu1 %v3843_v62  ;;  %v3908_v62 = vld [vmem:[%s5314_s1 + $0x680] ss:$8 sps:$4 sm:$0xff]  }
  0x80   : > { %1812 = vmatpush1.bf16.msra.mxu0 %v3846_v63  ;;  %718 = vmatprep.subr.bf16.mxu1 %v3851_v1  ;;  %v3913_v63 = vld [vmem:[%s5314_s1 + $0x294] ss:$8 sps:$4 sm:$0xff]  }
  0x81   : > { %1813 = vmatprep.subr.bf16.mxu0 %v3854_v3  ;;  %v3916_v1 = vld [vmem:[%s5314_s1 + $0x694] ss:$8 sps:$4 sm:$0xff]   ;;  %v3911_v3 = vld [vmem:[%s5314_s1 + $0x290] ss:$8 sps:$4 sm:$0xff]  }
  0x83   : > { %719 = vmatpush1.bf16.msra.mxu1 %v3849_v4  ;;  %v3914_v4 = vld [vmem:[%s5314_s1 + $0x690] ss:$8 sps:$4 sm:$0xff]  }
  0x84   : > { %1814 = vmatpush1.bf16.msra.mxu0 %v3852_v2  ;;  %949 = vmatprep.subr.bf16.mxu1 %v3857_v5  ;;  %v3919_v2 = vld [vmem:[%s5314_s1 + $0x2a4] ss:$8 sps:$4 sm:$0xff]  }
  0x85   : > { %2064 = vmatprep.subr.bf16.mxu0 %v3861_v6  ;;  %v3922_v5 = vld [vmem:[%s5314_s1 + $0x6a4] ss:$8 sps:$4 sm:$0xff]   ;;  %v3917_v6 = vld [vmem:[%s5314_s1 + $0x2a0] ss:$8 sps:$4 sm:$0xff]  }
  0x86   : > { %721 = vmatmul.mubr.bf16.vlgmr.msra.gmra.mrb[0].mxu1 %v4350_v0  ;;  %v3871_v0 = vld [vmem:[%s5314_s1 + $0x224] ss:$8 sps:$4 sm:$0xff]  }
  0x87   : > { %1816 = vmatmul.mubr.bf16.vlgmr.msra.gmra.mrb[0].mxu0 %v3315_v8  ;;  %950 = vmatpush1.bf16.msra.mxu1 %v3855_v7  ;;  %v3920_v7 = vld [vmem:[%s5314_s1 + $0x6a0] ss:$8 sps:$4 sm:$0xff]   ;;  %v3925_v8 = vld [vmem:[%s5314_s1 + $0x2b4] ss:$8 sps:$4 sm:$0xff]  }
  0x88   : > { %2065 = vmatpush1.bf16.msra.mxu0 %v3859_v11  ;;  %951 = vmatprep.subr.bf16.mxu1 %v3865_v12  ;;  %v3923_v11 = vld [vmem:[%s5314_s1 + $0x2b0] ss:$8 sps:$4 sm:$0xff]  }
  0x89   : > { %2066 = vmatprep.subr.bf16.mxu0 %v3868_v13  ;;  %730 = vmatprep.mubr.bf16.mxu1 %v3050_v15  ;;  %v3926_v12 = vld [vmem:[%s5314_s1 + $0x6b0] ss:$8 sps:$4 sm:$0xff]   ;;  %v3931_v13 = vld [vmem:[%s5314_s1 + $0x2c4] ss:$8 sps:$4 sm:$0xff]  }
  0x8a   : > { %1825 = vmatprep.mubr.bf16.mxu0 %v3318_v16  ;;  %v3934_v15 = vld [vmem:[%s5314_s1 + $0x6c4] ss:$8 sps:$4 sm:$0xff]   ;;  %v3929_v16 = vld [vmem:[%s5314_s1 + $0x2c0] ss:$8 sps:$4 sm:$0xff]  }
  0x8b   : > { %952 = vmatpush1.bf16.msra.mxu1 %v3863_v17  ;;  %v3932_v17 = vld [vmem:[%s5314_s1 + $0x6c0] ss:$8 sps:$4 sm:$0xff]  }
  0x8c   : > { %2067 = vmatpush1.bf16.msra.mxu0 %v3866_v18  ;;  %953 = vmatprep.subr.bf16.mxu1 %v3871_v0  ;;  %v3937_v18 = vld [vmem:[%s5314_s1 + $0x2d4] ss:$8 sps:$4 sm:$0xff]  }
  0x8d   : > { %2068 = vmatprep.subr.bf16.mxu0 %v3874_v53  ;;  %v3940_v0 = vld [vmem:[%s5314_s1 + $0x6d4] ss:$8 sps:$4 sm:$0xff]   ;;  %v3935_v53 = vld [vmem:[%s5314_s1 + $0x2d0] ss:$8 sps:$4 sm:$0xff]  }
  0x8e   : > { %731 = vmatmul.mubr.bf16.gmra.mrb[4].mxu1 %v3049_v26  ;;  %v3942_v26 = vld [vmem:[%s5314_s1 + $0x2e0] ss:$8 sps:$4 sm:$0xff]  }
  0x8f   : > { %1826 = vmatmul.mubr.bf16.gmra.mrb[4].mxu0 %v3317_v21  ;;  %954 = vmatpush1.bf16.msra.mxu1 %v3869_v25  ;;  %v3944_v21 = vld [vmem:[%s5314_s1 + $0x2e4] ss:$8 sps:$4 sm:$0xff]  }
  0x90   : > { %2069 = vmatpush1.bf16.msra.mxu0 %v3872_v56  ;;  %955 = vmatprep.subr.bf16.mxu1 %v3877_v30  ;;  %v3948_v25 = vld [vmem:[%s5314_s1 + $0x6e4] ss:$8 sps:$4 sm:$0xff]   ;;  %v3953_v56 = vld [vmem:[%s5314_s1 + $0x2f4] ss:$8 sps:$4 sm:$0xff]   ;;  %v3115_v30 = vcombine.low %v4640_v19, %v4117_v29  ;;  %v3951_v19 = vld [vmem:[%s5314_s1 + $0x2f0] ss:$8 sps:$4 sm:$0xff]  }
  0x91   : > { %2070 = vmatprep.subr.bf16.mxu0 %v3880_v50  ;;  %981 = vmatprep.mubr.bf16.mxu1 %v784_v33  ;;  %v4832_v50 = vld [vmem:[%s4297_s30 + $0x10] sm:$0xff]  ;;  %v3385_v33 = vcombine.low %v4656_v23, %v4659_v24 }
  0x92   : > { %2096 = vmatprep.mubr.bf16.mxu0 %v1899_v36  ;;  %v4836_v31 = vcombine.low %v4653_v22, %v4832_v50  ;;  %v3954_v36 = vld [vmem:[%s5314_s1 + $0x6f0] ss:$8 sps:$4 sm:$0xff]   ;;  %v780_v22 = vrot.slane %v4364_v9, 1  ;;  %v779_v24 = vrot.slane %v3115_v30, 1  ;;  %v3998_v29 = vld [vmem:[%s5314_s1 + $0x754] ss:$8 sps:$4 sm:$0xff]  }
  0x93   : > { %956 = vmatpush1.bf16.msra.mxu1 %v3875_v34  ;;  %v2121_v34 = vld [vmem:[%s4297_s30 + $0x20] sm:$0x33]  ;;  %v3993_v30 = vld [vmem:[%s5314_s1 + $0x350] ss:$8 sps:$4 sm:$0xff]  }
  0x94   : > { %2071 = vmatpush1.bf16.msra.mxu0 %v3878_v35  ;;  %957 = vmatprep.subr.bf16.mxu1 %v3883_v37  ;;  %v3956_v35 = vld [vmem:[%s5314_s1 + $0x6f4] ss:$8 sps:$4 sm:$0xff]   ;;  %v4852_v37 = vcombine.high %v4656_v23, %v2121_v34 }
  0x95   : > { %2072 = vmatprep.subr.bf16.mxu0 %v3886_v38  ;;  %v3961_v38 = vld [vmem:[%s5314_s1 + $0x304] ss:$8 sps:$4 sm:$0xff]  }
  0x97   : > { %958 = vmatpush1.bf16.msra.mxu1 %v3881_v39  ;;  %v1895_v39 = vrot.slane %v3385_v33, 2  ;;  %v3996_v33 = vld [vmem:[%s5314_s1 + $0x750] ss:$8 sps:$4 sm:$0xff]  }
  0x98   : > { %2073 = vmatpush1.bf16.msra.mxu0 %v3884_v40  ;;  %959 = vmatprep.subr.bf16.mxu1 %v3889_v41  ;;  %v1894_v40 = vrot.slane %v4836_v31, 2  ;;  %v3968_v41 = vld [vmem:[%s5314_s1 + $0x704] ss:$8 sps:$4 sm:$0xff]  }
  0x99   : > { %2074 = vmatprep.subr.bf16.mxu0 %v3892_v42  ;;  %v3959_v42 = vld [vmem:[%s5314_s1 + $0x300] ss:$8 sps:$4 sm:$0xff]  }
  0x9b   : > { %960 = vmatpush1.bf16.msra.mxu1 %v3887_v43  ;;  %v2179_v43 = vshrl.u32 %v4667_v49, 16 }
  0x9c   : > { %2075 = vmatpush1.bf16.msra.mxu0 %v3890_v44  ;;  %961 = vmatprep.subr.bf16.mxu1 %v3895_v45  ;;  %v3966_v44 = vld [vmem:[%s5314_s1 + $0x700] ss:$8 sps:$4 sm:$0xff]   ;;  %v2182_v45 = vshll.u32 %v4667_v49, 16  ;;  %v3974_v49 = vld [vmem:[%s5314_s1 + $0x714] ss:$8 sps:$4 sm:$0xff]  }
  0x9d   : > { %2076 = vmatprep.subr.bf16.mxu0 %v3898_v46  ;;  %v2187_v46 = vshrl.u32 %v4852_v37, 16 }
  0x9f   : > { %962 = vmatpush1.bf16.msra.mxu1 %v3893_v47  ;;  %v2190_v47 = vshll.u32 %v4852_v37, 16 }
  0xa0   : > { %2077 = vmatpush1.bf16.msra.mxu0 %v3896_v48  ;;  %963 = vmatprep.subr.bf16.mxu1 %v3901_v51  ;;  %v781_v48 = vsel %vm778_vm2, %v779_v24, %v780_v22  ;;  %v1896_v51 = vsel %vm1893_vm3, %v1894_v40, %v1895_v39  ;;  %v4010_v24 = vld [vmem:[%s5314_s1 + $0x774] ss:$8 sps:$4 sm:$0xff]   ;;  %v4013_v40 = vld [vmem:[%s5314_s1 + $0x384] ss:$8 sps:$4 sm:$0xff]  }
  0xa1   : > { %2078 = vmatprep.subr.bf16.mxu0 %v3904_v52  ;;  %v3971_v52 = vld [vmem:[%s5314_s1 + $0x314] ss:$8 sps:$4 sm:$0xff]  }
  0xa3   : > { %964 = vmatpush1.bf16.msra.mxu1 %v3899_v55  ;;  %v4879_v55 = vld [vmem:[%s4297_s30 + $0x18] sm:$0x33] }
  0xa4   : > { %2079 = vmatpush1.bf16.msra.mxu0 %v3902_v57  ;;  %965 = vmatprep.subr.bf16.mxu1 %v3907_v58  ;;  %v2181_v57 = vrot.slane %v2179_v43, 2  ;;  %v3969_v58 = vld [vmem:[%s5314_s1 + $0x310] ss:$8 sps:$4 sm:$0xff]   ;;  %v4014_v43 = vld [vmem:[%s5314_s1 + $0x780] ss:$8 sps:$4 sm:$0xff]  }
  0xa5   : > { %2080 = vmatprep.subr.bf16.mxu0 %v3910_v59  ;;  %v3184_v59 = vcombine.high %v4832_v50, %v4879_v55 }
  0xa7   : > { %966 = vmatpush1.bf16.msra.mxu1 %v3905_v61  ;;  %v2184_v61 = vrot.slane %v2182_v45, 3  ;;  %v4022_v45 = vld [vmem:[%s5314_s1 + $0x794] ss:$8 sps:$4 sm:$0xff]  }
  0xa8   : > { %2081 = vmatpush1.bf16.msra.mxu0 %v3908_v62  ;;  %967 = vmatprep.subr.bf16.mxu1 %v3913_v63  ;;  %v2189_v62 = vrot.slane %v2187_v46, 2  ;;  %v2192_v63 = vrot.slane %v2190_v47, 3  ;;  %v4017_v46 = vld [vmem:[%s5314_s1 + $0x390] ss:$8 sps:$4 sm:$0xff]  }
  0xa9   : > { %2082 = vmatprep.subr.bf16.mxu0 %v3916_v1  ;;  %v3972_v1 = vld [vmem:[%s5314_s1 + $0x710] ss:$8 sps:$4 sm:$0xff]  }
  0xaa   : > { %v4020_v47 = vld [vmem:[%s5314_s1 + $0x790] ss:$8 sps:$4 sm:$0xff]  }
  0xab   : > { %968 = vmatpush1.bf16.msra.mxu1 %v3911_v3  ;;  %v3977_v3 = vld [vmem:[%s5314_s1 + $0x324] ss:$8 sps:$4 sm:$0xff]  }
  0xac   : > { %2083 = vmatpush1.bf16.msra.mxu0 %v3914_v4  ;;  %969 = vmatprep.subr.bf16.mxu1 %v3919_v2  ;;  %v3980_v4 = vld [vmem:[%s5314_s1 + $0x724] ss:$8 sps:$4 sm:$0xff]   ;;  %v1063_v2 = vrot.slane %v4339_v60, 3  ;;  %v3978_v60 = vld [vmem:[%s5314_s1 + $0x720] ss:$8 sps:$4 sm:$0xff]  }
  0xad   : > { %2084 = vmatprep.subr.bf16.mxu0 %v3922_v5  ;;  %v4903_v5 = vcombine.low %v4656_v23, %v2121_v34  ;;  %v4001_v34 = vld [vmem:[%s5314_s1 + $0x364] ss:$8 sps:$4 sm:$0xff]  }
  0xaf   : > { %970 = vmatpush1.bf16.msra.mxu1 %v3917_v6  ;;  %v4905_v6 = vrot.slane %v3184_v59, 3  ;;  %v4029_v59 = vld [vmem:[%s5314_s1 + $0x3b0] ss:$8 sps:$4 sm:$0xff]  }
  0xb0   : > { %2085 = vmatpush1.bf16.msra.mxu0 %v3920_v7  ;;  %971 = vmatprep.subr.bf16.mxu1 %v3925_v8  ;;  %v2185_v7 = vor.u32 %v2184_v61, %v2181_v57  ;;  %v4907_v8 = vor.u32 %v2192_v63, %v2189_v62  ;;  %v4031_v57 = vld [vmem:[%s5314_s1 + $0x3b4] ss:$8 sps:$4 sm:$0xff]   ;;  %v4032_v61 = vld [vmem:[%s5314_s1 + $0x7b0] ss:$8 sps:$4 sm:$0xff]   ;;  %v4037_v62 = vld [vmem:[%s5314_s1 + $0x3c4] ss:$8 sps:$4 sm:$0xff]  }
  0xb1   : > { %2086 = vmatprep.subr.bf16.mxu0 %v3928_v10  ;;  %v2416_v10 = vld [vmem:[%s4297_s30 + $0x8] sm:$0x88] }
  0xb2   : > { %v3517_v23 = vcombine.low %v2416_v10, %v4832_v50  ;;  %v4040_v63 = vld [vmem:[%s5314_s1 + $0x7c4] ss:$8 sps:$4 sm:$0xff]  }
  0xb3   : > { %972 = vmatpush1.bf16.msra.mxu1 %v3923_v11  ;;  %v2456_v11 = vrot.slane %v4903_v5, 3 }
  0xb4   : > { %2087 = vmatpush1.bf16.msra.mxu0 %v3926_v12  ;;  %973 = vmatprep.subr.bf16.mxu1 %v3931_v13  ;;  %v3983_v12 = vld [vmem:[%s5314_s1 + $0x334] ss:$8 sps:$4 sm:$0xff]  }
  0xb5   : > { %2088 = vmatprep.subr.bf16.mxu0 %v3934_v15  ;;  %v3986_v13 = vld [vmem:[%s5314_s1 + $0x734] ss:$8 sps:$4 sm:$0xff]   ;;  %v2455_v15 = vrot.slane %v3517_v23, 3  ;;  %v2170_v23 = vshrl.u32 %v4903_v5, 16 }
  0xb7   : > { %974 = vmatpush1.bf16.msra.mxu1 %v3929_v16 }
  0xb8   : > { %2089 = vmatpush1.bf16.msra.mxu0 %v3932_v17  ;;  %975 = vmatprep.subr.bf16.mxu1 %v3937_v18  ;;  %v1065_v17 = vsel %vm1059_vm4, %v1063_v2, %v4905_v6  ;;  %v2194_v18 = vsel %vm2160_vm5, %v2185_v7, %v4907_v8  ;;  %v4046_v2 = vld [vmem:[%s5314_s1 + $0x7d4] ss:$8 sps:$4 sm:$0xff]   ;;  %v2162_v7 = vshrl.u32 %v4836_v31, 16 }
  0xb9   : > { %2090 = vmatprep.subr.bf16.mxu0 %v3940_v0  ;;  %v3981_v0 = vld [vmem:[%s5314_s1 + $0x330] ss:$8 sps:$4 sm:$0xff]  }
  0xbb   : > { %976 = vmatpush1.bf16.msra.mxu1 %v3935_v53  ;;  %v3984_v53 = vld [vmem:[%s5314_s1 + $0x730] ss:$8 sps:$4 sm:$0xff]  }
  0xbc   : > { %2091 = vmatpush1.bf16.msra.mxu0 %v3938_v20  ;;  %977 = vmatprep.subr.bf16.mxu1 %v3944_v21  ;;  %v4946_v20 = vsel %vm1059_vm4, %v2455_v15, %v2456_v11  ;;  %v3989_v21 = vld [vmem:[%s5314_s1 + $0x344] ss:$8 sps:$4 sm:$0xff]  }
  0xbd   : > { %2092 = vmatprep.subr.bf16.mxu0 %v3948_v25  ;;  %v3992_v25 = vld [vmem:[%s5314_s1 + $0x744] ss:$8 sps:$4 sm:$0xff]  }
  0xbf   : > { %978 = vmatpush1.bf16.msra.mxu1 %v3942_v26  ;;  %v3987_v26 = vld [vmem:[%s5314_s1 + $0x340] ss:$8 sps:$4 sm:$0xff]  }
  0xc0   : > { %2093 = vmatpush1.bf16.msra.mxu0 %v3946_v27  ;;  %979 = vmatprep.subr.bf16.mxu1 %v3953_v56  ;;  %v3990_v27 = vld [vmem:[%s5314_s1 + $0x740] ss:$8 sps:$4 sm:$0xff]   ;;  %v3995_v56 = vld [vmem:[%s5314_s1 + $0x354] ss:$8 sps:$4 sm:$0xff]  }
  0xc1   : > { %2094 = vmatprep.subr.bf16.mxu0 %v3956_v35  ;;  %v4004_v35 = vld [vmem:[%s5314_s1 + $0x764] ss:$8 sps:$4 sm:$0xff]  }
  0xc3   : > { %980 = vmatpush1.bf16.msra.mxu1 %v3951_v19  ;;  %v3999_v19 = vld [vmem:[%s5314_s1 + $0x360] ss:$8 sps:$4 sm:$0xff]  }
  0xc4   : > { %2095 = vmatpush1.bf16.msra.mxu0 %v3954_v36  ;;  %1230 = vmatprep.subr.bf16.mxu1 %v3961_v38  ;;  %v4002_v36 = vld [vmem:[%s5314_s1 + $0x760] ss:$8 sps:$4 sm:$0xff]   ;;  %v4005_v38 = vld [vmem:[%s5314_s1 + $0x370] ss:$8 sps:$4 sm:$0xff]  }
  0xc5   : > { %2359 = vmatprep.subr.bf16.mxu0 %v3968_v41  ;;  %v4016_v41 = vld [vmem:[%s5314_s1 + $0x784] ss:$8 sps:$4 sm:$0xff]  }
  0xc6   : > { %982 = vmatmul.mubr.bf16.vlgmr.msra.gmra.mrb[0].mxu1 %v781_v48  ;;  %v4025_v48 = vld [vmem:[%s5314_s1 + $0x3a4] ss:$8 sps:$4 sm:$0xff]  }
  0xc7   : > { %2097 = vmatmul.mubr.bf16.vlgmr.msra.gmra.mrb[0].mxu0 %v1896_v51  ;;  %1231 = vmatpush1.bf16.msra.mxu1 %v3959_v42  ;;  %v4011_v42 = vld [vmem:[%s5314_s1 + $0x380] ss:$8 sps:$4 sm:$0xff]   ;;  %v4028_v51 = vld [vmem:[%s5314_s1 + $0x7a4] ss:$8 sps:$4 sm:$0xff]  }
  0xc8   : > { %2360 = vmatpush1.bf16.msra.mxu0 %v3966_v44  ;;  %1232 = vmatprep.subr.bf16.mxu1 %v3971_v52  ;;  %v4019_v44 = vld [vmem:[%s5314_s1 + $0x394] ss:$8 sps:$4 sm:$0xff]   ;;  %v4023_v52 = vld [vmem:[%s5314_s1 + $0x3a0] ss:$8 sps:$4 sm:$0xff]  }
  0xc9   : > { %2361 = vmatprep.subr.bf16.mxu0 %v3974_v49  ;;  %991 = vmatprep.mubr.bf16.mxu1 %v783_v28  ;;  %v3518_v28 = vcombine.high %v2416_v10, %v4832_v50  ;;  %v4026_v49 = vld [vmem:[%s5314_s1 + $0x7a0] ss:$8 sps:$4 sm:$0xff]   ;;  %v2165_v10 = vshll.u32 %v4836_v31, 16  ;;  %v4049_v31 = vld [vmem:[%s5314_s1 + $0x3e4] ss:$8 sps:$4 sm:$0xff]  }
  0xca   : > { %2106 = vmatprep.mubr.bf16.mxu0 %v4681_v32  ;;  %v2459_v32 = vrot.slane %v4852_v37, 3  ;;  %v4083_v37 = vld [vmem:[%s5314_s1 + $0x864] ss:$8 sps:$4 sm:$0xff]  }
  0xcb   : > { %1233 = vmatpush1.bf16.msra.mxu1 %v3969_v58  ;;  %v2458_v16 = vrot.slane %v3518_v28, 3  ;;  %v4034_v58 = vld [vmem:[%s5314_s1 + $0x7b4] ss:$8 sps:$4 sm:$0xff]   ;;  %v2173_v28 = vshll.u32 %v4903_v5, 16  ;;  %v2167_v15 = vrot.slane %v2165_v10, 3 }
  0xcc   : > { %2362 = vmatpush1.bf16.msra.mxu0 %v3972_v1  ;;  %1234 = vmatprep.subr.bf16.mxu1 %v3977_v3  ;;  %v4035_v1 = vld [vmem:[%s5314_s1 + $0x3c0] ss:$8 sps:$4 sm:$0xff]  }
  0xcd   : > { %2363 = vmatprep.subr.bf16.mxu0 %v3980_v4  ;;  %v4941_v9 = vsel %vm1059_vm4, %v2458_v16, %v2459_v32  ;;  %v4038_v3 = vld [vmem:[%s5314_s1 + $0x7c0] ss:$8 sps:$4 sm:$0xff]   ;;  %v4043_v4 = vld [vmem:[%s5314_s1 + $0x3d4] ss:$8 sps:$4 sm:$0xff]  }
  0xce   : > { %992 = vmatmul.mubr.bf16.gmra.mrb[4].mxu1 %v780_v22  ;;  %v4007_v22 = vld [vmem:[%s5314_s1 + $0x374] ss:$8 sps:$4 sm:$0xff]   ;;  %v4047_v16 = vld [vmem:[%s5314_s1 + $0x3e0] ss:$8 sps:$4 sm:$0xff]  }
  0xcf   : > { %2107 = vmatmul.mubr.bf16.gmra.mrb[4].mxu0 %v1895_v39  ;;  %1235 = vmatpush1.bf16.msra.mxu1 %v3975_v54  ;;  %v4008_v39 = vld [vmem:[%s5314_s1 + $0x770] ss:$8 sps:$4 sm:$0xff]  }
  0xd0   : > { %2364 = vmatpush1.bf16.msra.mxu0 %v3978_v60  ;;  %1236 = vmatprep.subr.bf16.mxu1 %v3983_v12  ;;  %v4041_v54 = vld [vmem:[%s5314_s1 + $0x3d0] ss:$8 sps:$4 sm:$0xff]   ;;  %v4052_v12 = vld [vmem:[%s5314_s1 + $0x7e4] ss:$8 sps:$4 sm:$0xff]  }
  0xd1   : > { %2365 = vmatprep.subr.bf16.mxu0 %v3986_v13  ;;  %1262 = vmatprep.mubr.bf16.mxu1 %v1065_v17  ;;  %v4044_v60 = vld [vmem:[%s5314_s1 + $0x7d0] ss:$8 sps:$4 sm:$0xff]   ;;  %v2164_v13 = vrot.slane %v2162_v7, 2  ;;  %v4050_v17 = vld [vmem:[%s5314_s1 + $0x7e0] ss:$8 sps:$4 sm:$0xff]  }
  0xd2   : > { %2391 = vmatprep.mubr.bf16.mxu0 %v2194_v18  ;;  %v3183_v18 = vcombine.low %v4832_v50, %v4879_v55  ;;  %v4056_v50 = vld [vmem:[%s5314_s1 + $0x7f0] ss:$8 sps:$4 sm:$0xff]  }
  0xd3   : > { %1237 = vmatpush1.bf16.msra.mxu1 %v3981_v0  ;;  %v2172_v0 = vrot.slane %v2170_v23, 2 }
  0xd4   : > { %2366 = vmatpush1.bf16.msra.mxu0 %v3984_v53  ;;  %1238 = vmatprep.subr.bf16.mxu1 %v3989_v21  ;;  %v2175_v53 = vrot.slane %v2173_v28, 3  ;;  %v4055_v21 = vld [vmem:[%s5314_s1 + $0x3f4] ss:$8 sps:$4 sm:$0xff]   ;;  %v1061_v55 = vrot.slane %v3183_v18, 3 }
  0xd5   : > { %2367 = vmatprep.subr.bf16.mxu0 %v3992_v25  ;;  %v4058_v25 = vld [vmem:[%s5314_s1 + $0x7f4] ss:$8 sps:$4 sm:$0xff]  }
  0xd7   : > { %1239 = vmatpush1.bf16.msra.mxu1 %v3987_v26  ;;  %v4053_v26 = vld [vmem:[%s5314_s1 + $0x3f0] ss:$8 sps:$4 sm:$0xff]  }
  0xd8   : > { %2368 = vmatpush1.bf16.msra.mxu0 %v3990_v27  ;;  %1240 = vmatprep.subr.bf16.mxu1 %v3995_v56  ;;  %v1060_v27 = vrot.slane %v4370_v14, 3  ;;  %v2168_v56 = vor.u32 %v2167_v15, %v2164_v13  ;;  %v4068_v14 = vld [vmem:[%s5314_s1 + $0x814] ss:$8 sps:$4 sm:$0xff]  }
  0xd9   : > { %2369 = vmatprep.subr.bf16.mxu0 %v3998_v29  ;;  %v2176_v29 = vor.u32 %v2175_v53, %v2172_v0 }
  0xdb   : > { %1241 = vmatpush1.bf16.msra.mxu1 %v3993_v30  ;;  %v4065_v30 = vld [vmem:[%s5314_s1 + $0x804] ss:$8 sps:$4 sm:$0xff]  }
  0xdc   : > { %2370 = vmatpush1.bf16.msra.mxu0 %v3996_v33  ;;  %1242 = vmatprep.subr.bf16.mxu1 %v4001_v34  ;;  %v1062_v33 = vsel %vm1059_vm4, %v1060_v27, %v1061_v55  ;;  %v2177_v34 = vsel %vm2160_vm5, %v2168_v56, %v2176_v29 }
  0xdd   : > { %2371 = vmatprep.subr.bf16.mxu0 %v4004_v35  ;;  %v4063_v35 = vld [vmem:[%s5314_s1 + $0x800] ss:$8 sps:$4 sm:$0xff]  }
  0xdf   : > { %1243 = vmatpush1.bf16.msra.mxu1 %v3999_v19  ;;  %v4066_v19 = vld [vmem:[%s5314_s1 + $0x810] ss:$8 sps:$4 sm:$0xff]  }
  0xe0   : > { %2372 = vmatpush1.bf16.msra.mxu0 %v4002_v36  ;;  %1244 = vmatprep.subr.bf16.mxu1 %v4007_v22  ;;  %v4071_v36 = vld [vmem:[%s5314_s1 + $0x824] ss:$8 sps:$4 sm:$0xff]   ;;  %v4069_v22 = vld [vmem:[%s5314_s1 + $0x820] ss:$8 sps:$4 sm:$0xff]  }
  0xe1   : > { %2373 = vmatprep.subr.bf16.mxu0 %v4010_v24  ;;  %v4074_v24 = vld [vmem:[%s5314_s1 + $0x834] ss:$8 sps:$4 sm:$0xff]  }
  0xe3   : > { %1245 = vmatpush1.bf16.msra.mxu1 %v4005_v38  ;;  %v4075_v38 = vld [vmem:[%s5314_s1 + $0x840] ss:$8 sps:$4 sm:$0xff]  }
  0xe4   : > { %2374 = vmatpush1.bf16.msra.mxu0 %v4008_v39  ;;  %1246 = vmatprep.subr.bf16.mxu1 %v4013_v40  ;;  %v4080_v39 = vld [vmem:[%s5314_s1 + $0x854] ss:$8 sps:$4 sm:$0xff]  }
  0xe5   : > { %2375 = vmatprep.subr.bf16.mxu0 %v4016_v41  ;;  %v4086_v40 = vld [vmem:[%s5314_s1 + $0x874] ss:$8 sps:$4 sm:$0xff]   ;;  %v4084_v41 = vld [vmem:[%s5314_s1 + $0x870] ss:$8 sps:$4 sm:$0xff]  }
  0xe7   : > { %1247 = vmatpush1.bf16.msra.mxu1 %v4011_v42  ;;  %v4089_v42 = vld [vmem:[%s5314_s1 + $0x884] ss:$8 sps:$4 sm:$0xff]  }
  0xe8   : > { %2376 = vmatpush1.bf16.msra.mxu0 %v4014_v43  ;;  %1248 = vmatprep.subr.bf16.mxu1 %v4019_v44  ;;  %v4087_v43 = vld [vmem:[%s5314_s1 + $0x880] ss:$8 sps:$4 sm:$0xff]   ;;  %v4092_v44 = vld [vmem:[%s5314_s1 + $0x894] ss:$8 sps:$4 sm:$0xff]  }
  0xe9   : > { %2377 = vmatprep.subr.bf16.mxu0 %v4022_v45  ;;  %v4090_v45 = vld [vmem:[%s5314_s1 + $0x890] ss:$8 sps:$4 sm:$0xff]  }
  0xeb   : > { %1249 = vmatpush1.bf16.msra.mxu1 %v4017_v46  ;;  %v4095_v46 = vld [vmem:[%s5314_s1 + $0x8a4] ss:$8 sps:$4 sm:$0xff]  }
  0xec   : > { %2378 = vmatpush1.bf16.msra.mxu0 %v4020_v47  ;;  %1250 = vmatprep.subr.bf16.mxu1 %v4025_v48  ;;  %v4093_v47 = vld [vmem:[%s5314_s1 + $0x8a0] ss:$8 sps:$4 sm:$0xff]   ;;  %v4098_v48 = vld [vmem:[%s5314_s1 + $0x8b4] ss:$8 sps:$4 sm:$0xff]  }
  0xed   : > { %2379 = vmatprep.subr.bf16.mxu0 %v4028_v51  ;;  %v4096_v51 = vld [vmem:[%s5314_s1 + $0x8b0] ss:$8 sps:$4 sm:$0xff]  }
  0xef   : > { %1251 = vmatpush1.bf16.msra.mxu1 %v4023_v52  ;;  %v4101_v52 = vld [vmem:[%s5314_s1 + $0x8c4] ss:$8 sps:$4 sm:$0xff]  }
  0xf0   : > { %2380 = vmatpush1.bf16.msra.mxu0 %v4026_v49  ;;  %1252 = vmatprep.subr.bf16.mxu1 %v4031_v57  ;;  %v4099_v49 = vld [vmem:[%s5314_s1 + $0x8c0] ss:$8 sps:$4 sm:$0xff]   ;;  %v4104_v57 = vld [vmem:[%s5314_s1 + $0x8d4] ss:$8 sps:$4 sm:$0xff]  }
  0xf1   : > { %2381 = vmatprep.subr.bf16.mxu0 %v4034_v58  ;;  %v4102_v58 = vld [vmem:[%s5314_s1 + $0x8d0] ss:$8 sps:$4 sm:$0xff]  }
  0xf3   : > { %1253 = vmatpush1.bf16.msra.mxu1 %v4029_v59  ;;  %v4107_v59 = vld [vmem:[%s5314_s1 + $0x8e4] ss:$8 sps:$4 sm:$0xff]  }
  0xf4   : > { %2382 = vmatpush1.bf16.msra.mxu0 %v4032_v61  ;;  %1254 = vmatprep.subr.bf16.mxu1 %v4037_v62  ;;  %v4105_v61 = vld [vmem:[%s5314_s1 + $0x8e0] ss:$8 sps:$4 sm:$0xff]   ;;  %v4110_v62 = vld [vmem:[%s5314_s1 + $0x8f4] ss:$8 sps:$4 sm:$0xff]  }
  0xf5   : > { %2383 = vmatprep.subr.bf16.mxu0 %v4040_v63  ;;  %v4108_v63 = vld [vmem:[%s5314_s1 + $0x8f0] ss:$8 sps:$4 sm:$0xff]  }
  0xf7   : > { %1255 = vmatpush1.bf16.msra.mxu1 %v4035_v1 }
  0xf8   : > { %2384 = vmatpush1.bf16.msra.mxu0 %v4038_v3  ;;  %1256 = vmatprep.subr.bf16.mxu1 %v4043_v4 }
  0xf9   : > { %2385 = vmatprep.subr.bf16.mxu0 %v4046_v2 }
  0xfb   : > { %1257 = vmatpush1.bf16.msra.mxu1 %v4041_v54 }
  0xfc   : > { %2386 = vmatpush1.bf16.msra.mxu0 %v4044_v60  ;;  %1258 = vmatprep.subr.bf16.mxu1 %v4049_v31 }
  0xfd   : > { %2387 = vmatprep.subr.bf16.mxu0 %v4052_v12 }
  0xff   : > { %1259 = vmatpush1.bf16.msra.mxu1 %v4047_v16 }
 0x100   : > { %2388 = vmatpush1.bf16.msra.mxu0 %v4050_v17  ;;  %1260 = vmatprep.subr.bf16.mxu1 %v4055_v21 }
 0x101   : > { %2389 = vmatprep.subr.bf16.mxu0 %v4058_v25 }
 0x103   : > { %1261 = vmatpush1.bf16.msra.mxu1 %v4053_v26 }
 0x104   : > { %2390 = vmatpush1.bf16.msra.mxu0 %v4056_v50  ;;  %3553 = vmatprep.subr.bf16.mxu1 %v4065_v30 }
 0x105   : > { %2625 = vmatprep.subr.bf16.mxu0 %v4065_v30 }
 0x106   : > { %1263 = vmatmul.mubr.bf16.vlgmr.msra.gmra.mrb[0].mxu1 %v1062_v33 }
 0x107   : > { %2392 = vmatmul.mubr.bf16.vlgmr.msra.gmra.mrb[0].mxu0 %v2177_v34  ;;  %3569 = vmatpush1.bf16.msra.mxu1 %v4063_v35 }
 0x108   : > { %2626 = vmatpush1.bf16.msra.mxu0 %v4063_v35  ;;  %3554 = vmatprep.subr.bf16.mxu1 %v4068_v14 }
 0x109   : > { %2627 = vmatprep.subr.bf16.mxu0 %v4068_v14  ;;  %1272 = vmatprep.mubr.bf16.mxu1 %v4905_v6  ;;  %v4072_v6 = vld [vmem:[%s5314_s1 + $0x830] ss:$8 sps:$4 sm:$0xff]  }
 0x10a   : > { %2401 = vmatprep.mubr.bf16.mxu0 %v4907_v8  ;;  %v4077_v8 = vld [vmem:[%s5314_s1 + $0x844] ss:$8 sps:$4 sm:$0xff]  }
 0x10b   : > { %3570 = vmatpush1.bf16.msra.mxu1 %v4066_v19 }
 0x10c   : > { %2628 = vmatpush1.bf16.msra.mxu0 %v4066_v19  ;;  %3555 = vmatprep.subr.bf16.mxu1 %v4071_v36 }
 0x10d   : > { %2629 = vmatprep.subr.bf16.mxu0 %v4071_v36 }
 0x10e   : > { %1273 = vmatmul.mubr.bf16.gmra.mrb[4].mxu1 %v1061_v55 }
 0x10f   : > { %2402 = vmatmul.mubr.bf16.gmra.mrb[4].mxu0 %v2176_v29  ;;  %3571 = vmatpush1.bf16.msra.mxu1 %v4069_v22 }
 0x110   : > { %2630 = vmatpush1.bf16.msra.mxu0 %v4069_v22  ;;  %3556 = vmatprep.subr.bf16.mxu1 %v4074_v24 }
 0x111   : > { %2631 = vmatprep.subr.bf16.mxu0 %v4074_v24  ;;  %2657 = vmatprep.mubr.bf16.mxu0 %v4941_v9  ;;  %v4078_v9 = vld [vmem:[%s5314_s1 + $0x850] ss:$8 sps:$4 sm:$0xff]  }
 0x112   : > { %2667 = vmatprep.mubr.bf16.mxu1 %v2459_v32  ;;  %v4081_v32 = vld [vmem:[%s5314_s1 + $0x860] ss:$8 sps:$4 sm:$0xff]  }
 0x113   : > { %3572 = vmatpush1.bf16.msra.mxu1 %v4072_v6 }
 0x114   : > { %2632 = vmatpush1.bf16.msra.mxu0 %v4072_v6  ;;  %3557 = vmatprep.subr.bf16.mxu1 %v4077_v8 }
 0x115   : > { %2633 = vmatprep.subr.bf16.mxu0 %v4077_v8 }
 0x117   : > { %3573 = vmatpush1.bf16.msra.mxu1 %v4075_v38 }
 0x118   : > { %2634 = vmatpush1.bf16.msra.mxu0 %v4075_v38  ;;  %3558 = vmatprep.subr.bf16.mxu1 %v4080_v39 }
 0x119   : > { %2635 = vmatprep.subr.bf16.mxu0 %v4080_v39 }
 0x11b   : > { %3574 = vmatpush1.bf16.msra.mxu1 %v4078_v9 }
 0x11c   : > { %2636 = vmatpush1.bf16.msra.mxu0 %v4078_v9  ;;  %3559 = vmatprep.subr.bf16.mxu1 %v4083_v37 }
 0x11d   : > { %2637 = vmatprep.subr.bf16.mxu0 %v4083_v37 }
 0x11f   : > { %3575 = vmatpush1.bf16.msra.mxu1 %v4081_v32 }
 0x120   : > { %2638 = vmatpush1.bf16.msra.mxu0 %v4081_v32  ;;  %3560 = vmatprep.subr.bf16.mxu1 %v4086_v40 }
 0x121   : > { %2639 = vmatprep.subr.bf16.mxu0 %v4086_v40 }
 0x123   : > { %3576 = vmatpush1.bf16.msra.mxu1 %v4084_v41 }
 0x124   : > { %2640 = vmatpush1.bf16.msra.mxu0 %v4084_v41  ;;  %3561 = vmatprep.subr.bf16.mxu1 %v4089_v42 }
 0x125   : > { %2641 = vmatprep.subr.bf16.mxu0 %v4089_v42 }
 0x127   : > { %3577 = vmatpush1.bf16.msra.mxu1 %v4087_v43 }
 0x128   : > { %2642 = vmatpush1.bf16.msra.mxu0 %v4087_v43  ;;  %3562 = vmatprep.subr.bf16.mxu1 %v4092_v44 }
 0x129   : > { %2643 = vmatprep.subr.bf16.mxu0 %v4092_v44 }
 0x12b   : > { %3578 = vmatpush1.bf16.msra.mxu1 %v4090_v45 }
 0x12c   : > { %2644 = vmatpush1.bf16.msra.mxu0 %v4090_v45  ;;  %3563 = vmatprep.subr.bf16.mxu1 %v4095_v46 }
 0x12d   : > { %2645 = vmatprep.subr.bf16.mxu0 %v4095_v46 }
 0x12f   : > { %3579 = vmatpush1.bf16.msra.mxu1 %v4093_v47 }
 0x130   : > { %2646 = vmatpush1.bf16.msra.mxu0 %v4093_v47  ;;  %3564 = vmatprep.subr.bf16.mxu1 %v4098_v48 }
 0x131   : > { %2647 = vmatprep.subr.bf16.mxu0 %v4098_v48 }
 0x133   : > { %3580 = vmatpush1.bf16.msra.mxu1 %v4096_v51 }
 0x134   : > { %2648 = vmatpush1.bf16.msra.mxu0 %v4096_v51  ;;  %3565 = vmatprep.subr.bf16.mxu1 %v4101_v52 }
 0x135   : > { %2649 = vmatprep.subr.bf16.mxu0 %v4101_v52 }
 0x137   : > { %3581 = vmatpush1.bf16.msra.mxu1 %v4099_v49 }
 0x138   : > { %2650 = vmatpush1.bf16.msra.mxu0 %v4099_v49  ;;  %3566 = vmatprep.subr.bf16.mxu1 %v4104_v57 }
 0x139   : > { %2651 = vmatprep.subr.bf16.mxu0 %v4104_v57 }
 0x13b   : > { %3582 = vmatpush1.bf16.msra.mxu1 %v4102_v58 }
 0x13c   : > { %2652 = vmatpush1.bf16.msra.mxu0 %v4102_v58  ;;  %3567 = vmatprep.subr.bf16.mxu1 %v4107_v59 }
 0x13d   : > { %2653 = vmatprep.subr.bf16.mxu0 %v4107_v59 }
 0x13f   : > { %3583 = vmatpush1.bf16.msra.mxu1 %v4105_v61 }
 0x140   : > { %2654 = vmatpush1.bf16.msra.mxu0 %v4105_v61  ;;  %3568 = vmatprep.subr.bf16.mxu1 %v4110_v62 }
 0x141   : > { %2655 = vmatprep.subr.bf16.mxu0 %v4110_v62 }
 0x143   : > { %3584 = vmatpush1.bf16.msra.mxu1 %v4108_v63 }
 0x144   : > { %2656 = vmatpush1.bf16.msra.mxu0 %v4108_v63 }
 0x146   : > { %2668 = vmatmul.mubr.bf16.vlgmr.msra.gmra.mrb[8].mxu1 %v2456_v11 }
 0x147   : > { %2658 = vmatmul.mubr.bf16.vlgmr.msra.gmra.mrb[0].mxu0 %v4946_v20 }
 0x1d9   : > { %v1264_v1 = vpop.f32.mrb[0].mxu1 }
 0x1da   : > { %v1266_v3 = vpop.f32.mrb[1].mxu1 }
 0x1db   : > { %v5205_v4 = vpop.f32.mrb[2].mxu1 }
 0x1dc   : > { %v5207_v2 = vpop.f32.mrb[3].mxu1 }
 0x1e1   : > { %v1274_v7 = vpop.f32.mrb[4].mxu1 }
 0x1e2   : > { %v2403_v10 = vpop.f32.mrb[4].mxu0  ;;  %v1276_v60 = vpop.f32.mrb[5].mxu1 }
 0x1e3   : > { %v3589_v54 = vadd.f32 %v2403_v10, %v1274_v7  ;;  %v2405_v23 = vpop.f32.mrb[5].mxu0  ;;  %v1278_v31 = vpop.f32.mrb[6].mxu1 }
 0x1e4   : > { %v3591_v28 = vadd.f32 %v2405_v23, %v1276_v60  ;;  %v2407_v12 = vpop.f32.mrb[6].mxu0  ;;  %v1279_v13 = vpop.f32.mrb[7].mxu1 }
 0x1e5   : > { %v2408_v15 = vpop.f32.mrb[7].mxu0 }
 0x219   : > { %v2669_v5 = vpop.f32.mrb[8].mxu1 }
 0x21a   : > { %v2659_v20 = vpop.f32.mrb[0].mxu0  ;;  %v5211_v16 = vadd.f32 %v3589_v54, %v2669_v5  ;;  %v2671_v18 = vpop.f32.mrb[9].mxu1 }
 0x21b   : > { %v5209_v11 = vadd.f32 %v2659_v20, %v1264_v1  ;;  %v2661_v17 = vpop.f32.mrb[1].mxu0  ;;  %v5215_v53 = vadd.f32 %v3591_v28, %v2671_v18  ;;  %v2673_v25 = vpop.f32.mrb[10].mxu1 }
 0x21c   : > { %v5213_v0 = vadd.f32 %v2661_v17, %v1266_v3  ;;  %v2663_v21 = vpop.f32.mrb[2].mxu0  ;;  %v2818_v55 = vrot.slane %v5211_v16, 2  ;;  %v2674_v56 = vpop.f32.mrb[11].mxu1  ;;  %v2838_v30 = vmul.f32 %v5211_v16, %v5211_v16 }
 0x21d   : > { %v2683_v26 = vsel %vm2682_vm6, %v5209_v11, 0.0  ;;  %v5221_v50 = vmul.f32 %v5209_v11, %v5209_v11  ;;  %v2665_v27 = vpop.f32.mrb[3].mxu0  ;;  %v2819_v43 = vrot.slane %v5215_v53, 2  ;;  %v2839_v47 = vmul.f32 %v5215_v53, %v5215_v53 }
 0x21e   : > { %v2684_v29 = vrot.slane %v2683_v26, 4  ;;  %v2690_v33 = vsel %vm2682_vm6, %v5213_v0, 0.0  ;;  %v5230_v34 = vmul.f32 %v5213_v0, %v5213_v0  ;;  %v2822_v14 = vsel %vm2682_vm6, %v2818_v55, 0.0 }
 0x21f   : > { %v2701_v35 = vsel %vm2682_vm6, %v5221_v50, 0.0  ;;  %v2691_v19 = vrot.slane %v2690_v33, 4  ;;  %v2823_v24 = vrot.slane %v2822_v14, 4  ;;  %v2842_v6 = vrot.slane %v2838_v30, 2 }
 0x220   : > { %v2685_v36 = vadd.f32 %v2684_v29, %v2683_v26  ;;  %v2702_v22 = vrot.slane %v2701_v35, 4  ;;  %v2708_v38 = vsel %vm2682_vm6, %v5230_v34, 0.0  ;;  %v2829_v49 = vsel %vm2682_vm6, %v2819_v43, 0.0 }
 0x221   : > { %v2692_v8 = vadd.f32 %v2691_v19, %v2690_v33  ;;  %v2824_v37 = vadd.f32 %v2823_v24, %v2822_v14  ;;  %v2846_v32 = vsel %vm2682_vm6, %v2842_v6, 0.0  ;;  %v2709_v42 = vrot.slane %v2708_v38, 4 }
 0x222   : > { %v2686_v39 = vrot.slane %v2685_v36, 2  ;;  %v2703_v9 = vadd.f32 %v2702_v22, %v2701_v35  ;;  %v2847_v40 = vrot.slane %v2846_v32, 4  ;;  %v2830_v59 = vrot.slane %v2829_v49, 4 }
 0x223   : > { %v2693_v41 = vrot.slane %v2692_v8, 2  ;;  %v2825_v46 = vrot.slane %v2824_v37, 2  ;;  %v2710_v52 = vadd.f32 %v2709_v42, %v2708_v38  ;;  %v2843_v3 = vrot.slane %v2839_v47, 2 }
 0x224   : > { %v2687_v44 = vadd.f32 %v2686_v39, %v2685_v36  ;;  %v2704_v45 = vrot.slane %v2703_v9, 2  ;;  %v2848_v48 = vadd.f32 %v2847_v40, %v2846_v32  ;;  %v2722_v10 = vrot.slane %v5209_v11, 6 }
 0x225   : > { %v2694_v51 = vadd.f32 %v2693_v41, %v2692_v8  ;;  %v2826_v58 = vadd.f32 %v2825_v46, %v2824_v37  ;;  %v2711_v1 = vrot.slane %v2710_v52, 2  ;;  %v2752_v54 = vrot.slane %v5221_v50, 6 }
 0x226   : > { %v2705_v57 = vadd.f32 %v2704_v45, %v2703_v9  ;;  %v2688_v61 = vrot.slane %v2687_v44, 1  ;;  %v2849_v62 = vrot.slane %v2848_v48, 2  ;;  %v2725_v23 = vrot.slane %v5213_v0, 6 }
 0x227   : > { %v2695_v63 = vrot.slane %v2694_v51, 1  ;;  %v2827_v60 = vrot.slane %v2826_v58, 1  ;;  %v5245_v28 = vadd.f32 %v2830_v59, %v2829_v49  ;;  %v5248_v31 = vadd.f32 %v2663_v21, %v5205_v4 }
 0x228   : > { %v2706_v7 = vrot.slane %v2705_v57, 1  ;;  %v5251_v12 = vadd.f32 %v2665_v27, %v5207_v2  ;;  %v5253_v13 = vadd.f32 %v2688_v61, %v2687_v44  ;;  %v5255_v15 = vadd.f32 %v2849_v62, %v2848_v48 }
 0x229   : > { %v5257_v20 = vadd.f32 %v2695_v63, %v2694_v51  ;;  %v2755_v5 = vrot.slane %v5230_v34, 6  ;;  %v5260_v17 = vadd.f32 %v2711_v1, %v2710_v52  ;;  %v2853_v18 = vsel %vm2682_vm6, %v2843_v3, 0.0 }
 0x22a   : > { %v2723_v25 = vrot.slane %v5248_v31, 6  ;;  %v2746_v4 = vmul.f32 %v5248_v31, %v5248_v31  ;;  %v5266_v21 = vadd.f32 %v2706_v7, %v2705_v57  ;;  %v5268_v2 = vadd.f32 %v2827_v60, %v2826_v58 }
 0x22b   : > { %v2776_v26 = vrot.slane %v5248_v31, 4  ;;  %v2726_v50 = vrot.slane %v5251_v12, 6  ;;  %v2832_v55 = vrot.slane %v5245_v28, 2  ;;  %v2854_v30 = vrot.slane %v2853_v18, 4 }
 0x22c   : > { %v2724_v27 = vsel %vm2721_vm7, %v2722_v10, %v2723_v25  ;;  %v2753_v56 = vrot.slane %v2746_v4, 6  ;;  %v2796_v29 = vrot.slane %v2746_v4, 4  ;;  %v2747_v35 = vmul.f32 %v5251_v12, %v5251_v12 }
 0x22d   : > { %v2730_v33 = vsel %vm2682_vm6, %v2724_v27, 0.0  ;;  %v2780_v34 = vsel %vm2682_vm6, %v2776_v26, 0.0  ;;  %v2851_v24 = vrot.slane %v5255_v15, 1  ;;  %v2727_v38 = vsel %vm2721_vm7, %v2725_v23, %v2726_v50 }
 0x22e   : > { %v2731_v14 = vrot.slane %v2730_v33, 4  ;;  %v2754_v19 = vsel %vm2721_vm7, %v2752_v54, %v2753_v56  ;;  %v2781_v36 = vrot.slane %v2780_v34, 4  ;;  %v2800_v22 = vsel %vm2682_vm6, %v2796_v29, 0.0 }
 0x22f   : > { %v2760_v6 = vsel %vm2682_vm6, %v2754_v19, 0.0  ;;  %v2801_v8 = vrot.slane %v2800_v22, 4  ;;  %v2737_v32 = vsel %vm2682_vm6, %v2727_v38, 0.0  ;;  %v2855_v40 = vadd.f32 %v2854_v30, %v2853_v18 }
 0x230   : > { %v2732_v39 = vadd.f32 %v2731_v14, %v2730_v33  ;;  %v2761_v9 = vrot.slane %v2760_v6, 4  ;;  %v2782_v37 = vadd.f32 %v2781_v36, %v2780_v34  ;;  %v2738_v42 = vrot.slane %v2737_v32, 4 }
 0x231   : > { %v2802_v41 = vadd.f32 %v2801_v8, %v2800_v22  ;;  %v2756_v43 = vrot.slane %v2747_v35, 6  ;;  %v2777_v47 = vrot.slane %v5251_v12, 4  ;;  %v2797_v49 = vrot.slane %v2747_v35, 4 }
 0x232   : > { %v2733_v44 = vrot.slane %v2732_v39, 2  ;;  %v2762_v45 = vadd.f32 %v2761_v9, %v2760_v6  ;;  %v2783_v46 = vrot.slane %v2782_v37, 2  ;;  %v2739_v51 = vadd.f32 %v2738_v42, %v2737_v32 }
 0x233   : > { %v2803_v48 = vrot.slane %v2802_v41, 2  ;;  %v2757_v52 = vsel %vm2721_vm7, %v2755_v5, %v2756_v43  ;;  %v2787_v3 = vsel %vm2682_vm6, %v2777_v47, 0.0  ;;  %v2713_v23 = vrot.slane %v5260_v17, 1 }
 0x234   : > { %v2734_v57 = vadd.f32 %v2733_v44, %v2732_v39  ;;  %v2763_v58 = vrot.slane %v2762_v45, 2  ;;  %v2784_v59 = vadd.f32 %v2783_v46, %v2782_v37  ;;  %v2767_v61 = vsel %vm2682_vm6, %v2757_v52, 0.0 }
 0x235   : > { %v2804_v62 = vadd.f32 %v2803_v48, %v2802_v41  ;;  %v2740_v63 = vrot.slane %v2739_v51, 2  ;;  %v2768_v1 = vrot.slane %v2767_v61, 4  ;;  %v2788_v60 = vrot.slane %v2787_v3, 4 }
 0x236   : > { %v2735_v7 = vrot.slane %v2734_v57, 1  ;;  %v2764_v10 = vadd.f32 %v2763_v58, %v2762_v45  ;;  %v2785_v54 = vrot.slane %v2784_v59, 1  ;;  %v2807_v5 = vsel %vm2682_vm6, %v2797_v49, 0.0 }
 0x237   : > { %v2741_v18 = vadd.f32 %v2740_v63, %v2739_v51  ;;  %v2769_v25 = vadd.f32 %v2768_v1, %v2767_v61  ;;  %v2805_v50 = vrot.slane %v2804_v62, 1  ;;  %v2789_v27 = vadd.f32 %v2788_v60, %v2787_v3 }
 0x238   : > { %v2736_v4 = vadd.f32 %v2735_v7, %v2734_v57  ;;  %v2765_v26 = vrot.slane %v2764_v10, 1  ;;  %v2856_v56 = vrot.slane %v2855_v40, 2  ;;  %v2808_v33 = vrot.slane %v2807_v5, 4 }
 0x239   : > { %v2742_v29 = vrot.slane %v2741_v18, 1  ;;  %v2770_v30 = vrot.slane %v2769_v25, 2  ;;  %v2786_v14 = vadd.f32 %v2785_v54, %v2784_v59  ;;  %v2790_v19 = vrot.slane %v2789_v27, 2 }
 0x23a   : > { %v2744_v34 = vadd.f32 %v2736_v4, %v5253_v13  ;;  %v2766_v35 = vadd.f32 %v2765_v26, %v2764_v10  ;;  %v2833_v36 = vadd.f32 %v2832_v55, %v5245_v28  ;;  %v2809_v8 = vadd.f32 %v2808_v33, %v2807_v5 }
 0x23b   : > { %v2743_v22 = vadd.f32 %v2742_v29, %v2741_v18  ;;  %v2771_v6 = vadd.f32 %v2770_v30, %v2769_v25  ;;  %v2806_v9 = vadd.f32 %v2805_v50, %v2804_v62  ;;  %v2791_v37 = vadd.f32 %v2790_v19, %v2789_v27  ;;  %v2888_v50 = vld [vmem:[%s185_s8] sm:$0xff]  ;;  %v2890_v27 = vld [vmem:[%s185_s8 + $0x10] sm:$0xff]  ;;  %v2893_v19 = vld [vmem:[%s185_s8 + $0x28] sm:$0x3f] }
 0x23c   : > { %v2774_v38 = vadd.f32 %v2766_v35, %v5266_v21  ;;  %v2794_v39 = vadd.f32 %v2786_v14, %v2744_v34  ;;  %v2857_v32 = vadd.f32 %v2856_v56, %v2855_v40  ;;  %v2810_v43 = vrot.slane %v2809_v8, 2  ;;  %v2892_v56 = vld [vmem:[%s185_s8 + $0x20] sm:$0x3f]  ;;  %v2889_v35 = vld [vmem:[%s185_s8 + $0x8] sm:$0xff]  ;;  %v2891_v14 = vld [vmem:[%s185_s8 + $0x18] sm:$0xff] }
 0x23d   : > { %v2745_v41 = vadd.f32 %v2743_v22, %v5257_v20  ;;  %v2772_v42 = vrot.slane %v2771_v6, 1  ;;  %v2852_v13 = vadd.f32 %v2851_v24, %v5255_v15  ;;  %v2792_v46 = vrot.slane %v2791_v37, 1 }
 0x23e   : > { %v2814_v44 = vadd.f32 %v2806_v9, %v2774_v38  ;;  %v2836_v45 = vadd.f32 %v5268_v2, %v2794_v39  ;;  %v2714_v28 = vadd.f32 %v2713_v23, %v5260_v17  ;;  %v2834_v55 = vrot.slane %v2833_v36, 1 }
 0x23f   : > { %v2773_v47 = vadd.f32 %v2772_v42, %v2771_v6  ;;  %v2811_v48 = vadd.f32 %v2810_v43, %v2809_v8  ;;  %v2858_v52 = vrot.slane %v2857_v32, 1  ;;  %v2793_v40 = vadd.f32 %v2792_v46, %v2791_v37 }
 0x240   : > { %v2860_v21 = vadd.f32 %v2852_v13, %v2814_v44  ;;  %v2862_v51 = vmul.f32 0.0625, %v2836_v45  ;;  %v2835_v24 = vadd.f32 %v2834_v55, %v2833_v36 }
 0x241   : > { %v2775_v49 = vadd.f32 %v2773_v47, %v2714_v28  ;;  %v2812_v57 = vrot.slane %v2811_v48, 1  ;;  %v2795_v61 = vadd.f32 %v2793_v40, %v2745_v41  ;;  %v2859_v63 = vadd.f32 %v2858_v52, %v2857_v32 }
 0x242   : > { %v2864_v20 = vmul.f32 0.0625, %v2860_v21  ;;  %v2866_v58 = vmul.f32 %v2862_v51, %v2862_v51  ;;  %v2872_v59 = vsub.f32 %v5209_v11, %v2862_v51  ;;  %v2874_v15 = vsub.f32 %v5248_v31, %v2862_v51 }
 0x243   : > { %v2876_v2 = vsub.f32 %v5211_v16, %v2862_v51  ;;  %v2813_v17 = vadd.f32 %v2812_v57, %v2811_v48  ;;  %v2837_v3 = vadd.f32 %v2835_v24, %v2795_v61 }
 0x244   : > { %v2868_v62 = vsub.f32 %v2864_v20, %v2866_v58 }
 0x245   : > { %v2815_v1 = vadd.f32 %v2813_v17, %v2775_v49  ;;  %v2863_v54 = vmul.f32 0.0625, %v2837_v3 }
 0x246   : > { %v2870_v7 = vmax.f32 %v2868_v62, 0.0 }
 0x247   : > { %v2861_v10 = vadd.f32 %v2859_v63, %v2815_v1  ;;  %v2867_v18 = vmul.f32 %v2863_v54, %v2863_v54  ;;  %v2873_v11 = vsub.f32 %v5213_v0, %v2863_v54  ;;  %v2875_v31 = vsub.f32 %v5251_v12, %v2863_v54 }
 0x248   : > { %v2878_v60 = vadd.f32 1e-05, %v2870_v7  ;;  %v2877_v16 = vsub.f32 %v5215_v53, %v2863_v54 }
 0x249   : > { %v2865_v23 = vmul.f32 0.0625, %v2861_v10 }
 0x24a   : > { %4113 = vrsqrt.f32 %v2878_v60 }
 0x24b   : > { %v2869_v25 = vsub.f32 %v2865_v23, %v2867_v18 }
 0x24d   : > { %v2871_v5 = vmax.f32 %v2869_v25, 0.0 }
 0x24f   : > { %v2879_v4 = vadd.f32 1e-05, %v2871_v5 }
 0x251   : > { %4115 = vrsqrt.f32 %v2879_v4 }
 0x254   : > { %v4114_v26 = vpop.eup %4113 }
 0x255   : > { %v2882_v29 = vmul.f32 %v4114_v26, %v2872_v59  ;;  %v2884_v0 = vmul.f32 %v4114_v26, %v2874_v15  ;;  %v2886_v30 = vmul.f32 %v4114_v26, %v2876_v2 }
 0x257   : > { %v2894_v53 = vadd.f32 %v2888_v50, %v2882_v29  ;;  %v2896_v12 = vadd.f32 %v2890_v27, %v2884_v0  ;;  %v2898_v33 = vadd.f32 %v2892_v56, %v2886_v30 }
 0x259   : > { %2900 = vst [vmem:[%s190_s11] sm:$0xff] %v2894_v53  ;;  %2902 = vst [vmem:[%s190_s11 + $0x10] sm:$0xff] %v2896_v12 }
 0x25a   : > { %2904 = vst [vmem:[%s190_s11 + $0x20] sm:$0x3f] %v2898_v33 }
 0x25b   : > { %v4116_v34 = vpop.eup %4115 }
 0x25c   : > { %v2883_v36 = vmul.f32 %v4116_v34, %v2873_v11  ;;  %v2885_v22 = vmul.f32 %v4116_v34, %v2875_v31  ;;  %v2887_v6 = vmul.f32 %v4116_v34, %v2877_v16 }
 0x25e   : > { %v2895_v8 = vadd.f32 %v2889_v35, %v2883_v36  ;;  %v2897_v38 = vadd.f32 %v2891_v14, %v2885_v22  ;;  %v2899_v39 = vadd.f32 %v2893_v19, %v2887_v6 }
 0x260   : > { %2901 = vst [vmem:[%s190_s11 + $0x8] sm:$0xff] %v2895_v8  ;;  %2903 = vst [vmem:[%s190_s11 + $0x18] sm:$0xff] %v2897_v38 }
 0x261   : > { %2905 = vst [vmem:[%s190_s11 + $0x28] sm:$0x3f] %v2899_v39 }
 0x262 PF: > { %s13_s12 = sadd.s32 1, %s4125_s12  }
 0x263   : > { %p10_p4 = scmp.ge.s32.totalorder %s13_s12, 4  }
 0x265   :  { %12 = sbr.rel (!%p10_p4) target bundleno = 1 (0x1), region = 73 }

</bundles_post_ra>
